<compile_context>
chip_gen: v6e
topology: v6e:2x2x1
jax: 0.10.0
libtpu: 0.0.40
codegen_flags: <defaults>
</compile_context>

<pallas_src>
import functools
import math

import jax
import jax.numpy as jnp
from jax.experimental import pallas as pl
from jax.experimental.pallas import tpu as pltpu


# ----------------------------------------------------------------------------
# Helpers
# ----------------------------------------------------------------------------
def _gelu_tanh(v):
    # TODO(synk): torch.nn.GELU defaults to the exact-erf form; we use the tanh
    # approximation (single EUP tanh, |rel err| ~1e-3) as recommended for TPU.
    return 0.5 * v * (1.0 + jnp.tanh(0.7978845608028654 * (v + 0.044715 * v * v * v)))


def _rep_spec(arr):
    """BlockSpec for a small array fully replicated across the batch grid."""
    n = arr.ndim
    return pl.BlockSpec(arr.shape, lambda b, _n=n: (0,) * _n)


def _im2col(x_nchw, tk):
    """(B, Cin, H, W) -> (B, Wp, H*Tk*Cin), index order (h, kw, cin).

    Built from Tk static slices + stack (no XLA gather)."""
    B, Cin, H, W = x_nchw.shape
    wp = W - tk + 1
    x_hwc = jnp.transpose(x_nchw, (0, 2, 3, 1))                       # (B, H, W, Cin)
    cols = jnp.stack([x_hwc[:, :, k:k + wp, :] for k in range(tk)], axis=3)
    cols = jnp.transpose(cols, (0, 2, 1, 3, 4))                       # (B, Wp, H, Tk, Cin)
    return cols.reshape(B, wp, H * tk * Cin)


def _pick_batch_block(B, cap=8):
    """Largest divisor of B that is <= cap and keeps >=2 grid steps (v7x TCs)."""
    best = 1
    for bt in range(1, min(cap, B) + 1):
        if B % bt == 0 and B // bt >= 2:
            best = bt
    return best


# ----------------------------------------------------------------------------
# Fused EEGEncoder kernel: Bt batch elements per grid step.
# ----------------------------------------------------------------------------
def _eeg_kernel(xcol_ref, weff_ref, we_ref, sb_ref,
                ln_ref, wqkv_ref, wo_ref, w1_ref, w2_ref, lb_ref,
                o_ref, y_scr,
                *, num_heads, batch_block, wp_pad, seq_len, pool_k, pool_st):
    f32 = jnp.float32
    cdt = weff_ref.dtype                    # bf16 matmul-operand dtype
    C = we_ref.shape[1]
    EC = w1_ref.shape[2]
    L = ln_ref.shape[0]
    nh = num_heads
    dh = C // nh
    Bt = batch_block
    S = seq_len

    # ---- ShallowEncoderNet -------------------------------------------------
    # Fused temporal+spatial conv (+ folded BN) as ONE im2col matmul over all
    # Bt*Wpad rows at once (M = Bt*Wpad).
    y = jnp.dot(xcol_ref[...], weff_ref[...],
                preferred_element_type=f32) + sb_ref[0:1, :]           # (Bt*Wpad, C)
    # ELU (alpha=1), f32 elementwise.
    y = jnp.where(y > 0.0, y, jnp.exp(jnp.minimum(y, 0.0)) - 1.0)
    y_scr[...] = y

    # AvgPool(K, stride) as K strided sublane loads from the scratch; pooling
    # never crosses a batch-element boundary (per-b base offsets are static).
    inv_k = 1.0 / float(pool_k)
    pooled = []
    for b in range(Bt):
        base = b * wp_pad
        acc = y_scr[pl.ds(base, S, pool_st), :]
        for k in range(1, pool_k):
            acc = acc + y_scr[pl.ds(base + k, S, pool_st), :]
        pooled.append(acc * inv_k)
    x = jnp.concatenate(pooled, axis=0)                                # (Bt*S, C) f32

    # Dropout (eval) = identity; enhance 1x1 conv = one (Bt*S, C)@(C, C) matmul.
    x = jnp.dot(x.astype(cdt), we_ref[...],
                preferred_element_type=f32) + sb_ref[1:2, :]           # (Bt*S, C)

    # ---- TransformerEncoder (all layers fused, unrolled) -------------------
    def layer_norm(v, g, b):
        mu = jnp.mean(v, axis=-1, keepdims=True)
        var = jnp.mean((v - mu) ** 2, axis=-1, keepdims=True)
        return (v - mu) * jax.lax.rsqrt(var + 1e-5) * g + b

    for l in range(L):
        ln_l = ln_ref[l]                                               # (2, C)
        g, bta = ln_l[0:1, :], ln_l[1:2, :]
        lb = lb_ref[l]                                                 # (4, 128)
        bqkv = lb[0:1, :3 * C]
        bo = lb[1:2, :C]
        b1 = lb[2:3, :EC]
        b2 = lb[3:4, :C]

        # -- multi-head self-attention (shared pre-norm, dropout = identity) -
        h = layer_norm(x, g, bta).astype(cdt)
        # 1/sqrt(dh) scale pre-folded into the Q projection weights/bias.
        qkv = jnp.dot(h, wqkv_ref[l], preferred_element_type=f32) + bqkv
        qkv_c = qkv.astype(cdt)           # single hoisted cast (was per-head)

        # Scores for all (b, head) pairs; one K transpose per batch element.
        qkv_bs, scores = [], []
        for b in range(Bt):
            qkv_b = qkv_c[b * S:(b + 1) * S, :]                        # (S, 3C)
            qkv_bs.append(qkv_b)
            kT = jnp.transpose(qkv[b * S:(b + 1) * S, C:2 * C]).astype(cdt)  # (C, S)
            for i in range(nh):
                q = qkv_b[:, i * dh:(i + 1) * dh]
                scores.append(jnp.dot(q, kT[i * dh:(i + 1) * dh, :],
                                      preferred_element_type=f32))     # (S, S)

        # Single batched softmax over all Bt*nh score tiles.
        s_all = jnp.concatenate(scores, axis=0)                        # (Bt*nh*S, S)
        s_all = s_all - jnp.max(s_all, axis=-1, keepdims=True)
        p_all = jnp.exp(s_all)
        p_all = p_all * pl.reciprocal(jnp.sum(p_all, axis=-1, keepdims=True),
                                      approx=True)
        p_all = p_all.astype(cdt)

        outs = []
        for b in range(Bt):
            qkv_b = qkv_bs[b]
            heads = []
            for i in range(nh):
                p = p_all[(b * nh + i) * S:(b * nh + i + 1) * S, :]
                v = qkv_b[:, 2 * C + i * dh:2 * C + (i + 1) * dh]
                heads.append(jnp.dot(p, v, preferred_element_type=f32))
            outs.append(jnp.concatenate(heads, axis=-1))               # (S, C)
        ho = jnp.concatenate(outs, axis=0).astype(cdt)                 # (Bt*S, C)
        x = x + jnp.dot(ho, wo_ref[l], preferred_element_type=f32) + bo

        # -- feed-forward: Linear -> GELU(tanh) -> Dropout(id) -> Linear -----
        h2 = layer_norm(x, g, bta).astype(cdt)
        f = jnp.dot(h2, w1_ref[l], preferred_element_type=f32) + b1
        f = _gelu_tanh(f)
        x = x + jnp.dot(f.astype(cdt), w2_ref[l], preferred_element_type=f32) + b2

    # Per-batch-element stores into the (Bt, S, C) output block.
    for b in range(Bt):
        o_ref[b] = x[b * S:(b + 1) * S, :].astype(o_ref.dtype)


# ----------------------------------------------------------------------------
# Wrapper: host-side im2col + single fused pallas_call.
# ----------------------------------------------------------------------------
def eeg_encoder(x_nchw, params, cfg, batch_block=None):
    B, Cin, H, W = x_nchw.shape
    Tk = cfg['temporal_conv_size']
    K = cfg['avg_kernel']
    st = cfg['avg_stride']
    C = cfg['channel_size']
    assert H == cfg['spatial_conv_size'], \
        "spatial conv must collapse the electrode axis (required by squeeze(1))"

    Wp = W - Tk + 1
    S = (Wp - K) // st + 1
    Wpad = ((Wp + 7) // 8) * 8            # sublane-align each batch element's rows

    Bt = _pick_batch_block(B) if batch_block is None else batch_block
    assert B % Bt == 0

    # Lane-dense im2col input, zero-padded to Wpad rows per batch element and
    # row-flattened so each grid step reads a (Bt*Wpad, Dcol) block directly.
    xcol = _im2col(x_nchw.astype(jnp.float32), Tk)                     # (B, Wp, Dcol)
    Dcol = xcol.shape[-1]
    xcol = jnp.pad(xcol, ((0, 0), (0, Wpad - Wp), (0, 0)))
    xcol = xcol.reshape(B * Wpad, Dcol).astype(jnp.bfloat16)

    ins = [xcol, params['w_eff'], params['we'], params['sb'], params['ln'],
           params['wqkv'], params['wo'], params['w1'], params['w2'], params['lbias']]
    in_specs = [pl.BlockSpec((Bt * Wpad, Dcol), lambda b: (b, 0))] + \
               [_rep_spec(a) for a in ins[1:]]

    kernel = functools.partial(
        _eeg_kernel, num_heads=cfg['num_head'], batch_block=Bt,
        wp_pad=Wpad, seq_len=S, pool_k=K, pool_st=st)

    return pl.pallas_call(
        kernel,
        out_shape=jax.ShapeDtypeStruct((B, S, C), jnp.float32),
        grid_spec=pltpu.PrefetchScalarGridSpec(
            num_scalar_prefetch=0,
            grid=(B // Bt,),
            in_specs=in_specs,
            out_specs=pl.BlockSpec((Bt, S, C), lambda b: (b, 0, 0)),
            scratch_shapes=[pltpu.VMEM((Bt * Wpad, C), jnp.float32)],
        ),
        compiler_params=pltpu.CompilerParams(dimension_semantics=("parallel",)),
    )(*ins)


# ----------------------------------------------------------------------------
# Deterministic synthetic parameters (PyTorch shapes), folded into kernel layout.
# ----------------------------------------------------------------------------
def init_params(key, cfg):
    C = cfg['channel_size']
    Cin = cfg['in_channels']
    Tk = cfg['temporal_conv_size']
    Kh = cfg['spatial_conv_size']
    E = cfg['expansion']
    nh = cfg['num_head']
    L = cfg['num_attention']
    dh = C // nh
    bf16 = jnp.bfloat16

    keys = iter(jax.random.split(key, 256))

    def nrm(shape, s=0.05):
        return s * jax.random.normal(next(keys), shape, jnp.float32)

    # --- ShallowEncoderNet (PyTorch shapes) ---
    wt = nrm((C, Cin, 1, Tk))             # temporal_conv.weight
    bt = nrm((C,), 0.02)
    ws = nrm((C, C, Kh, 1))               # spatial_conv.weight
    bs = nrm((C,), 0.02)
    gamma = 1.0 + nrm((C,), 0.1)          # bn.weight
    beta = nrm((C,), 0.1)                 # bn.bias
    rmean = nrm((C,), 0.1)                # bn.running_mean
    rvar = 1.0 + jnp.abs(nrm((C,), 0.1))  # bn.running_var
    we = nrm((C, C, 1, 1))                # enhance_conv.weight
    be = nrm((C,), 0.02)

    eps = 1e-5
    bn_scale = gamma / jnp.sqrt(rvar + eps)
    bn_shift = beta - rmean * bn_scale

    # Fold temporal conv, spatial conv and eval-mode BN into one im2col weight.
    wt2 = wt[:, :, 0, :]                  # (C_mid, Cin, Tk)
    ws2 = ws[:, :, :, 0]                  # (C_out, C_mid, Kh)
    w_eff = jnp.einsum('mck,omh->hkco', wt2, ws2)        # (Kh, Tk, Cin, C)
    b_eff = bs + jnp.einsum('m,omh->o', bt, ws2)
    w_eff = (w_eff * bn_scale[None, None, None, :]).reshape(Kh * Tk * Cin, C)
    b_eff = b_eff * bn_scale + bn_shift

    shallow = dict(
        w_eff=w_eff.astype(bf16),                         # (Kh*Tk*Cin, C)
        we=we[:, :, 0, 0].T.astype(bf16),                 # (C, C)
        sb=jnp.stack([b_eff, be], axis=0),                # (2, C) f32
    )

    # --- Transformer layers (packed / stacked over L) ---
    scale = 1.0 / math.sqrt(dh)
    padw = ((max(3 * C, E * C, 128) + 127) // 128) * 128  # one bias per sublane row

    def pad_row(v):
        return jnp.pad(v, (0, padw - v.shape[0]))[None, :]

    lns, wqkvs, wos, w1s, w2s, lbs = [], [], [], [], [], []
    for _ in range(L):
        in_w = nrm((3 * C, C))            # MultiheadAttention.in_proj_weight
        in_b = nrm((3 * C,), 0.02)
        out_w = nrm((C, C))               # out_proj.weight
        out_b = nrm((C,), 0.02)
        w1 = nrm((E * C, C))              # feed_forward Linear 1
        b1 = nrm((E * C,), 0.02)
        w2 = nrm((C, E * C))              # feed_forward Linear 2
        b2 = nrm((C,), 0.02)
        ln_g = 1.0 + nrm((C,), 0.1)       # shared LayerNorm (norm1 == norm2 in ref)
        ln_b = nrm((C,), 0.1)

        wqkv = in_w.T                     # (C, 3C), columns [q | k | v]
        bqkv = in_b
        # fold the 1/sqrt(dh) attention scale into the Q projection
        wqkv = jnp.concatenate([wqkv[:, :C] * scale, wqkv[:, C:]], axis=1)
        bqkv = jnp.concatenate([bqkv[:C] * scale, bqkv[C:]], axis=0)

        lns.append(jnp.stack([ln_g, ln_b], axis=0))                   # (2, C)
        wqkvs.append(wqkv)
        wos.append(out_w.T)
        w1s.append(w1.T)
        w2s.append(w2.T)
        # (4, padw): row 0 = bqkv, row 1 = out_b, row 2 = b1, row 3 = b2
        lbs.append(jnp.concatenate(
            [pad_row(bqkv), pad_row(out_b), pad_row(b1), pad_row(b2)], axis=0))

    return dict(
        **shallow,
        ln=jnp.stack(lns),                        # (L, 2, C)     f32
        wqkv=jnp.stack(wqkvs).astype(bf16),       # (L, C, 3C)
        wo=jnp.stack(wos).astype(bf16),           # (L, C, C)
        w1=jnp.stack(w1s).astype(bf16),           # (L, C, EC)
        w2=jnp.stack(w2s).astype(bf16),           # (L, EC, C)
        lbias=jnp.stack(lbs),                     # (L, 4, 128)   f32
    )


# ----------------------------------------------------------------------------
if __name__ == "__main__":
    cfg = dict(
        in_channels=4,
        channel_size=32,
        temporal_conv_size=5,
        spatial_conv_size=8,   # == number of electrodes (H), so squeeze(1) is valid
        avg_kernel=4,
        avg_stride=2,
        dropout=0.1,           # identity at inference
        num_head=4,
        expansion=2,
        num_attention=2,
    )

    key = jax.random.PRNGKey(0)
    kx, kp = jax.random.split(key)

    # B=8 exercises the batch blocking (Bt=4 per grid step, 2 grid steps).
    B, H, W = 8, cfg['spatial_conv_size'], 64
    # PyTorch NCHW input: (batch, in_channels, electrodes, time)
    x = jax.random.normal(kx, (B, cfg['in_channels'], H, W), jnp.float32)

    params = init_params(kp, cfg)

    out = eeg_encoder(x, params, cfg)
    out = jax.block_until_ready(out)

    # Expected output shape: (B, seq, channel_size) = (8, 29, 32)
    S = (W - cfg['temporal_conv_size'] + 1 - cfg['avg_kernel']) // cfg['avg_stride'] + 1
    assert out.shape == (B, S, cfg['channel_size'])
    assert jnp.all(jnp.isfinite(out))
    print("KERNEL_OK")
</pallas_src>

<mosaic_0001>
module attributes {stable_mosaic.version = 11 : i64} {
  func.func @_eeg_kernel(%arg0: i32, %arg1: memref<256x160xbf16, #tpu.memory_space<vmem>>, %arg2: memref<160x32xbf16, #tpu.memory_space<vmem>>, %arg3: memref<32x32xbf16, #tpu.memory_space<vmem>>, %arg4: memref<2x32xf32, #tpu.memory_space<vmem>>, %arg5: memref<2x2x32xf32, #tpu.memory_space<vmem>>, %arg6: memref<2x32x96xbf16, #tpu.memory_space<vmem>>, %arg7: memref<2x32x32xbf16, #tpu.memory_space<vmem>>, %arg8: memref<2x32x64xbf16, #tpu.memory_space<vmem>>, %arg9: memref<2x64x32xbf16, #tpu.memory_space<vmem>>, %arg10: memref<2x4x128xf32, #tpu.memory_space<vmem>>, %arg11: memref<4x29x32xf32, #tpu.memory_space<vmem>>, %arg12: memref<256x32xf32, #tpu.memory_space<vmem>>) attributes {dimension_semantics = [#tpu.dimension_semantics<parallel>], iteration_bounds = array<i64: 2>, scalar_prefetch = 0 : i64, scratch_operands = 1 : i64, tpu.core_type = #tpu.core_type<tc>, window_params = [{transform_indices = @transform_0, window_bounds = array<i64: 256, 160>}, {pipeline_mode = #tpu.pipeline_mode<synchronous>, transform_indices = @transform_1, window_bounds = array<i64: 160, 32>}, {pipeline_mode = #tpu.pipeline_mode<synchronous>, transform_indices = @transform_2, window_bounds = array<i64: 32, 32>}, {pipeline_mode = #tpu.pipeline_mode<synchronous>, transform_indices = @transform_3, window_bounds = array<i64: 2, 32>}, {pipeline_mode = #tpu.pipeline_mode<synchronous>, transform_indices = @transform_4, window_bounds = array<i64: 2, 2, 32>}, {pipeline_mode = #tpu.pipeline_mode<synchronous>, transform_indices = @transform_5, window_bounds = array<i64: 2, 32, 96>}, {pipeline_mode = #tpu.pipeline_mode<synchronous>, transform_indices = @transform_6, window_bounds = array<i64: 2, 32, 32>}, {pipeline_mode = #tpu.pipeline_mode<synchronous>, transform_indices = @transform_7, window_bounds = array<i64: 2, 32, 64>}, {pipeline_mode = #tpu.pipeline_mode<synchronous>, transform_indices = @transform_8, window_bounds = array<i64: 2, 64, 32>}, {pipeline_mode = #tpu.pipeline_mode<synchronous>, transform_indices = @transform_9, window_bounds = array<i64: 2, 4, 128>}, {transform_indices = @transform_10, window_bounds = array<i64: 4, 29, 32>}]} {
    %c0 = arith.constant 0 : index
    %c0_0 = arith.constant 0 : index
    %0 = vector.load %arg1[%c0, %c0_0] : memref<256x160xbf16, #tpu.memory_space<vmem>>, vector<256x160xbf16>
    %c0_1 = arith.constant 0 : index
    %c0_2 = arith.constant 0 : index
    %1 = vector.load %arg2[%c0_1, %c0_2] : memref<160x32xbf16, #tpu.memory_space<vmem>>, vector<160x32xbf16>
    %cst = arith.constant dense<0.000000e+00> : vector<256x32xf32>
    %2 = tpu.matmul %0, %1, %cst {dimension_numbers = #tpu.dot_dimension_numbers<[1], [0], [0], [1], [0, 0, 1, 1], [], []>} : vector<256x160xbf16>, vector<160x32xbf16>, vector<256x32xf32> -> vector<256x32xf32>
    %c0_3 = arith.constant 0 : index
    %c0_4 = arith.constant 0 : index
    %3 = vector.load %arg4[%c0_3, %c0_4] : memref<2x32xf32, #tpu.memory_space<vmem>>, vector<1x32xf32>
    %4 = vector.broadcast %3 : vector<1x32xf32> to vector<256x32xf32>
    %5 = arith.addf %2, %4 : vector<256x32xf32>
    %cst_5 = arith.constant 0.000000e+00 : f32
    %6 = vector.broadcast %cst_5 : f32 to vector<256x32xf32>
    %7 = arith.cmpf ogt, %5, %6 : vector<256x32xf32>
    %cst_6 = arith.constant 0.000000e+00 : f32
    %8 = vector.broadcast %cst_6 : f32 to vector<256x32xf32>
    %9 = arith.minimumf %5, %8 : vector<256x32xf32>
    %10 = math.exp %9 : vector<256x32xf32>
    %cst_7 = arith.constant 1.000000e+00 : f32
    %11 = vector.broadcast %cst_7 : f32 to vector<256x32xf32>
    %12 = arith.subf %10, %11 : vector<256x32xf32>
    %13 = arith.select %7, %5, %12 : vector<256x32xi1>, vector<256x32xf32>
    %c0_8 = arith.constant 0 : index
    %c0_9 = arith.constant 0 : index
    %14 = vector.load %arg12[%c0_8, %c0_9] : memref<256x32xf32, #tpu.memory_space<vmem>>, vector<256x32xf32>
    tpu.vector_store %arg12[%c0_8, %c0_9], %13 {strides = array<i32>} : memref<256x32xf32, #tpu.memory_space<vmem>>, vector<256x32xf32>,
    %c0_10 = arith.constant 0 : index
    %c0_11 = arith.constant 0 : index
    %15 = tpu.strided_load %arg12[%c0_10, %c0_11] {strides = array<i32: 2, 1>} : memref<256x32xf32, #tpu.memory_space<vmem>>, vector<29x32xf32>
    %c1 = arith.constant 1 : index
    %c0_12 = arith.constant 0 : index
    %16 = tpu.strided_load %arg12[%c1, %c0_12] {strides = array<i32: 2, 1>} : memref<256x32xf32, #tpu.memory_space<vmem>>, vector<29x32xf32>
    %17 = arith.addf %15, %16 : vector<29x32xf32>
    %c2 = arith.constant 2 : index
    %c0_13 = arith.constant 0 : index
    %18 = tpu.strided_load %arg12[%c2, %c0_13] {strides = array<i32: 2, 1>} : memref<256x32xf32, #tpu.memory_space<vmem>>, vector<29x32xf32>
    %19 = arith.addf %17, %18 : vector<29x32xf32>
    %c3 = arith.constant 3 : index
    %c0_14 = arith.constant 0 : index
    %20 = tpu.strided_load %arg12[%c3, %c0_14] {strides = array<i32: 2, 1>} : memref<256x32xf32, #tpu.memory_space<vmem>>, vector<29x32xf32>
    %21 = arith.addf %19, %20 : vector<29x32xf32>
    %cst_15 = arith.constant 2.500000e-01 : f32
    %22 = vector.broadcast %cst_15 : f32 to vector<29x32xf32>
    %23 = arith.mulf %21, %22 : vector<29x32xf32>
    %c64 = arith.constant 64 : index
    %c0_16 = arith.constant 0 : index
    %24 = tpu.strided_load %arg12[%c64, %c0_16] {strides = array<i32: 2, 1>} : memref<256x32xf32, #tpu.memory_space<vmem>>, vector<29x32xf32>
    %c65 = arith.constant 65 : index
    %c0_17 = arith.constant 0 : index
    %25 = tpu.strided_load %arg12[%c65, %c0_17] {strides = array<i32: 2, 1>} : memref<256x32xf32, #tpu.memory_space<vmem>>, vector<29x32xf32>
    %26 = arith.addf %24, %25 : vector<29x32xf32>
    %c66 = arith.constant 66 : index
    %c0_18 = arith.constant 0 : index
    %27 = tpu.strided_load %arg12[%c66, %c0_18] {strides = array<i32: 2, 1>} : memref<256x32xf32, #tpu.memory_space<vmem>>, vector<29x32xf32>
    %28 = arith.addf %26, %27 : vector<29x32xf32>
    %c67 = arith.constant 67 : index
    %c0_19 = arith.constant 0 : index
    %29 = tpu.strided_load %arg12[%c67, %c0_19] {strides = array<i32: 2, 1>} : memref<256x32xf32, #tpu.memory_space<vmem>>, vector<29x32xf32>
    %30 = arith.addf %28, %29 : vector<29x32xf32>
    %cst_20 = arith.constant 2.500000e-01 : f32
    %31 = vector.broadcast %cst_20 : f32 to vector<29x32xf32>
    %32 = arith.mulf %30, %31 : vector<29x32xf32>
    %c128 = arith.constant 128 : index
    %c0_21 = arith.constant 0 : index
    %33 = tpu.strided_load %arg12[%c128, %c0_21] {strides = array<i32: 2, 1>} : memref<256x32xf32, #tpu.memory_space<vmem>>, vector<29x32xf32>
    %c129 = arith.constant 129 : index
    %c0_22 = arith.constant 0 : index
    %34 = tpu.strided_load %arg12[%c129, %c0_22] {strides = array<i32: 2, 1>} : memref<256x32xf32, #tpu.memory_space<vmem>>, vector<29x32xf32>
    %35 = arith.addf %33, %34 : vector<29x32xf32>
    %c130 = arith.constant 130 : index
    %c0_23 = arith.constant 0 : index
    %36 = tpu.strided_load %arg12[%c130, %c0_23] {strides = array<i32: 2, 1>} : memref<256x32xf32, #tpu.memory_space<vmem>>, vector<29x32xf32>
    %37 = arith.addf %35, %36 : vector<29x32xf32>
    %c131 = arith.constant 131 : index
    %c0_24 = arith.constant 0 : index
    %38 = tpu.strided_load %arg12[%c131, %c0_24] {strides = array<i32: 2, 1>} : memref<256x32xf32, #tpu.memory_space<vmem>>, vector<29x32xf32>
    %39 = arith.addf %37, %38 : vector<29x32xf32>
    %cst_25 = arith.constant 2.500000e-01 : f32
    %40 = vector.broadcast %cst_25 : f32 to vector<29x32xf32>
    %41 = arith.mulf %39, %40 : vector<29x32xf32>
    %c192 = arith.constant 192 : index
    %c0_26 = arith.constant 0 : index
    %42 = tpu.strided_load %arg12[%c192, %c0_26] {strides = array<i32: 2, 1>} : memref<256x32xf32, #tpu.memory_space<vmem>>, vector<29x32xf32>
    %c193 = arith.constant 193 : index
    %c0_27 = arith.constant 0 : index
    %43 = tpu.strided_load %arg12[%c193, %c0_27] {strides = array<i32: 2, 1>} : memref<256x32xf32, #tpu.memory_space<vmem>>, vector<29x32xf32>
    %44 = arith.addf %42, %43 : vector<29x32xf32>
    %c194 = arith.constant 194 : index
    %c0_28 = arith.constant 0 : index
    %45 = tpu.strided_load %arg12[%c194, %c0_28] {strides = array<i32: 2, 1>} : memref<256x32xf32, #tpu.memory_space<vmem>>, vector<29x32xf32>
    %46 = arith.addf %44, %45 : vector<29x32xf32>
    %c195 = arith.constant 195 : index
    %c0_29 = arith.constant 0 : index
    %47 = tpu.strided_load %arg12[%c195, %c0_29] {strides = array<i32: 2, 1>} : memref<256x32xf32, #tpu.memory_space<vmem>>, vector<29x32xf32>
    %48 = arith.addf %46, %47 : vector<29x32xf32>
    %cst_30 = arith.constant 2.500000e-01 : f32
    %49 = vector.broadcast %cst_30 : f32 to vector<29x32xf32>
    %50 = arith.mulf %48, %49 : vector<29x32xf32>
    %51 = tpu.concatenate %23, %32, %41, %50 in 0 : vector<29x32xf32>, vector<29x32xf32>, vector<29x32xf32>, vector<29x32xf32> -> vector<116x32xf32>
    %52 = arith.truncf %51 : vector<116x32xf32> to vector<116x32xbf16>
    %c0_31 = arith.constant 0 : index
    %c0_32 = arith.constant 0 : index
    %53 = vector.load %arg3[%c0_31, %c0_32] : memref<32x32xbf16, #tpu.memory_space<vmem>>, vector<32x32xbf16>
    %cst_33 = arith.constant dense<0.000000e+00> : vector<116x32xf32>
    %54 = tpu.matmul %52, %53, %cst_33 {dimension_numbers = #tpu.dot_dimension_numbers<[1], [0], [0], [1], [0, 0, 1, 1], [], []>} : vector<116x32xbf16>, vector<32x32xbf16>, vector<116x32xf32> -> vector<116x32xf32>
    %c1_34 = arith.constant 1 : index
    %c0_35 = arith.constant 0 : index
    %55 = vector.load %arg4[%c1_34, %c0_35] : memref<2x32xf32, #tpu.memory_space<vmem>>, vector<1x32xf32>
    %56 = vector.broadcast %55 : vector<1x32xf32> to vector<116x32xf32>
    %57 = arith.addf %54, %56 : vector<116x32xf32>
    %c0_36 = arith.constant 0 : index
    %c0_37 = arith.constant 0 : index
    %c0_38 = arith.constant 0 : index
    %58 = vector.load %arg5[%c0_36, %c0_37, %c0_38] : memref<2x2x32xf32, #tpu.memory_space<vmem>>, vector<1x2x32xf32>
    %59 = vector.shape_cast %58 : vector<1x2x32xf32> to vector<2x32xf32>
    %60 = vector.extract_strided_slice %59 {offsets = [0, 0], sizes = [1, 32], strides = [1, 1]} : vector<2x32xf32> to vector<1x32xf32>
    %61 = vector.extract_strided_slice %59 {offsets = [1, 0], sizes = [1, 32], strides = [1, 1]} : vector<2x32xf32> to vector<1x32xf32>
    %c0_39 = arith.constant 0 : index
    %c0_40 = arith.constant 0 : index
    %c0_41 = arith.constant 0 : index
    %62 = vector.load %arg10[%c0_39, %c0_40, %c0_41] : memref<2x4x128xf32, #tpu.memory_space<vmem>>, vector<1x4x128xf32>
    %63 = vector.shape_cast %62 : vector<1x4x128xf32> to vector<4x128xf32>
    %64 = vector.extract_strided_slice %63 {offsets = [0, 0], sizes = [1, 96], strides = [1, 1]} : vector<4x128xf32> to vector<1x96xf32>
    %65 = vector.extract_strided_slice %63 {offsets = [1, 0], sizes = [1, 32], strides = [1, 1]} : vector<4x128xf32> to vector<1x32xf32>
    %66 = vector.extract_strided_slice %63 {offsets = [2, 0], sizes = [1, 64], strides = [1, 1]} : vector<4x128xf32> to vector<1x64xf32>
    %67 = vector.extract_strided_slice %63 {offsets = [3, 0], sizes = [1, 32], strides = [1, 1]} : vector<4x128xf32> to vector<1x32xf32>
    %cst_42 = arith.constant dense<0.000000e+00> : vector<116xf32>
    %68 = vector.multi_reduction <add>, %57, %cst_42 [1] : vector<116x32xf32> to vector<116xf32>
    %69 = vector.shape_cast %68 : vector<116xf32> to vector<116x1xf32>
    %cst_43 = arith.constant 3.200000e+01 : f32
    %70 = vector.broadcast %cst_43 : f32 to vector<116x1xf32>
    %71 = arith.divf %69, %70 : vector<116x1xf32>
    %72 = vector.broadcast %71 : vector<116x1xf32> to vector<116x32xf32>
    %73 = arith.subf %57, %72 : vector<116x32xf32>
    %74 = arith.mulf %73, %73 : vector<116x32xf32>
    %cst_44 = arith.constant dense<0.000000e+00> : vector<116xf32>
    %75 = vector.multi_reduction <add>, %74, %cst_44 [1] : vector<116x32xf32> to vector<116xf32>
    %76 = vector.shape_cast %75 : vector<116xf32> to vector<116x1xf32>
    %cst_45 = arith.constant 3.200000e+01 : f32
    %77 = vector.broadcast %cst_45 : f32 to vector<116x1xf32>
    %78 = arith.divf %76, %77 : vector<116x1xf32>
    %79 = vector.broadcast %71 : vector<116x1xf32> to vector<116x32xf32>
    %80 = arith.subf %57, %79 : vector<116x32xf32>
    %cst_46 = arith.constant 9.99999974E-6 : f32
    %81 = vector.broadcast %cst_46 : f32 to vector<116x1xf32>
    %82 = arith.addf %78, %81 : vector<116x1xf32>
    %83 = math.rsqrt %82 : vector<116x1xf32>
    %84 = vector.broadcast %83 : vector<116x1xf32> to vector<116x32xf32>
    %85 = arith.mulf %80, %84 : vector<116x32xf32>
    %86 = vector.broadcast %60 : vector<1x32xf32> to vector<116x32xf32>
    %87 = arith.mulf %85, %86 : vector<116x32xf32>
    %88 = vector.broadcast %61 : vector<1x32xf32> to vector<116x32xf32>
    %89 = arith.addf %87, %88 : vector<116x32xf32>
    %90 = arith.truncf %89 : vector<116x32xf32> to vector<116x32xbf16>
    %c0_47 = arith.constant 0 : index
    %c0_48 = arith.constant 0 : index
    %c0_49 = arith.constant 0 : index
    %91 = vector.load %arg6[%c0_47, %c0_48, %c0_49] : memref<2x32x96xbf16, #tpu.memory_space<vmem>>, vector<1x32x96xbf16>
    %92 = vector.shape_cast %91 : vector<1x32x96xbf16> to vector<32x96xbf16>
    %cst_50 = arith.constant dense<0.000000e+00> : vector<116x96xf32>
    %93 = tpu.matmul %90, %92, %cst_50 {dimension_numbers = #tpu.dot_dimension_numbers<[1], [0], [0], [1], [0, 0, 1, 1], [], []>} : vector<116x32xbf16>, vector<32x96xbf16>, vector<116x96xf32> -> vector<116x96xf32>
    %94 = vector.broadcast %64 : vector<1x96xf32> to vector<116x96xf32>
    %95 = arith.addf %93, %94 : vector<116x96xf32>
    %96 = arith.truncf %95 : vector<116x96xf32> to vector<116x96xbf16>
    %97 = vector.extract_strided_slice %96 {offsets = [0, 0], sizes = [29, 96], strides = [1, 1]} : vector<116x96xbf16> to vector<29x96xbf16>
    %98 = vector.extract_strided_slice %95 {offsets = [0, 32], sizes = [29, 32], strides = [1, 1]} : vector<116x96xf32> to vector<29x32xf32>
    %99 = tpu.transpose %98, [1, 0] : vector<29x32xf32> -> vector<32x29xf32>
    %100 = arith.truncf %99 : vector<32x29xf32> to vector<32x29xbf16>
    %101 = vector.extract_strided_slice %97 {offsets = [0, 0], sizes = [29, 8], strides = [1, 1]} : vector<29x96xbf16> to vector<29x8xbf16>
    %102 = vector.extract_strided_slice %100 {offsets = [0, 0], sizes = [8, 29], strides = [1, 1]} : vector<32x29xbf16> to vector<8x29xbf16>
    %cst_51 = arith.constant dense<0.000000e+00> : vector<29x29xf32>
    %103 = tpu.matmul %101, %102, %cst_51 {dimension_numbers = #tpu.dot_dimension_numbers<[1], [0], [0], [1], [0, 0, 1, 1], [], []>} : vector<29x8xbf16>, vector<8x29xbf16>, vector<29x29xf32> -> vector<29x29xf32>
    %104 = vector.extract_strided_slice %97 {offsets = [0, 8], sizes = [29, 8], strides = [1, 1]} : vector<29x96xbf16> to vector<29x8xbf16>
    %105 = vector.extract_strided_slice %100 {offsets = [8, 0], sizes = [8, 29], strides = [1, 1]} : vector<32x29xbf16> to vector<8x29xbf16>
    %cst_52 = arith.constant dense<0.000000e+00> : vector<29x29xf32>
    %106 = tpu.matmul %104, %105, %cst_52 {dimension_numbers = #tpu.dot_dimension_numbers<[1], [0], [0], [1], [0, 0, 1, 1], [], []>} : vector<29x8xbf16>, vector<8x29xbf16>, vector<29x29xf32> -> vector<29x29xf32>
    %107 = vector.extract_strided_slice %97 {offsets = [0, 16], sizes = [29, 8], strides = [1, 1]} : vector<29x96xbf16> to vector<29x8xbf16>
    %108 = vector.extract_strided_slice %100 {offsets = [16, 0], sizes = [8, 29], strides = [1, 1]} : vector<32x29xbf16> to vector<8x29xbf16>
    %cst_53 = arith.constant dense<0.000000e+00> : vector<29x29xf32>
    %109 = tpu.matmul %107, %108, %cst_53 {dimension_numbers = #tpu.dot_dimension_numbers<[1], [0], [0], [1], [0, 0, 1, 1], [], []>} : vector<29x8xbf16>, vector<8x29xbf16>, vector<29x29xf32> -> vector<29x29xf32>
    %110 = vector.extract_strided_slice %97 {offsets = [0, 24], sizes = [29, 8], strides = [1, 1]} : vector<29x96xbf16> to vector<29x8xbf16>
    %111 = vector.extract_strided_slice %100 {offsets = [24, 0], sizes = [8, 29], strides = [1, 1]} : vector<32x29xbf16> to vector<8x29xbf16>
    %cst_54 = arith.constant dense<0.000000e+00> : vector<29x29xf32>
    %112 = tpu.matmul %110, %111, %cst_54 {dimension_numbers = #tpu.dot_dimension_numbers<[1], [0], [0], [1], [0, 0, 1, 1], [], []>} : vector<29x8xbf16>, vector<8x29xbf16>, vector<29x29xf32> -> vector<29x29xf32>
    %113 = vector.extract_strided_slice %96 {offsets = [29, 0], sizes = [29, 96], strides = [1, 1]} : vector<116x96xbf16> to vector<29x96xbf16>
    %114 = vector.extract_strided_slice %95 {offsets = [29, 32], sizes = [29, 32], strides = [1, 1]} : vector<116x96xf32> to vector<29x32xf32>
    %115 = tpu.transpose %114, [1, 0] : vector<29x32xf32> -> vector<32x29xf32>
    %116 = arith.truncf %115 : vector<32x29xf32> to vector<32x29xbf16>
    %117 = vector.extract_strided_slice %113 {offsets = [0, 0], sizes = [29, 8], strides = [1, 1]} : vector<29x96xbf16> to vector<29x8xbf16>
    %118 = vector.extract_strided_slice %116 {offsets = [0, 0], sizes = [8, 29], strides = [1, 1]} : vector<32x29xbf16> to vector<8x29xbf16>
    %cst_55 = arith.constant dense<0.000000e+00> : vector<29x29xf32>
    %119 = tpu.matmul %117, %118, %cst_55 {dimension_numbers = #tpu.dot_dimension_numbers<[1], [0], [0], [1], [0, 0, 1, 1], [], []>} : vector<29x8xbf16>, vector<8x29xbf16>, vector<29x29xf32> -> vector<29x29xf32>
    %120 = vector.extract_strided_slice %113 {offsets = [0, 8], sizes = [29, 8], strides = [1, 1]} : vector<29x96xbf16> to vector<29x8xbf16>
    %121 = vector.extract_strided_slice %116 {offsets = [8, 0], sizes = [8, 29], strides = [1, 1]} : vector<32x29xbf16> to vector<8x29xbf16>
    %cst_56 = arith.constant dense<0.000000e+00> : vector<29x29xf32>
    %122 = tpu.matmul %120, %121, %cst_56 {dimension_numbers = #tpu.dot_dimension_numbers<[1], [0], [0], [1], [0, 0, 1, 1], [], []>} : vector<29x8xbf16>, vector<8x29xbf16>, vector<29x29xf32> -> vector<29x29xf32>
    %123 = vector.extract_strided_slice %113 {offsets = [0, 16], sizes = [29, 8], strides = [1, 1]} : vector<29x96xbf16> to vector<29x8xbf16>
    %124 = vector.extract_strided_slice %116 {offsets = [16, 0], sizes = [8, 29], strides = [1, 1]} : vector<32x29xbf16> to vector<8x29xbf16>
    %cst_57 = arith.constant dense<0.000000e+00> : vector<29x29xf32>
    %125 = tpu.matmul %123, %124, %cst_57 {dimension_numbers = #tpu.dot_dimension_numbers<[1], [0], [0], [1], [0, 0, 1, 1], [], []>} : vector<29x8xbf16>, vector<8x29xbf16>, vector<29x29xf32> -> vector<29x29xf32>
    %126 = vector.extract_strided_slice %113 {offsets = [0, 24], sizes = [29, 8], strides = [1, 1]} : vector<29x96xbf16> to vector<29x8xbf16>
    %127 = vector.extract_strided_slice %116 {offsets = [24, 0], sizes = [8, 29], strides = [1, 1]} : vector<32x29xbf16> to vector<8x29xbf16>
    %cst_58 = arith.constant dense<0.000000e+00> : vector<29x29xf32>
    %128 = tpu.matmul %126, %127, %cst_58 {dimension_numbers = #tpu.dot_dimension_numbers<[1], [0], [0], [1], [0, 0, 1, 1], [], []>} : vector<29x8xbf16>, vector<8x29xbf16>, vector<29x29xf32> -> vector<29x29xf32>
    %129 = vector.extract_strided_slice %96 {offsets = [58, 0], sizes = [29, 96], strides = [1, 1]} : vector<116x96xbf16> to vector<29x96xbf16>
    %130 = vector.extract_strided_slice %95 {offsets = [58, 32], sizes = [29, 32], strides = [1, 1]} : vector<116x96xf32> to vector<29x32xf32>
    %131 = tpu.transpose %130, [1, 0] : vector<29x32xf32> -> vector<32x29xf32>
    %132 = arith.truncf %131 : vector<32x29xf32> to vector<32x29xbf16>
    %133 = vector.extract_strided_slice %129 {offsets = [0, 0], sizes = [29, 8], strides = [1, 1]} : vector<29x96xbf16> to vector<29x8xbf16>
    %134 = vector.extract_strided_slice %132 {offsets = [0, 0], sizes = [8, 29], strides = [1, 1]} : vector<32x29xbf16> to vector<8x29xbf16>
    %cst_59 = arith.constant dense<0.000000e+00> : vector<29x29xf32>
    %135 = tpu.matmul %133, %134, %cst_59 {dimension_numbers = #tpu.dot_dimension_numbers<[1], [0], [0], [1], [0, 0, 1, 1], [], []>} : vector<29x8xbf16>, vector<8x29xbf16>, vector<29x29xf32> -> vector<29x29xf32>
    %136 = vector.extract_strided_slice %129 {offsets = [0, 8], sizes = [29, 8], strides = [1, 1]} : vector<29x96xbf16> to vector<29x8xbf16>
    %137 = vector.extract_strided_slice %132 {offsets = [8, 0], sizes = [8, 29], strides = [1, 1]} : vector<32x29xbf16> to vector<8x29xbf16>
    %cst_60 = arith.constant dense<0.000000e+00> : vector<29x29xf32>
    %138 = tpu.matmul %136, %137, %cst_60 {dimension_numbers = #tpu.dot_dimension_numbers<[1], [0], [0], [1], [0, 0, 1, 1], [], []>} : vector<29x8xbf16>, vector<8x29xbf16>, vector<29x29xf32> -> vector<29x29xf32>
    %139 = vector.extract_strided_slice %129 {offsets = [0, 16], sizes = [29, 8], strides = [1, 1]} : vector<29x96xbf16> to vector<29x8xbf16>
    %140 = vector.extract_strided_slice %132 {offsets = [16, 0], sizes = [8, 29], strides = [1, 1]} : vector<32x29xbf16> to vector<8x29xbf16>
    %cst_61 = arith.constant dense<0.000000e+00> : vector<29x29xf32>
    %141 = tpu.matmul %139, %140, %cst_61 {dimension_numbers = #tpu.dot_dimension_numbers<[1], [0], [0], [1], [0, 0, 1, 1], [], []>} : vector<29x8xbf16>, vector<8x29xbf16>, vector<29x29xf32> -> vector<29x29xf32>
    %142 = vector.extract_strided_slice %129 {offsets = [0, 24], sizes = [29, 8], strides = [1, 1]} : vector<29x96xbf16> to vector<29x8xbf16>
    %143 = vector.extract_strided_slice %132 {offsets = [24, 0], sizes = [8, 29], strides = [1, 1]} : vector<32x29xbf16> to vector<8x29xbf16>
    %cst_62 = arith.constant dense<0.000000e+00> : vector<29x29xf32>
    %144 = tpu.matmul %142, %143, %cst_62 {dimension_numbers = #tpu.dot_dimension_numbers<[1], [0], [0], [1], [0, 0, 1, 1], [], []>} : vector<29x8xbf16>, vector<8x29xbf16>, vector<29x29xf32> -> vector<29x29xf32>
    %145 = vector.extract_strided_slice %96 {offsets = [87, 0], sizes = [29, 96], strides = [1, 1]} : vector<116x96xbf16> to vector<29x96xbf16>
    %146 = vector.extract_strided_slice %95 {offsets = [87, 32], sizes = [29, 32], strides = [1, 1]} : vector<116x96xf32> to vector<29x32xf32>
    %147 = tpu.transpose %146, [1, 0] : vector<29x32xf32> -> vector<32x29xf32>
    %148 = arith.truncf %147 : vector<32x29xf32> to vector<32x29xbf16>
    %149 = vector.extract_strided_slice %145 {offsets = [0, 0], sizes = [29, 8], strides = [1, 1]} : vector<29x96xbf16> to vector<29x8xbf16>
    %150 = vector.extract_strided_slice %148 {offsets = [0, 0], sizes = [8, 29], strides = [1, 1]} : vector<32x29xbf16> to vector<8x29xbf16>
    %cst_63 = arith.constant dense<0.000000e+00> : vector<29x29xf32>
    %151 = tpu.matmul %149, %150, %cst_63 {dimension_numbers = #tpu.dot_dimension_numbers<[1], [0], [0], [1], [0, 0, 1, 1], [], []>} : vector<29x8xbf16>, vector<8x29xbf16>, vector<29x29xf32> -> vector<29x29xf32>
    %152 = vector.extract_strided_slice %145 {offsets = [0, 8], sizes = [29, 8], strides = [1, 1]} : vector<29x96xbf16> to vector<29x8xbf16>
    %153 = vector.extract_strided_slice %148 {offsets = [8, 0], sizes = [8, 29], strides = [1, 1]} : vector<32x29xbf16> to vector<8x29xbf16>
    %cst_64 = arith.constant dense<0.000000e+00> : vector<29x29xf32>
    %154 = tpu.matmul %152, %153, %cst_64 {dimension_numbers = #tpu.dot_dimension_numbers<[1], [0], [0], [1], [0, 0, 1, 1], [], []>} : vector<29x8xbf16>, vector<8x29xbf16>, vector<29x29xf32> -> vector<29x29xf32>
    %155 = vector.extract_strided_slice %145 {offsets = [0, 16], sizes = [29, 8], strides = [1, 1]} : vector<29x96xbf16> to vector<29x8xbf16>
    %156 = vector.extract_strided_slice %148 {offsets = [16, 0], sizes = [8, 29], strides = [1, 1]} : vector<32x29xbf16> to vector<8x29xbf16>
    %cst_65 = arith.constant dense<0.000000e+00> : vector<29x29xf32>
    %157 = tpu.matmul %155, %156, %cst_65 {dimension_numbers = #tpu.dot_dimension_numbers<[1], [0], [0], [1], [0, 0, 1, 1], [], []>} : vector<29x8xbf16>, vector<8x29xbf16>, vector<29x29xf32> -> vector<29x29xf32>
    %158 = vector.extract_strided_slice %145 {offsets = [0, 24], sizes = [29, 8], strides = [1, 1]} : vector<29x96xbf16> to vector<29x8xbf16>
    %159 = vector.extract_strided_slice %148 {offsets = [24, 0], sizes = [8, 29], strides = [1, 1]} : vector<32x29xbf16> to vector<8x29xbf16>
    %cst_66 = arith.constant dense<0.000000e+00> : vector<29x29xf32>
    %160 = tpu.matmul %158, %159, %cst_66 {dimension_numbers = #tpu.dot_dimension_numbers<[1], [0], [0], [1], [0, 0, 1, 1], [], []>} : vector<29x8xbf16>, vector<8x29xbf16>, vector<29x29xf32> -> vector<29x29xf32>
    %161 = tpu.concatenate %103, %106, %109, %112, %119, %122, %125, %128, %135, %138, %141, %144, %151, %154, %157, %160 in 0 : vector<29x29xf32>, vector<29x29xf32>, vector<29x29xf32>, vector<29x29xf32>, vector<29x29xf32>, vector<29x29xf32>, vector<29x29xf32>, vector<29x29xf32>, vector<29x29xf32>, vector<29x29xf32>, vector<29x29xf32>, vector<29x29xf32>, vector<29x29xf32>, vector<29x29xf32>, vector<29x29xf32>, vector<29x29xf32> -> vector<464x29xf32>
    %cst_67 = arith.constant dense<0xFF800000> : vector<464xf32>
    %162 = vector.multi_reduction <maximumf>, %161, %cst_67 [1] : vector<464x29xf32> to vector<464xf32>
    %163 = vector.shape_cast %162 : vector<464xf32> to vector<464x1xf32>
    %164 = vector.broadcast %163 : vector<464x1xf32> to vector<464x29xf32>
    %165 = arith.subf %161, %164 : vector<464x29xf32>
    %166 = math.exp %165 : vector<464x29xf32>
    %cst_68 = arith.constant dense<0.000000e+00> : vector<464xf32>
    %167 = vector.multi_reduction <add>, %166, %cst_68 [1] : vector<464x29xf32> to vector<464xf32>
    %168 = vector.shape_cast %167 : vector<464xf32> to vector<464x1xf32>
    %169 = tpu.reciprocal %168 {approx = true} : vector<464x1xf32> -> vector<464x1xf32>
    %170 = vector.broadcast %169 : vector<464x1xf32> to vector<464x29xf32>
    %171 = arith.mulf %166, %170 : vector<464x29xf32>
    %172 = arith.truncf %171 : vector<464x29xf32> to vector<464x29xbf16>
    %173 = vector.extract_strided_slice %172 {offsets = [0, 0], sizes = [29, 29], strides = [1, 1]} : vector<464x29xbf16> to vector<29x29xbf16>
    %174 = vector.extract_strided_slice %97 {offsets = [0, 64], sizes = [29, 8], strides = [1, 1]} : vector<29x96xbf16> to vector<29x8xbf16>
    %cst_69 = arith.constant dense<0.000000e+00> : vector<29x8xf32>
    %175 = tpu.matmul %173, %174, %cst_69 {dimension_numbers = #tpu.dot_dimension_numbers<[1], [0], [0], [1], [0, 0, 1, 1], [], []>} : vector<29x29xbf16>, vector<29x8xbf16>, vector<29x8xf32> -> vector<29x8xf32>
    %176 = vector.extract_strided_slice %172 {offsets = [29, 0], sizes = [29, 29], strides = [1, 1]} : vector<464x29xbf16> to vector<29x29xbf16>
    %177 = vector.extract_strided_slice %97 {offsets = [0, 72], sizes = [29, 8], strides = [1, 1]} : vector<29x96xbf16> to vector<29x8xbf16>
    %cst_70 = arith.constant dense<0.000000e+00> : vector<29x8xf32>
    %178 = tpu.matmul %176, %177, %cst_70 {dimension_numbers = #tpu.dot_dimension_numbers<[1], [0], [0], [1], [0, 0, 1, 1], [], []>} : vector<29x29xbf16>, vector<29x8xbf16>, vector<29x8xf32> -> vector<29x8xf32>
    %179 = vector.extract_strided_slice %172 {offsets = [58, 0], sizes = [29, 29], strides = [1, 1]} : vector<464x29xbf16> to vector<29x29xbf16>
    %180 = vector.extract_strided_slice %97 {offsets = [0, 80], sizes = [29, 8], strides = [1, 1]} : vector<29x96xbf16> to vector<29x8xbf16>
    %cst_71 = arith.constant dense<0.000000e+00> : vector<29x8xf32>
    %181 = tpu.matmul %179, %180, %cst_71 {dimension_numbers = #tpu.dot_dimension_numbers<[1], [0], [0], [1], [0, 0, 1, 1], [], []>} : vector<29x29xbf16>, vector<29x8xbf16>, vector<29x8xf32> -> vector<29x8xf32>
    %182 = vector.extract_strided_slice %172 {offsets = [87, 0], sizes = [29, 29], strides = [1, 1]} : vector<464x29xbf16> to vector<29x29xbf16>
    %183 = vector.extract_strided_slice %97 {offsets = [0, 88], sizes = [29, 8], strides = [1, 1]} : vector<29x96xbf16> to vector<29x8xbf16>
    %cst_72 = arith.constant dense<0.000000e+00> : vector<29x8xf32>
    %184 = tpu.matmul %182, %183, %cst_72 {dimension_numbers = #tpu.dot_dimension_numbers<[1], [0], [0], [1], [0, 0, 1, 1], [], []>} : vector<29x29xbf16>, vector<29x8xbf16>, vector<29x8xf32> -> vector<29x8xf32>
    %185 = tpu.concatenate %175, %178, %181, %184 in 1 : vector<29x8xf32>, vector<29x8xf32>, vector<29x8xf32>, vector<29x8xf32> -> vector<29x32xf32>
    %186 = vector.extract_strided_slice %172 {offsets = [116, 0], sizes = [29, 29], strides = [1, 1]} : vector<464x29xbf16> to vector<29x29xbf16>
    %187 = vector.extract_strided_slice %113 {offsets = [0, 64], sizes = [29, 8], strides = [1, 1]} : vector<29x96xbf16> to vector<29x8xbf16>
    %cst_73 = arith.constant dense<0.000000e+00> : vector<29x8xf32>
    %188 = tpu.matmul %186, %187, %cst_73 {dimension_numbers = #tpu.dot_dimension_numbers<[1], [0], [0], [1], [0, 0, 1, 1], [], []>} : vector<29x29xbf16>, vector<29x8xbf16>, vector<29x8xf32> -> vector<29x8xf32>
    %189 = vector.extract_strided_slice %172 {offsets = [145, 0], sizes = [29, 29], strides = [1, 1]} : vector<464x29xbf16> to vector<29x29xbf16>
    %190 = vector.extract_strided_slice %113 {offsets = [0, 72], sizes = [29, 8], strides = [1, 1]} : vector<29x96xbf16> to vector<29x8xbf16>
    %cst_74 = arith.constant dense<0.000000e+00> : vector<29x8xf32>
    %191 = tpu.matmul %189, %190, %cst_74 {dimension_numbers = #tpu.dot_dimension_numbers<[1], [0], [0], [1], [0, 0, 1, 1], [], []>} : vector<29x29xbf16>, vector<29x8xbf16>, vector<29x8xf32> -> vector<29x8xf32>
    %192 = vector.extract_strided_slice %172 {offsets = [174, 0], sizes = [29, 29], strides = [1, 1]} : vector<464x29xbf16> to vector<29x29xbf16>
    %193 = vector.extract_strided_slice %113 {offsets = [0, 80], sizes = [29, 8], strides = [1, 1]} : vector<29x96xbf16> to vector<29x8xbf16>
    %cst_75 = arith.constant dense<0.000000e+00> : vector<29x8xf32>
    %194 = tpu.matmul %192, %193, %cst_75 {dimension_numbers = #tpu.dot_dimension_numbers<[1], [0], [0], [1], [0, 0, 1, 1], [], []>} : vector<29x29xbf16>, vector<29x8xbf16>, vector<29x8xf32> -> vector<29x8xf32>
    %195 = vector.extract_strided_slice %172 {offsets = [203, 0], sizes = [29, 29], strides = [1, 1]} : vector<464x29xbf16> to vector<29x29xbf16>
    %196 = vector.extract_strided_slice %113 {offsets = [0, 88], sizes = [29, 8], strides = [1, 1]} : vector<29x96xbf16> to vector<29x8xbf16>
    %cst_76 = arith.constant dense<0.000000e+00> : vector<29x8xf32>
    %197 = tpu.matmul %195, %196, %cst_76 {dimension_numbers = #tpu.dot_dimension_numbers<[1], [0], [0], [1], [0, 0, 1, 1], [], []>} : vector<29x29xbf16>, vector<29x8xbf16>, vector<29x8xf32> -> vector<29x8xf32>
    %198 = tpu.concatenate %188, %191, %194, %197 in 1 : vector<29x8xf32>, vector<29x8xf32>, vector<29x8xf32>, vector<29x8xf32> -> vector<29x32xf32>
    %199 = vector.extract_strided_slice %172 {offsets = [232, 0], sizes = [29, 29], strides = [1, 1]} : vector<464x29xbf16> to vector<29x29xbf16>
    %200 = vector.extract_strided_slice %129 {offsets = [0, 64], sizes = [29, 8], strides = [1, 1]} : vector<29x96xbf16> to vector<29x8xbf16>
    %cst_77 = arith.constant dense<0.000000e+00> : vector<29x8xf32>
    %201 = tpu.matmul %199, %200, %cst_77 {dimension_numbers = #tpu.dot_dimension_numbers<[1], [0], [0], [1], [0, 0, 1, 1], [], []>} : vector<29x29xbf16>, vector<29x8xbf16>, vector<29x8xf32> -> vector<29x8xf32>
    %202 = vector.extract_strided_slice %172 {offsets = [261, 0], sizes = [29, 29], strides = [1, 1]} : vector<464x29xbf16> to vector<29x29xbf16>
    %203 = vector.extract_strided_slice %129 {offsets = [0, 72], sizes = [29, 8], strides = [1, 1]} : vector<29x96xbf16> to vector<29x8xbf16>
    %cst_78 = arith.constant dense<0.000000e+00> : vector<29x8xf32>
    %204 = tpu.matmul %202, %203, %cst_78 {dimension_numbers = #tpu.dot_dimension_numbers<[1], [0], [0], [1], [0, 0, 1, 1], [], []>} : vector<29x29xbf16>, vector<29x8xbf16>, vector<29x8xf32> -> vector<29x8xf32>
    %205 = vector.extract_strided_slice %172 {offsets = [290, 0], sizes = [29, 29], strides = [1, 1]} : vector<464x29xbf16> to vector<29x29xbf16>
    %206 = vector.extract_strided_slice %129 {offsets = [0, 80], sizes = [29, 8], strides = [1, 1]} : vector<29x96xbf16> to vector<29x8xbf16>
    %cst_79 = arith.constant dense<0.000000e+00> : vector<29x8xf32>
    %207 = tpu.matmul %205, %206, %cst_79 {dimension_numbers = #tpu.dot_dimension_numbers<[1], [0], [0], [1], [0, 0, 1, 1], [], []>} : vector<29x29xbf16>, vector<29x8xbf16>, vector<29x8xf32> -> vector<29x8xf32>
    %208 = vector.extract_strided_slice %172 {offsets = [319, 0], sizes = [29, 29], strides = [1, 1]} : vector<464x29xbf16> to vector<29x29xbf16>
    %209 = vector.extract_strided_slice %129 {offsets = [0, 88], sizes = [29, 8], strides = [1, 1]} : vector<29x96xbf16> to vector<29x8xbf16>
    %cst_80 = arith.constant dense<0.000000e+00> : vector<29x8xf32>
    %210 = tpu.matmul %208, %209, %cst_80 {dimension_numbers = #tpu.dot_dimension_numbers<[1], [0], [0], [1], [0, 0, 1, 1], [], []>} : vector<29x29xbf16>, vector<29x8xbf16>, vector<29x8xf32> -> vector<29x8xf32>
    %211 = tpu.concatenate %201, %204, %207, %210 in 1 : vector<29x8xf32>, vector<29x8xf32>, vector<29x8xf32>, vector<29x8xf32> -> vector<29x32xf32>
    %212 = vector.extract_strided_slice %172 {offsets = [348, 0], sizes = [29, 29], strides = [1, 1]} : vector<464x29xbf16> to vector<29x29xbf16>
    %213 = vector.extract_strided_slice %145 {offsets = [0, 64], sizes = [29, 8], strides = [1, 1]} : vector<29x96xbf16> to vector<29x8xbf16>
    %cst_81 = arith.constant dense<0.000000e+00> : vector<29x8xf32>
    %214 = tpu.matmul %212, %213, %cst_81 {dimension_numbers = #tpu.dot_dimension_numbers<[1], [0], [0], [1], [0, 0, 1, 1], [], []>} : vector<29x29xbf16>, vector<29x8xbf16>, vector<29x8xf32> -> vector<29x8xf32>
    %215 = vector.extract_strided_slice %172 {offsets = [377, 0], sizes = [29, 29], strides = [1, 1]} : vector<464x29xbf16> to vector<29x29xbf16>
    %216 = vector.extract_strided_slice %145 {offsets = [0, 72], sizes = [29, 8], strides = [1, 1]} : vector<29x96xbf16> to vector<29x8xbf16>
    %cst_82 = arith.constant dense<0.000000e+00> : vector<29x8xf32>
    %217 = tpu.matmul %215, %216, %cst_82 {dimension_numbers = #tpu.dot_dimension_numbers<[1], [0], [0], [1], [0, 0, 1, 1], [], []>} : vector<29x29xbf16>, vector<29x8xbf16>, vector<29x8xf32> -> vector<29x8xf32>
    %218 = vector.extract_strided_slice %172 {offsets = [406, 0], sizes = [29, 29], strides = [1, 1]} : vector<464x29xbf16> to vector<29x29xbf16>
    %219 = vector.extract_strided_slice %145 {offsets = [0, 80], sizes = [29, 8], strides = [1, 1]} : vector<29x96xbf16> to vector<29x8xbf16>
    %cst_83 = arith.constant dense<0.000000e+00> : vector<29x8xf32>
    %220 = tpu.matmul %218, %219, %cst_83 {dimension_numbers = #tpu.dot_dimension_numbers<[1], [0], [0], [1], [0, 0, 1, 1], [], []>} : vector<29x29xbf16>, vector<29x8xbf16>, vector<29x8xf32> -> vector<29x8xf32>
    %221 = vector.extract_strided_slice %172 {offsets = [435, 0], sizes = [29, 29], strides = [1, 1]} : vector<464x29xbf16> to vector<29x29xbf16>
    %222 = vector.extract_strided_slice %145 {offsets = [0, 88], sizes = [29, 8], strides = [1, 1]} : vector<29x96xbf16> to vector<29x8xbf16>
    %cst_84 = arith.constant dense<0.000000e+00> : vector<29x8xf32>
    %223 = tpu.matmul %221, %222, %cst_84 {dimension_numbers = #tpu.dot_dimension_numbers<[1], [0], [0], [1], [0, 0, 1, 1], [], []>} : vector<29x29xbf16>, vector<29x8xbf16>, vector<29x8xf32> -> vector<29x8xf32>
    %224 = tpu.concatenate %214, %217, %220, %223 in 1 : vector<29x8xf32>, vector<29x8xf32>, vector<29x8xf32>, vector<29x8xf32> -> vector<29x32xf32>
    %225 = tpu.concatenate %185, %198, %211, %224 in 0 : vector<29x32xf32>, vector<29x32xf32>, vector<29x32xf32>, vector<29x32xf32> -> vector<116x32xf32>
    %226 = arith.truncf %225 : vector<116x32xf32> to vector<116x32xbf16>
    %c0_85 = arith.constant 0 : index
    %c0_86 = arith.constant 0 : index
    %c0_87 = arith.constant 0 : index
    %227 = vector.load %arg7[%c0_85, %c0_86, %c0_87] : memref<2x32x32xbf16, #tpu.memory_space<vmem>>, vector<1x32x32xbf16>
    %228 = vector.shape_cast %227 : vector<1x32x32xbf16> to vector<32x32xbf16>
    %cst_88 = arith.constant dense<0.000000e+00> : vector<116x32xf32>
    %229 = tpu.matmul %226, %228, %cst_88 {dimension_numbers = #tpu.dot_dimension_numbers<[1], [0], [0], [1], [0, 0, 1, 1], [], []>} : vector<116x32xbf16>, vector<32x32xbf16>, vector<116x32xf32> -> vector<116x32xf32>
    %230 = arith.addf %57, %229 : vector<116x32xf32>
    %231 = vector.broadcast %65 : vector<1x32xf32> to vector<116x32xf32>
    %232 = arith.addf %230, %231 : vector<116x32xf32>
    %cst_89 = arith.constant dense<0.000000e+00> : vector<116xf32>
    %233 = vector.multi_reduction <add>, %232, %cst_89 [1] : vector<116x32xf32> to vector<116xf32>
    %234 = vector.shape_cast %233 : vector<116xf32> to vector<116x1xf32>
    %cst_90 = arith.constant 3.200000e+01 : f32
    %235 = vector.broadcast %cst_90 : f32 to vector<116x1xf32>
    %236 = arith.divf %234, %235 : vector<116x1xf32>
    %237 = vector.broadcast %236 : vector<116x1xf32> to vector<116x32xf32>
    %238 = arith.subf %232, %237 : vector<116x32xf32>
    %239 = arith.mulf %238, %238 : vector<116x32xf32>
    %cst_91 = arith.constant dense<0.000000e+00> : vector<116xf32>
    %240 = vector.multi_reduction <add>, %239, %cst_91 [1] : vector<116x32xf32> to vector<116xf32>
    %241 = vector.shape_cast %240 : vector<116xf32> to vector<116x1xf32>
    %cst_92 = arith.constant 3.200000e+01 : f32
    %242 = vector.broadcast %cst_92 : f32 to vector<116x1xf32>
    %243 = arith.divf %241, %242 : vector<116x1xf32>
    %244 = vector.broadcast %236 : vector<116x1xf32> to vector<116x32xf32>
    %245 = arith.subf %232, %244 : vector<116x32xf32>
    %cst_93 = arith.constant 9.99999974E-6 : f32
    %246 = vector.broadcast %cst_93 : f32 to vector<116x1xf32>
    %247 = arith.addf %243, %246 : vector<116x1xf32>
    %248 = math.rsqrt %247 : vector<116x1xf32>
    %249 = vector.broadcast %248 : vector<116x1xf32> to vector<116x32xf32>
    %250 = arith.mulf %245, %249 : vector<116x32xf32>
    %251 = vector.broadcast %60 : vector<1x32xf32> to vector<116x32xf32>
    %252 = arith.mulf %250, %251 : vector<116x32xf32>
    %253 = vector.broadcast %61 : vector<1x32xf32> to vector<116x32xf32>
    %254 = arith.addf %252, %253 : vector<116x32xf32>
    %255 = arith.truncf %254 : vector<116x32xf32> to vector<116x32xbf16>
    %c0_94 = arith.constant 0 : index
    %c0_95 = arith.constant 0 : index
    %c0_96 = arith.constant 0 : index
    %256 = vector.load %arg8[%c0_94, %c0_95, %c0_96] : memref<2x32x64xbf16, #tpu.memory_space<vmem>>, vector<1x32x64xbf16>
    %257 = vector.shape_cast %256 : vector<1x32x64xbf16> to vector<32x64xbf16>
    %cst_97 = arith.constant dense<0.000000e+00> : vector<116x64xf32>
    %258 = tpu.matmul %255, %257, %cst_97 {dimension_numbers = #tpu.dot_dimension_numbers<[1], [0], [0], [1], [0, 0, 1, 1], [], []>} : vector<116x32xbf16>, vector<32x64xbf16>, vector<116x64xf32> -> vector<116x64xf32>
    %259 = vector.broadcast %66 : vector<1x64xf32> to vector<116x64xf32>
    %260 = arith.addf %258, %259 : vector<116x64xf32>
    %cst_98 = arith.constant 5.000000e-01 : f32
    %261 = vector.broadcast %cst_98 : f32 to vector<116x64xf32>
    %262 = arith.mulf %261, %260 : vector<116x64xf32>
    %cst_99 = arith.constant 4.471500e-02 : f32
    %263 = vector.broadcast %cst_99 : f32 to vector<116x64xf32>
    %264 = arith.mulf %263, %260 : vector<116x64xf32>
    %265 = arith.mulf %264, %260 : vector<116x64xf32>
    %266 = arith.mulf %265, %260 : vector<116x64xf32>
    %267 = arith.addf %260, %266 : vector<116x64xf32>
    %cst_100 = arith.constant 0.797884583 : f32
    %268 = vector.broadcast %cst_100 : f32 to vector<116x64xf32>
    %269 = arith.mulf %268, %267 : vector<116x64xf32>
    %270 = math.tanh %269 : vector<116x64xf32>
    %cst_101 = arith.constant 1.000000e+00 : f32
    %271 = vector.broadcast %cst_101 : f32 to vector<116x64xf32>
    %272 = arith.addf %271, %270 : vector<116x64xf32>
    %273 = arith.mulf %262, %272 : vector<116x64xf32>
    %274 = arith.truncf %273 : vector<116x64xf32> to vector<116x64xbf16>
    %c0_102 = arith.constant 0 : index
    %c0_103 = arith.constant 0 : index
    %c0_104 = arith.constant 0 : index
    %275 = vector.load %arg9[%c0_102, %c0_103, %c0_104] : memref<2x64x32xbf16, #tpu.memory_space<vmem>>, vector<1x64x32xbf16>
    %276 = vector.shape_cast %275 : vector<1x64x32xbf16> to vector<64x32xbf16>
    %cst_105 = arith.constant dense<0.000000e+00> : vector<116x32xf32>
    %277 = tpu.matmul %274, %276, %cst_105 {dimension_numbers = #tpu.dot_dimension_numbers<[1], [0], [0], [1], [0, 0, 1, 1], [], []>} : vector<116x64xbf16>, vector<64x32xbf16>, vector<116x32xf32> -> vector<116x32xf32>
    %278 = arith.addf %232, %277 : vector<116x32xf32>
    %279 = vector.broadcast %67 : vector<1x32xf32> to vector<116x32xf32>
    %280 = arith.addf %278, %279 : vector<116x32xf32>
    %c1_106 = arith.constant 1 : index
    %c0_107 = arith.constant 0 : index
    %c0_108 = arith.constant 0 : index
    %281 = vector.load %arg5[%c1_106, %c0_107, %c0_108] : memref<2x2x32xf32, #tpu.memory_space<vmem>>, vector<1x2x32xf32>
    %282 = vector.shape_cast %281 : vector<1x2x32xf32> to vector<2x32xf32>
    %283 = vector.extract_strided_slice %282 {offsets = [0, 0], sizes = [1, 32], strides = [1, 1]} : vector<2x32xf32> to vector<1x32xf32>
    %284 = vector.extract_strided_slice %282 {offsets = [1, 0], sizes = [1, 32], strides = [1, 1]} : vector<2x32xf32> to vector<1x32xf32>
    %c1_109 = arith.constant 1 : index
    %c0_110 = arith.constant 0 : index
    %c0_111 = arith.constant 0 : index
    %285 = vector.load %arg10[%c1_109, %c0_110, %c0_111] : memref<2x4x128xf32, #tpu.memory_space<vmem>>, vector<1x4x128xf32>
    %286 = vector.shape_cast %285 : vector<1x4x128xf32> to vector<4x128xf32>
    %287 = vector.extract_strided_slice %286 {offsets = [0, 0], sizes = [1, 96], strides = [1, 1]} : vector<4x128xf32> to vector<1x96xf32>
    %288 = vector.extract_strided_slice %286 {offsets = [1, 0], sizes = [1, 32], strides = [1, 1]} : vector<4x128xf32> to vector<1x32xf32>
    %289 = vector.extract_strided_slice %286 {offsets = [2, 0], sizes = [1, 64], strides = [1, 1]} : vector<4x128xf32> to vector<1x64xf32>
    %290 = vector.extract_strided_slice %286 {offsets = [3, 0], sizes = [1, 32], strides = [1, 1]} : vector<4x128xf32> to vector<1x32xf32>
    %cst_112 = arith.constant dense<0.000000e+00> : vector<116xf32>
    %291 = vector.multi_reduction <add>, %280, %cst_112 [1] : vector<116x32xf32> to vector<116xf32>
    %292 = vector.shape_cast %291 : vector<116xf32> to vector<116x1xf32>
    %cst_113 = arith.constant 3.200000e+01 : f32
    %293 = vector.broadcast %cst_113 : f32 to vector<116x1xf32>
    %294 = arith.divf %292, %293 : vector<116x1xf32>
    %295 = vector.broadcast %294 : vector<116x1xf32> to vector<116x32xf32>
    %296 = arith.subf %280, %295 : vector<116x32xf32>
    %297 = arith.mulf %296, %296 : vector<116x32xf32>
    %cst_114 = arith.constant dense<0.000000e+00> : vector<116xf32>
    %298 = vector.multi_reduction <add>, %297, %cst_114 [1] : vector<116x32xf32> to vector<116xf32>
    %299 = vector.shape_cast %298 : vector<116xf32> to vector<116x1xf32>
    %cst_115 = arith.constant 3.200000e+01 : f32
    %300 = vector.broadcast %cst_115 : f32 to vector<116x1xf32>
    %301 = arith.divf %299, %300 : vector<116x1xf32>
    %302 = vector.broadcast %294 : vector<116x1xf32> to vector<116x32xf32>
    %303 = arith.subf %280, %302 : vector<116x32xf32>
    %cst_116 = arith.constant 9.99999974E-6 : f32
    %304 = vector.broadcast %cst_116 : f32 to vector<116x1xf32>
    %305 = arith.addf %301, %304 : vector<116x1xf32>
    %306 = math.rsqrt %305 : vector<116x1xf32>
    %307 = vector.broadcast %306 : vector<116x1xf32> to vector<116x32xf32>
    %308 = arith.mulf %303, %307 : vector<116x32xf32>
    %309 = vector.broadcast %283 : vector<1x32xf32> to vector<116x32xf32>
    %310 = arith.mulf %308, %309 : vector<116x32xf32>
    %311 = vector.broadcast %284 : vector<1x32xf32> to vector<116x32xf32>
    %312 = arith.addf %310, %311 : vector<116x32xf32>
    %313 = arith.truncf %312 : vector<116x32xf32> to vector<116x32xbf16>
    %c1_117 = arith.constant 1 : index
    %c0_118 = arith.constant 0 : index
    %c0_119 = arith.constant 0 : index
    %314 = vector.load %arg6[%c1_117, %c0_118, %c0_119] : memref<2x32x96xbf16, #tpu.memory_space<vmem>>, vector<1x32x96xbf16>
    %315 = vector.shape_cast %314 : vector<1x32x96xbf16> to vector<32x96xbf16>
    %cst_120 = arith.constant dense<0.000000e+00> : vector<116x96xf32>
    %316 = tpu.matmul %313, %315, %cst_120 {dimension_numbers = #tpu.dot_dimension_numbers<[1], [0], [0], [1], [0, 0, 1, 1], [], []>} : vector<116x32xbf16>, vector<32x96xbf16>, vector<116x96xf32> -> vector<116x96xf32>
    %317 = vector.broadcast %287 : vector<1x96xf32> to vector<116x96xf32>
    %318 = arith.addf %316, %317 : vector<116x96xf32>
    %319 = arith.truncf %318 : vector<116x96xf32> to vector<116x96xbf16>
    %320 = vector.extract_strided_slice %319 {offsets = [0, 0], sizes = [29, 96], strides = [1, 1]} : vector<116x96xbf16> to vector<29x96xbf16>
    %321 = vector.extract_strided_slice %318 {offsets = [0, 32], sizes = [29, 32], strides = [1, 1]} : vector<116x96xf32> to vector<29x32xf32>
    %322 = tpu.transpose %321, [1, 0] : vector<29x32xf32> -> vector<32x29xf32>
    %323 = arith.truncf %322 : vector<32x29xf32> to vector<32x29xbf16>
    %324 = vector.extract_strided_slice %320 {offsets = [0, 0], sizes = [29, 8], strides = [1, 1]} : vector<29x96xbf16> to vector<29x8xbf16>
    %325 = vector.extract_strided_slice %323 {offsets = [0, 0], sizes = [8, 29], strides = [1, 1]} : vector<32x29xbf16> to vector<8x29xbf16>
    %cst_121 = arith.constant dense<0.000000e+00> : vector<29x29xf32>
    %326 = tpu.matmul %324, %325, %cst_121 {dimension_numbers = #tpu.dot_dimension_numbers<[1], [0], [0], [1], [0, 0, 1, 1], [], []>} : vector<29x8xbf16>, vector<8x29xbf16>, vector<29x29xf32> -> vector<29x29xf32>
    %327 = vector.extract_strided_slice %320 {offsets = [0, 8], sizes = [29, 8], strides = [1, 1]} : vector<29x96xbf16> to vector<29x8xbf16>
    %328 = vector.extract_strided_slice %323 {offsets = [8, 0], sizes = [8, 29], strides = [1, 1]} : vector<32x29xbf16> to vector<8x29xbf16>
    %cst_122 = arith.constant dense<0.000000e+00> : vector<29x29xf32>
    %329 = tpu.matmul %327, %328, %cst_122 {dimension_numbers = #tpu.dot_dimension_numbers<[1], [0], [0], [1], [0, 0, 1, 1], [], []>} : vector<29x8xbf16>, vector<8x29xbf16>, vector<29x29xf32> -> vector<29x29xf32>
    %330 = vector.extract_strided_slice %320 {offsets = [0, 16], sizes = [29, 8], strides = [1, 1]} : vector<29x96xbf16> to vector<29x8xbf16>
    %331 = vector.extract_strided_slice %323 {offsets = [16, 0], sizes = [8, 29], strides = [1, 1]} : vector<32x29xbf16> to vector<8x29xbf16>
    %cst_123 = arith.constant dense<0.000000e+00> : vector<29x29xf32>
    %332 = tpu.matmul %330, %331, %cst_123 {dimension_numbers = #tpu.dot_dimension_numbers<[1], [0], [0], [1], [0, 0, 1, 1], [], []>} : vector<29x8xbf16>, vector<8x29xbf16>, vector<29x29xf32> -> vector<29x29xf32>
    %333 = vector.extract_strided_slice %320 {offsets = [0, 24], sizes = [29, 8], strides = [1, 1]} : vector<29x96xbf16> to vector<29x8xbf16>
    %334 = vector.extract_strided_slice %323 {offsets = [24, 0], sizes = [8, 29], strides = [1, 1]} : vector<32x29xbf16> to vector<8x29xbf16>
    %cst_124 = arith.constant dense<0.000000e+00> : vector<29x29xf32>
    %335 = tpu.matmul %333, %334, %cst_124 {dimension_numbers = #tpu.dot_dimension_numbers<[1], [0], [0], [1], [0, 0, 1, 1], [], []>} : vector<29x8xbf16>, vector<8x29xbf16>, vector<29x29xf32> -> vector<29x29xf32>
    %336 = vector.extract_strided_slice %319 {offsets = [29, 0], sizes = [29, 96], strides = [1, 1]} : vector<116x96xbf16> to vector<29x96xbf16>
    %337 = vector.extract_strided_slice %318 {offsets = [29, 32], sizes = [29, 32], strides = [1, 1]} : vector<116x96xf32> to vector<29x32xf32>
    %338 = tpu.transpose %337, [1, 0] : vector<29x32xf32> -> vector<32x29xf32>
    %339 = arith.truncf %338 : vector<32x29xf32> to vector<32x29xbf16>
    %340 = vector.extract_strided_slice %336 {offsets = [0, 0], sizes = [29, 8], strides = [1, 1]} : vector<29x96xbf16> to vector<29x8xbf16>
    %341 = vector.extract_strided_slice %339 {offsets = [0, 0], sizes = [8, 29], strides = [1, 1]} : vector<32x29xbf16> to vector<8x29xbf16>
    %cst_125 = arith.constant dense<0.000000e+00> : vector<29x29xf32>
    %342 = tpu.matmul %340, %341, %cst_125 {dimension_numbers = #tpu.dot_dimension_numbers<[1], [0], [0], [1], [0, 0, 1, 1], [], []>} : vector<29x8xbf16>, vector<8x29xbf16>, vector<29x29xf32> -> vector<29x29xf32>
    %343 = vector.extract_strided_slice %336 {offsets = [0, 8], sizes = [29, 8], strides = [1, 1]} : vector<29x96xbf16> to vector<29x8xbf16>
    %344 = vector.extract_strided_slice %339 {offsets = [8, 0], sizes = [8, 29], strides = [1, 1]} : vector<32x29xbf16> to vector<8x29xbf16>
    %cst_126 = arith.constant dense<0.000000e+00> : vector<29x29xf32>
    %345 = tpu.matmul %343, %344, %cst_126 {dimension_numbers = #tpu.dot_dimension_numbers<[1], [0], [0], [1], [0, 0, 1, 1], [], []>} : vector<29x8xbf16>, vector<8x29xbf16>, vector<29x29xf32> -> vector<29x29xf32>
    %346 = vector.extract_strided_slice %336 {offsets = [0, 16], sizes = [29, 8], strides = [1, 1]} : vector<29x96xbf16> to vector<29x8xbf16>
    %347 = vector.extract_strided_slice %339 {offsets = [16, 0], sizes = [8, 29], strides = [1, 1]} : vector<32x29xbf16> to vector<8x29xbf16>
    %cst_127 = arith.constant dense<0.000000e+00> : vector<29x29xf32>
    %348 = tpu.matmul %346, %347, %cst_127 {dimension_numbers = #tpu.dot_dimension_numbers<[1], [0], [0], [1], [0, 0, 1, 1], [], []>} : vector<29x8xbf16>, vector<8x29xbf16>, vector<29x29xf32> -> vector<29x29xf32>
    %349 = vector.extract_strided_slice %336 {offsets = [0, 24], sizes = [29, 8], strides = [1, 1]} : vector<29x96xbf16> to vector<29x8xbf16>
    %350 = vector.extract_strided_slice %339 {offsets = [24, 0], sizes = [8, 29], strides = [1, 1]} : vector<32x29xbf16> to vector<8x29xbf16>
    %cst_128 = arith.constant dense<0.000000e+00> : vector<29x29xf32>
    %351 = tpu.matmul %349, %350, %cst_128 {dimension_numbers = #tpu.dot_dimension_numbers<[1], [0], [0], [1], [0, 0, 1, 1], [], []>} : vector<29x8xbf16>, vector<8x29xbf16>, vector<29x29xf32> -> vector<29x29xf32>
    %352 = vector.extract_strided_slice %319 {offsets = [58, 0], sizes = [29, 96], strides = [1, 1]} : vector<116x96xbf16> to vector<29x96xbf16>
    %353 = vector.extract_strided_slice %318 {offsets = [58, 32], sizes = [29, 32], strides = [1, 1]} : vector<116x96xf32> to vector<29x32xf32>
    %354 = tpu.transpose %353, [1, 0] : vector<29x32xf32> -> vector<32x29xf32>
    %355 = arith.truncf %354 : vector<32x29xf32> to vector<32x29xbf16>
    %356 = vector.extract_strided_slice %352 {offsets = [0, 0], sizes = [29, 8], strides = [1, 1]} : vector<29x96xbf16> to vector<29x8xbf16>
    %357 = vector.extract_strided_slice %355 {offsets = [0, 0], sizes = [8, 29], strides = [1, 1]} : vector<32x29xbf16> to vector<8x29xbf16>
    %cst_129 = arith.constant dense<0.000000e+00> : vector<29x29xf32>
    %358 = tpu.matmul %356, %357, %cst_129 {dimension_numbers = #tpu.dot_dimension_numbers<[1], [0], [0], [1], [0, 0, 1, 1], [], []>} : vector<29x8xbf16>, vector<8x29xbf16>, vector<29x29xf32> -> vector<29x29xf32>
    %359 = vector.extract_strided_slice %352 {offsets = [0, 8], sizes = [29, 8], strides = [1, 1]} : vector<29x96xbf16> to vector<29x8xbf16>
    %360 = vector.extract_strided_slice %355 {offsets = [8, 0], sizes = [8, 29], strides = [1, 1]} : vector<32x29xbf16> to vector<8x29xbf16>
    %cst_130 = arith.constant dense<0.000000e+00> : vector<29x29xf32>
    %361 = tpu.matmul %359, %360, %cst_130 {dimension_numbers = #tpu.dot_dimension_numbers<[1], [0], [0], [1], [0, 0, 1, 1], [], []>} : vector<29x8xbf16>, vector<8x29xbf16>, vector<29x29xf32> -> vector<29x29xf32>
    %362 = vector.extract_strided_slice %352 {offsets = [0, 16], sizes = [29, 8], strides = [1, 1]} : vector<29x96xbf16> to vector<29x8xbf16>
    %363 = vector.extract_strided_slice %355 {offsets = [16, 0], sizes = [8, 29], strides = [1, 1]} : vector<32x29xbf16> to vector<8x29xbf16>
    %cst_131 = arith.constant dense<0.000000e+00> : vector<29x29xf32>
    %364 = tpu.matmul %362, %363, %cst_131 {dimension_numbers = #tpu.dot_dimension_numbers<[1], [0], [0], [1], [0, 0, 1, 1], [], []>} : vector<29x8xbf16>, vector<8x29xbf16>, vector<29x29xf32> -> vector<29x29xf32>
    %365 = vector.extract_strided_slice %352 {offsets = [0, 24], sizes = [29, 8], strides = [1, 1]} : vector<29x96xbf16> to vector<29x8xbf16>
    %366 = vector.extract_strided_slice %355 {offsets = [24, 0], sizes = [8, 29], strides = [1, 1]} : vector<32x29xbf16> to vector<8x29xbf16>
    %cst_132 = arith.constant dense<0.000000e+00> : vector<29x29xf32>
    %367 = tpu.matmul %365, %366, %cst_132 {dimension_numbers = #tpu.dot_dimension_numbers<[1], [0], [0], [1], [0, 0, 1, 1], [], []>} : vector<29x8xbf16>, vector<8x29xbf16>, vector<29x29xf32> -> vector<29x29xf32>
    %368 = vector.extract_strided_slice %319 {offsets = [87, 0], sizes = [29, 96], strides = [1, 1]} : vector<116x96xbf16> to vector<29x96xbf16>
    %369 = vector.extract_strided_slice %318 {offsets = [87, 32], sizes = [29, 32], strides = [1, 1]} : vector<116x96xf32> to vector<29x32xf32>
    %370 = tpu.transpose %369, [1, 0] : vector<29x32xf32> -> vector<32x29xf32>
    %371 = arith.truncf %370 : vector<32x29xf32> to vector<32x29xbf16>
    %372 = vector.extract_strided_slice %368 {offsets = [0, 0], sizes = [29, 8], strides = [1, 1]} : vector<29x96xbf16> to vector<29x8xbf16>
    %373 = vector.extract_strided_slice %371 {offsets = [0, 0], sizes = [8, 29], strides = [1, 1]} : vector<32x29xbf16> to vector<8x29xbf16>
    %cst_133 = arith.constant dense<0.000000e+00> : vector<29x29xf32>
    %374 = tpu.matmul %372, %373, %cst_133 {dimension_numbers = #tpu.dot_dimension_numbers<[1], [0], [0], [1], [0, 0, 1, 1], [], []>} : vector<29x8xbf16>, vector<8x29xbf16>, vector<29x29xf32> -> vector<29x29xf32>
    %375 = vector.extract_strided_slice %368 {offsets = [0, 8], sizes = [29, 8], strides = [1, 1]} : vector<29x96xbf16> to vector<29x8xbf16>
    %376 = vector.extract_strided_slice %371 {offsets = [8, 0], sizes = [8, 29], strides = [1, 1]} : vector<32x29xbf16> to vector<8x29xbf16>
    %cst_134 = arith.constant dense<0.000000e+00> : vector<29x29xf32>
    %377 = tpu.matmul %375, %376, %cst_134 {dimension_numbers = #tpu.dot_dimension_numbers<[1], [0], [0], [1], [0, 0, 1, 1], [], []>} : vector<29x8xbf16>, vector<8x29xbf16>, vector<29x29xf32> -> vector<29x29xf32>
    %378 = vector.extract_strided_slice %368 {offsets = [0, 16], sizes = [29, 8], strides = [1, 1]} : vector<29x96xbf16> to vector<29x8xbf16>
    %379 = vector.extract_strided_slice %371 {offsets = [16, 0], sizes = [8, 29], strides = [1, 1]} : vector<32x29xbf16> to vector<8x29xbf16>
    %cst_135 = arith.constant dense<0.000000e+00> : vector<29x29xf32>
    %380 = tpu.matmul %378, %379, %cst_135 {dimension_numbers = #tpu.dot_dimension_numbers<[1], [0], [0], [1], [0, 0, 1, 1], [], []>} : vector<29x8xbf16>, vector<8x29xbf16>, vector<29x29xf32> -> vector<29x29xf32>
    %381 = vector.extract_strided_slice %368 {offsets = [0, 24], sizes = [29, 8], strides = [1, 1]} : vector<29x96xbf16> to vector<29x8xbf16>
    %382 = vector.extract_strided_slice %371 {offsets = [24, 0], sizes = [8, 29], strides = [1, 1]} : vector<32x29xbf16> to vector<8x29xbf16>
    %cst_136 = arith.constant dense<0.000000e+00> : vector<29x29xf32>
    %383 = tpu.matmul %381, %382, %cst_136 {dimension_numbers = #tpu.dot_dimension_numbers<[1], [0], [0], [1], [0, 0, 1, 1], [], []>} : vector<29x8xbf16>, vector<8x29xbf16>, vector<29x29xf32> -> vector<29x29xf32>
    %384 = tpu.concatenate %326, %329, %332, %335, %342, %345, %348, %351, %358, %361, %364, %367, %374, %377, %380, %383 in 0 : vector<29x29xf32>, vector<29x29xf32>, vector<29x29xf32>, vector<29x29xf32>, vector<29x29xf32>, vector<29x29xf32>, vector<29x29xf32>, vector<29x29xf32>, vector<29x29xf32>, vector<29x29xf32>, vector<29x29xf32>, vector<29x29xf32>, vector<29x29xf32>, vector<29x29xf32>, vector<29x29xf32>, vector<29x29xf32> -> vector<464x29xf32>
    %cst_137 = arith.constant dense<0xFF800000> : vector<464xf32>
    %385 = vector.multi_reduction <maximumf>, %384, %cst_137 [1] : vector<464x29xf32> to vector<464xf32>
    %386 = vector.shape_cast %385 : vector<464xf32> to vector<464x1xf32>
    %387 = vector.broadcast %386 : vector<464x1xf32> to vector<464x29xf32>
    %388 = arith.subf %384, %387 : vector<464x29xf32>
    %389 = math.exp %388 : vector<464x29xf32>
    %cst_138 = arith.constant dense<0.000000e+00> : vector<464xf32>
    %390 = vector.multi_reduction <add>, %389, %cst_138 [1] : vector<464x29xf32> to vector<464xf32>
    %391 = vector.shape_cast %390 : vector<464xf32> to vector<464x1xf32>
    %392 = tpu.reciprocal %391 {approx = true} : vector<464x1xf32> -> vector<464x1xf32>
    %393 = vector.broadcast %392 : vector<464x1xf32> to vector<464x29xf32>
    %394 = arith.mulf %389, %393 : vector<464x29xf32>
    %395 = arith.truncf %394 : vector<464x29xf32> to vector<464x29xbf16>
    %396 = vector.extract_strided_slice %395 {offsets = [0, 0], sizes = [29, 29], strides = [1, 1]} : vector<464x29xbf16> to vector<29x29xbf16>
    %397 = vector.extract_strided_slice %320 {offsets = [0, 64], sizes = [29, 8], strides = [1, 1]} : vector<29x96xbf16> to vector<29x8xbf16>
    %cst_139 = arith.constant dense<0.000000e+00> : vector<29x8xf32>
    %398 = tpu.matmul %396, %397, %cst_139 {dimension_numbers = #tpu.dot_dimension_numbers<[1], [0], [0], [1], [0, 0, 1, 1], [], []>} : vector<29x29xbf16>, vector<29x8xbf16>, vector<29x8xf32> -> vector<29x8xf32>
    %399 = vector.extract_strided_slice %395 {offsets = [29, 0], sizes = [29, 29], strides = [1, 1]} : vector<464x29xbf16> to vector<29x29xbf16>
    %400 = vector.extract_strided_slice %320 {offsets = [0, 72], sizes = [29, 8], strides = [1, 1]} : vector<29x96xbf16> to vector<29x8xbf16>
    %cst_140 = arith.constant dense<0.000000e+00> : vector<29x8xf32>
    %401 = tpu.matmul %399, %400, %cst_140 {dimension_numbers = #tpu.dot_dimension_numbers<[1], [0], [0], [1], [0, 0, 1, 1], [], []>} : vector<29x29xbf16>, vector<29x8xbf16>, vector<29x8xf32> -> vector<29x8xf32>
    %402 = vector.extract_strided_slice %395 {offsets = [58, 0], sizes = [29, 29], strides = [1, 1]} : vector<464x29xbf16> to vector<29x29xbf16>
    %403 = vector.extract_strided_slice %320 {offsets = [0, 80], sizes = [29, 8], strides = [1, 1]} : vector<29x96xbf16> to vector<29x8xbf16>
    %cst_141 = arith.constant dense<0.000000e+00> : vector<29x8xf32>
    %404 = tpu.matmul %402, %403, %cst_141 {dimension_numbers = #tpu.dot_dimension_numbers<[1], [0], [0], [1], [0, 0, 1, 1], [], []>} : vector<29x29xbf16>, vector<29x8xbf16>, vector<29x8xf32> -> vector<29x8xf32>
    %405 = vector.extract_strided_slice %395 {offsets = [87, 0], sizes = [29, 29], strides = [1, 1]} : vector<464x29xbf16> to vector<29x29xbf16>
    %406 = vector.extract_strided_slice %320 {offsets = [0, 88], sizes = [29, 8], strides = [1, 1]} : vector<29x96xbf16> to vector<29x8xbf16>
    %cst_142 = arith.constant dense<0.000000e+00> : vector<29x8xf32>
    %407 = tpu.matmul %405, %406, %cst_142 {dimension_numbers = #tpu.dot_dimension_numbers<[1], [0], [0], [1], [0, 0, 1, 1], [], []>} : vector<29x29xbf16>, vector<29x8xbf16>, vector<29x8xf32> -> vector<29x8xf32>
    %408 = tpu.concatenate %398, %401, %404, %407 in 1 : vector<29x8xf32>, vector<29x8xf32>, vector<29x8xf32>, vector<29x8xf32> -> vector<29x32xf32>
    %409 = vector.extract_strided_slice %395 {offsets = [116, 0], sizes = [29, 29], strides = [1, 1]} : vector<464x29xbf16> to vector<29x29xbf16>
    %410 = vector.extract_strided_slice %336 {offsets = [0, 64], sizes = [29, 8], strides = [1, 1]} : vector<29x96xbf16> to vector<29x8xbf16>
    %cst_143 = arith.constant dense<0.000000e+00> : vector<29x8xf32>
    %411 = tpu.matmul %409, %410, %cst_143 {dimension_numbers = #tpu.dot_dimension_numbers<[1], [0], [0], [1], [0, 0, 1, 1], [], []>} : vector<29x29xbf16>, vector<29x8xbf16>, vector<29x8xf32> -> vector<29x8xf32>
    %412 = vector.extract_strided_slice %395 {offsets = [145, 0], sizes = [29, 29], strides = [1, 1]} : vector<464x29xbf16> to vector<29x29xbf16>
    %413 = vector.extract_strided_slice %336 {offsets = [0, 72], sizes = [29, 8], strides = [1, 1]} : vector<29x96xbf16> to vector<29x8xbf16>
    %cst_144 = arith.constant dense<0.000000e+00> : vector<29x8xf32>
    %414 = tpu.matmul %412, %413, %cst_144 {dimension_numbers = #tpu.dot_dimension_numbers<[1], [0], [0], [1], [0, 0, 1, 1], [], []>} : vector<29x29xbf16>, vector<29x8xbf16>, vector<29x8xf32> -> vector<29x8xf32>
    %415 = vector.extract_strided_slice %395 {offsets = [174, 0], sizes = [29, 29], strides = [1, 1]} : vector<464x29xbf16> to vector<29x29xbf16>
    %416 = vector.extract_strided_slice %336 {offsets = [0, 80], sizes = [29, 8], strides = [1, 1]} : vector<29x96xbf16> to vector<29x8xbf16>
    %cst_145 = arith.constant dense<0.000000e+00> : vector<29x8xf32>
    %417 = tpu.matmul %415, %416, %cst_145 {dimension_numbers = #tpu.dot_dimension_numbers<[1], [0], [0], [1], [0, 0, 1, 1], [], []>} : vector<29x29xbf16>, vector<29x8xbf16>, vector<29x8xf32> -> vector<29x8xf32>
    %418 = vector.extract_strided_slice %395 {offsets = [203, 0], sizes = [29, 29], strides = [1, 1]} : vector<464x29xbf16> to vector<29x29xbf16>
    %419 = vector.extract_strided_slice %336 {offsets = [0, 88], sizes = [29, 8], strides = [1, 1]} : vector<29x96xbf16> to vector<29x8xbf16>
    %cst_146 = arith.constant dense<0.000000e+00> : vector<29x8xf32>
    %420 = tpu.matmul %418, %419, %cst_146 {dimension_numbers = #tpu.dot_dimension_numbers<[1], [0], [0], [1], [0, 0, 1, 1], [], []>} : vector<29x29xbf16>, vector<29x8xbf16>, vector<29x8xf32> -> vector<29x8xf32>
    %421 = tpu.concatenate %411, %414, %417, %420 in 1 : vector<29x8xf32>, vector<29x8xf32>, vector<29x8xf32>, vector<29x8xf32> -> vector<29x32xf32>
    %422 = vector.extract_strided_slice %395 {offsets = [232, 0], sizes = [29, 29], strides = [1, 1]} : vector<464x29xbf16> to vector<29x29xbf16>
    %423 = vector.extract_strided_slice %352 {offsets = [0, 64], sizes = [29, 8], strides = [1, 1]} : vector<29x96xbf16> to vector<29x8xbf16>
    %cst_147 = arith.constant dense<0.000000e+00> : vector<29x8xf32>
    %424 = tpu.matmul %422, %423, %cst_147 {dimension_numbers = #tpu.dot_dimension_numbers<[1], [0], [0], [1], [0, 0, 1, 1], [], []>} : vector<29x29xbf16>, vector<29x8xbf16>, vector<29x8xf32> -> vector<29x8xf32>
    %425 = vector.extract_strided_slice %395 {offsets = [261, 0], sizes = [29, 29], strides = [1, 1]} : vector<464x29xbf16> to vector<29x29xbf16>
    %426 = vector.extract_strided_slice %352 {offsets = [0, 72], sizes = [29, 8], strides = [1, 1]} : vector<29x96xbf16> to vector<29x8xbf16>
    %cst_148 = arith.constant dense<0.000000e+00> : vector<29x8xf32>
    %427 = tpu.matmul %425, %426, %cst_148 {dimension_numbers = #tpu.dot_dimension_numbers<[1], [0], [0], [1], [0, 0, 1, 1], [], []>} : vector<29x29xbf16>, vector<29x8xbf16>, vector<29x8xf32> -> vector<29x8xf32>
    %428 = vector.extract_strided_slice %395 {offsets = [290, 0], sizes = [29, 29], strides = [1, 1]} : vector<464x29xbf16> to vector<29x29xbf16>
    %429 = vector.extract_strided_slice %352 {offsets = [0, 80], sizes = [29, 8], strides = [1, 1]} : vector<29x96xbf16> to vector<29x8xbf16>
    %cst_149 = arith.constant dense<0.000000e+00> : vector<29x8xf32>
    %430 = tpu.matmul %428, %429, %cst_149 {dimension_numbers = #tpu.dot_dimension_numbers<[1], [0], [0], [1], [0, 0, 1, 1], [], []>} : vector<29x29xbf16>, vector<29x8xbf16>, vector<29x8xf32> -> vector<29x8xf32>
    %431 = vector.extract_strided_slice %395 {offsets = [319, 0], sizes = [29, 29], strides = [1, 1]} : vector<464x29xbf16> to vector<29x29xbf16>
    %432 = vector.extract_strided_slice %352 {offsets = [0, 88], sizes = [29, 8], strides = [1, 1]} : vector<29x96xbf16> to vector<29x8xbf16>
    %cst_150 = arith.constant dense<0.000000e+00> : vector<29x8xf32>
    %433 = tpu.matmul %431, %432, %cst_150 {dimension_numbers = #tpu.dot_dimension_numbers<[1], [0], [0], [1], [0, 0, 1, 1], [], []>} : vector<29x29xbf16>, vector<29x8xbf16>, vector<29x8xf32> -> vector<29x8xf32>
    %434 = tpu.concatenate %424, %427, %430, %433 in 1 : vector<29x8xf32>, vector<29x8xf32>, vector<29x8xf32>, vector<29x8xf32> -> vector<29x32xf32>
    %435 = vector.extract_strided_slice %395 {offsets = [348, 0], sizes = [29, 29], strides = [1, 1]} : vector<464x29xbf16> to vector<29x29xbf16>
    %436 = vector.extract_strided_slice %368 {offsets = [0, 64], sizes = [29, 8], strides = [1, 1]} : vector<29x96xbf16> to vector<29x8xbf16>
    %cst_151 = arith.constant dense<0.000000e+00> : vector<29x8xf32>
    %437 = tpu.matmul %435, %436, %cst_151 {dimension_numbers = #tpu.dot_dimension_numbers<[1], [0], [0], [1], [0, 0, 1, 1], [], []>} : vector<29x29xbf16>, vector<29x8xbf16>, vector<29x8xf32> -> vector<29x8xf32>
    %438 = vector.extract_strided_slice %395 {offsets = [377, 0], sizes = [29, 29], strides = [1, 1]} : vector<464x29xbf16> to vector<29x29xbf16>
    %439 = vector.extract_strided_slice %368 {offsets = [0, 72], sizes = [29, 8], strides = [1, 1]} : vector<29x96xbf16> to vector<29x8xbf16>
    %cst_152 = arith.constant dense<0.000000e+00> : vector<29x8xf32>
    %440 = tpu.matmul %438, %439, %cst_152 {dimension_numbers = #tpu.dot_dimension_numbers<[1], [0], [0], [1], [0, 0, 1, 1], [], []>} : vector<29x29xbf16>, vector<29x8xbf16>, vector<29x8xf32> -> vector<29x8xf32>
    %441 = vector.extract_strided_slice %395 {offsets = [406, 0], sizes = [29, 29], strides = [1, 1]} : vector<464x29xbf16> to vector<29x29xbf16>
    %442 = vector.extract_strided_slice %368 {offsets = [0, 80], sizes = [29, 8], strides = [1, 1]} : vector<29x96xbf16> to vector<29x8xbf16>
    %cst_153 = arith.constant dense<0.000000e+00> : vector<29x8xf32>
    %443 = tpu.matmul %441, %442, %cst_153 {dimension_numbers = #tpu.dot_dimension_numbers<[1], [0], [0], [1], [0, 0, 1, 1], [], []>} : vector<29x29xbf16>, vector<29x8xbf16>, vector<29x8xf32> -> vector<29x8xf32>
    %444 = vector.extract_strided_slice %395 {offsets = [435, 0], sizes = [29, 29], strides = [1, 1]} : vector<464x29xbf16> to vector<29x29xbf16>
    %445 = vector.extract_strided_slice %368 {offsets = [0, 88], sizes = [29, 8], strides = [1, 1]} : vector<29x96xbf16> to vector<29x8xbf16>
    %cst_154 = arith.constant dense<0.000000e+00> : vector<29x8xf32>
    %446 = tpu.matmul %444, %445, %cst_154 {dimension_numbers = #tpu.dot_dimension_numbers<[1], [0], [0], [1], [0, 0, 1, 1], [], []>} : vector<29x29xbf16>, vector<29x8xbf16>, vector<29x8xf32> -> vector<29x8xf32>
    %447 = tpu.concatenate %437, %440, %443, %446 in 1 : vector<29x8xf32>, vector<29x8xf32>, vector<29x8xf32>, vector<29x8xf32> -> vector<29x32xf32>
    %448 = tpu.concatenate %408, %421, %434, %447 in 0 : vector<29x32xf32>, vector<29x32xf32>, vector<29x32xf32>, vector<29x32xf32> -> vector<116x32xf32>
    %449 = arith.truncf %448 : vector<116x32xf32> to vector<116x32xbf16>
    %c1_155 = arith.constant 1 : index
    %c0_156 = arith.constant 0 : index
    %c0_157 = arith.constant 0 : index
    %450 = vector.load %arg7[%c1_155, %c0_156, %c0_157] : memref<2x32x32xbf16, #tpu.memory_space<vmem>>, vector<1x32x32xbf16>
    %451 = vector.shape_cast %450 : vector<1x32x32xbf16> to vector<32x32xbf16>
    %cst_158 = arith.constant dense<0.000000e+00> : vector<116x32xf32>
    %452 = tpu.matmul %449, %451, %cst_158 {dimension_numbers = #tpu.dot_dimension_numbers<[1], [0], [0], [1], [0, 0, 1, 1], [], []>} : vector<116x32xbf16>, vector<32x32xbf16>, vector<116x32xf32> -> vector<116x32xf32>
    %453 = arith.addf %280, %452 : vector<116x32xf32>
    %454 = vector.broadcast %288 : vector<1x32xf32> to vector<116x32xf32>
    %455 = arith.addf %453, %454 : vector<116x32xf32>
    %cst_159 = arith.constant dense<0.000000e+00> : vector<116xf32>
    %456 = vector.multi_reduction <add>, %455, %cst_159 [1] : vector<116x32xf32> to vector<116xf32>
    %457 = vector.shape_cast %456 : vector<116xf32> to vector<116x1xf32>
    %cst_160 = arith.constant 3.200000e+01 : f32
    %458 = vector.broadcast %cst_160 : f32 to vector<116x1xf32>
    %459 = arith.divf %457, %458 : vector<116x1xf32>
    %460 = vector.broadcast %459 : vector<116x1xf32> to vector<116x32xf32>
    %461 = arith.subf %455, %460 : vector<116x32xf32>
    %462 = arith.mulf %461, %461 : vector<116x32xf32>
    %cst_161 = arith.constant dense<0.000000e+00> : vector<116xf32>
    %463 = vector.multi_reduction <add>, %462, %cst_161 [1] : vector<116x32xf32> to vector<116xf32>
    %464 = vector.shape_cast %463 : vector<116xf32> to vector<116x1xf32>
    %cst_162 = arith.constant 3.200000e+01 : f32
    %465 = vector.broadcast %cst_162 : f32 to vector<116x1xf32>
    %466 = arith.divf %464, %465 : vector<116x1xf32>
    %467 = vector.broadcast %459 : vector<116x1xf32> to vector<116x32xf32>
    %468 = arith.subf %455, %467 : vector<116x32xf32>
    %cst_163 = arith.constant 9.99999974E-6 : f32
    %469 = vector.broadcast %cst_163 : f32 to vector<116x1xf32>
    %470 = arith.addf %466, %469 : vector<116x1xf32>
    %471 = math.rsqrt %470 : vector<116x1xf32>
    %472 = vector.broadcast %471 : vector<116x1xf32> to vector<116x32xf32>
    %473 = arith.mulf %468, %472 : vector<116x32xf32>
    %474 = vector.broadcast %283 : vector<1x32xf32> to vector<116x32xf32>
    %475 = arith.mulf %473, %474 : vector<116x32xf32>
    %476 = vector.broadcast %284 : vector<1x32xf32> to vector<116x32xf32>
    %477 = arith.addf %475, %476 : vector<116x32xf32>
    %478 = arith.truncf %477 : vector<116x32xf32> to vector<116x32xbf16>
    %c1_164 = arith.constant 1 : index
    %c0_165 = arith.constant 0 : index
    %c0_166 = arith.constant 0 : index
    %479 = vector.load %arg8[%c1_164, %c0_165, %c0_166] : memref<2x32x64xbf16, #tpu.memory_space<vmem>>, vector<1x32x64xbf16>
    %480 = vector.shape_cast %479 : vector<1x32x64xbf16> to vector<32x64xbf16>
    %cst_167 = arith.constant dense<0.000000e+00> : vector<116x64xf32>
    %481 = tpu.matmul %478, %480, %cst_167 {dimension_numbers = #tpu.dot_dimension_numbers<[1], [0], [0], [1], [0, 0, 1, 1], [], []>} : vector<116x32xbf16>, vector<32x64xbf16>, vector<116x64xf32> -> vector<116x64xf32>
    %482 = vector.broadcast %289 : vector<1x64xf32> to vector<116x64xf32>
    %483 = arith.addf %481, %482 : vector<116x64xf32>
    %cst_168 = arith.constant 5.000000e-01 : f32
    %484 = vector.broadcast %cst_168 : f32 to vector<116x64xf32>
    %485 = arith.mulf %484, %483 : vector<116x64xf32>
    %cst_169 = arith.constant 4.471500e-02 : f32
    %486 = vector.broadcast %cst_169 : f32 to vector<116x64xf32>
    %487 = arith.mulf %486, %483 : vector<116x64xf32>
    %488 = arith.mulf %487, %483 : vector<116x64xf32>
    %489 = arith.mulf %488, %483 : vector<116x64xf32>
    %490 = arith.addf %483, %489 : vector<116x64xf32>
    %cst_170 = arith.constant 0.797884583 : f32
    %491 = vector.broadcast %cst_170 : f32 to vector<116x64xf32>
    %492 = arith.mulf %491, %490 : vector<116x64xf32>
    %493 = math.tanh %492 : vector<116x64xf32>
    %cst_171 = arith.constant 1.000000e+00 : f32
    %494 = vector.broadcast %cst_171 : f32 to vector<116x64xf32>
    %495 = arith.addf %494, %493 : vector<116x64xf32>
    %496 = arith.mulf %485, %495 : vector<116x64xf32>
    %497 = arith.truncf %496 : vector<116x64xf32> to vector<116x64xbf16>
    %c1_172 = arith.constant 1 : index
    %c0_173 = arith.constant 0 : index
    %c0_174 = arith.constant 0 : index
    %498 = vector.load %arg9[%c1_172, %c0_173, %c0_174] : memref<2x64x32xbf16, #tpu.memory_space<vmem>>, vector<1x64x32xbf16>
    %499 = vector.shape_cast %498 : vector<1x64x32xbf16> to vector<64x32xbf16>
    %cst_175 = arith.constant dense<0.000000e+00> : vector<116x32xf32>
    %500 = tpu.matmul %497, %499, %cst_175 {dimension_numbers = #tpu.dot_dimension_numbers<[1], [0], [0], [1], [0, 0, 1, 1], [], []>} : vector<116x64xbf16>, vector<64x32xbf16>, vector<116x32xf32> -> vector<116x32xf32>
    %501 = arith.addf %455, %500 : vector<116x32xf32>
    %502 = vector.broadcast %290 : vector<1x32xf32> to vector<116x32xf32>
    %503 = arith.addf %501, %502 : vector<116x32xf32>
    %504 = vector.extract_strided_slice %503 {offsets = [0, 0], sizes = [29, 32], strides = [1, 1]} : vector<116x32xf32> to vector<29x32xf32>
    %c0_176 = arith.constant 0 : index
    %c0_177 = arith.constant 0 : index
    %c0_178 = arith.constant 0 : index
    %505 = vector.load %arg11[%c0_176, %c0_177, %c0_178] : memref<4x29x32xf32, #tpu.memory_space<vmem>>, vector<1x29x32xf32>
    %506 = vector.shape_cast %505 : vector<1x29x32xf32> to vector<29x32xf32>
    %507 = vector.shape_cast %504 : vector<29x32xf32> to vector<1x29x32xf32>
    tpu.vector_store %arg11[%c0_176, %c0_177, %c0_178], %507 {strides = array<i32>} : memref<4x29x32xf32, #tpu.memory_space<vmem>>, vector<1x29x32xf32>,
    %508 = vector.extract_strided_slice %503 {offsets = [29, 0], sizes = [29, 32], strides = [1, 1]} : vector<116x32xf32> to vector<29x32xf32>
    %c1_179 = arith.constant 1 : index
    %c0_180 = arith.constant 0 : index
    %c0_181 = arith.constant 0 : index
    %509 = vector.load %arg11[%c1_179, %c0_180, %c0_181] : memref<4x29x32xf32, #tpu.memory_space<vmem>>, vector<1x29x32xf32>
    %510 = vector.shape_cast %509 : vector<1x29x32xf32> to vector<29x32xf32>
    %511 = vector.shape_cast %508 : vector<29x32xf32> to vector<1x29x32xf32>
    tpu.vector_store %arg11[%c1_179, %c0_180, %c0_181], %511 {strides = array<i32>} : memref<4x29x32xf32, #tpu.memory_space<vmem>>, vector<1x29x32xf32>,
    %512 = vector.extract_strided_slice %503 {offsets = [58, 0], sizes = [29, 32], strides = [1, 1]} : vector<116x32xf32> to vector<29x32xf32>
    %c2_182 = arith.constant 2 : index
    %c0_183 = arith.constant 0 : index
    %c0_184 = arith.constant 0 : index
    %513 = vector.load %arg11[%c2_182, %c0_183, %c0_184] : memref<4x29x32xf32, #tpu.memory_space<vmem>>, vector<1x29x32xf32>
    %514 = vector.shape_cast %513 : vector<1x29x32xf32> to vector<29x32xf32>
    %515 = vector.shape_cast %512 : vector<29x32xf32> to vector<1x29x32xf32>
    tpu.vector_store %arg11[%c2_182, %c0_183, %c0_184], %515 {strides = array<i32>} : memref<4x29x32xf32, #tpu.memory_space<vmem>>, vector<1x29x32xf32>,
    %516 = vector.extract_strided_slice %503 {offsets = [87, 0], sizes = [29, 32], strides = [1, 1]} : vector<116x32xf32> to vector<29x32xf32>
    %c3_185 = arith.constant 3 : index
    %c0_186 = arith.constant 0 : index
    %c0_187 = arith.constant 0 : index
    %517 = vector.load %arg11[%c3_185, %c0_186, %c0_187] : memref<4x29x32xf32, #tpu.memory_space<vmem>>, vector<1x29x32xf32>
    %518 = vector.shape_cast %517 : vector<1x29x32xf32> to vector<29x32xf32>
    %519 = vector.shape_cast %516 : vector<29x32xf32> to vector<1x29x32xf32>
    tpu.vector_store %arg11[%c3_185, %c0_186, %c0_187], %519 {strides = array<i32>} : memref<4x29x32xf32, #tpu.memory_space<vmem>>, vector<1x29x32xf32>,
    return
  }
  func.func @transform_0(%arg0: i32) -> (i32, i32) {
    %c0_i32 = arith.constant 0 : i32
    %c0_i32_0 = arith.constant 0 : i32
    return %arg0, %c0_i32 : i32, i32
  }
  func.func @transform_1(%arg0: i32) -> (i32, i32) {
    %c0_i32 = arith.constant 0 : i32
    %c0_i32_0 = arith.constant 0 : i32
    %c0_i32_1 = arith.constant 0 : i32
    return %c0_i32, %c0_i32_0 : i32, i32
  }
  func.func @transform_2(%arg0: i32) -> (i32, i32) {
    %c0_i32 = arith.constant 0 : i32
    %c0_i32_0 = arith.constant 0 : i32
    %c0_i32_1 = arith.constant 0 : i32
    return %c0_i32, %c0_i32_0 : i32, i32
  }
  func.func @transform_3(%arg0: i32) -> (i32, i32) {
    %c0_i32 = arith.constant 0 : i32
    %c0_i32_0 = arith.constant 0 : i32
    %c0_i32_1 = arith.constant 0 : i32
    return %c0_i32, %c0_i32_0 : i32, i32
  }
  func.func @transform_4(%arg0: i32) -> (i32, i32, i32) {
    %c0_i32 = arith.constant 0 : i32
    %c0_i32_0 = arith.constant 0 : i32
    %c0_i32_1 = arith.constant 0 : i32
    %c0_i32_2 = arith.constant 0 : i32
    return %c0_i32, %c0_i32_0, %c0_i32_1 : i32, i32, i32
  }
  func.func @transform_5(%arg0: i32) -> (i32, i32, i32) {
    %c0_i32 = arith.constant 0 : i32
    %c0_i32_0 = arith.constant 0 : i32
    %c0_i32_1 = arith.constant 0 : i32
    %c0_i32_2 = arith.constant 0 : i32
    return %c0_i32, %c0_i32_0, %c0_i32_1 : i32, i32, i32
  }
  func.func @transform_6(%arg0: i32) -> (i32, i32, i32) {
    %c0_i32 = arith.constant 0 : i32
    %c0_i32_0 = arith.constant 0 : i32
    %c0_i32_1 = arith.constant 0 : i32
    %c0_i32_2 = arith.constant 0 : i32
    return %c0_i32, %c0_i32_0, %c0_i32_1 : i32, i32, i32
  }
  func.func @transform_7(%arg0: i32) -> (i32, i32, i32) {
    %c0_i32 = arith.constant 0 : i32
    %c0_i32_0 = arith.constant 0 : i32
    %c0_i32_1 = arith.constant 0 : i32
    %c0_i32_2 = arith.constant 0 : i32
    return %c0_i32, %c0_i32_0, %c0_i32_1 : i32, i32, i32
  }
  func.func @transform_8(%arg0: i32) -> (i32, i32, i32) {
    %c0_i32 = arith.constant 0 : i32
    %c0_i32_0 = arith.constant 0 : i32
    %c0_i32_1 = arith.constant 0 : i32
    %c0_i32_2 = arith.constant 0 : i32
    return %c0_i32, %c0_i32_0, %c0_i32_1 : i32, i32, i32
  }
  func.func @transform_9(%arg0: i32) -> (i32, i32, i32) {
    %c0_i32 = arith.constant 0 : i32
    %c0_i32_0 = arith.constant 0 : i32
    %c0_i32_1 = arith.constant 0 : i32
    %c0_i32_2 = arith.constant 0 : i32
    return %c0_i32, %c0_i32_0, %c0_i32_1 : i32, i32, i32
  }
  func.func @transform_10(%arg0: i32) -> (i32, i32, i32) {
    %c0_i32 = arith.constant 0 : i32
    %c0_i32_0 = arith.constant 0 : i32
    %c0_i32_1 = arith.constant 0 : i32
    return %arg0, %c0_i32, %c0_i32_0 : i32, i32, i32
  }
}

</mosaic_0001>

<bundles_post_ra>
// kernel: tpu_custom_call.1
= control target key start
LH: loop header
LB: loop body
LE: loop exit
PB: predicated region body
PF: predicated region fallthrough
CT: control target
= control target key end

     0   :  { %s14206_s13 = smov 0   ;;  %s18416_s0 = inlined_call_operand.vmem [shape: bf16[512,160], index: 0, kind: input, shape index: {}]   ;;  %s18417_s1 = inlined_call_operand.vmem [shape: bf16[160,32], index: 1, kind: input, shape index: {}]   ;;  %s18418_s2 = inlined_call_operand.vmem [shape: bf16[32,32], index: 2, kind: input, shape index: {}]   ;;  %s18419_s3 = inlined_call_operand.vmem [shape: f32[2,32], index: 3, kind: input, shape index: {}]   ;;  %s18420_s4 = inlined_call_operand.vmem [shape: f32[2,2,32], index: 4, kind: input, shape index: {}]   ;;  %s18421_s5 = inlined_call_operand.vmem [shape: bf16[2,32,96], index: 5, kind: input, shape index: {}]   ;;  %s18422_s6 = inlined_call_operand.vmem [shape: bf16[2,32,32], index: 6, kind: input, shape index: {}]   ;;  %s18423_s7 = inlined_call_operand.vmem [shape: bf16[2,32,64], index: 7, kind: input, shape index: {}]   ;;  %s18424_s8 = inlined_call_operand.vmem [shape: bf16[2,64,32], index: 8, kind: input, shape index: {}]   ;;  %s18425_s9 = inlined_call_operand.vmem [shape: f32[2,4,128], index: 9, kind: input, shape index: {}]   ;;  %s18426_s10 = inlined_call_operand.vmem [shape: f32[8,29,32], index: 10, kind: output, shape index: {}]  }
   0x1 LB: > { %s11534_s14 = sadd.s32 4294967295, %s14136_s13   ;;  %p11538_p0 = scmp.ge.s32.totalorder %s14136_s13, 1  ;;  %s14136_s13 = sphi %s14206_s13, %s20_s13  }
   0x2   : > { %p314_p1 = scmp.lt.s32.totalorder %s14136_s13, 3 }
   0x4   : > { %p315_p2 = pnand %p11538_p0, %p314_p1 }
   0x6   : > { %318 = sbr.rel (%p315_p2) target bundleno = 6056 (0x17a8), region = 60 }
   0xb   : > { %v13338_v0 = vld [vmem:[%s18417_s1 + $0x38] sm:$0xff]   ;;  %v14138_v1 = vmov 0   ;;  %s11539_s17 = sshll.u32 %s11534_s14, 5  ;;  %v13339_v2 = vld [vmem:[%s18417_s1 + $0x30] sm:$0xff]   ;;  %v13340_v3 = vld [vmem:[%s18417_s1 + $0x28] sm:$0xff]   ;;  %vm630_vm0 = vcmask 261120  }
   0xc   : > { %679 = vmatprep.subr.bf16.mxu0 %v14138_v1  ;;  %p355_p3 = scmp.lt.s32.totalorder %s11539_s17, 63  ;;  %v13341_v4 = vld [vmem:[%s18417_s1 + $0x20] sm:$0xff]   ;;  %v13342_v6 = vld [vmem:[%s18417_s1 + $0x18] sm:$0xff]   ;;  %v13343_v7 = vld [vmem:[%s18417_s1 + $0x10] sm:$0xff]   ;;  %s14139_s20 = smov 96  }
   0xd   : > { %680 = vmatpush1.bf16.msra.mxu0 %v13338_v0  ;;  %v13344_v8 = vld [vmem:[%s18417_s1 + $0x8] sm:$0xff]   ;;  %v13345_v9 = vld [vmem:[%s18417_s1] sm:$0xff]   ;;  %s14140_s21 = smov 120   ;;  %s14142_s23 = smov 104  }
   0xe   : > { %681 = vmatprep.subr.bf16.mxu0 %v14138_v1  ;;  %s18880_s17 = smov (!%p355_p3, %s11539_s17), 63  ;;  %v13346_v10 = vld [vmem:[%s18417_s1 + $0x48] sm:$0xff]   ;;  %v13347_v11 = vld [vmem:[%s18417_s1 + $0x40] sm:$0xff]   ;;  %s14143_s24 = smov 64  }
   0xf   : > { %s11897_s22 = sshll.u32 %s18880_s17, 3  ;;  %v13396_v43 = vld [vmem:[%s18418_s2 + $0x8] sm:$0xff]   ;;  %v13397_v44 = vld [vmem:[%s18418_s2] sm:$0xff]   ;;  %s14144_s26 = smov 48  }
  0x10   : > { %s14228_s25 = scalar_lea.vmem %s18416_s0, %s11897_s22  ;;  %12217 = vmatprep.subr.bf16.mxu1 %v13396_v43  ;;  %v14308_v45 = vld [vmem:[%s18419_s3] ss:$0 sm:$0xff]  ;;  %s14141_s22 = smov 112  }
  0x11   : > { %682 = vmatpush1.bf16.msra.mxu0 %v13339_v2  ;;  %v13350_v5 = vld [vmem:[%s14228_s25 + $0x4] ss:$8 sps:$4 sm:$0xff]   ;;  %v13348_v12 = vld [vmem:[%s14228_s25] ss:$8 sps:$4 sm:$0xff]   ;;  %v13351_v13 = vld [vmem:[%s14228_s25 + $0x14] ss:$8 sps:$4 sm:$0xff]   ;;  %12218 = vmatpush3.bf16.msra.mxu1 %v13396_v43 }
  0x12   : > { %683 = vmatprep.subr.bf16.mxu0 %v14138_v1  ;;  %11588 = vmatprep.mubr.msk.bf16.mxu0 %vm630_vm0, %v13350_v5  ;;  %v13353_v14 = vld [vmem:[%s14228_s25 + $0x10] ss:$8 sps:$4 sm:$0xff]   ;;  %v13354_v15 = vld [vmem:[%s14228_s25 + $0x24] ss:$8 sps:$4 sm:$0xff]   ;;  %v13356_v16 = vld [vmem:[%s14228_s25 + $0x20] ss:$8 sps:$4 sm:$0xff]  }
  0x13   : > { %v13357_v17 = vld [vmem:[%s14228_s25 + $0x34] ss:$8 sps:$4 sm:$0xff]   ;;  %v13359_v18 = vld [vmem:[%s14228_s25 + $0x30] ss:$8 sps:$4 sm:$0xff]   ;;  %v13360_v19 = vld [vmem:[%s14228_s25 + $0x44] ss:$8 sps:$4 sm:$0xff]   ;;  %12219 = vmatprep.subr.bf16.mxu1 %v13397_v44 }
  0x14   : > { %v13362_v20 = vld [vmem:[%s14228_s25 + $0x40] ss:$8 sps:$4 sm:$0xff]   ;;  %v13363_v21 = vld [vmem:[%s14228_s25 + $0x54] ss:$8 sps:$4 sm:$0xff]   ;;  %v13365_v22 = vld [vmem:[%s14228_s25 + $0x50] ss:$8 sps:$4 sm:$0xff]  }
  0x15   : > { %684 = vmatpush1.bf16.msra.mxu0 %v13340_v3  ;;  %v13366_v23 = vld [vmem:[%s14228_s25 + $0x64] ss:$8 sps:$4 sm:$0xff]   ;;  %v13368_v24 = vld [vmem:[%s14228_s25 + $0x60] ss:$8 sps:$4 sm:$0xff]   ;;  %v13369_v25 = vld [vmem:[%s14228_s25 + $0x74] ss:$8 sps:$4 sm:$0xff]   ;;  %12220 = vmatpush3.bf16.msra.mxu1 %v13397_v44 }
  0x16   : > { %685 = vmatprep.subr.bf16.mxu0 %v14138_v1  ;;  %v13371_v26 = vld [vmem:[%s14228_s25 + $0x70] ss:$8 sps:$4 sm:$0xff]   ;;  %v13372_v27 = vld [vmem:[%s14228_s25 + $0x84] ss:$8 sps:$4 sm:$0xff]   ;;  %v13374_v28 = vld [vmem:[%s14228_s25 + $0x80] ss:$8 sps:$4 sm:$0xff]  }
  0x17   : > { %v13375_v29 = vld [vmem:[%s14228_s25 + $0x94] ss:$8 sps:$4 sm:$0xff]   ;;  %v13377_v30 = vld [vmem:[%s14228_s25 + $0x90] ss:$8 sps:$4 sm:$0xff]   ;;  %v13378_v31 = vld [vmem:[%s14228_s25 + $0xa4] ss:$8 sps:$4 sm:$0xff]  }
  0x18   : > { %v13380_v32 = vld [vmem:[%s14228_s25 + $0xa0] ss:$8 sps:$4 sm:$0xff]   ;;  %v13381_v33 = vld [vmem:[%s14228_s25 + $0xb4] ss:$8 sps:$4 sm:$0xff]   ;;  %v13383_v34 = vld [vmem:[%s14228_s25 + $0xb0] ss:$8 sps:$4 sm:$0xff]  }
  0x19   : > { %686 = vmatpush1.bf16.msra.mxu0 %v13341_v4  ;;  %v13384_v35 = vld [vmem:[%s14228_s25 + $0xc4] ss:$8 sps:$4 sm:$0xff]   ;;  %v13386_v36 = vld [vmem:[%s14228_s25 + $0xc0] ss:$8 sps:$4 sm:$0xff]   ;;  %v13387_v37 = vld [vmem:[%s14228_s25 + $0xd4] ss:$8 sps:$4 sm:$0xff]  }
  0x1a   : > { %687 = vmatprep.subr.bf16.mxu0 %v14138_v1  ;;  %v13389_v38 = vld [vmem:[%s14228_s25 + $0xd0] ss:$8 sps:$4 sm:$0xff]   ;;  %v13390_v39 = vld [vmem:[%s14228_s25 + $0xe4] ss:$8 sps:$4 sm:$0xff]   ;;  %v13392_v40 = vld [vmem:[%s14228_s25 + $0xe0] ss:$8 sps:$4 sm:$0xff]  }
  0x1b   : > { %v13393_v41 = vld [vmem:[%s14228_s25 + $0xf4] ss:$8 sps:$4 sm:$0xff]   ;;  %v13395_v42 = vld [vmem:[%s14228_s25 + $0xf0] ss:$8 sps:$4 sm:$0xff]   ;;  %s14145_s27 = smov 56   ;;  %s14146_s28 = smov 40  }
  0x1c   : > { %s14148_s25 = smov 8   ;;  %s14149_s29 = smov 16  }
  0x1d   : > { %688 = vmatpush1.bf16.msra.mxu0 %v13342_v6  ;;  %s14150_s30 = smov 24  }
  0x1e   : > { %689 = vmatprep.subr.bf16.mxu0 %v14138_v1 }
  0x21   : > { %690 = vmatpush1.bf16.msra.mxu0 %v13343_v7 }
  0x22   : > { %691 = vmatprep.subr.bf16.mxu0 %v14138_v1 }
  0x25   : > { %692 = vmatpush1.bf16.msra.mxu0 %v13344_v8 }
  0x26   : > { %693 = vmatprep.subr.bf16.mxu0 %v14138_v1 }
  0x29   : > { %694 = vmatpush1.bf16.msra.mxu0 %v13345_v9 }
  0x2a   : > { %707 = vmatprep.subr.bf16.mxu0 %v14138_v1 }
  0x2d   : > { %708 = vmatpush2.bf16.msra.mxu0 %v13346_v10 }
  0x2e   : > { %709 = vmatprep.subr.bf16.mxu0 %v14138_v1 }
  0x31   : > { %710 = vmatpush2.bf16.msra.mxu0 %v13347_v11 }
  0x34   : > { %712 = vmatmul.mubr.bf16.vlgmr.msra.gmra.mxu0 %v13348_v12 }
  0x35   : > { %11589 = vmatprep.mubr.msk.bf16.mxu0 %vm630_vm0, %v13351_v13 }
  0x3c   : > { %720 = vmatmul.mubr.bf16.gmra.mxu0 %v13353_v14 }
  0x3d   : > { %11590 = vmatprep.mubr.msk.bf16.mxu0 %vm630_vm0, %v13354_v15 }
  0x44   : > { %728 = vmatmul.mubr.bf16.gmra.mxu0 %v13356_v16 }
  0x45   : > { %11591 = vmatprep.mubr.msk.bf16.mxu0 %vm630_vm0, %v13357_v17 }
  0x4c   : > { %736 = vmatmul.mubr.bf16.gmra.mxu0 %v13359_v18 }
  0x4d   : > { %11592 = vmatprep.mubr.msk.bf16.mxu0 %vm630_vm0, %v13360_v19 }
  0x54   : > { %744 = vmatmul.mubr.bf16.gmra.mxu0 %v13362_v20 }
  0x55   : > { %11593 = vmatprep.mubr.msk.bf16.mxu0 %vm630_vm0, %v13363_v21 }
  0x5c   : > { %752 = vmatmul.mubr.bf16.gmra.mxu0 %v13365_v22 }
  0x5d   : > { %11594 = vmatprep.mubr.msk.bf16.mxu0 %vm630_vm0, %v13366_v23 }
  0x64   : > { %760 = vmatmul.mubr.bf16.gmra.mxu0 %v13368_v24 }
  0x65   : > { %11595 = vmatprep.mubr.msk.bf16.mxu0 %vm630_vm0, %v13369_v25 }
  0x6c   : > { %768 = vmatmul.mubr.bf16.gmra.mxu0 %v13371_v26 }
  0x6d   : > { %11596 = vmatprep.mubr.msk.bf16.mxu0 %vm630_vm0, %v13372_v27 }
  0x74   : > { %776 = vmatmul.mubr.bf16.gmra.mxu0 %v13374_v28 }
  0x75   : > { %11597 = vmatprep.mubr.msk.bf16.mxu0 %vm630_vm0, %v13375_v29 }
  0x7c   : > { %784 = vmatmul.mubr.bf16.gmra.mxu0 %v13377_v30 }
  0x7d   : > { %11598 = vmatprep.mubr.msk.bf16.mxu0 %vm630_vm0, %v13378_v31 }
  0x84   : > { %792 = vmatmul.mubr.bf16.gmra.mxu0 %v13380_v32 }
  0x85   : > { %11599 = vmatprep.mubr.msk.bf16.mxu0 %vm630_vm0, %v13381_v33 }
  0x8c   : > { %800 = vmatmul.mubr.bf16.gmra.mxu0 %v13383_v34 }
  0x8d   : > { %11600 = vmatprep.mubr.msk.bf16.mxu0 %vm630_vm0, %v13384_v35 }
  0x94   : > { %808 = vmatmul.mubr.bf16.gmra.mxu0 %v13386_v36 }
  0x95   : > { %11601 = vmatprep.mubr.msk.bf16.mxu0 %vm630_vm0, %v13387_v37 }
  0x9c   : > { %816 = vmatmul.mubr.bf16.gmra.mxu0 %v13389_v38 }
  0x9d   : > { %11602 = vmatprep.mubr.msk.bf16.mxu0 %vm630_vm0, %v13390_v39 }
  0xa4   : > { %824 = vmatmul.mubr.bf16.gmra.mxu0 %v13392_v40 }
  0xa5   : > { %11603 = vmatprep.mubr.msk.bf16.mxu0 %vm630_vm0, %v13393_v41 }
  0xac   : > { %832 = vmatmul.mubr.bf16.gmra.mxu0 %v13395_v42 }
  0xf4   : > { %v713_v46 = vpop.f32.mrf.mxu0 }
  0xf5   : > { %v714_v47 = vadd.f32 %v14308_v45, %v713_v46 }
  0xf6   : > { %v715_v48 = vpop.f32.mrf.mxu0 }
  0xf7   : > { %v872_v49 = vmin.f32 %v714_v47, 0.0  ;;  %vm840_vm1 = vcmp.gt.f32.partialorder %v714_v47, 0.0 }
  0xf8   : > { %v716_v50 = vpop.f32.mrf.mxu0 }
  0xf9   : > { %v904_v51 = vmul.f32 1.442695, %v872_v49  ;;  %v717_v52 = vadd.f32 %v14308_v45, %v716_v50 }
  0xfa   : > { %v718_v53 = vpop.f32.mrf.mxu0 }
  0xfb   : > { %13418 = vpow2.f32 %v904_v51  ;;  %v873_v54 = vmin.f32 %v717_v52, 0.0  ;;  %vm841_vm2 = vcmp.gt.f32.partialorder %v717_v52, 0.0 }
  0xfc   : > { %v721_v55 = vpop.f32.mrf.mxu0 }
  0xfd   : > { %v906_v56 = vmul.f32 1.442695, %v873_v54  ;;  %v722_v57 = vadd.f32 %v14308_v45, %v721_v55 }
  0xfe   : > { %v723_v58 = vpop.f32.mrf.mxu0 }
  0xff   : > { %13420 = vpow2.f32 %v906_v56  ;;  %v874_v59 = vmin.f32 %v722_v57, 0.0  ;;  %vm842_vm3 = vcmp.gt.f32.partialorder %v722_v57, 0.0 }
 0x100   : > { %v724_v60 = vpop.f32.mrf.mxu0 }
 0x101   : > { %v908_v61 = vmul.f32 1.442695, %v874_v59  ;;  %v725_v62 = vadd.f32 %v14308_v45, %v724_v60 }
 0x102   : > { %v726_v63 = vpop.f32.mrf.mxu0 }
 0x103   : > { %13422 = vpow2.f32 %v908_v61  ;;  %v875_v0 = vmin.f32 %v725_v62, 0.0  ;;  %vm843_vm4 = vcmp.gt.f32.partialorder %v725_v62, 0.0 }
 0x104   : > { %v729_v1 = vpop.f32.mrf.mxu0 }
 0x105   : > { %v910_v2 = vmul.f32 1.442695, %v875_v0  ;;  %v730_v3 = vadd.f32 %v14308_v45, %v729_v1 }
 0x106   : > { %v731_v4 = vpop.f32.mrf.mxu0 }
 0x107   : > { %13424 = vpow2.f32 %v910_v2  ;;  %v876_v5 = vmin.f32 %v730_v3, 0.0  ;;  %vm844_vm5 = vcmp.gt.f32.partialorder %v730_v3, 0.0 }
 0x108   : > { %v13419_v6 = vpop.eup %13418  ;;  %v732_v7 = vpop.f32.mrf.mxu0 }
 0x109   : > { %v11604_v8 = vadd.f32 -1.0, %v13419_v6  ;;  %v912_v9 = vmul.f32 1.442695, %v876_v5  ;;  %v14316_v10 = vadd.f32 %v14308_v45, %v732_v7 }
 0x10a   : > { %v734_v11 = vpop.f32.mrf.mxu0 }
 0x10b   : > { %v1000_v12 = vsel %vm840_vm1, %v714_v47, %v11604_v8  ;;  %13426 = vpow2.f32 %v912_v9  ;;  %v877_v13 = vmin.f32 %v14316_v10, 0.0  ;;  %vm845_vm6 = vcmp.gt.f32.partialorder %v14316_v10, 0.0 }
 0x10c   : > { %v13421_v14 = vpop.eup %13420  ;;  %1032 = vst.msk [vmem:[#allocation2] sm:$0xff] %vm630_vm0, %v1000_v12  ;;  %v737_v15 = vpop.f32.mrf.mxu0  ;;  %vm1259_vm1 = vcmask 1044480  }
 0x10d   : > { %v11605_v16 = vadd.f32 -1.0, %v13421_v14  ;;  %v914_v17 = vmul.f32 1.442695, %v877_v13  ;;  %v14321_v18 = vadd.f32 %v14308_v45, %v737_v15 }
 0x10e   : > { %v739_v19 = vpop.f32.mrf.mxu0 }
 0x10f   : > { %v1001_v20 = vsel %vm841_vm2, %v717_v52, %v11605_v16  ;;  %13428 = vpow2.f32 %v914_v17  ;;  %v878_v21 = vmin.f32 %v14321_v18, 0.0  ;;  %vm846_vm7 = vcmp.gt.f32.partialorder %v14321_v18, 0.0 }
 0x110   : > { %v13423_v22 = vpop.eup %13422  ;;  %1033 = vst.msk [vmem:[#allocation2 + $0x8] sm:$0xff] %vm630_vm0, %v1001_v20  ;;  %v740_v23 = vpop.f32.mrf.mxu0 }
 0x111   : > { %v11606_v24 = vadd.f32 -1.0, %v13423_v22  ;;  %v916_v25 = vmul.f32 1.442695, %v878_v21  ;;  %v14326_v26 = vadd.f32 %v14308_v45, %v740_v23 }
 0x112   : > { %v742_v27 = vpop.f32.mrf.mxu0 }
 0x113   : > { %v1002_v28 = vsel %vm842_vm3, %v722_v57, %v11606_v24  ;;  %13430 = vpow2.f32 %v916_v25  ;;  %v879_v29 = vmin.f32 %v14326_v26, 0.0  ;;  %vm847_vm8 = vcmp.gt.f32.partialorder %v14326_v26, 0.0 }
 0x114   : > { %v13425_v30 = vpop.eup %13424  ;;  %1034 = vst.msk [vmem:[#allocation2 + $0x10] sm:$0xff] %vm630_vm0, %v1002_v28  ;;  %v745_v31 = vpop.f32.mrf.mxu0 }
 0x115   : > { %v11607_v32 = vadd.f32 -1.0, %v13425_v30  ;;  %v918_v33 = vmul.f32 1.442695, %v879_v29  ;;  %v14331_v34 = vadd.f32 %v14308_v45, %v745_v31 }
 0x116   : > { %v747_v35 = vpop.f32.mrf.mxu0 }
 0x117   : > { %v1003_v36 = vsel %vm843_vm4, %v725_v62, %v11607_v32  ;;  %13432 = vpow2.f32 %v918_v33  ;;  %v880_v37 = vmin.f32 %v14331_v34, 0.0  ;;  %v1064_v47 = vld [vmem:[#allocation2] ss:$2 sm:$0xff]  ;;  %v1072_v48 = vld [vmem:[#allocation2 + $0x1] ss:$2 sm:$0xff]  ;;  %vm848_vm9 = vcmp.gt.f32.partialorder %v14331_v34, 0.0 }
 0x118   : > { %v13427_v38 = vpop.eup %13426  ;;  %1035 = vst.msk [vmem:[#allocation2 + $0x18] sm:$0xff] %vm630_vm0, %v1003_v36  ;;  %v748_v39 = vpop.f32.mrf.mxu0  ;;  %v1079_v56 = vadd.f32 %v1072_v48, %v1064_v47 }
 0x119   : > { %v11608_v40 = vadd.f32 -1.0, %v13427_v38  ;;  %v920_v41 = vmul.f32 1.442695, %v880_v37  ;;  %v14336_v42 = vadd.f32 %v14308_v45, %v748_v39 }
 0x11a   : > { %v750_v43 = vpop.f32.mrf.mxu0 }
 0x11b   : > { %v1004_v44 = vsel %vm844_vm5, %v730_v3, %v11608_v40  ;;  %13434 = vpow2.f32 %v920_v41  ;;  %v881_v46 = vmin.f32 %v14336_v42, 0.0  ;;  %v1084_v54 = vld [vmem:[#allocation2 + $0x2] ss:$2 sm:$0xff]  ;;  %v1096_v8 = vld [vmem:[#allocation2 + $0x3] ss:$2 sm:$0xff]  ;;  %vm849_vm10 = vcmp.gt.f32.partialorder %v14336_v42, 0.0 }
 0x11c   : > { %v13429_v49 = vpop.eup %13428  ;;  %1036 = vst.msk [vmem:[#allocation2 + $0x20] sm:$0xff] %vm630_vm0, %v1004_v44  ;;  %v753_v50 = vpop.f32.mrf.mxu0  ;;  %v1091_v63 = vadd.f32 %v1084_v54, %v1079_v56 }
 0x11d   : > { %v11609_v51 = vadd.f32 -1.0, %v13429_v49  ;;  %v922_v52 = vmul.f32 1.442695, %v881_v46  ;;  %v14341_v53 = vadd.f32 %v14308_v45, %v753_v50 }
 0x11e   : > { %v755_v55 = vpop.f32.mrf.mxu0  ;;  %v1103_v12 = vadd.f32 %v1096_v8, %v1091_v63 }
 0x11f   : > { %v1005_v57 = vsel %vm845_vm6, %v14316_v10, %v11609_v51  ;;  %13436 = vpow2.f32 %v922_v52  ;;  %v882_v58 = vmin.f32 %v14341_v53, 0.0  ;;  %v1066_v59 = vld [vmem:[#allocation2 + $0x10] ss:$2 sm:$0xff]  ;;  %v1074_v60 = vld [vmem:[#allocation2 + $0x11] ss:$2 sm:$0xff]  ;;  %vm850_vm11 = vcmp.gt.f32.partialorder %v14341_v53, 0.0 }
 0x120   : > { %v13431_v61 = vpop.eup %13430  ;;  %1037 = vst.msk [vmem:[#allocation2 + $0x28] sm:$0xff] %vm630_vm0, %v1005_v57  ;;  %v756_v62 = vpop.f32.mrf.mxu0  ;;  %v1080_v4 = vadd.f32 %v1074_v60, %v1066_v59  ;;  %v1107_v23 = vmul.f32 0.25, %v1103_v12 }
 0x121   : > { %v11610_v0 = vadd.f32 -1.0, %v13431_v61  ;;  %v924_v1 = vmul.f32 1.442695, %v882_v58  ;;  %v14348_v2 = vadd.f32 %v14308_v45, %v756_v62 }
 0x122   : > { %v758_v3 = vpop.f32.mrf.mxu0 }
 0x123   : > { %v1006_v5 = vsel %vm846_vm7, %v14321_v18, %v11610_v0  ;;  %13438 = vpow2.f32 %v924_v1  ;;  %v883_v6 = vmin.f32 %v14348_v2, 0.0  ;;  %v1086_v7 = vld [vmem:[#allocation2 + $0x12] ss:$2 sm:$0xff]  ;;  %v1098_v16 = vld [vmem:[#allocation2 + $0x13] ss:$2 sm:$0xff]  ;;  %vm851_vm12 = vcmp.gt.f32.partialorder %v14348_v2, 0.0 }
 0x124   : > { %v13433_v9 = vpop.eup %13432  ;;  %1038 = vst.msk [vmem:[#allocation2 + $0x30] sm:$0xff] %vm630_vm0, %v1006_v5  ;;  %v761_v10 = vpop.f32.mrf.mxu0  ;;  %v1092_v11 = vadd.f32 %v1086_v7, %v1080_v4 }
 0x125   : > { %v11611_v13 = vadd.f32 -1.0, %v13433_v9  ;;  %v926_v14 = vmul.f32 1.442695, %v883_v6  ;;  %v14355_v15 = vadd.f32 %v14308_v45, %v761_v10 }
 0x126   : > { %v763_v17 = vpop.f32.mrf.mxu0  ;;  %v1104_v18 = vadd.f32 %v1098_v16, %v1092_v11 }
 0x127   : > { %v1007_v19 = vsel %vm847_vm8, %v14326_v26, %v11611_v13  ;;  %13440 = vpow2.f32 %v926_v14  ;;  %v884_v20 = vmin.f32 %v14355_v15, 0.0  ;;  %v1068_v58 = vld [vmem:[#allocation2 + $0x20] ss:$2 sm:$0xff]  ;;  %v1076_v59 = vld [vmem:[#allocation2 + $0x21] ss:$2 sm:$0xff]  ;;  %vm852_vm13 = vcmp.gt.f32.partialorder %v14355_v15, 0.0 }
 0x128   : > { %v13435_v21 = vpop.eup %13434  ;;  %1039 = vst.msk [vmem:[#allocation2 + $0x38] sm:$0xff] %vm630_vm0, %v1007_v19  ;;  %v764_v22 = vpop.f32.mrf.mxu0  ;;  %v1108_v24 = vmul.f32 0.25, %v1104_v18  ;;  %v1081_v7 = vadd.f32 %v1076_v59, %v1068_v58 }
 0x129   : > { %v11612_v25 = vadd.f32 -1.0, %v13435_v21  ;;  %v928_v27 = vmul.f32 1.442695, %v884_v20  ;;  %v14362_v28 = vadd.f32 %v14308_v45, %v764_v22 }
 0x12a   : > { %v766_v29 = vpop.f32.mrf.mxu0  ;;  %v1308_v30 = vpack.c.bf16 %v1108_v24, %v1107_v23 }
 0x12b   : > { %v1008_v26 = vsel %vm848_vm9, %v14331_v34, %v11612_v25  ;;  %13442 = vpow2.f32 %v928_v27  ;;  %v885_v31 = vmin.f32 %v14362_v28, 0.0  ;;  %v1088_v3 = vld [vmem:[#allocation2 + $0x22] ss:$2 sm:$0xff]  ;;  %vm853_vm14 = vcmp.gt.f32.partialorder %v14362_v28, 0.0  ;;  %v1100_v24 = vld [vmem:[#allocation2 + $0x23] ss:$2 sm:$0xff] }
 0x12c   : > { %v13437_v32 = vpop.eup %13436  ;;  %1040 = vst.msk [vmem:[#allocation2 + $0x40] sm:$0xff] %vm630_vm0, %v1008_v26  ;;  %v769_v33 = vpop.f32.mrf.mxu0  ;;  %12221 = vmatprep.mubr.msk.bf16.mxu1 %vm630_vm0, %v1308_v30  ;;  %v1093_v13 = vadd.f32 %v1088_v3, %v1081_v7 }
 0x12d   : > { %v11613_v35 = vadd.f32 -1.0, %v13437_v32  ;;  %v930_v36 = vmul.f32 1.442695, %v885_v31  ;;  %v14370_v37 = vadd.f32 %v14308_v45, %v769_v33 }
 0x12e   : > { %v771_v38 = vpop.f32.mrf.mxu0  ;;  %v1105_v26 = vadd.f32 %v1100_v24, %v1093_v13 }
 0x12f   : > { %v1009_v39 = vsel %vm849_vm10, %v14336_v42, %v11613_v35  ;;  %13444 = vpow2.f32 %v930_v36  ;;  %v886_v34 = vmin.f32 %v14370_v37, 0.0  ;;  %v1070_v48 = vld [vmem:[#allocation2 + $0x30] ss:$2 sm:$0x1f]  ;;  %vm854_vm15 = vcmp.gt.f32.partialorder %v14370_v37, 0.0 }
 0x130   : > { %v13439_v40 = vpop.eup %13438  ;;  %1041 = vst.msk [vmem:[#allocation2 + $0x48] sm:$0xff] %vm630_vm0, %v1009_v39  ;;  %v772_v41 = vpop.f32.mrf.mxu0  ;;  %v1078_v50 = vld [vmem:[#allocation2 + $0x31] ss:$2 sm:$0x1f]  ;;  %vm1276_vm10 = vcmask 1041408  }
 0x131   : > { %v11614_v43 = vadd.f32 -1.0, %v13439_v40  ;;  %v932_v44 = vmul.f32 1.442695, %v886_v34  ;;  %v14377_v46 = vadd.f32 %v14308_v45, %v772_v41  ;;  %v1082_v60 = vadd.f32 %v1078_v50, %v1070_v48  ;;  %v1090_v8 = vld [vmem:[#allocation2 + $0x32] ss:$2 sm:$0x1f] }
 0x132   : > { %v774_v47 = vpop.f32.mrf.mxu0  ;;  %v1102_v18 = vld [vmem:[#allocation2 + $0x33] ss:$2 sm:$0x1f]  ;;  %v1109_v48 = vmul.f32 0.25, %v1105_v26 }
 0x133   : > { %v1010_v49 = vsel %vm850_vm11, %v14341_v53, %v11614_v43  ;;  %13446 = vpow2.f32 %v932_v44  ;;  %v887_v42 = vmin.f32 %v14377_v46, 0.0  ;;  %v1094_v9 = vadd.f32 %v1090_v8, %v1082_v60 }
 0x134   : > { %v13441_v51 = vpop.eup %13440  ;;  %1042 = vst.msk [vmem:[#allocation2 + $0x50] sm:$0xff] %vm630_vm0, %v1010_v49  ;;  %v777_v52 = vpop.f32.mrf.mxu0  ;;  %vm855_vm2 = vcmp.gt.f32.partialorder %v14377_v46, 0.0 }
 0x135   : > { %v11615_v54 = vadd.f32 -1.0, %v13441_v51  ;;  %v934_v55 = vmul.f32 1.442695, %v887_v42  ;;  %v14384_v56 = vadd.f32 %v14308_v45, %v777_v52  ;;  %v1106_v25 = vadd.f32 %v1102_v18, %v1094_v9 }
 0x136   : > { %v779_v57 = vpop.f32.mrf.mxu0 }
 0x137   : > { %v1011_v53 = vsel %vm851_vm12, %v14348_v2, %v11615_v54  ;;  %13448 = vpow2.f32 %v934_v55  ;;  %v888_v61 = vmin.f32 %v14384_v56, 0.0  ;;  %v1112_v62 = vld [vmem:[#allocation2 + $0x40] ss:$2 sm:$0xff]  ;;  %v1120_v63 = vld [vmem:[#allocation2 + $0x41] ss:$2 sm:$0xff]  ;;  %v1110_v40 = vmul.f32 0.25, %v1106_v25 }
 0x138   : > { %v13443_v0 = vpop.eup %13442  ;;  %1043 = vst.msk [vmem:[#allocation2 + $0x58] sm:$0xff] %vm630_vm0, %v1011_v53  ;;  %v780_v1 = vpop.f32.mrf.mxu0  ;;  %v1127_v10 = vadd.f32 %v1120_v63, %v1112_v62  ;;  %vm856_vm3 = vcmp.gt.f32.partialorder %v14384_v56, 0.0 }
 0x139   : > { %v11616_v4 = vadd.f32 -1.0, %v13443_v0  ;;  %v936_v5 = vmul.f32 1.442695, %v888_v61  ;;  %v14392_v6 = vadd.f32 %v14308_v45, %v780_v1 }
 0x13a   : > { %v782_v2 = vpop.f32.mrf.mxu0 }
 0x13b   : > { %v1012_v11 = vsel %vm852_vm13, %v14355_v15, %v11616_v4  ;;  %13450 = vpow2.f32 %v936_v5  ;;  %v889_v12 = vmin.f32 %v14392_v6, 0.0  ;;  %v1132_v14 = vld [vmem:[#allocation2 + $0x42] ss:$2 sm:$0xff]  ;;  %v1144_v23 = vld [vmem:[#allocation2 + $0x43] ss:$2 sm:$0xff]  ;;  %vm857_vm4 = vcmp.gt.f32.partialorder %v14392_v6, 0.0 }
 0x13c   : > { %v13445_v16 = vpop.eup %13444  ;;  %1044 = vst.msk [vmem:[#allocation2 + $0x60] sm:$0xff] %vm630_vm0, %v1012_v11  ;;  %v785_v17 = vpop.f32.mrf.mxu0  ;;  %v1139_v19 = vadd.f32 %v1132_v14, %v1127_v10 }
 0x13d   : > { %v11617_v20 = vadd.f32 -1.0, %v13445_v16  ;;  %v938_v21 = vmul.f32 1.442695, %v889_v12  ;;  %v14399_v22 = vadd.f32 %v14308_v45, %v785_v17 }
 0x13e   : > { %v787_v15 = vpop.f32.mrf.mxu0  ;;  %v1151_v27 = vadd.f32 %v1144_v23, %v1139_v19 }
 0x13f   : > { %v1013_v29 = vsel %vm853_vm14, %v14362_v28, %v11617_v20  ;;  %13452 = vpow2.f32 %v938_v21  ;;  %v890_v30 = vmin.f32 %v14399_v22, 0.0  ;;  %v1114_v31 = vld [vmem:[#allocation2 + $0x50] ss:$2 sm:$0xff]  ;;  %v1122_v32 = vld [vmem:[#allocation2 + $0x51] ss:$2 sm:$0xff]  ;;  %vm858_vm5 = vcmp.gt.f32.partialorder %v14399_v22, 0.0 }
 0x140   : > { %v13447_v33 = vpop.eup %13446  ;;  %1045 = vst.msk [vmem:[#allocation2 + $0x68] sm:$0xff] %vm630_vm0, %v1013_v29  ;;  %v788_v35 = vpop.f32.mrf.mxu0  ;;  %v14405_v36 = vmul.f32 0.25, %v1151_v27  ;;  %v1128_v43 = vadd.f32 %v1122_v32, %v1114_v31 }
 0x141   : > { %v11618_v38 = vadd.f32 -1.0, %v13447_v33  ;;  %v940_v39 = vmul.f32 1.442695, %v890_v30  ;;  %v14408_v34 = vadd.f32 %v14308_v45, %v788_v35 }
 0x142   : > { %v790_v28 = vpop.f32.mrf.mxu0  ;;  %v1260_v41 = vrot.slane %v14405_v36, 3 }
 0x143   : > { %v1014_v44 = vsel %vm854_vm15, %v14370_v37, %v11618_v38  ;;  %13454 = vpow2.f32 %v940_v39  ;;  %v891_v47 = vmin.f32 %v14408_v34, 0.0  ;;  %v1134_v49 = vld [vmem:[#allocation2 + $0x52] ss:$2 sm:$0xff]  ;;  %v1146_v59 = vld [vmem:[#allocation2 + $0x53] ss:$2 sm:$0xff]  ;;  %vm859_vm6 = vcmp.gt.f32.partialorder %v14408_v34, 0.0 }
 0x144   : > { %v13449_v42 = vpop.eup %13448  ;;  %1046 = vst.msk [vmem:[#allocation2 + $0x70] sm:$0xff] %vm630_vm0, %v1014_v44  ;;  %v793_v50 = vpop.f32.mrf.mxu0  ;;  %v1305_v51 = vsel %vm1259_vm1, %v1110_v40, %v1260_v41  ;;  %v1140_v52 = vadd.f32 %v1134_v49, %v1128_v43 }
 0x145   : > { %v11619_v54 = vadd.f32 -1.0, %v13449_v42  ;;  %v942_v55 = vmul.f32 1.442695, %v891_v47  ;;  %v14419_v37 = vadd.f32 %v14308_v45, %v793_v50  ;;  %v1309_v57 = vpack.c.bf16 %v1305_v51, %v1109_v48 }
 0x146   : > { %v795_v58 = vpop.f32.mrf.mxu0  ;;  %v1152_v3 = vadd.f32 %v1146_v59, %v1140_v52 }
 0x147   : > { %v1015_v60 = vsel %vm855_vm2, %v14377_v46, %v11619_v54  ;;  %13456 = vpow2.f32 %v942_v55  ;;  %v892_v53 = vmin.f32 %v14419_v37, 0.0  ;;  %12222 = vmatmul.mubr.msk.bf16.vlgmr.msra.gmra.mxu1 %vm630_vm0, %v1309_v57  ;;  %v1116_v61 = vld [vmem:[#allocation2 + $0x60] ss:$2 sm:$0xff]  ;;  %v1124_v62 = vld [vmem:[#allocation2 + $0x61] ss:$2 sm:$0xff]  ;;  %vm860_vm7 = vcmp.gt.f32.partialorder %v14419_v37, 0.0 }
 0x148   : > { %v13451_v63 = vpop.eup %13450  ;;  %1047 = vst.msk [vmem:[#allocation2 + $0x78] sm:$0xff] %vm630_vm0, %v1015_v60  ;;  %v796_v0 = vpop.f32.mrf.mxu0  ;;  %v1129_v1 = vadd.f32 %v1124_v62, %v1116_v61  ;;  %v1156_v14 = vmul.f32 0.25, %v1152_v3 }
 0x149   : > { %v11620_v4 = vadd.f32 -1.0, %v13451_v63  ;;  %v944_v5 = vmul.f32 1.442695, %v892_v53  ;;  %v14427_v7 = vadd.f32 %v14308_v45, %v796_v0 }
 0x14a   : > { %v798_v46 = vpop.f32.mrf.mxu0  ;;  %v1261_v27 = vrot.slane %v1156_v14, 3 }
 0x14b   : > { %v1016_v8 = vsel %vm856_vm3, %v14384_v56, %v11620_v4  ;;  %13458 = vpow2.f32 %v944_v5  ;;  %v893_v2 = vmin.f32 %v14427_v7, 0.0  ;;  %v1136_v9 = vld [vmem:[#allocation2 + $0x62] ss:$2 sm:$0xff]  ;;  %v1148_v10 = vld [vmem:[#allocation2 + $0x63] ss:$2 sm:$0xff]  ;;  %vm861_vm8 = vcmp.gt.f32.partialorder %v14427_v7, 0.0 }
 0x14c   : > { %v13453_v11 = vpop.eup %13452  ;;  %1048 = vst.msk [vmem:[#allocation2 + $0x80] sm:$0xff] %vm630_vm0, %v1016_v8  ;;  %v801_v12 = vpop.f32.mrf.mxu0  ;;  %v1141_v13 = vadd.f32 %v1136_v9, %v1129_v1  ;;  %v1262_v44 = vsel %vm1259_vm1, %v1260_v41, %v1261_v27 }
 0x14d   : > { %v11621_v16 = vadd.f32 -1.0, %v13453_v11  ;;  %v946_v17 = vmul.f32 1.442695, %v893_v2  ;;  %v14434_v18 = vadd.f32 %v14308_v45, %v801_v12 }
 0x14e   : > { %v803_v19 = vpop.f32.mrf.mxu0  ;;  %v1153_v56 = vadd.f32 %v1148_v10, %v1141_v13 }
 0x14f   : > { %v1017_v20 = vsel %vm857_vm4, %v14392_v6, %v11621_v16  ;;  %13460 = vpow2.f32 %v946_v17  ;;  %v894_v21 = vmin.f32 %v14434_v18, 0.0  ;;  %v1118_v23 = vld [vmem:[#allocation2 + $0x70] ss:$2 sm:$0x1f]  ;;  %vm862_vm9 = vcmp.gt.f32.partialorder %v14434_v18, 0.0 }
 0x150   : > { %v13455_v15 = vpop.eup %13454  ;;  %1049 = vst.msk [vmem:[#allocation2 + $0x88] sm:$0xff] %vm630_vm0, %v1017_v20  ;;  %v804_v24 = vpop.f32.mrf.mxu0  ;;  %v14440_v25 = vmul.f32 0.25, %v1153_v56  ;;  %v1126_v29 = vld [vmem:[#allocation2 + $0x71] ss:$2 sm:$0x1f] }
 0x151   : > { %v11622_v30 = vadd.f32 -1.0, %v13455_v15  ;;  %v948_v26 = vmul.f32 1.442695, %v894_v21  ;;  %v14443_v31 = vadd.f32 %v14308_v45, %v804_v24  ;;  %v1130_v6 = vadd.f32 %v1126_v29, %v1118_v23  ;;  %v1138_v32 = vld [vmem:[#allocation2 + $0x72] ss:$2 sm:$0x1f] }
 0x152   : > { %v806_v33 = vpop.f32.mrf.mxu0  ;;  %v1263_v35 = vrot.slane %v14440_v25, 3  ;;  %v1150_v28 = vld [vmem:[#allocation2 + $0x73] ss:$2 sm:$0x1f] }
 0x153   : > { %v1018_v38 = vsel %vm858_vm5, %v14399_v22, %v11622_v30  ;;  %13462 = vpow2.f32 %v948_v26  ;;  %v895_v39 = vmin.f32 %v14443_v31, 0.0  ;;  %v1142_v48 = vadd.f32 %v1138_v32, %v1130_v6 }
 0x154   : > { %v13457_v40 = vpop.eup %13456  ;;  %1050 = vst.msk [vmem:[#allocation2 + $0x90] sm:$0xff] %vm630_vm0, %v1018_v38  ;;  %v809_v43 = vpop.f32.mrf.mxu0  ;;  %v1264_v47 = vsel %vm1259_vm1, %v1261_v27, %v1263_v35  ;;  %vm863_vm11 = vcmp.gt.f32.partialorder %v14443_v31, 0.0 }
 0x155   : > { %v11623_v22 = vadd.f32 -1.0, %v13457_v40  ;;  %v950_v49 = vmul.f32 1.442695, %v895_v39  ;;  %v14457_v42 = vadd.f32 %v14308_v45, %v809_v43  ;;  %v1310_v50 = vpack.c.bf16 %v1264_v47, %v1262_v44 }
 0x156   : > { %v811_v51 = vpop.f32.mrf.mxu0  ;;  %v1154_v52 = vadd.f32 %v1150_v28, %v1142_v48 }
 0x157   : > { %v1019_v54 = vsel %vm859_vm6, %v14408_v34, %v11623_v22  ;;  %13464 = vpow2.f32 %v950_v49  ;;  %v896_v36 = vmin.f32 %v14457_v42, 0.0  ;;  %12225 = vmatprep.mubr.msk.bf16.mxu1 %vm630_vm0, %v1310_v50  ;;  %v1160_v41 = vld [vmem:[#allocation2 + $0x80] ss:$2 sm:$0xff]  ;;  %v1168_v55 = vld [vmem:[#allocation2 + $0x81] ss:$2 sm:$0xff]  ;;  %vm864_vm12 = vcmp.gt.f32.partialorder %v14457_v42, 0.0 }
 0x158   : > { %v13459_v57 = vpop.eup %13458  ;;  %1051 = vst.msk [vmem:[#allocation2 + $0x98] sm:$0xff] %vm630_vm0, %v1019_v54  ;;  %v812_v58 = vpop.f32.mrf.mxu0  ;;  %v1175_v59 = vadd.f32 %v1168_v55, %v1160_v41  ;;  %v1158_v62 = vmul.f32 0.25, %v1154_v52  ;;  %vm1292_vm6 = vcmask 1046528  }
 0x159   : > { %v11624_v60 = vadd.f32 -1.0, %v13459_v57  ;;  %v952_v53 = vmul.f32 1.442695, %v896_v36  ;;  %v14465_v61 = vadd.f32 %v14308_v45, %v812_v58 }
 0x15a   : > { %v814_v34 = vpop.f32.mrf.mxu0 }
 0x15b   : > { %v1020_v63 = vsel %vm860_vm7, %v14419_v37, %v11624_v60  ;;  %13466 = vpow2.f32 %v952_v53  ;;  %v897_v0 = vmin.f32 %v14465_v61, 0.0  ;;  %v1180_v1 = vld [vmem:[#allocation2 + $0x82] ss:$2 sm:$0xff]  ;;  %v1192_v3 = vld [vmem:[#allocation2 + $0x83] ss:$2 sm:$0xff]  ;;  %v1265_v37 = vrot.slane %v1158_v62, 3 }
 0x15c   : > { %v13461_v4 = vpop.eup %13460  ;;  %1052 = vst.msk [vmem:[#allocation2 + $0xa0] sm:$0xff] %vm630_vm0, %v1020_v63  ;;  %v817_v5 = vpop.f32.mrf.mxu0  ;;  %v1187_v46 = vadd.f32 %v1180_v1, %v1175_v59  ;;  %vm865_vm13 = vcmp.gt.f32.partialorder %v14465_v61, 0.0  ;;  %vm1501_vm7 = vcmask 257024  }
 0x15d   : > { %v11625_v8 = vadd.f32 -1.0, %v13461_v4  ;;  %v954_v2 = vmul.f32 1.442695, %v897_v0  ;;  %v14472_v9 = vadd.f32 %v14308_v45, %v817_v5  ;;  %v1266_v24 = vsel %vm1259_vm1, %v1263_v35, %v1265_v37 }
 0x15e   : > { %v819_v10 = vpop.f32.mrf.mxu0  ;;  %v1199_v11 = vadd.f32 %v1192_v3, %v1187_v46 }
 0x15f   : > { %v1021_v12 = vsel %vm861_vm8, %v14427_v7, %v11625_v8  ;;  %13468 = vpow2.f32 %v954_v2  ;;  %v898_v13 = vmin.f32 %v14472_v9, 0.0  ;;  %v1162_v14 = vld [vmem:[#allocation2 + $0x90] ss:$2 sm:$0xff]  ;;  %v1170_v16 = vld [vmem:[#allocation2 + $0x91] ss:$2 sm:$0xff]  ;;  %vm866_vm14 = vcmp.gt.f32.partialorder %v14472_v9, 0.0 }
 0x160   : > { %v13463_v17 = vpop.eup %13462  ;;  %1053 = vst.msk [vmem:[#allocation2 + $0xa8] sm:$0xff] %vm630_vm0, %v1021_v12  ;;  %v820_v19 = vpop.f32.mrf.mxu0  ;;  %v14478_v56 = vmul.f32 0.25, %v1199_v11  ;;  %v1176_v20 = vadd.f32 %v1170_v16, %v1162_v14  ;;  %vm1900_vm8 = vcmask 64512  }
 0x161   : > { %v11626_v21 = vadd.f32 -1.0, %v13463_v17  ;;  %v956_v23 = vmul.f32 1.442695, %v898_v13  ;;  %v14481_v15 = vadd.f32 %v14308_v45, %v820_v19 }
 0x162   : > { %v822_v7 = vpop.f32.mrf.mxu0  ;;  %v1277_v27 = vrot.slane %v14478_v56, 6 }
 0x163   : > { %v1022_v29 = vsel %vm862_vm9, %v14434_v18, %v11626_v21  ;;  %13470 = vpow2.f32 %v956_v23  ;;  %v899_v30 = vmin.f32 %v14481_v15, 0.0  ;;  %v1182_v26 = vld [vmem:[#allocation2 + $0x92] ss:$2 sm:$0xff]  ;;  %v1194_v6 = vld [vmem:[#allocation2 + $0x93] ss:$2 sm:$0xff]  ;;  %vm867_vm15 = vcmp.gt.f32.partialorder %v14481_v15, 0.0 }
 0x164   : > { %v13465_v32 = vpop.eup %13464  ;;  %1054 = vst.msk [vmem:[#allocation2 + $0xb0] sm:$0xff] %vm630_vm0, %v1022_v29  ;;  %v825_v33 = vpop.f32.mrf.mxu0  ;;  %v1306_v25 = vsel %vm1276_vm10, %v1265_v37, %v1277_v27  ;;  %v1188_v35 = vadd.f32 %v1182_v26, %v1176_v20  ;;  %vm2156_vm9 = vcmask 1042432  }
 0x165   : > { %v11627_v38 = vadd.f32 -1.0, %v13465_v32  ;;  %v958_v39 = vmul.f32 1.442695, %v899_v30  ;;  %v14495_v18 = vadd.f32 %v14308_v45, %v825_v33  ;;  %v1311_v28 = vpack.c.bf16 %v1306_v25, %v1266_v24 }
 0x166   : > { %v827_v40 = vpop.f32.mrf.mxu0  ;;  %v1200_v43 = vadd.f32 %v1194_v6, %v1188_v35 }
 0x167   : > { %v1023_v44 = vsel %vm863_vm11, %v14443_v31, %v11627_v38  ;;  %13472 = vpow2.f32 %v958_v39  ;;  %v900_v47 = vmin.f32 %v14495_v18, 0.0  ;;  %12226 = vmatmul.mubr.msk.bf16.gmra.mxu1 %vm630_vm0, %v1311_v28  ;;  %v1164_v48 = vld [vmem:[#allocation2 + $0xa0] ss:$2 sm:$0xff]  ;;  %v1172_v22 = vld [vmem:[#allocation2 + $0xa1] ss:$2 sm:$0xff]  ;;  %vm868_vm2 = vcmp.gt.f32.partialorder %v14495_v18, 0.0 }
 0x168   : > { %v13467_v49 = vpop.eup %13466  ;;  %1055 = vst.msk [vmem:[#allocation2 + $0xb8] sm:$0xff] %vm630_vm0, %v1023_v44  ;;  %v828_v50 = vpop.f32.mrf.mxu0  ;;  %v1177_v51 = vadd.f32 %v1172_v22, %v1164_v48  ;;  %v1204_v41 = vmul.f32 0.25, %v1200_v43  ;;  %vm2212_vm11 = vsmask.f32 1280 }
 0x169   : > { %v11628_v52 = vadd.f32 -1.0, %v13467_v49  ;;  %v960_v54 = vmul.f32 1.442695, %v900_v47  ;;  %v14503_v36 = vadd.f32 %v14308_v45, %v828_v50 }
 0x16a   : > { %v830_v31 = vpop.f32.mrf.mxu0 }
 0x16b   : > { %v1024_v55 = vsel %vm864_vm12, %v14457_v42, %v11628_v52  ;;  %13474 = vpow2.f32 %v960_v54  ;;  %v901_v57 = vmin.f32 %v14503_v36, 0.0  ;;  %v1184_v58 = vld [vmem:[#allocation2 + $0xa2] ss:$2 sm:$0xff]  ;;  %v1196_v59 = vld [vmem:[#allocation2 + $0xa3] ss:$2 sm:$0xff]  ;;  %v1278_v42 = vrot.slane %v1204_v41, 6 }
 0x16c   : > { %v13469_v60 = vpop.eup %13468  ;;  %1056 = vst.msk [vmem:[#allocation2 + $0xc0] sm:$0xff] %vm630_vm0, %v1024_v55  ;;  %v833_v53 = vpop.f32.mrf.mxu0  ;;  %v1189_v34 = vadd.f32 %v1184_v58, %v1177_v51  ;;  %vm869_vm3 = vcmp.gt.f32.partialorder %v14503_v36, 0.0  ;;  %vm2804_vm12 = vcmask 1040384  }
 0x16d   : > { %v11629_v62 = vadd.f32 -1.0, %v13469_v60  ;;  %v962_v63 = vmul.f32 1.442695, %v901_v57  ;;  %v14510_v0 = vadd.f32 %v14308_v45, %v833_v53 }
 0x16e   : > { %v835_v1 = vpop.f32.mrf.mxu0  ;;  %v1201_v3 = vadd.f32 %v1196_v59, %v1189_v34 }
 0x16f   : > { %v1025_v4 = vsel %vm865_vm13, %v14465_v61, %v11629_v62  ;;  %13476 = vpow2.f32 %v962_v63  ;;  %v902_v5 = vmin.f32 %v14510_v0, 0.0  ;;  %v1166_v46 = vld [vmem:[#allocation2 + $0xb0] ss:$2 sm:$0x1f]  ;;  %v1279_v61 = vsel %vm1276_vm10, %v1277_v27, %v1278_v42 }
 0x170   : > { %v13471_v8 = vpop.eup %13470  ;;  %1057 = vst.msk [vmem:[#allocation2 + $0xc8] sm:$0xff] %vm630_vm0, %v1025_v4  ;;  %v836_v2 = vpop.f32.mrf.mxu0  ;;  %v14516_v10 = vmul.f32 0.25, %v1201_v3  ;;  %v1174_v11 = vld [vmem:[#allocation2 + $0xb1] ss:$2 sm:$0x1f]  ;;  %vm870_vm4 = vcmp.gt.f32.partialorder %v14510_v0, 0.0 }
 0x171   : > { %v11630_v37 = vadd.f32 -1.0, %v13471_v8  ;;  %v964_v12 = vmul.f32 1.442695, %v902_v5  ;;  %v837_v13 = vadd.f32 %v14308_v45, %v836_v2  ;;  %v1178_v20 = vadd.f32 %v1174_v11, %v1166_v46  ;;  %v1186_v45 = vld [vmem:[#allocation2 + $0xb2] ss:$2 sm:$0x1f] }
 0x172   : > { %v1280_v14 = vrot.slane %v14516_v10, 6  ;;  %v838_v16 = vpop.f32.mrf.mxu0  ;;  %v1198_v6 = vld [vmem:[#allocation2 + $0xb3] ss:$2 sm:$0x1f]  ;;  %vm2489_vm13 = vcmask 1045504  }
 0x173   : > { %v1026_v17 = vsel %vm866_vm14, %v14472_v9, %v11630_v37  ;;  %13478 = vpow2.f32 %v964_v12  ;;  %v903_v19 = vmin.f32 %v837_v13, 0.0  ;;  %v1190_v9 = vadd.f32 %v1186_v45, %v1178_v20 }
 0x174   : > { %v13473_v21 = vpop.eup %13472  ;;  %1058 = vst.msk [vmem:[#allocation2 + $0xd0] sm:$0xff] %vm630_vm0, %v1026_v17  ;;  %v1281_v23 = vsel %vm1276_vm10, %v1278_v42, %v1280_v14  ;;  %vm871_vm5 = vcmp.gt.f32.partialorder %v837_v13, 0.0  ;;  %vm2860_vm14 = vsmask.f32 4352 }
 0x175   : > { %v11631_v7 = vadd.f32 -1.0, %v13473_v21  ;;  %v966_v56 = vmul.f32 1.442695, %v903_v19  ;;  %v1312_v24 = vpack.c.bf16 %v1281_v23, %v1279_v61  ;;  %v1202_v35 = vadd.f32 %v1198_v6, %v1190_v9 }
 0x177   : > { %v1027_v27 = vsel %vm867_vm15, %v14481_v15, %v11631_v7  ;;  %13480 = vpow2.f32 %v966_v56  ;;  %12229 = vmatprep.mubr.msk.bf16.mxu1 %vm630_vm0, %v1312_v24  ;;  %v1208_v29 = vld [vmem:[#allocation2 + $0xc0] ss:$2 sm:$0xff]  ;;  %v1216_v30 = vld [vmem:[#allocation2 + $0xc1] ss:$2 sm:$0xff]  ;;  %v1206_v47 = vmul.f32 0.25, %v1202_v35  ;;  %vm1907_vm15 = vcmask 1043456  }
 0x178   : > { %v13475_v26 = vpop.eup %13474  ;;  %1059 = vst.msk [vmem:[#allocation2 + $0xd8] sm:$0xff] %vm630_vm0, %v1027_v27  ;;  %v1223_v32 = vadd.f32 %v1216_v30, %v1208_v29  ;;  %v14551_v56 = vld [vmem:[%s18419_s3 + $0x1] ss:$0 sm:$0xff] }
 0x179   : > { %v11632_v33 = vadd.f32 -1.0, %v13475_v26  ;;  %v1282_v41 = vrot.slane %v1206_v47, 6 }
 0x17b   : > { %v1028_v25 = vsel %vm868_vm2, %v14495_v18, %v11632_v33  ;;  %v1228_v38 = vld [vmem:[#allocation2 + $0xc2] ss:$2 sm:$0xff]  ;;  %v1240_v39 = vld [vmem:[#allocation2 + $0xc3] ss:$2 sm:$0xff]  ;;  %v1283_v53 = vsel %vm1276_vm10, %v1280_v14, %v1282_v41  ;;  %vm3367_vm2 = vcmask 236544  }
 0x17c   : > { %v13477_v15 = vpop.eup %13476  ;;  %1060 = vst.msk [vmem:[#allocation2 + $0xe0] sm:$0xff] %vm630_vm0, %v1028_v25  ;;  %v1235_v28 = vadd.f32 %v1228_v38, %v1223_v32 }
 0x17d   : > { %v11633_v40 = vadd.f32 -1.0, %v13477_v15 }
 0x17e   : > { %v1247_v43 = vadd.f32 %v1240_v39, %v1235_v28 }
 0x17f   : > { %v1029_v44 = vsel %vm869_vm3, %v14503_v36, %v11633_v40  ;;  %v1210_v48 = vld [vmem:[#allocation2 + $0xd0] ss:$2 sm:$0xff]  ;;  %v1218_v22 = vld [vmem:[#allocation2 + $0xd1] ss:$2 sm:$0xff]  ;;  %vm4482_vm3 = vsmask.f32 7424 }
 0x180   : > { %v13479_v49 = vpop.eup %13478  ;;  %1061 = vst.msk [vmem:[#allocation2 + $0xe8] sm:$0xff] %vm630_vm0, %v1029_v44  ;;  %v1224_v18 = vadd.f32 %v1218_v22, %v1210_v48  ;;  %v1251_v51 = vmul.f32 0.25, %v1247_v43 }
 0x181   : > { %v11634_v50 = vadd.f32 -1.0, %v13479_v49 }
 0x182   : > { %v1293_v59 = vrot.slane %v1251_v51, 1 }
 0x183   : > { %v1030_v52 = vsel %vm870_vm4, %v14510_v0, %v11634_v50  ;;  %v1230_v54 = vld [vmem:[#allocation2 + $0xd2] ss:$2 sm:$0xff]  ;;  %v1242_v31 = vld [vmem:[#allocation2 + $0xd3] ss:$2 sm:$0xff]  ;;  %vm18502_vm4 = vsmask.f32 2304 }
 0x184   : > { %v13481_v55 = vpop.eup %13480  ;;  %1062 = vst.msk [vmem:[#allocation2 + $0xf0] sm:$0xff] %vm630_vm0, %v1030_v52  ;;  %v1236_v36 = vadd.f32 %v1230_v54, %v1224_v18  ;;  %v1307_v3 = vsel %vm1292_vm6, %v1283_v53, %v1293_v59 }
 0x185   : > { %v11635_v57 = vadd.f32 -1.0, %v13481_v55 }
 0x186   : > { %v1248_v58 = vadd.f32 %v1242_v31, %v1236_v36 }
 0x187   : > { %v1031_v60 = vsel %vm871_vm5, %v837_v13, %v11635_v57  ;;  %v1212_v34 = vld [vmem:[#allocation2 + $0xe0] ss:$2 sm:$0xff]  ;;  %v1220_v62 = vld [vmem:[#allocation2 + $0xe1] ss:$2 sm:$0xff]  ;;  %vm18500_vm5 = vsmask.f32 5376 }
 0x188   : > { %1063 = vst.msk [vmem:[#allocation2 + $0xf8] sm:$0xff] %vm630_vm0, %v1031_v60  ;;  %v1252_v63 = vmul.f32 0.25, %v1248_v58  ;;  %v1225_v0 = vadd.f32 %v1220_v62, %v1212_v34 }
 0x18a   : > { %v1294_v1 = vrot.slane %v1252_v63, 1 }
 0x18b   : > { %v1232_v42 = vld [vmem:[#allocation2 + $0xe2] ss:$2 sm:$0xff]  ;;  %v1244_v4 = vld [vmem:[#allocation2 + $0xe3] ss:$2 sm:$0xff] }
 0x18c   : > { %v1295_v5 = vsel %vm1292_vm6, %v1293_v59, %v1294_v1  ;;  %v1237_v46 = vadd.f32 %v1232_v42, %v1225_v0 }
 0x18d   : > { %v1313_v8 = vpack.c.bf16 %v1295_v5, %v1307_v3 }
 0x18e   : > { %v1249_v2 = vadd.f32 %v1244_v4, %v1237_v46 }
 0x18f   : > { %12230 = vmatmul.mubr.msk.bf16.gmra.mxu1 %vm630_vm0, %v1313_v8  ;;  %v1214_v10 = vld [vmem:[#allocation2 + $0xf0] ss:$2 sm:$0x1f]  ;;  %v1222_v11 = vld [vmem:[#allocation2 + $0xf1] ss:$2 sm:$0x1f] }
 0x190   : > { %v1226_v37 = vadd.f32 %v1222_v11, %v1214_v10  ;;  %v1234_v12 = vld [vmem:[#allocation2 + $0xf2] ss:$2 sm:$0x1f]  ;;  %v1246_v13 = vld [vmem:[#allocation2 + $0xf3] ss:$2 sm:$0x1f] }
 0x191   : > { %v1253_v61 = vmul.f32 0.25, %v1249_v2 }
 0x192   : > { %v1238_v14 = vadd.f32 %v1234_v12, %v1226_v37 }
 0x193   : > { %v1296_v17 = vrot.slane %v1253_v61, 1 }
 0x194   : > { %v1250_v16 = vadd.f32 %v1246_v13, %v1238_v14 }
 0x195   : > { %v1297_v20 = vsel %vm1292_vm6, %v1294_v1, %v1296_v17 }
 0x196   : > { %v1254_v19 = vmul.f32 0.25, %v1250_v16 }
 0x198   : > { %v1298_v21 = vrot.slane %v1254_v19, 1 }
 0x19a   : > { %v1299_v23 = vsel %vm1292_vm6, %v1296_v17, %v1298_v21  ;;  %v1315_v45 = vpack.c.bf16 %v1298_v21, %v1298_v21 }
 0x19b   : > { %v1314_v7 = vpack.c.bf16 %v1299_v23, %v1297_v20 }
 0x19d   : > { %12233 = vmatprep.mubr.msk.bf16.mxu1 %vm630_vm0, %v1314_v7 }
 0x19e   : > { %12234 = vmatmul.mubr.msk.bf16.gmra.mxu1 %vm630_vm0, %v1315_v45 }
 0x207   : > { %v12223_v24 = vpop.f32.mrf.mxu1 }
 0x208   : > { %v14554_v27 = vadd.f32 %v12223_v24, %v14551_v56 }
 0x209   : > { %v1395_v9 = vpop.f32.mrf.mxu1 }
 0x20a   : > { %18570 = vst [vmem:[#allocation3_spill] sm:$0xff] %v14554_v27  ;;  %v14557_v29 = vadd.f32 %v14551_v56, %v1395_v9  ;;  %v1465_v30 = vsel %vm630_vm0, %v14554_v27, 0.0 }
 0x20b   : > { %1466 = vadd.xlane.f32.xlu1 %v1465_v30  ;;  %v12224_v26 = vpop.f32.mrf.mxu1 }
 0x20c   : > { %18571 = vst [vmem:[#allocation4_spill] sm:$0xff] %v14557_v29  ;;  %v14562_v6 = vadd.f32 %v12224_v26, %v14551_v56  ;;  %v1459_v32 = vsel %vm630_vm0, %v14557_v29, 0.0 }
 0x20d   : > { %v1398_v33 = vpop.f32.mrf.mxu1  ;;  %1460 = vadd.xlane.f32.xlu0 %v1459_v32 }
 0x20e   : > { %18572 = vst [vmem:[#allocation5_spill] sm:$0xff] %v14562_v6  ;;  %v14567_v25 = vadd.f32 %v14551_v56, %v1398_v33  ;;  %v1468_v35 = vsel %vm630_vm0, %v14562_v6, 0.0 }
 0x20f   : > { %1469 = vadd.xlane.f32.xlu1 %v1468_v35 }
 0x210   : > { %18573 = vst [vmem:[#allocation6_spill] sm:$0xff] %v14567_v25  ;;  %v1462_v38 = vsel %vm630_vm0, %v14567_v25, 0.0 }
 0x211   : > { %1463 = vadd.xlane.f32.xlu0 %v1462_v38 }
 0x227   : > { %v12227_v39 = vpop.f32.mrf.mxu1 }
 0x228   : > { %v14577_v43 = vadd.f32 %v12227_v39, %v14551_v56 }
 0x229   : > { %v1411_v15 = vpop.f32.mrf.mxu1 }
 0x22a   : > { %v14574_v28 = vadd.f32 %v14551_v56, %v1411_v15  ;;  %18575 = vst [vmem:[#allocation8_spill] sm:$0xff] %v14577_v43  ;;  %v1477_v18 = vsel %vm630_vm0, %v14577_v43, 0.0 }
 0x22b   : > { %v12228_v40 = vpop.f32.mrf.mxu1 }
 0x22c   : > { %18574 = vst [vmem:[#allocation7_spill] sm:$0xff] %v14574_v28  ;;  %v1471_v44 = vsel %vm630_vm0, %v14574_v28, 0.0  ;;  %v14585_v22 = vadd.f32 %v12228_v40, %v14551_v56 }
 0x22d   : > { %v1414_v47 = vpop.f32.mrf.mxu1  ;;  %1472 = vadd.xlane.f32.xlu0 %v1471_v44 }
 0x22e   : > { %v14582_v48 = vadd.f32 %v14551_v56, %v1414_v47  ;;  %18577 = vst [vmem:[#allocation10_spill] sm:$0xff] %v14585_v22  ;;  %v1480_v50 = vsel %vm630_vm0, %v14585_v22, 0.0 }
 0x230   : > { %18576 = vst [vmem:[#allocation9_spill] sm:$0xff] %v14582_v48  ;;  %v1474_v49 = vsel %vm630_vm0, %v14582_v48, 0.0 }
 0x231   : > { %1475 = vadd.xlane.f32.xlu1 %v1474_v49  ;;  %1478 = vadd.xlane.f32.xlu0 %v1477_v18 }
 0x235   : > { %1481 = vadd.xlane.f32.xlu1 %v1480_v50 }
 0x24f   : > { %v12231_v51 = vpop.f32.mrf.mxu1 }
 0x250   : > { %v14594_v54 = vadd.f32 %v12231_v51, %v14551_v56 }
 0x251   : > { %v1427_v52 = vpop.f32.mrf.mxu1 }
 0x252   : > { %18578 = vst [vmem:[#allocation11_spill] sm:$0xff] %v14594_v54  ;;  %v14597_v31 = vadd.f32 %v14551_v56, %v1427_v52  ;;  %v1489_v59 = vsel %vm630_vm0, %v14594_v54, 0.0 }
 0x253   : > { %v12232_v41 = vpop.f32.mrf.mxu1 }
 0x254   : > { %18579 = vst [vmem:[#allocation12_spill] sm:$0xff] %v14597_v31  ;;  %v1483_v55 = vsel %vm630_vm0, %v14597_v31, 0.0  ;;  %v14602_v57 = vadd.f32 %v12232_v41, %v14551_v56 }
 0x255   : > { %v1430_v36 = vpop.f32.mrf.mxu1  ;;  %1484 = vadd.xlane.f32.xlu0 %v1483_v55 }
 0x256   : > { %18580 = vst [vmem:[#allocation13_spill] sm:$0xff] %v14602_v57  ;;  %v14605_v58 = vadd.f32 %v14551_v56, %v1430_v36  ;;  %v1492_v53 = vsel %vm630_vm0, %v14602_v57, 0.0  ;;  %v13398_v36 = vld [vmem:[%s18421_s5 + $0x8] sm:$0xff]  }
 0x257   : > { %12237 = vmatprep.subr.bf16.mxu1 %v13398_v36 }
 0x258   : > { %18581 = vst [vmem:[#allocation14_spill] sm:$0xff] %v14605_v58  ;;  %v1486_v60 = vsel %vm630_vm0, %v14605_v58, 0.0  ;;  %12238 = vmatpush3.bf16.msra.mxu1 %v13398_v36 }
 0x259   : > { %1487 = vadd.xlane.f32.xlu1 %v1486_v60  ;;  %1490 = vadd.xlane.f32.xlu0 %v1489_v59  ;;  %v13399_v60 = vld [vmem:[%s18421_s5] sm:$0xff]  }
 0x25a   : > { %12239 = vmatprep.subr.bf16.mxu1 %v13399_v60 }
 0x25c   : > { %12240 = vmatpush3.bf16.msra.mxu1 %v13399_v60 }
 0x25d   : > { %1493 = vadd.xlane.f32.xlu1 %v1492_v53 }
 0x25e   : > { %v12235_v34 = vpop.f32.mrf.mxu1 }
 0x25f   : > { %v14640_v23 = vadd.f32 %v12235_v34, %v14551_v56 }
 0x260   : > { %v1443_v62 = vpop.f32.mrf.mxu1 }
 0x261   : > { %v14633_v16 = vadd.f32 %v14551_v56, %v1443_v62  ;;  %18583 = vst [vmem:[#allocation16_spill] sm:$0xff] %v14640_v23  ;;  %v1502_v9 = vsel %vm1501_vm7, %v14640_v23, 0.0 }
 0x262   : > { %v12236_v63 = vpop.f32.mrf.mxu1 }
 0x263   : > { %18582 = vst [vmem:[#allocation15_spill] sm:$0xff] %v14633_v16  ;;  %v1495_v7 = vsel %vm630_vm0, %v14633_v16, 0.0 }
 0x264   : > { %v1446_v21 = vpop.f32.mrf.mxu1 }
 0x265   : > { %v14643_v45 = vadd.f32 %v14551_v56, %v1446_v21 }
 0x267   : > { %18584 = vst [vmem:[#allocation17_spill] sm:$0xff] %v14643_v45  ;;  %v1498_v30 = vsel %vm630_vm0, %v14643_v45, 0.0 }
 0x294   : > { %v1467_v0 = vpop.xlane.xlu1 %1466 }
 0x295   : > { %v1508_v1 = vmul.f32 0.03125, %v1467_v0 }
 0x296   : > { %v1461_v3 = vpop.xlane.xlu0 %1460 }
 0x297   : > { %v1506_v42 = vmul.f32 0.03125, %v1461_v3  ;;  %v14614_v5 = vsub.f32 %v14554_v27, %v1508_v1 }
 0x298   : > { %v1470_v4 = vpop.xlane.xlu1 %1469 }
 0x299   : > { %v14617_v46 = vsub.f32 %v14557_v29, %v1506_v42  ;;  %v1509_v8 = vmul.f32 0.03125, %v1470_v4  ;;  %v1538_v61 = vmul.f32 %v14614_v5, %v14614_v5 }
 0x29a   : > { %v1464_v2 = vpop.xlane.xlu0 %1463 }
 0x29b   : > { %v1507_v10 = vmul.f32 0.03125, %v1464_v2  ;;  %v1536_v11 = vmul.f32 %v14617_v46, %v14617_v46  ;;  %v14622_v37 = vsub.f32 %v14562_v6, %v1509_v8  ;;  %v1557_v17 = vsel %vm630_vm0, %v1538_v61, 0.0 }
 0x29d   : > { %v14625_v12 = vsub.f32 %v14567_v25, %v1507_v10  ;;  %v1551_v13 = vsel %vm630_vm0, %v1536_v11, 0.0  ;;  %v1539_v20 = vmul.f32 %v14622_v37, %v14622_v37 }
 0x29e   : > { %1552 = vadd.xlane.f32.xlu0 %v1551_v13 }
 0x29f   : > { %v1537_v14 = vmul.f32 %v14625_v12, %v14625_v12  ;;  %v1560_v24 = vsel %vm630_vm0, %v1539_v20, 0.0 }
 0x2a1   : > { %v1554_v19 = vsel %vm630_vm0, %v1537_v14, 0.0 }
 0x2a2   : > { %1558 = vadd.xlane.f32.xlu0 %v1557_v17  ;;  %1555 = vadd.xlane.f32.xlu1 %v1554_v19 }
 0x2a6   : > { %1496 = vadd.xlane.f32.xlu0 %v1495_v7  ;;  %1561 = vadd.xlane.f32.xlu1 %v1560_v24 }
 0x2aa   : > { %1503 = vadd.xlane.f32.xlu0 %v1502_v9  ;;  %1499 = vadd.xlane.f32.xlu1 %v1498_v30 }
 0x2b6   : > { %v1473_v26 = vpop.xlane.xlu0 %1472 }
 0x2b7   : > { %v1510_v32 = vmul.f32 0.03125, %v1473_v26 }
 0x2b9   : > { %v14653_v56 = vsub.f32 %v14574_v28, %v1510_v32 }
 0x2ba   : > { %v1476_v33 = vpop.xlane.xlu1 %1475  ;;  %v1479_v35 = vpop.xlane.xlu0 %1478 }
 0x2bb   : > { %v1511_v38 = vmul.f32 0.03125, %v1476_v33  ;;  %v1512_v39 = vmul.f32 0.03125, %v1479_v35  ;;  %v1540_v15 = vmul.f32 %v14653_v56, %v14653_v56 }
 0x2bd   : > { %v14658_v40 = vsub.f32 %v14582_v48, %v1511_v38  ;;  %v14661_v44 = vsub.f32 %v14577_v43, %v1512_v39  ;;  %v1563_v47 = vsel %vm630_vm0, %v1540_v15, 0.0  ;;  %v1656_v38 = vlaneseq }
 0x2be   : > { %v1482_v49 = vpop.xlane.xlu1 %1481  ;;  %1564 = vadd.xlane.f32.xlu1 %v1563_v47 }
 0x2bf   : > { %v1513_v18 = vmul.f32 0.03125, %v1482_v49  ;;  %v1541_v50 = vmul.f32 %v14658_v40, %v14658_v40  ;;  %v1542_v51 = vmul.f32 %v14661_v44, %v14661_v44 }
 0x2c1   : > { %v14669_v52 = vsub.f32 %v14585_v22, %v1513_v18  ;;  %v1566_v41 = vsel %vm630_vm0, %v1541_v50, 0.0  ;;  %v1569_v55 = vsel %vm630_vm0, %v1542_v51, 0.0  ;;  %v14706_v51 = vshrl.u32 %v1656_v38, 7 }
 0x2c2   : > { %1567 = vadd.xlane.f32.xlu0 %v1566_v41  ;;  %1570 = vadd.xlane.f32.xlu1 %v1569_v55 }
 0x2c3   : > { %v1543_v59 = vmul.f32 %v14669_v52, %v14669_v52  ;;  %18585 = vst [vmem:[#allocation18_spill] sm:$0xff] %v14706_v51 }
 0x2c5   : > { %v1572_v53 = vsel %vm630_vm0, %v1543_v59, 0.0 }
 0x2c6   : > { %1573 = vadd.xlane.f32.xlu0 %v1572_v53 }
 0x2de   : > { %v1485_v34 = vpop.xlane.xlu0 %1484 }
 0x2df   : > { %v1514_v62 = vmul.f32 0.03125, %v1485_v34 }
 0x2e1   : > { %v14683_v63 = vsub.f32 %v14597_v31, %v1514_v62  ;;  %v14714_v62 = vsub.s32 0, %v14706_v51 }
 0x2e2   : > { %v1488_v0 = vpop.xlane.xlu1 %1487  ;;  %v1491_v1 = vpop.xlane.xlu0 %1490 }
 0x2e3   : > { %v1515_v3 = vmul.f32 0.03125, %v1488_v0  ;;  %v1516_v42 = vmul.f32 0.03125, %v1491_v1  ;;  %v1544_v4 = vmul.f32 %v14683_v63, %v14683_v63  ;;  %18586 = vst [vmem:[#allocation19_spill] sm:$0xff] %v14714_v62  ;;  %v1457_v0 = vld [vmem:[%s18420_s4] sm:$0x3] }
 0x2e5   : > { %v14688_v8 = vsub.f32 %v14605_v58, %v1515_v3  ;;  %v14691_v2 = vsub.f32 %v14594_v54, %v1516_v42  ;;  %v1575_v10 = vsel %vm630_vm0, %v1544_v4, 0.0 }
 0x2e6   : > { %v1494_v11 = vpop.xlane.xlu1 %1493  ;;  %1576 = vadd.xlane.f32.xlu1 %v1575_v10 }
 0x2e7   : > { %v1517_v13 = vmul.f32 0.03125, %v1494_v11  ;;  %v1545_v61 = vmul.f32 %v14688_v8, %v14688_v8  ;;  %v1546_v14 = vmul.f32 %v14691_v2, %v14691_v2 }
 0x2e9   : > { %v14699_v17 = vsub.f32 %v14602_v57, %v1517_v13  ;;  %v1578_v19 = vsel %vm630_vm0, %v1545_v61, 0.0  ;;  %v1581_v20 = vsel %vm630_vm0, %v1546_v14, 0.0  ;;  %v14731_v13 = vrot.slane %v1457_v0, %v14714_v62 }
 0x2ea   : > { %1579 = vadd.xlane.f32.xlu0 %v1578_v19  ;;  %1582 = vadd.xlane.f32.xlu1 %v1581_v20  ;;  %v14737_v20 = vsub.s32 1, %v14706_v51 }
 0x2eb   : > { %v1547_v21 = vmul.f32 %v14699_v17, %v14699_v17  ;;  %18587 = vst [vmem:[#allocation20_spill] sm:$0xff] %v14731_v13 }
 0x2ec   : > { %18588 = vst [vmem:[#allocation21_spill] sm:$0xff] %v14737_v20 }
 0x2ed   : > { %v1584_v7 = vsel %vm630_vm0, %v1547_v21, 0.0 }
 0x2ee   : > { %1585 = vadd.xlane.f32.xlu0 %v1584_v7 }
 0x327   : > { %v1553_v24 = vpop.xlane.xlu0 %1552 }
 0x328   : > { %v1596_v9 = vmul.f32 0.03125, %v1553_v24 }
 0x32a   : > { %v1611_v30 = vadd.f32 1e-05, %v1596_v9 }
 0x32b   : > { %v1556_v26 = vpop.xlane.xlu1 %1555  ;;  %v1559_v32 = vpop.xlane.xlu0 %1558 }
 0x32c   : > { %13482 = vrsqrt.f32 %v1611_v30  ;;  %v1597_v33 = vmul.f32 0.03125, %v1556_v26  ;;  %v1598_v35 = vmul.f32 0.03125, %v1559_v32  ;;  %v14742_v30 = vrot.slane %v1457_v0, %v14737_v20 }
 0x32e   : > { %v1612_v39 = vadd.f32 1e-05, %v1597_v33  ;;  %v1613_v15 = vadd.f32 1e-05, %v1598_v35  ;;  %18589 = vst [vmem:[#allocation22_spill] sm:$0xff] %v14742_v30 }
 0x32f   : > { %v1562_v47 = vpop.xlane.xlu1 %1561  ;;  %v1497_v49 = vpop.xlane.xlu0 %1496 }
 0x330   : > { %13484 = vrsqrt.f32 %v1612_v39  ;;  %v1599_v18 = vmul.f32 0.03125, %v1562_v47  ;;  %v1518_v50 = vmul.f32 0.03125, %v1497_v49 }
 0x331   : > { %13486 = vrsqrt.f32 %v1613_v15 }
 0x332   : > { %v1614_v41 = vadd.f32 1e-05, %v1599_v18  ;;  %v14709_v55 = vsub.f32 %v14633_v16, %v1518_v50 }
 0x333   : > { %v1500_v36 = vpop.xlane.xlu1 %1499  ;;  %v1504_v59 = vpop.xlane.xlu0 %1503 }
 0x334   : > { %13488 = vrsqrt.f32 %v1614_v41  ;;  %v1519_v60 = vmul.f32 0.03125, %v1500_v36  ;;  %v1520_v53 = vmul.f32 0.03125, %v1504_v59  ;;  %v1548_v34 = vmul.f32 %v14709_v55, %v14709_v55 }
 0x336   : > { %v14720_v1 = vsub.f32 %v14643_v45, %v1519_v60  ;;  %v14723_v3 = vsub.f32 %v14640_v23, %v1520_v53  ;;  %v1587_v42 = vsel %vm630_vm0, %v1548_v34, 0.0 }
 0x337   : > { %1588 = vadd.xlane.f32.xlu1 %v1587_v42 }
 0x338   : > { %v1549_v4 = vmul.f32 %v14720_v1, %v14720_v1  ;;  %v1550_v10 = vmul.f32 %v14723_v3, %v14723_v3 }
 0x339   : > { %v13483_v11 = vpop.eup %13482 }
 0x33a   : > { %v1590_v61 = vsel %vm630_vm0, %v1549_v4, 0.0  ;;  %v1593_v14 = vsel %vm1501_vm7, %v1550_v10, 0.0  ;;  %v1641_v19 = vmul.f32 %v13483_v11, %v14617_v46 }
 0x33b   : > { %1591 = vadd.xlane.f32.xlu0 %v1590_v61  ;;  %1594 = vadd.xlane.f32.xlu1 %v1593_v14 }
 0x33c   : > { %v1660_v9 = vmul.f32 %v14731_v13, %v1641_v19 }
 0x33d   : > { %v13485_v21 = vpop.eup %13484 }
 0x33e   : > { %v13487_v7 = vpop.eup %13486  ;;  %v1642_v24 = vmul.f32 %v13485_v21, %v14625_v12  ;;  %v1679_v38 = vadd.f32 %v14742_v30, %v1660_v9 }
 0x33f   : > { %v1643_v26 = vmul.f32 %v13487_v7, %v14614_v5 }
 0x340   : > { %v1661_v32 = vmul.f32 %v14731_v13, %v1642_v24 }
 0x341   : > { %v13489_v33 = vpop.eup %13488  ;;  %v1662_v46 = vmul.f32 %v14731_v13, %v1643_v26 }
 0x342   : > { %v1644_v35 = vmul.f32 %v13489_v33, %v14622_v37  ;;  %v1680_v39 = vadd.f32 %v14742_v30, %v1661_v32 }
 0x343   : > { %v1681_v47 = vadd.f32 %v14742_v30, %v1662_v46 }
 0x344   : > { %v1663_v12 = vmul.f32 %v14731_v13, %v1644_v35  ;;  %v1694_v15 = vpack.c.bf16 %v1680_v39, %v1679_v38 }
 0x346   : > { %12241 = vmatprep.mubr.msk.bf16.mxu1 %vm630_vm0, %v1694_v15  ;;  %v1682_v5 = vadd.f32 %v14742_v30, %v1663_v12 }
 0x347   : > { %v1565_v49 = vpop.xlane.xlu1 %1564 }
 0x348   : > { %v1600_v18 = vmul.f32 0.03125, %v1565_v49  ;;  %v1695_v50 = vpack.c.bf16 %v1682_v5, %v1681_v47 }
 0x34a   : > { %v1615_v41 = vadd.f32 1e-05, %v1600_v18  ;;  %12242 = vmatmul.mubr.msk.bf16.vlgmr.msra.gmra.mxu1 %vm630_vm0, %v1695_v50 }
 0x34b   : > { %v1571_v37 = vpop.xlane.xlu1 %1570  ;;  %v1568_v36 = vpop.xlane.xlu0 %1567 }
 0x34c   : > { %13490 = vrsqrt.f32 %v1615_v41  ;;  %v1602_v59 = vmul.f32 0.03125, %v1571_v37  ;;  %v1601_v60 = vmul.f32 0.03125, %v1568_v36 }
 0x34e   : > { %v1617_v53 = vadd.f32 1e-05, %v1602_v59  ;;  %v1616_v34 = vadd.f32 1e-05, %v1601_v60 }
 0x34f   : > { %v1574_v0 = vpop.xlane.xlu0 %1573 }
 0x350   : > { %13492 = vrsqrt.f32 %v1617_v53  ;;  %v1603_v42 = vmul.f32 0.03125, %v1574_v0 }
 0x351   : > { %13494 = vrsqrt.f32 %v1616_v34 }
 0x352   : > { %v1618_v4 = vadd.f32 1e-05, %v1603_v42 }
 0x354   : > { %13496 = vrsqrt.f32 %v1618_v4 }
 0x359   : > { %v13491_v10 = vpop.eup %13490 }
 0x35a   : > { %v1645_v11 = vmul.f32 %v13491_v10, %v14653_v56 }
 0x35c   : > { %v1664_v7 = vmul.f32 %v14731_v13, %v1645_v11 }
 0x35d   : > { %v13493_v61 = vpop.eup %13492 }
 0x35e   : > { %v13495_v14 = vpop.eup %13494  ;;  %v1647_v19 = vmul.f32 %v13493_v61, %v14661_v44  ;;  %v1683_v33 = vadd.f32 %v14742_v30, %v1664_v7 }
 0x35f   : > { %v1646_v21 = vmul.f32 %v13495_v14, %v14658_v40 }
 0x360   : > { %v1666_v32 = vmul.f32 %v14731_v13, %v1647_v19 }
 0x361   : > { %v13497_v24 = vpop.eup %13496  ;;  %v1665_v9 = vmul.f32 %v14731_v13, %v1646_v21 }
 0x362   : > { %v1648_v26 = vmul.f32 %v13497_v24, %v14669_v52  ;;  %v1685_v44 = vadd.f32 %v14742_v30, %v1666_v32 }
 0x363   : > { %v1684_v46 = vadd.f32 %v14742_v30, %v1665_v9 }
 0x364   : > { %v1667_v56 = vmul.f32 %v14731_v13, %v1648_v26 }
 0x365   : > { %v1696_v35 = vpack.c.bf16 %v1684_v46, %v1683_v33 }
 0x366   : > { %v1686_v40 = vadd.f32 %v14742_v30, %v1667_v56 }
 0x367   : > { %12245 = vmatprep.mubr.msk.bf16.mxu1 %vm630_vm0, %v1696_v35 }
 0x368   : > { %v1697_v38 = vpack.c.bf16 %v1686_v40, %v1685_v44 }
 0x36a   : > { %12246 = vmatmul.mubr.msk.bf16.gmra.mxu1 %vm630_vm0, %v1697_v38 }
 0x36f   : > { %v1577_v39 = vpop.xlane.xlu1 %1576 }
 0x370   : > { %v1604_v52 = vmul.f32 0.03125, %v1577_v39 }
 0x372   : > { %v1619_v12 = vadd.f32 1e-05, %v1604_v52 }
 0x373   : > { %v1583_v15 = vpop.xlane.xlu1 %1582  ;;  %v1580_v47 = vpop.xlane.xlu0 %1579 }
 0x374   : > { %13498 = vrsqrt.f32 %v1619_v12  ;;  %v1606_v5 = vmul.f32 0.03125, %v1583_v15  ;;  %v1605_v49 = vmul.f32 0.03125, %v1580_v47 }
 0x376   : > { %v1621_v18 = vadd.f32 1e-05, %v1606_v5  ;;  %v1620_v50 = vadd.f32 1e-05, %v1605_v49 }
 0x377   : > { %v1586_v41 = vpop.xlane.xlu0 %1585 }
 0x378   : > { %13500 = vrsqrt.f32 %v1621_v18  ;;  %v1607_v37 = vmul.f32 0.03125, %v1586_v41 }
 0x379   : > { %13502 = vrsqrt.f32 %v1620_v50 }
 0x37a   : > { %v1622_v36 = vadd.f32 1e-05, %v1607_v37 }
 0x37c   : > { %13504 = vrsqrt.f32 %v1622_v36 }
 0x381   : > { %v13499_v59 = vpop.eup %13498 }
 0x382   : > { %v1649_v60 = vmul.f32 %v13499_v59, %v14683_v63 }
 0x384   : > { %v1668_v4 = vmul.f32 %v14731_v13, %v1649_v60 }
 0x385   : > { %v13501_v53 = vpop.eup %13500 }
 0x386   : > { %v13503_v34 = vpop.eup %13502  ;;  %v1651_v0 = vmul.f32 %v13501_v53, %v14691_v2  ;;  %v1687_v19 = vadd.f32 %v14742_v30, %v1668_v4 }
 0x387   : > { %v1650_v42 = vmul.f32 %v13503_v34, %v14688_v8 }
 0x388   : > { %v1670_v14 = vmul.f32 %v14731_v13, %v1651_v0 }
 0x389   : > { %v13505_v10 = vpop.eup %13504  ;;  %v1669_v11 = vmul.f32 %v14731_v13, %v1650_v42 }
 0x38a   : > { %v1652_v61 = vmul.f32 %v13505_v10, %v14699_v17  ;;  %v1689_v2 = vadd.f32 %v14742_v30, %v1670_v14 }
 0x38b   : > { %v1688_v21 = vadd.f32 %v14742_v30, %v1669_v11 }
 0x38c   : > { %v1671_v63 = vmul.f32 %v14731_v13, %v1652_v61 }
 0x38d   : > { %v1698_v7 = vpack.c.bf16 %v1688_v21, %v1687_v19 }
 0x38e   : > { %v1690_v8 = vadd.f32 %v14742_v30, %v1671_v63 }
 0x38f   : > { %12249 = vmatprep.mubr.msk.bf16.mxu1 %vm630_vm0, %v1698_v7 }
 0x390   : > { %v1699_v24 = vpack.c.bf16 %v1690_v8, %v1689_v2 }
 0x392   : > { %12250 = vmatmul.mubr.msk.bf16.gmra.mxu1 %vm630_vm0, %v1699_v24 }
 0x3c0   : > { %v1589_v9 = vpop.xlane.xlu1 %1588 }
 0x3c1   : > { %v1608_v17 = vmul.f32 0.03125, %v1589_v9 }
 0x3c3   : > { %v1623_v26 = vadd.f32 1e-05, %v1608_v17 }
 0x3c4   : > { %v1595_v32 = vpop.xlane.xlu1 %1594  ;;  %v1592_v33 = vpop.xlane.xlu0 %1591 }
 0x3c5   : > { %13506 = vrsqrt.f32 %v1623_v26  ;;  %v1610_v46 = vmul.f32 0.03125, %v1595_v32  ;;  %v1609_v56 = vmul.f32 0.03125, %v1592_v33 }
 0x3c7   : > { %v1625_v35 = vadd.f32 1e-05, %v1610_v46  ;;  %v1624_v44 = vadd.f32 1e-05, %v1609_v56 }
 0x3c9   : > { %13508 = vrsqrt.f32 %v1625_v35 }
 0x3ca   : > { %13510 = vrsqrt.f32 %v1624_v44 }
 0x3d2   : > { %v13507_v40 = vpop.eup %13506 }
 0x3d3   : > { %v1653_v38 = vmul.f32 %v13507_v40, %v14709_v55 }
 0x3d5   : > { %v1672_v47 = vmul.f32 %v14731_v13, %v1653_v38 }
 0x3d6   : > { %v13509_v39 = vpop.eup %13508 }
 0x3d7   : > { %v13511_v52 = vpop.eup %13510  ;;  %v1655_v12 = vmul.f32 %v13509_v39, %v14723_v3  ;;  %v1691_v50 = vadd.f32 %v14742_v30, %v1672_v47 }
 0x3d8   : > { %v1654_v15 = vmul.f32 %v13511_v52, %v14720_v1  ;;  %v1458_v1 = vld [vmem:[%s18425_s9] sm:$0xf] }
 0x3d9   : > { %v1674_v5 = vmul.f32 %v14731_v13, %v1655_v12  ;;  %v14798_v36 = vrot.slane %v1458_v1, %v14714_v62 }
 0x3da   : > { %v1673_v49 = vmul.f32 %v14731_v13, %v1654_v15 }
 0x3db   : > { %v1693_v18 = vadd.f32 %v14742_v30, %v1674_v5 }
 0x3dc   : > { %v1692_v41 = vadd.f32 %v14742_v30, %v1673_v49 }
 0x3dd   : > { %v1701_v37 = vpack.c.bf16 %v1693_v18, %v1693_v18 }
 0x3de   : > { %v1700_v55 = vpack.c.bf16 %v1692_v41, %v1691_v50 }
 0x3e0   : > { %12253 = vmatprep.mubr.msk.bf16.mxu1 %vm630_vm0, %v1700_v55 }
 0x3e1   : > { %12254 = vmatmul.mubr.msk.bf16.gmra.mxu1 %vm630_vm0, %v1701_v37 }
 0x40a   : > { %v12243_v3 = vpop.f32.mrf.mxu1 }
 0x40b   : > { %v1789_v53 = vadd.f32 %v12243_v3, %v14798_v36 }
 0x40c   : > { %v1780_v59 = vpop.f32.mrf.mxu1 }
 0x40d   : > { %v1781_v42 = vadd.f32 %v1780_v59, %v14798_v36 }
 0x40e   : > { %v12244_v60 = vpop.f32.mrf.mxu1 }
 0x40f   : > { %v1792_v34 = vadd.f32 %v12244_v60, %v14798_v36 }
 0x410   : > { %v1783_v0 = vpop.f32.mrf.mxu1 }
 0x411   : > { %v1784_v4 = vadd.f32 %v1783_v0, %v14798_v36  ;;  %v12916_v10 = vpack.i.bf16 %v1792_v34, %v1789_v53  ;;  %v14807_v14 = vpack.c.bf16 %v1792_v34, %v1789_v53  ;;  %v2157_v32 = vrot.slane %v1792_v34, 5 }
 0x413   : > { %v12911_v11 = vpack.i.bf16 %v1784_v4, %v1781_v42  ;;  %v14804_v61 = vpack.c.bf16 %v1784_v4, %v1781_v42  ;;  %12917 = vrot.lane.b32.xlu1 %v12916_v10, %s14139_s20  ;;  %v2213_v46 = vshrl.u32 %v14807_v14, 16  ;;  %v2216_v35 = vshll.u32 %v14807_v14, 16 }
 0x415   : > { %12912 = vrot.lane.b32.xlu0 %v12911_v11, %s14139_s20  ;;  %12259 = vmatprep.mubr.msk.bf16.mxu1 %vm1900_vm8, %v14804_v61  ;;  %v2215_v18 = vrot.slane %v2213_v46, 6  ;;  %v2218_v37 = vrot.slane %v2216_v35, 7 }
 0x417   : > { %1964 = vrot.lane.b32.xlu1 %v14807_v14, %s14140_s21  ;;  %v2219_v53 = vor.u32 %v2218_v37, %v2215_v18 }
 0x419   : > { %1962 = vrot.lane.b32.xlu0 %v14804_v61, %s14140_s21 }
 0x41b   : > { %2028 = vrot.lane.b32.xlu1 %v14807_v14, %s14141_s22 }
 0x41d   : > { %2026 = vrot.lane.b32.xlu0 %v14804_v61, %s14141_s22 }
 0x41f   : > { %2090 = vrot.lane.b32.xlu1 %v14807_v14, %s14142_s23 }
 0x423   : > { %2088 = vrot.lane.b32.xlu1 %v14804_v61, %s14142_s23 }
 0x42a   : > { %v12247_v19 = vpop.f32.mrf.mxu1 }
 0x42b   : > { %v1805_v8 = vadd.f32 %v12247_v19, %v14798_v36 }
 0x42c   : > { %v1796_v21 = vpop.f32.mrf.mxu1 }
 0x42d   : > { %v1797_v63 = vadd.f32 %v1796_v21, %v14798_v36  ;;  %v2162_v56 = vrot.slane %v1805_v8, 5 }
 0x42e   : > { %v12248_v7 = vpop.f32.mrf.mxu1 }
 0x42f   : > { %v2158_v9 = vrot.slane %v1797_v63, 5  ;;  %v1808_v17 = vadd.f32 %v12248_v7, %v14798_v36 }
 0x430   : > { %v1799_v2 = vpop.f32.mrf.mxu1 }
 0x431   : > { %v1800_v24 = vadd.f32 %v1799_v2, %v14798_v36  ;;  %v1845_v38 = vpack.c.bf16 %v1808_v17, %v1805_v8  ;;  %v2164_v39 = vrot.slane %v1808_v17, 5  ;;  %v2159_v52 = vsel %vm2156_vm9, %v2157_v32, %v2158_v9 }
 0x433   : > { %v1844_v26 = vpack.c.bf16 %v1800_v24, %v1797_v63  ;;  %v2160_v33 = vrot.slane %v1800_v24, 5  ;;  %v2230_v50 = vshrl.u32 %v1845_v38, 16  ;;  %v2233_v41 = vshll.u32 %v1845_v38, 16 }
 0x434   : > { %v2165_v55 = vsel %vm2156_vm9, %v2162_v56, %v2164_v39  ;;  %v2547_v35 = vrot.slane %v1845_v38, 5 }
 0x435   : > { %v2221_v44 = vshrl.u32 %v1844_v26, 16  ;;  %v2224_v40 = vshll.u32 %v1844_v26, 16  ;;  %v2161_v12 = vsel %vm2156_vm9, %v2158_v9, %v2160_v33  ;;  %v2163_v49 = vsel %vm2156_vm9, %v2160_v33, %v2162_v56 }
 0x436   : > { %v12921_v15 = vpack.i.bf16 %v2161_v12, %v2159_v52  ;;  %v12926_v1 = vpack.i.bf16 %v2165_v55, %v2163_v49  ;;  %v2232_v59 = vrot.slane %v2230_v50, 6  ;;  %v2235_v60 = vrot.slane %v2233_v41, 7 }
 0x437   : > { %v2223_v47 = vrot.slane %v2221_v44, 6  ;;  %v2226_v5 = vrot.slane %v2224_v40, 7  ;;  %v2490_v33 = vrot.slane %v1808_v17, 2 }
 0x438   : > { %12922 = vrot.lane.b32.xlu1 %v12921_v15, %s14139_s20  ;;  %v2236_v0 = vor.u32 %v2235_v60, %v2232_v59 }
 0x439   : > { %v2227_v3 = vor.u32 %v2226_v5, %v2223_v47 }
 0x43b   : > { %v14837_v34 = vsel %vm2212_vm11, %v2219_v53, %v2227_v3  ;;  %v14842_v42 = vsel %vm2212_vm11, %v2227_v3, %v2236_v0 }
 0x43c   : > { %12927 = vrot.lane.b32.xlu1 %v12926_v1, %s14139_s20 }
 0x440   : > { %2296 = vrot.lane.b32.xlu1 %v14837_v34, %s14140_s21 }
 0x444   : > { %2298 = vrot.lane.b32.xlu1 %v14842_v42, %s14140_s21 }
 0x448   : > { %2360 = vrot.lane.b32.xlu1 %v14837_v34, %s14141_s22 }
 0x44c   : > { %2362 = vrot.lane.b32.xlu1 %v14842_v42, %s14141_s22 }
 0x452   : > { %v12251_v4 = vpop.f32.mrf.mxu1 }
 0x453   : > { %v1821_v11 = vadd.f32 %v12251_v4, %v14798_v36 }
 0x454   : > { %v1812_v10 = vpop.f32.mrf.mxu1 }
 0x455   : > { %v1813_v19 = vadd.f32 %v1812_v10, %v14798_v36  ;;  %v2805_v9 = vrot.slane %v1821_v11, 7  ;;  %v2495_v39 = vrot.slane %v1821_v11, 2 }
 0x456   : > { %v12252_v21 = vpop.f32.mrf.mxu1 }
 0x457   : > { %v1824_v63 = vadd.f32 %v12252_v21, %v14798_v36  ;;  %v2491_v26 = vrot.slane %v1813_v19, 2 }
 0x458   : > { %v1815_v7 = vpop.f32.mrf.mxu1 }
 0x459   : > { %v1847_v2 = vpack.c.bf16 %v1824_v63, %v1821_v11  ;;  %v2806_v8 = vrot.slane %v1824_v63, 7  ;;  %v1816_v24 = vadd.f32 %v1815_v7, %v14798_v36  ;;  %v2492_v52 = vsel %vm2489_vm13, %v2490_v33, %v2491_v26 }
 0x45b   : > { %v1846_v32 = vpack.c.bf16 %v1816_v24, %v1813_v19  ;;  %v2493_v46 = vrot.slane %v1816_v24, 2  ;;  %v2807_v56 = vsel %vm2804_vm12, %v2805_v9, %v2806_v8  ;;  %v2550_v44 = vrot.slane %v1847_v2, 5 }
 0x45c   : > { %v2862_v0 = vshrl.u32 %v1847_v2, 16  ;;  %v2865_v4 = vshll.u32 %v1847_v2, 16 }
 0x45d   : > { %v2548_v40 = vrot.slane %v1846_v32, 5  ;;  %v2494_v12 = vsel %vm2489_vm13, %v2491_v26, %v2493_v46  ;;  %v2496_v17 = vsel %vm2489_vm13, %v2493_v46, %v2495_v39 }
 0x45e   : > { %v12931_v5 = vpack.i.bf16 %v2494_v12, %v2492_v52  ;;  %v12936_v49 = vpack.i.bf16 %v2495_v39, %v2496_v17  ;;  %v2864_v33 = vrot.slane %v2862_v0, 3  ;;  %v2867_v46 = vrot.slane %v2865_v4, 4 }
 0x45f   : > { %v14858_v15 = vsel %vm2156_vm9, %v2547_v35, %v2548_v40  ;;  %v14861_v47 = vsel %vm2156_vm9, %v2548_v40, %v2550_v44 }
 0x460   : > { %12932 = vrot.lane.b32.xlu1 %v12931_v5, %s14139_s20 }
 0x464   : > { %12937 = vrot.lane.b32.xlu1 %v12936_v49, %s14139_s20 }
 0x485   : > { %v14866_v38 = vpop.permute.xlu1 %12917 }
 0x487   : > { %v12913_v9 = vpop.permute.xlu0 %12912 }
 0x488   : > { %v12915_v0 = vunpack.i.h.bf16 %v12913_v9 }
 0x489   : > { %v14868_v18 = vpop.permute.xlu1 %1964 }
 0x48d   : > { %v14870_v50 = vpop.permute.xlu1 %2028 }
 0x491   : > { %v14872_v41 = vpop.permute.xlu1 %2090 }
 0x495   : > { %v14876_v10 = vpop.permute.xlu1 %2088 }
 0x4a1   : > { %v12255_v37 = vpop.f32.mrf.mxu1 }
 0x4a2   : > { %v1837_v55 = vadd.f32 %v12255_v37, %v14798_v36 }
 0x4a3   : > { %v1828_v1 = vpop.f32.mrf.mxu1 }
 0x4a4   : > { %v1849_v3 = vpack.c.bf16 %v1837_v55, %v1837_v55  ;;  %v1829_v59 = vadd.f32 %v1828_v1, %v14798_v36  ;;  %v2812_v35 = vrot.slane %v1837_v55, 7  ;;  %v2868_v55 = vor.u32 %v2867_v46, %v2864_v33 }
 0x4a5   : > { %v12256_v60 = vpop.f32.mrf.mxu1 }
 0x4a6   : > { %v2808_v53 = vrot.slane %v1829_v59, 7  ;;  %v2879_v11 = vshrl.u32 %v1849_v3, 16  ;;  %v2882_v21 = vshll.u32 %v1849_v3, 16 }
 0x4a7   : > { %v1831_v19 = vpop.f32.mrf.mxu1 }
 0x4a8   : > { %v1832_v63 = vadd.f32 %v1831_v19, %v14798_v36  ;;  %v2809_v7 = vsel %vm2804_vm12, %v2806_v8, %v2808_v53  ;;  %v2881_v44 = vrot.slane %v2879_v11, 3  ;;  %v2884_v2 = vrot.slane %v2882_v21, 4 }
 0x4a9   : > { %v12941_v24 = vpack.i.bf16 %v2809_v7, %v2807_v56  ;;  %v12914_v8 = vunpack.i.l.bf16 %v12913_v9  ;;  %v12919_v21 = vunpack.i.l.bf16 %v14866_v38 }
 0x4aa   : > { %v1848_v26 = vpack.c.bf16 %v1832_v63, %v1829_v59  ;;  %v2810_v32 = vrot.slane %v1832_v63, 7  ;;  %v12923_v40 = vpop.permute.xlu1 %12922  ;;  %v2885_v3 = vor.u32 %v2884_v2, %v2881_v44 }
 0x4ab   : > { %12942 = vrot.lane.b32.xlu1 %v12941_v24, %s14139_s20  ;;  %v12924_v5 = vunpack.i.l.bf16 %v12923_v40  ;;  %v12925_v37 = vunpack.i.h.bf16 %v12923_v40  ;;  %v12920_v24 = vunpack.i.h.bf16 %v14866_v38 }
 0x4ac   : > { %v2870_v39 = vshrl.u32 %v1848_v26, 16  ;;  %v2873_v52 = vshll.u32 %v1848_v26, 16  ;;  %v2811_v12 = vsel %vm2804_vm12, %v2808_v53, %v2810_v32  ;;  %v2813_v36 = vsel %vm2804_vm12, %v2810_v32, %v2812_v35 }
 0x4ad   : > { %v12946_v49 = vpack.i.bf16 %v2813_v36, %v2811_v12  ;;  %v12951_v1 = vpack.i.bf16 %v12924_v5, %v12914_v8  ;;  %v12953_v19 = vpack.i.bf16 %v12925_v37, %v12915_v0  ;;  %v1963_v5 = vpop.permute.xlu0 %1962 }
 0x4ae   : > { %v2872_v56 = vrot.slane %v2870_v39, 3  ;;  %v2875_v17 = vrot.slane %v2873_v52, 4  ;;  %v12928_v60 = vpop.permute.xlu1 %12927 }
 0x4af   : > { %12947 = vrot.lane.b32.xlu1 %v12946_v49, %s14139_s20  ;;  %12952 = vxpose.xlu0.b32.start [1/4] (short) (narrow) %v12951_v1, 32  ;;  %v12929_v11 = vunpack.i.l.bf16 %v12928_v60  ;;  %v12930_v63 = vunpack.i.h.bf16 %v12928_v60 }
 0x4b0   : > { %v2876_v59 = vor.u32 %v2875_v17, %v2872_v56 }
 0x4b1   : > { %v12955_v7 = vpack.i.bf16 %v12929_v11, %v12919_v21  ;;  %v12957_v9 = vpack.i.bf16 %v12930_v63, %v12920_v24  ;;  %v2027_v1 = vpop.permute.xlu0 %2026 }
 0x4b2   : > { %v14885_v53 = vsel %vm2860_vm14, %v2868_v55, %v2876_v59  ;;  %v14888_v4 = vsel %vm2860_vm14, %v2876_v59, %v2885_v3  ;;  %v14916_v38 = vpop.permute.xlu1 %2296 }
 0x4b3   : > { %18590 = vst [vmem:[#allocation23_spill] sm:$0xff] %v14885_v53  ;;  %18591 = vst [vmem:[#allocation24_spill] sm:$0xff] %v14888_v4  ;;  %12331 = vmatprep.mubr.msk.bf16.mxu0 %vm1900_vm8, %v14885_v53  ;;  %2424 = vrot.lane.b32.xlu1 %v14842_v42, %s14142_s23 }
 0x4b4   : > { %12954 = vxpose.xlu0.b32.cont [2/4] (short) (narrow) %v12953_v19, 32 }
 0x4b6   : > { %v14922_v26 = vpop.permute.xlu1 %2298 }
 0x4b7   : > { %2610 = vrot.lane.b32.xlu1 %v14858_v15, %s14140_s21 }
 0x4b8   : > { %12956 = vxpose.xlu0.b32.cont [3/4] (short) (narrow) %v12955_v7, 32 }
 0x4ba   : > { %v14926_v32 = vpop.permute.xlu1 %2360 }
 0x4bb   : > { %2612 = vrot.lane.b32.xlu1 %v14861_v47, %s14140_s21 }
 0x4bc   : > { %12958 = vxpose.xlu0.b32.end [4/4] (short) (narrow) %v12957_v9, 32 }
 0x4be   : > { %v14932_v33 = vpop.permute.xlu1 %2362 }
 0x4bf   : > { %2674 = vrot.lane.b32.xlu1 %v14858_v15, %s14141_s22 }
 0x4c3   : > { %2676 = vrot.lane.b32.xlu1 %v14861_v47, %s14141_s22 }
 0x4d2   : > { %v12933_v46 = vpop.permute.xlu1 %12932 }
 0x4d3   : > { %v12934_v40 = vunpack.i.l.bf16 %v12933_v46  ;;  %v12935_v12 = vunpack.i.h.bf16 %v12933_v46 }
 0x4d6   : > { %v12938_v35 = vpop.permute.xlu1 %12937 }
 0x4d7   : > { %v12939_v17 = vunpack.i.l.bf16 %v12938_v35  ;;  %v12940_v55 = vunpack.i.h.bf16 %v12938_v35 }
 0x4e5   : > { %2422 = vrot.lane.b32.xlu0 %v14837_v34, %s14142_s23 }
 0x4e9   : > { %2736 = vrot.lane.b32.xlu0 %v14858_v15, %s14142_s23 }
 0x4ed   : > { %2738 = vrot.lane.b32.xlu0 %v14861_v47, %s14142_s23 }
 0x4f1   : > { %2945 = vrot.lane.b32.xlu0 %v14885_v53, %s14140_s21 }
 0x4f5   : > { %2947 = vrot.lane.b32.xlu0 %v14888_v4, %s14140_s21 }
 0x4f9   : > { %3009 = vrot.lane.b32.xlu0 %v14885_v53, %s14141_s22 }
 0x4fd   : > { %3011 = vrot.lane.b32.xlu0 %v14888_v4, %s14141_s22 }
 0x501   : > { %3071 = vrot.lane.b32.xlu0 %v14885_v53, %s14142_s23 }
 0x505   : > { %3073 = vrot.lane.b32.xlu0 %v14888_v4, %s14142_s23 }
 0x509   : > { %4037 = vrot.lane.b32.xlu0 %v14807_v14, %s14143_s24 }
 0x50d   : > { %4035 = vrot.lane.b32.xlu0 %v14804_v61, %s14143_s24 }
 0x511   : > { %4198 = vrot.lane.b32.xlu0 %v14807_v14, %s14144_s26 }
 0x515   : > { %4196 = vrot.lane.b32.xlu0 %v14804_v61, %s14144_s26 }
 0x519   : > { %4421 = vrot.lane.b32.xlu0 %v14842_v42, %s14143_s24 }
 0x51d   : > { %v12943_v44 = vpop.permute.xlu1 %12942  ;;  %4500 = vrot.lane.b32.xlu0 %v14842_v42, %s14145_s27 }
 0x51e   : > { %v12944_v2 = vunpack.i.l.bf16 %v12943_v44  ;;  %v12945_v39 = vunpack.i.h.bf16 %v12943_v44 }
 0x520   : > { %v12979_v52 = vpack.i.bf16 %v12944_v2, %v12934_v40  ;;  %v12981_v56 = vpack.i.bf16 %v12945_v39, %v12935_v12 }
 0x521   : > { %v12948_v36 = vpop.permute.xlu1 %12947  ;;  %4419 = vrot.lane.b32.xlu0 %v14837_v34, %s14143_s24 }
 0x522   : > { %12980 = vxpose.xlu1.b32.start [1/4] (short) (narrow) %v12979_v52, 32  ;;  %v12949_v8 = vunpack.i.l.bf16 %v12948_v36  ;;  %v12950_v49 = vunpack.i.h.bf16 %v12948_v36 }
 0x524   : > { %v12983_v37 = vpack.i.bf16 %v12949_v8, %v12939_v17  ;;  %v12985_v3 = vpack.i.bf16 %v12950_v49, %v12940_v55 }
 0x525   : > { %4572 = vrot.lane.b32.xlu0 %v14842_v42, %s14144_s26 }
 0x526   : > { %12982 = vxpose.xlu1.b32.cont [2/4] (short) (narrow) %v12981_v56, 32 }
 0x529   : > { %4570 = vrot.lane.b32.xlu0 %v14837_v34, %s14144_s26 }
 0x52a   : > { %12984 = vxpose.xlu1.b32.cont [3/4] (short) (narrow) %v12983_v37, 32 }
 0x52c   : > { %v12959_v59 = vpop.trf.xlu0 }
 0x52d   : > { %4794 = vrot.lane.b32.xlu0 %v14861_v47, %s14143_s24  ;;  %v12960_v60 = vunpack.i.l.bf16 %v12959_v59  ;;  %v12963_v39 = vunpack.i.h.bf16 %v12959_v59 }
 0x52e   : > { %12986 = vxpose.xlu1.b32.end [4/4] (short) (narrow) %v12985_v3, 32 }
 0x530   : > { %v12964_v0 = vpop.trf.xlu0 }
 0x531   : > { %v12965_v11 = vunpack.i.l.bf16 %v12964_v0  ;;  %4882 = vrot.lane.b32.xlu0 %v14858_v15, %s14145_s27  ;;  %v12968_v52 = vunpack.i.h.bf16 %v12964_v0 }
 0x533   : > { %v1898_v19 = vpack.c.bf16 %v12965_v11, %v12960_v60  ;;  %v2210_v36 = vpack.c.bf16 %v12968_v52, %v12963_v39 }
 0x534   : > { %v12969_v21 = vpop.trf.xlu0 }
 0x535   : > { %5037 = vrot.lane.b32.xlu0 %v14861_v47, %s14146_s28  ;;  %12857 = vmatprep.subr.msk.bf16.mxu1 %vm1907_vm15, %v1898_v19  ;;  %v1909_v63 = vsel %vm1907_vm15, %v1898_v19, 0  ;;  %v1967_v7 = vrot.slane %v1898_v19, 4  ;;  %v12970_v24 = vunpack.i.l.bf16 %v12969_v21 }
 0x536   : > { %12258 = vmatpush3.bf16.msra.mxu1 %v1909_v63 }
 0x537   : > { %12858 = vmatprep.subr.msk.bf16.mxu1 %vm1907_vm15, %v1967_v7  ;;  %v1975_v9 = vsel %vm1907_vm15, %v1967_v7, 0 }
 0x538   : > { %v12974_v46 = vpop.trf.xlu0 }
 0x539   : > { %5035 = vrot.lane.b32.xlu0 %v14858_v15, %s14146_s28  ;;  %12260 = vmatmul.mubr.msk.bf16.vlgmr.msra.gmra.mxu1 %vm1900_vm8, %v14807_v14  ;;  %v12975_v35 = vunpack.i.l.bf16 %v12974_v46 }
 0x53a   : > { %12265 = vmatprep.mubr.msk.bf16.mxu1 %vm1900_vm8, %v1963_v5  ;;  %12264 = vmatpush3.bf16.msra.mxu1 %v1975_v9  ;;  %v2301_v5 = vrot.slane %v2210_v36, 4 }
 0x53b   : > { %v1899_v44 = vpack.c.bf16 %v12975_v35, %v12970_v24 }
 0x53c   : > { %v2309_v8 = vsel %vm1907_vm15, %v2301_v5, 0 }
 0x53d   : > { %5259 = vrot.lane.b32.xlu0 %v14888_v4, %s14145_s27  ;;  %12859 = vmatprep.subr.msk.bf16.mxu1 %vm1907_vm15, %v1899_v44  ;;  %v2037_v40 = vsel %vm1907_vm15, %v1899_v44, 0  ;;  %v2093_v2 = vrot.slane %v1899_v44, 4 }
 0x53f   : > { %v2101_v12 = vsel %vm1907_vm15, %v2093_v2, 0 }
 0x541   : > { %5257 = vrot.lane.b32.xlu0 %v14885_v53, %s14145_s27  ;;  %12266 = vmatmul.mubr.msk.bf16.vlgmr.msra.gmra.mxu1 %vm1900_vm8, %v14868_v18  ;;  %v2245_v18 = vsel %vm1907_vm15, %v2210_v36, 0 }
 0x542   : > { %12271 = vmatprep.mubr.msk.bf16.mxu1 %vm1900_vm8, %v2027_v1  ;;  %12270 = vmatpush3.bf16.msra.mxu1 %v2037_v40  ;;  %v14147_v40 = vmov 65535  }
 0x543   : > { %12860 = vmatprep.subr.msk.bf16.mxu1 %vm1907_vm15, %v2093_v2  ;;  %v4046_v2 = vsel %vm2489_vm13, 4294967295, %v14147_v40 }
 0x549   : > { %12272 = vmatmul.mubr.msk.bf16.vlgmr.msra.gmra.mxu1 %vm1900_vm8, %v14870_v50  ;;  %v12973_v50 = vunpack.i.h.bf16 %v12969_v21 }
 0x54a   : > { %12277 = vmatprep.mubr.msk.bf16.mxu1 %vm1900_vm8, %v14876_v10  ;;  %12276 = vmatpush3.bf16.msra.mxu1 %v2101_v12  ;;  %v12978_v10 = vunpack.i.h.bf16 %v12974_v46 }
 0x54b   : > { %12861 = vmatprep.subr.msk.bf16.mxu1 %vm1907_vm15, %v2210_v36 }
 0x54c   : > { %4127 = vrot.lane.b32.xlu1 %v14807_v14, %s14145_s27  ;;  %v2211_v56 = vpack.c.bf16 %v12978_v10, %v12973_v50  ;;  %v15049_v50 = vsel %vm1292_vm6, %v4046_v2, 0 }
 0x54d   : > { %18592 = vst [vmem:[#allocation25_spill] sm:$0xff] %v15049_v50 }
 0x550   : > { %4125 = vrot.lane.b32.xlu1 %v14804_v61, %s14145_s27 }
 0x551   : > { %12278 = vmatmul.mubr.msk.bf16.vlgmr.msra.gmra.mxu1 %vm1900_vm8, %v14872_v41 }
 0x552   : > { %12283 = vmatprep.mubr.msk.bf16.mxu1 %vm1900_vm8, %v14837_v34  ;;  %12282 = vmatpush3.bf16.msra.mxu1 %v2245_v18 }
 0x553   : > { %12862 = vmatprep.subr.msk.bf16.mxu1 %vm1907_vm15, %v2301_v5 }
 0x554   : > { %4287 = vrot.lane.b32.xlu1 %v14807_v14, %s14146_s28  ;;  %v2427_v14 = vrot.slane %v2211_v56, 4 }
 0x557   : > { %v2423_v41 = vpop.permute.xlu0 %2422 }
 0x558   : > { %4285 = vrot.lane.b32.xlu1 %v14804_v61, %s14146_s28  ;;  %v2371_v61 = vsel %vm1907_vm15, %v2211_v56, 0 }
 0x559   : > { %12284 = vmatmul.mubr.msk.bf16.vlgmr.msra.gmra.mxu1 %vm1900_vm8, %v14842_v42 }
 0x55a   : > { %12289 = vmatprep.mubr.msk.bf16.mxu1 %vm1900_vm8, %v14916_v38  ;;  %12288 = vmatpush3.bf16.msra.mxu1 %v2309_v8 }
 0x55b   : > { %12863 = vmatprep.subr.msk.bf16.mxu1 %vm1907_vm15, %v2211_v56  ;;  %v15028_v38 = vpop.permute.xlu0 %2736 }
 0x55c   : > { %4498 = vrot.lane.b32.xlu1 %v14837_v34, %s14145_s27 }
 0x560   : > { %4662 = vrot.lane.b32.xlu1 %v14842_v42, %s14146_s28  ;;  %v2435_v42 = vsel %vm1907_vm15, %v2427_v14, 0 }
 0x561   : > { %12290 = vmatmul.mubr.msk.bf16.vlgmr.msra.gmra.mxu1 %vm1900_vm8, %v14922_v26  ;;  %v15032_v26 = vpop.permute.xlu0 %2738 }
 0x562   : > { %12295 = vmatprep.mubr.msk.bf16.mxu1 %vm1900_vm8, %v14926_v32  ;;  %12294 = vmatpush3.bf16.msra.mxu1 %v2371_v61 }
 0x563   : > { %12864 = vmatprep.subr.msk.bf16.mxu1 %vm1907_vm15, %v2427_v14 }
 0x564   : > { %4660 = vrot.lane.b32.xlu1 %v14837_v34, %s14146_s28  ;;  %v2425_v34 = vpop.permute.xlu1 %2424 }
 0x565   : > { %v15034_v32 = vpop.permute.xlu0 %2945 }
 0x568   : > { %4884 = vrot.lane.b32.xlu1 %v14861_v47, %s14145_s27 }
 0x569   : > { %12296 = vmatmul.mubr.msk.bf16.vlgmr.msra.gmra.mxu1 %vm1900_vm8, %v14932_v33  ;;  %v2611_v33 = vpop.permute.xlu1 %2610  ;;  %v15036_v17 = vpop.permute.xlu0 %2947 }
 0x56a   : > { %12301 = vmatprep.mubr.msk.bf16.mxu1 %vm1900_vm8, %v2423_v41  ;;  %12300 = vmatpush3.bf16.msra.mxu1 %v2435_v42 }
 0x56c   : > { %4792 = vrot.lane.b32.xlu1 %v14858_v15, %s14143_s24 }
 0x56d   : > { %v2613_v49 = vpop.permute.xlu1 %2612  ;;  %v3010_v37 = vpop.permute.xlu0 %3009 }
 0x570   : > { %4953 = vrot.lane.b32.xlu1 %v14861_v47, %s14144_s26 }
 0x571   : > { %12302 = vmatmul.mubr.msk.bf16.vlgmr.msra.gmra.mxu1 %vm1900_vm8, %v2425_v34  ;;  %v2675_v1 = vpop.permute.xlu1 %2674  ;;  %v3012_v55 = vpop.permute.xlu0 %3011 }
 0x572   : > { %12307 = vmatprep.mubr.msk.bf16.mxu1 %vm1900_vm8, %v14858_v15 }
 0x574   : > { %4951 = vrot.lane.b32.xlu1 %v14858_v15, %s14144_s26 }
 0x575   : > { %v2677_v15 = vpop.permute.xlu1 %2676  ;;  %v15038_v3 = vpop.permute.xlu0 %3071 }
 0x578   : > { %5169 = vrot.lane.b32.xlu1 %v14888_v4, %s14143_s24 }
 0x579   : > { %v15040_v19 = vpop.permute.xlu0 %3073 }
 0x57c   : > { %5167 = vrot.lane.b32.xlu1 %v14885_v53, %s14143_s24 }
 0x57d   : > { %v4038_v39 = vpop.permute.xlu0 %4037 }
 0x57e   : > { %v4049_v61 = vand.u32 %v15049_v50, %v4038_v39 }
 0x581   : > { %v4036_v14 = vpop.permute.xlu0 %4035 }
 0x585   : > { %v4199_v34 = vpop.permute.xlu0 %4198 }
 0x59e   : > { %v12987_v59 = vpop.trf.xlu1 }
 0x59f   : > { %v12991_v60 = vunpack.i.h.bf16 %v12987_v59  ;;  %v12988_v0 = vunpack.i.l.bf16 %v12987_v59 }
 0x5a2   : > { %v12992_v11 = vpop.trf.xlu1 }
 0x5a3   : > { %v12996_v21 = vunpack.i.h.bf16 %v12992_v11  ;;  %v12993_v63 = vunpack.i.l.bf16 %v12992_v11 }
 0x5a5   : > { %v2858_v7 = vpack.c.bf16 %v12996_v21, %v12991_v60  ;;  %v2541_v24 = vpack.c.bf16 %v12993_v63, %v12988_v0 }
 0x5a6   : > { %v12997_v9 = vpop.trf.xlu1 }
 0x5a7   : > { %12869 = vmatprep.subr.msk.bf16.mxu0 %vm1907_vm15, %v2858_v7  ;;  %12865 = vmatprep.subr.msk.bf16.mxu1 %vm1907_vm15, %v2541_v24  ;;  %v2559_v46 = vsel %vm1907_vm15, %v2541_v24, 0  ;;  %v2894_v35 = vsel %vm1907_vm15, %v2858_v7, 0  ;;  %v2615_v44 = vrot.slane %v2541_v24, 4  ;;  %v13001_v52 = vunpack.i.h.bf16 %v12997_v9 }
 0x5a8   : > { %v12998_v12 = vunpack.i.l.bf16 %v12997_v9  ;;  %12306 = vmatpush3.bf16.msra.mxu1 %v2559_v46  ;;  %12330 = vmatpush3.bf16.msra.mxu0 %v2894_v35 }
 0x5a9   : > { %12866 = vmatprep.subr.msk.bf16.mxu1 %vm1907_vm15, %v2615_v44  ;;  %v2623_v10 = vsel %vm1907_vm15, %v2615_v44, 0 }
 0x5aa   : > { %v13002_v36 = vpop.trf.xlu1 }
 0x5ab   : > { %v13006_v18 = vunpack.i.h.bf16 %v13002_v36  ;;  %v13003_v5 = vunpack.i.l.bf16 %v13002_v36  ;;  %12332 = vmatmul.mubr.msk.bf16.vlgmr.msra.gmra.mxu0 %vm1900_vm8, %v14888_v4  ;;  %12308 = vmatmul.mubr.msk.bf16.vlgmr.msra.gmra.mxu1 %vm1900_vm8, %v14861_v47 }
 0x5ac   : > { %12312 = vmatpush3.bf16.msra.mxu1 %v2623_v10  ;;  %12313 = vmatprep.mubr.msk.bf16.mxu1 %vm1900_vm8, %v2611_v33  ;;  %v15068_v33 = vand.u32 %v4199_v34, %v15049_v50 }
 0x5ad   : > { %v2859_v8 = vpack.c.bf16 %v13006_v18, %v13001_v52  ;;  %v2542_v56 = vpack.c.bf16 %v13003_v5, %v12998_v12  ;;  %12343 = vmatprep.mubr.msk.bf16.mxu0 %vm1900_vm8, %v3010_v37 }
 0x5ae   : > { %18593 = vst [vmem:[#allocation26_spill] sm:$0xff] %v15068_v33 }
 0x5af   : > { %12871 = vmatprep.subr.msk.bf16.mxu0 %vm1907_vm15, %v2859_v8  ;;  %v3020_v42 = vsel %vm1907_vm15, %v2859_v8, 0  ;;  %12867 = vmatprep.subr.msk.bf16.mxu1 %vm1907_vm15, %v2542_v56  ;;  %v2685_v47 = vsel %vm1907_vm15, %v2542_v56, 0  ;;  %v2741_v41 = vrot.slane %v2542_v56, 4 }
 0x5b0   : > { %12342 = vmatpush3.bf16.msra.mxu0 %v3020_v42 }
 0x5b1   : > { %12353 = vmatprep.subr.bf16.mxu0 %v4049_v61  ;;  %v2749_v37 = vsel %vm1907_vm15, %v2741_v41, 0 }
 0x5b3   : > { %12344 = vmatmul.mubr.msk.bf16.vlgmr.msra.gmra.mxu0 %vm1900_vm8, %v3012_v55  ;;  %12314 = vmatmul.mubr.msk.bf16.vlgmr.msra.gmra.mxu1 %vm1900_vm8, %v2613_v49  ;;  %v2950_v55 = vrot.slane %v2858_v7, 4 }
 0x5b4   : > { %12319 = vmatprep.mubr.msk.bf16.mxu1 %vm1900_vm8, %v2675_v1  ;;  %12354 = vmatpush3.bf16.msra.mxu0 %v4049_v61  ;;  %v3076_v1 = vrot.slane %v2859_v8, 4 }
 0x5b5   : > { %12355 = vmatprep.subr.bf16.mxu0 %v4036_v14  ;;  %12318 = vmatpush3.bf16.msra.mxu1 %v2685_v47  ;;  %v2958_v49 = vsel %vm1907_vm15, %v2950_v55, 0 }
 0x5b6   : > { %12868 = vmatprep.subr.msk.bf16.mxu1 %vm1907_vm15, %v2741_v41 }
 0x5b8   : > { %12356 = vmatpush3.bf16.msra.mxu0 %v4036_v14 }
 0x5b9   : > { %12369 = vmatprep.subr.bf16.mxu0 %v15068_v33 }
 0x5bb   : > { %12320 = vmatmul.mubr.msk.bf16.vlgmr.msra.gmra.mxu1 %vm1900_vm8, %v2677_v15 }
 0x5bc   : > { %12324 = vmatpush3.bf16.msra.mxu1 %v2749_v37  ;;  %12325 = vmatprep.mubr.msk.bf16.mxu1 %vm1900_vm8, %v15028_v38  ;;  %v3084_v38 = vsel %vm1907_vm15, %v3076_v1, 0 }
 0x5bd   : > { %12870 = vmatprep.subr.msk.bf16.mxu1 %vm1907_vm15, %v2950_v55 }
 0x5be   : > { %v4128_v15 = vpop.permute.xlu1 %4127 }
 0x5bf   : > { %v4137_v59 = vand.u32 %v4128_v15, %v15049_v50 }
 0x5c3   : > { %12326 = vmatmul.mubr.msk.bf16.vlgmr.msra.gmra.mxu1 %vm1900_vm8, %v15032_v26  ;;  %v4126_v26 = vpop.permute.xlu1 %4125 }
 0x5c4   : > { %12336 = vmatpush3.bf16.msra.mxu1 %v2958_v49  ;;  %12337 = vmatprep.mubr.msk.bf16.mxu1 %vm1900_vm8, %v15034_v32 }
 0x5c5   : > { %12872 = vmatprep.subr.msk.bf16.mxu1 %vm1907_vm15, %v3076_v1 }
 0x5c7   : > { %v4288_v32 = vpop.permute.xlu1 %4287 }
 0x5c8   : > { %v15091_v60 = vand.u32 %v4288_v32, %v15049_v50 }
 0x5ca   : > { %18594 = vst [vmem:[#allocation27_spill] sm:$0xff] %v15091_v60 }
 0x5cb   : > { %12338 = vmatmul.mubr.msk.bf16.vlgmr.msra.gmra.mxu1 %vm1900_vm8, %v15036_v17 }
 0x5cc   : > { %12348 = vmatpush3.bf16.msra.mxu1 %v3084_v38  ;;  %12349 = vmatprep.mubr.msk.bf16.mxu1 %vm1900_vm8, %v15038_v3 }
 0x5cd   : > { %12361 = vmatprep.subr.bf16.mxu1 %v4137_v59 }
 0x5d3   : > { %12350 = vmatmul.mubr.msk.bf16.vlgmr.msra.gmra.mxu1 %vm1900_vm8, %v15040_v19 }
 0x5d4   : > { %12362 = vmatpush3.bf16.msra.mxu1 %v4137_v59 }
 0x5d5   : > { %12363 = vmatprep.subr.bf16.mxu1 %v4126_v26 }
 0x5d8   : > { %12364 = vmatpush3.bf16.msra.mxu1 %v4126_v26 }
 0x5d9   : > { %12377 = vmatprep.subr.bf16.mxu1 %v15091_v60 }
 0x5f9   : > { %v15094_v17 = vpop.f32.mrf.mxu1 }
 0x5fa   : > { %v3374_v3 = vsel %vm3367_vm2, %v15094_v17, -inf }
 0x5fb   : > { %3375 = vmax.xlane.f32.xlu0 %v3374_v3  ;;  %v15098_v0 = vpop.f32.mrf.mxu1 }
 0x5fc   : > { %v3368_v19 = vsel %vm3367_vm2, %v15098_v0, -inf }
 0x5fd   : > { %v12262_v11 = vpop.f32.mrf.mxu1 }
 0x5ff   : > { %3369 = vmax.xlane.f32.xlu0 %v3368_v19  ;;  %v15102_v21 = vpop.f32.mrf.mxu1 }
 0x600   : > { %v3371_v63 = vsel %vm3367_vm2, %v15102_v21, -inf }
 0x601   : > { %3372 = vmax.xlane.f32.xlu1 %v3371_v63  ;;  %v12267_v7 = vpop.f32.mrf.mxu1 }
 0x602   : > { %v3142_v35 = vrot.slane %v12267_v7, 3 }
 0x603   : > { %v2011_v24 = vpop.f32.mrf.mxu1 }
 0x604   : > { %v3139_v9 = vrot.slane %v2011_v24, 3 }
 0x605   : > { %v12268_v46 = vpop.f32.mrf.mxu1 }
 0x606   : > { %v3144_v44 = vrot.slane %v12268_v46, 3  ;;  %v15107_v40 = vsel %vm1259_vm1, %v12262_v11, %v3139_v9 }
 0x607   : > { %v2014_v2 = vpop.f32.mrf.mxu1  ;;  %v3377_v39 = vsel %vm3367_vm2, %v15107_v40, -inf }
 0x608   : > { %v3140_v52 = vrot.slane %v2014_v2, 3  ;;  %3378 = vmax.xlane.f32.xlu1 %v3377_v39  ;;  %v15112_v12 = vsel %vm1259_vm1, %v3142_v35, %v3144_v44 }
 0x609   : > { %v12273_v36 = vpop.f32.mrf.mxu1  ;;  %v3386_v18 = vsel %vm3367_vm2, %v15112_v12, -inf }
 0x60a   : > { %3387 = vmax.xlane.f32.xlu0 %v3386_v18  ;;  %v15117_v5 = vsel %vm1259_vm1, %v3139_v9, %v3140_v52  ;;  %v15125_v42 = vsel %vm1259_vm1, %v3140_v52, %v3142_v35  ;;  %v3158_v34 = vrot.slane %v12273_v36, 6 }
 0x60b   : > { %v2073_v10 = vpop.f32.mrf.mxu1  ;;  %v3380_v61 = vsel %vm3367_vm2, %v15117_v5, -inf  ;;  %v3383_v1 = vsel %vm3367_vm2, %v15125_v42, -inf }
 0x60c   : > { %v3155_v8 = vrot.slane %v2073_v10, 6 }
 0x60d   : > { %v12274_v56 = vpop.f32.mrf.mxu1 }
 0x60e   : > { %3381 = vmax.xlane.f32.xlu0 %v3380_v61  ;;  %v15122_v14 = vsel %vm1276_vm10, %v3144_v44, %v3155_v8  ;;  %v3160_v55 = vrot.slane %v12274_v56, 6 }
 0x60f   : > { %v2076_v47 = vpop.f32.mrf.mxu1  ;;  %v3389_v41 = vsel %vm3367_vm2, %v15122_v14, -inf }
 0x610   : > { %v3156_v37 = vrot.slane %v2076_v47, 6  ;;  %3390 = vmax.xlane.f32.xlu1 %v3389_v41  ;;  %v3161_v19 = vsel %vm1276_vm10, %v3158_v34, %v3160_v55 }
 0x611   : > { %v12279_v49 = vpop.f32.mrf.mxu1 }
 0x612   : > { %3384 = vmax.xlane.f32.xlu0 %v3383_v1  ;;  %v15132_v15 = vsel %vm1276_vm10, %v3156_v37, %v3158_v34  ;;  %v15135_v59 = vsel %vm1276_vm10, %v3155_v8, %v3156_v37  ;;  %v3173_v63 = vrot.slane %v12279_v49, 1 }
 0x613   : > { %v2137_v38 = vpop.f32.mrf.mxu1  ;;  %v3395_v26 = vsel %vm3367_vm2, %v15132_v15, -inf  ;;  %v3392_v11 = vsel %vm3367_vm2, %v15135_v59, -inf }
 0x614   : > { %v3170_v32 = vrot.slane %v2137_v38, 1  ;;  %3396 = vmax.xlane.f32.xlu1 %v3395_v26 }
 0x615   : > { %v12280_v3 = vpop.f32.mrf.mxu1 }
 0x616   : > { %v3175_v7 = vrot.slane %v12280_v3, 1  ;;  %3393 = vmax.xlane.f32.xlu0 %v3392_v11  ;;  %v15143_v24 = vsel %vm1292_vm6, %v3161_v19, %v3170_v32 }
 0x617   : > { %v2140_v9 = vpop.f32.mrf.mxu1  ;;  %v3398_v2 = vsel %vm3367_vm2, %v15143_v24, -inf }
 0x618   : > { %v3171_v46 = vrot.slane %v2140_v9, 1  ;;  %v15146_v35 = vsel %vm1292_vm6, %v3173_v63, %v3175_v7 }
 0x619   : > { %v12285_v44 = vpop.f32.mrf.mxu1  ;;  %v3407_v39 = vsel %vm3367_vm2, %v15146_v35, -inf }
 0x61a   : > { %3399 = vmax.xlane.f32.xlu0 %v3398_v2  ;;  %3408 = vmax.xlane.f32.xlu1 %v3407_v39  ;;  %v15153_v52 = vsel %vm1292_vm6, %v3171_v46, %v3173_v63  ;;  %v15156_v36 = vsel %vm1292_vm6, %v3170_v32, %v3171_v46  ;;  %v3189_v47 = vrot.slane %v12285_v44, 4 }
 0x61b   : > { %v2281_v18 = vpop.f32.mrf.mxu1  ;;  %v3404_v56 = vsel %vm3367_vm2, %v15153_v52, -inf  ;;  %v3401_v61 = vsel %vm3367_vm2, %v15156_v36, -inf }
 0x61c   : > { %v3186_v10 = vrot.slane %v2281_v18, 4 }
 0x61d   : > { %v12286_v8 = vpop.f32.mrf.mxu1 }
 0x61e   : > { %v3191_v41 = vrot.slane %v12286_v8, 4  ;;  %3405 = vmax.xlane.f32.xlu0 %v3404_v56  ;;  %3402 = vmax.xlane.f32.xlu1 %v3401_v61  ;;  %v15163_v34 = vsel %vm1907_vm15, %v3175_v7, %v3186_v10 }
 0x61f   : > { %v2284_v37 = vpop.f32.mrf.mxu1  ;;  %v3410_v38 = vsel %vm3367_vm2, %v15163_v34, -inf }
 0x620   : > { %v3187_v55 = vrot.slane %v2284_v37, 4  ;;  %v15166_v49 = vsel %vm1907_vm15, %v3189_v47, %v3191_v41 }
 0x621   : > { %v12291_v1 = vpop.f32.mrf.mxu1  ;;  %v3419_v26 = vsel %vm3367_vm2, %v15166_v49, -inf }
 0x622   : > { %3411 = vmax.xlane.f32.xlu0 %v3410_v38  ;;  %3420 = vmax.xlane.f32.xlu1 %v3419_v26  ;;  %v15173_v32 = vsel %vm1907_vm15, %v3187_v55, %v3189_v47  ;;  %v15176_v3 = vsel %vm1907_vm15, %v3186_v10, %v3187_v55  ;;  %v3205_v2 = vrot.slane %v12291_v1, 7 }
 0x623   : > { %v2345_v11 = vpop.f32.mrf.mxu1  ;;  %v3416_v7 = vsel %vm3367_vm2, %v15173_v32, -inf  ;;  %v3413_v9 = vsel %vm3367_vm2, %v15176_v3, -inf }
 0x624   : > { %v3202_v19 = vrot.slane %v2345_v11, 7 }
 0x625   : > { %v12292_v63 = vpop.f32.mrf.mxu1 }
 0x626   : > { %3417 = vmax.xlane.f32.xlu0 %v3416_v7  ;;  %3414 = vmax.xlane.f32.xlu1 %v3413_v9  ;;  %v15183_v46 = vsel %vm2804_vm12, %v3191_v41, %v3202_v19  ;;  %v3207_v18 = vrot.slane %v12292_v63, 7 }
 0x627   : > { %v2348_v44 = vpop.f32.mrf.mxu1  ;;  %v3422_v8 = vsel %vm3367_vm2, %v15183_v46, -inf }
 0x628   : > { %v3203_v39 = vrot.slane %v2348_v44, 7  ;;  %v3208_v38 = vsel %vm2804_vm12, %v3205_v2, %v3207_v18 }
 0x629   : > { %v12297_v10 = vpop.f32.mrf.mxu1 }
 0x62a   : > { %3423 = vmax.xlane.f32.xlu0 %v3422_v8  ;;  %v15188_v56 = vsel %vm2804_vm12, %v3202_v19, %v3203_v39  ;;  %v15191_v61 = vsel %vm2804_vm12, %v3203_v39, %v3205_v2  ;;  %v3220_v26 = vrot.slane %v12297_v10, 2 }
 0x62b   : > { %v2407_v47 = vpop.f32.mrf.mxu1  ;;  %v3425_v41 = vsel %vm3367_vm2, %v15188_v56, -inf  ;;  %v3428_v1 = vsel %vm3367_vm2, %v15191_v61, -inf }
 0x62c   : > { %v3217_v37 = vrot.slane %v2407_v47, 2  ;;  %3426 = vmax.xlane.f32.xlu1 %v3425_v41 }
 0x62d   : > { %v12298_v55 = vpop.f32.mrf.mxu1 }
 0x62e   : > { %v3222_v11 = vrot.slane %v12298_v55, 2  ;;  %3429 = vmax.xlane.f32.xlu0 %v3428_v1  ;;  %v15199_v19 = vsel %vm2489_vm13, %v3208_v38, %v3217_v37 }
 0x62f   : > { %v2410_v63 = vpop.f32.mrf.mxu1  ;;  %v3431_v7 = vsel %vm3367_vm2, %v15199_v19, -inf }
 0x630   : > { %v3218_v9 = vrot.slane %v2410_v63, 2  ;;  %3432 = vmax.xlane.f32.xlu1 %v3431_v7  ;;  %v15204_v44 = vsel %vm2489_vm13, %v3220_v26, %v3222_v11 }
 0x631   : > { %v12303_v39 = vpop.f32.mrf.mxu1  ;;  %v3440_v8 = vsel %vm3367_vm2, %v15204_v44, -inf }
 0x632   : > { %3441 = vmax.xlane.f32.xlu0 %v3440_v8  ;;  %v15209_v2 = vsel %vm2489_vm13, %v3218_v9, %v3220_v26  ;;  %v15212_v18 = vsel %vm2489_vm13, %v3217_v37, %v3218_v9  ;;  %v3236_v38 = vrot.slane %v12303_v39, 5 }
 0x633   : > { %v2471_v10 = vpop.f32.mrf.mxu1  ;;  %v3437_v47 = vsel %vm3367_vm2, %v15209_v2, -inf  ;;  %v3434_v1 = vsel %vm3367_vm2, %v15212_v18, -inf }
 0x634   : > { %v3233_v41 = vrot.slane %v2471_v10, 5  ;;  %3438 = vmax.xlane.f32.xlu1 %v3437_v47 }
 0x635   : > { %v12304_v55 = vpop.f32.mrf.mxu1 }
 0x636   : > { %v3238_v63 = vrot.slane %v12304_v55, 5  ;;  %3435 = vmax.xlane.f32.xlu0 %v3434_v1  ;;  %v15219_v7 = vsel %vm2156_vm9, %v3222_v11, %v3233_v41  ;;  %v15238_v1 = vpop.permute.xlu0 %4196 }
 0x637   : > { %v2474_v26 = vpop.f32.mrf.mxu1  ;;  %v3443_v37 = vsel %vm3367_vm2, %v15219_v7, -inf  ;;  %18595 = vst [vmem:[#allocation28_spill] sm:$0xff] %v15238_v1 }
 0x638   : > { %v3234_v9 = vrot.slane %v2474_v26, 5  ;;  %3444 = vmax.xlane.f32.xlu1 %v3443_v37  ;;  %v15224_v8 = vsel %vm2156_vm9, %v3236_v38, %v3238_v63 }
 0x639   : > { %v3452_v10 = vsel %vm3367_vm2, %v15224_v8, -inf }
 0x63a   : > { %3453 = vmax.xlane.f32.xlu0 %v3452_v10  ;;  %v15229_v39 = vsel %vm2156_vm9, %v3234_v9, %v3236_v38  ;;  %v15232_v47 = vsel %vm2156_vm9, %v3233_v41, %v3234_v9  ;;  %v15240_v63 = vpop.permute.xlu0 %4421  ;;  %v15246_v38 = vpop.permute.xlu1 %4285 }
 0x63b   : > { %v3449_v11 = vsel %vm3367_vm2, %v15229_v39, -inf  ;;  %v3446_v55 = vsel %vm3367_vm2, %v15232_v47, -inf  ;;  %18596 = vst [vmem:[#allocation29_spill] sm:$0xff] %v15240_v63  ;;  %18599 = vst [vmem:[#allocation32_spill] sm:$0xff] %v15246_v38 }
 0x63c   : > { %3450 = vmax.xlane.f32.xlu1 %v3449_v11 }
 0x63e   : > { %3447 = vmax.xlane.f32.xlu0 %v3446_v55  ;;  %v15242_v26 = vpop.permute.xlu0 %4500  ;;  %v15250_v9 = vpop.permute.xlu1 %4498 }
 0x63f   : > { %18597 = vst [vmem:[#allocation30_spill] sm:$0xff] %v15242_v26  ;;  %18601 = vst [vmem:[#allocation34_spill] sm:$0xff] %v15250_v9 }
 0x642   : > { %v15244_v37 = vpop.permute.xlu0 %4419  ;;  %v15254_v11 = vpop.permute.xlu1 %4662 }
 0x643   : > { %18598 = vst [vmem:[#allocation31_spill] sm:$0xff] %v15244_v37  ;;  %18603 = vst [vmem:[#allocation36_spill] sm:$0xff] %v15254_v11 }
 0x646   : > { %v15248_v41 = vpop.permute.xlu0 %4572  ;;  %v15258_v55 = vpop.permute.xlu1 %4660 }
 0x647   : > { %18600 = vst [vmem:[#allocation33_spill] sm:$0xff] %v15248_v41  ;;  %18605 = vst [vmem:[#allocation38_spill] sm:$0xff] %v15258_v55 }
 0x64a   : > { %v15252_v10 = vpop.permute.xlu0 %4570  ;;  %v15270_v58 = vpop.permute.xlu1 %4884 }
 0x64b   : > { %18602 = vst [vmem:[#allocation35_spill] sm:$0xff] %v15252_v10  ;;  %18607 = vst [vmem:[#allocation40_spill] sm:$0xff] %v15270_v58 }
 0x64e   : > { %v15256_v62 = vpop.permute.xlu0 %4794  ;;  %v15282_v43 = vpop.permute.xlu1 %4792 }
 0x64f   : > { %18604 = vst [vmem:[#allocation37_spill] sm:$0xff] %v15256_v62  ;;  %18609 = vst [vmem:[#allocation42_spill] sm:$0xff] %v15282_v43 }
 0x652   : > { %v15262_v13 = vpop.permute.xlu0 %4882  ;;  %v15293_v11 = vpop.permute.xlu1 %4953 }
 0x653   : > { %18606 = vst [vmem:[#allocation39_spill] sm:$0xff] %v15262_v13  ;;  %18611 = vst [vmem:[#allocation44_spill] sm:$0xff] %v15293_v11 }
 0x656   : > { %v15278_v22 = vpop.permute.xlu0 %5037 }
 0x657   : > { %18608 = vst [vmem:[#allocation41_spill] sm:$0xff] %v15278_v22 }
 0x65a   : > { %v15284_v27 = vpop.permute.xlu0 %5035 }
 0x65b   : > { %18610 = vst [vmem:[#allocation43_spill] sm:$0xff] %v15284_v27 }
 0x65e   : > { %v15313_v9 = vpop.permute.xlu0 %5259 }
 0x65f   : > { %18612 = vst [vmem:[#allocation45_spill] sm:$0xff] %v15313_v9 }
 0x66b   : > { %v15260_v51 = vpop.f32.mrf.mxu1  ;;  %v12333_v30 = vpop.f32.mrf.mxu0 }
 0x66c   : > { %v3461_v45 = vsel %vm3367_vm2, %v15260_v51, -inf }
 0x66d   : > { %v15266_v16 = vpop.f32.mrf.mxu0  ;;  %3462 = vmax.xlane.f32.xlu1 %v3461_v45  ;;  %v15268_v23 = vpop.f32.mrf.mxu1 }
 0x66e   : > { %v3455_v31 = vsel %vm3367_vm2, %v15268_v23, -inf }
 0x66f   : > { %v12310_v57 = vpop.f32.mrf.mxu1  ;;  %v15274_v54 = vpop.f32.mrf.mxu0 }
 0x670   : > { %v18613_v41 = vrot.slane %v15274_v54, 4 }
 0x671   : > { %3456 = vmax.xlane.f32.xlu1 %v3455_v31  ;;  %v15276_v48 = vpop.f32.mrf.mxu1  ;;  %v2933_v25 = vpop.f32.mrf.mxu0 }
 0x672   : > { %v3458_v28 = vsel %vm3367_vm2, %v15276_v48, -inf  ;;  %v3296_v27 = vrot.slane %v2933_v25, 4 }
 0x673   : > { %3459 = vmax.xlane.f32.xlu0 %v3458_v28  ;;  %v12315_v45 = vpop.f32.mrf.mxu1  ;;  %v15289_v55 = vpop.f32.mrf.mxu0 }
 0x674   : > { %v3251_v13 = vrot.slane %v12315_v45, 3 }
 0x675   : > { %v2659_v6 = vpop.f32.mrf.mxu1  ;;  %v15309_v43 = vpop.f32.mrf.mxu0 }
 0x676   : > { %v3248_v29 = vrot.slane %v2659_v6, 3 }
 0x677   : > { %v12316_v20 = vpop.f32.mrf.mxu1  ;;  %v15328_v37 = vpop.f32.mrf.mxu0 }
 0x678   : > { %v3253_v58 = vrot.slane %v12316_v20, 3  ;;  %v15287_v31 = vsel %vm1259_vm1, %v12310_v57, %v3248_v29  ;;  %v3298_v20 = vrot.slane %v12333_v30, 4  ;;  %v18622_v1 = vrot.slane %v15328_v37, 2 }
 0x679   : > { %v2662_v22 = vpop.f32.mrf.mxu1  ;;  %v3464_v28 = vsel %vm3367_vm2, %v15287_v31, -inf }
 0x67a   : > { %v3249_v62 = vrot.slane %v2662_v22, 3  ;;  %3465 = vmax.xlane.f32.xlu0 %v3464_v28  ;;  %v15297_v6 = vsel %vm1259_vm1, %v3251_v13, %v3253_v58  ;;  %v15318_v25 = vsel %vm1907_vm15, %v3298_v20, %v18613_v41 }
 0x67b   : > { %v15299_v45 = vpop.f32.mrf.mxu1  ;;  %v3473_v57 = vsel %vm3367_vm2, %v15297_v6, -inf  ;;  %18614 = vst [vmem:[#allocation46_spill] sm:$0xff] %v15318_v25  ;;  %v3506_v9 = vsel %vm3367_vm2, %v15318_v25, -inf }
 0x67c   : > { %3474 = vmax.xlane.f32.xlu1 %v3473_v57  ;;  %v15304_v10 = vsel %vm1259_vm1, %v3249_v62, %v3251_v13  ;;  %v15307_v11 = vsel %vm1259_vm1, %v3248_v29, %v3249_v62  ;;  %v15322_v29 = vpop.permute.xlu1 %4951  ;;  %v18464_v62 = vrot.slane %v15266_v16, 4  ;;  %v15326_v57 = vsel %vm1907_vm15, %v3296_v27, %v3298_v20 }
 0x67d   : > { %v2721_v22 = vpop.f32.mrf.mxu1  ;;  %v3470_v28 = vsel %vm3367_vm2, %v15304_v10, -inf  ;;  %v3467_v13 = vsel %vm3367_vm2, %v15307_v11, -inf  ;;  %18615 = vst [vmem:[#allocation47_spill] sm:$0xff] %v15322_v29  ;;  %18616 = vst [vmem:[#allocation48_spill] sm:$0xff] %v15326_v57  ;;  %v3503_v20 = vsel %vm3367_vm2, %v15326_v57, -inf  ;;  %v3267_v50 = vrot.slane %v15299_v45, 6 }
 0x67e   : > { %3471 = vmax.xlane.f32.xlu0 %v3470_v28  ;;  %v3264_v41 = vrot.slane %v2721_v22, 6  ;;  %v15335_v26 = vsel %vm1907_vm15, %v18464_v62, %v3296_v27  ;;  %v3059_v22 = vpop.f32.mrf.mxu0  ;;  %v3329_v27 = vrot.slane %v15289_v55, 2 }
 0x67f   : > { %v12322_v30 = vpop.f32.mrf.mxu1  ;;  %18617 = vst [vmem:[#allocation49_spill] sm:$0xff] %v15335_v26  ;;  %v3327_v38 = vrot.slane %v3059_v22, 2 }
 0x680   : > { %3468 = vmax.xlane.f32.xlu1 %v3467_v13  ;;  %v15341_v13 = vpop.permute.xlu0 %5257  ;;  %v15351_v62 = vsel %vm1276_vm10, %v3253_v58, %v3264_v41  ;;  %v15353_v63 = vpop.permute.xlu1 %5169  ;;  %v15361_v33 = vsel %vm2489_vm13, %v3329_v27, %v18622_v1  ;;  %v3269_v22 = vrot.slane %v12322_v30, 6 }
 0x681   : > { %v2724_v28 = vpop.f32.mrf.mxu1  ;;  %18618 = vst [vmem:[#allocation50_spill] sm:$0xff] %v15341_v13  ;;  %18620 = vst [vmem:[#allocation52_spill] sm:$0xff] %v15351_v62  ;;  %v3476_v58 = vsel %vm3367_vm2, %v15351_v62, -inf  ;;  %v3527_v45 = vsel %vm3367_vm2, %v15361_v33, -inf }
 0x682   : > { %v3265_v53 = vrot.slane %v2724_v28, 6  ;;  %3507 = vmax.xlane.f32.xlu0 %v3506_v9  ;;  %v3500_v28 = vsel %vm3367_vm2, %v15335_v26, -inf  ;;  %18621 = vst [vmem:[#allocation53_spill] sm:$0xff] %v15353_v63  ;;  %18623 = vst [vmem:[#allocation54_spill] sm:$0xff] %v15361_v33 }
 0x683   : > { %v15337_v29 = vpop.f32.mrf.mxu1 }
 0x684   : > { %3504 = vmax.xlane.f32.xlu1 %v3503_v20  ;;  %v15345_v60 = vsel %vm1276_vm10, %v3264_v41, %v3265_v53  ;;  %v3376_v55 = vpop.xlane.xlu0 %3375  ;;  %v3326_v41 = vrot.slane %v15309_v43, 2  ;;  %v15367_v63 = vsel %vm1276_vm10, %v3265_v53, %v3267_v50  ;;  %v15381_v53 = vsel %vm2489_vm13, %v3327_v38, %v3329_v27 }
 0x685   : > { %18619 = vst [vmem:[#allocation51_spill] sm:$0xff] %v15345_v60  ;;  %v2785_v9 = vpop.f32.mrf.mxu1  ;;  %v3479_v20 = vsel %vm3367_vm2, %v15345_v60, -inf  ;;  %18624 = vst [vmem:[#allocation55_spill] sm:$0xff] %v15367_v63  ;;  %v15376_v60 = vpop.permute.xlu1 %5167  ;;  %v3482_v43 = vsel %vm3367_vm2, %v15367_v63, -inf  ;;  %v3282_v33 = vrot.slane %v15337_v29, 1  ;;  %v18630_v29 = vrot.slane %v15266_v16, 4 }
 0x686   : > { %3501 = vmax.xlane.f32.xlu0 %v3500_v28  ;;  %v15374_v1 = vsel %vm2489_vm13, %v3326_v41, %v3327_v38  ;;  %18626 = vst [vmem:[#allocation57_spill] sm:$0xff] %v15376_v60  ;;  %18627 = vst [vmem:[#allocation58_spill] sm:$0xff] %v15381_v53 }
 0x687   : > { %v12328_v13 = vpop.f32.mrf.mxu1  ;;  %18625 = vst [vmem:[#allocation56_spill] sm:$0xff] %v15374_v1 }
 0x688   : > { %3480 = vmax.xlane.f32.xlu1 %v3479_v20  ;;  %v3279_v20 = vrot.slane %v2785_v9, 1  ;;  %v3370_v30 = vpop.xlane.xlu0 %3369  ;;  %v3521_v9 = vsel %vm3367_vm2, %v15374_v1, -inf }
 0x689   : > { %v2788_v28 = vpop.f32.mrf.mxu1 }
 0x68a   : > { %3477 = vmax.xlane.f32.xlu0 %v3476_v58  ;;  %v3284_v58 = vrot.slane %v12328_v13, 1  ;;  %v3373_v57 = vpop.xlane.xlu1 %3372  ;;  %v3524_v13 = vsel %vm3367_vm2, %v15381_v53, -inf  ;;  %v3280_v38 = vrot.slane %v2788_v28, 1 }
 0x68b   : > { %v15369_v4 = vpop.f32.mrf.mxu1 }
 0x68c   : > { %3528 = vmax.xlane.f32.xlu1 %v3527_v45  ;;  %v3270_v45 = vsel %vm1276_vm10, %v3267_v50, %v3269_v22  ;;  %v15393_v27 = vsel %vm1292_vm6, %v3282_v33, %v3284_v58  ;;  %v15402_v22 = vsel %vm1907_vm15, %v3284_v58, %v18630_v29  ;;  %v3314_v28 = vrot.slane %v15369_v4, 7 }
 0x68d   : > { %v2994_v62 = vpop.f32.mrf.mxu1  ;;  %v15388_v60 = vsel %vm1292_vm6, %v3270_v45, %v3279_v20  ;;  %18629 = vst [vmem:[#allocation60_spill] sm:$0xff] %v15393_v27  ;;  %18631 = vst [vmem:[#allocation61_spill] sm:$0xff] %v15402_v22  ;;  %v15411_v53 = vsel %vm1292_vm6, %v3279_v20, %v3280_v38  ;;  %v3497_v58 = vsel %vm3367_vm2, %v15402_v22, -inf  ;;  %v15418_v4 = vsel %vm1292_vm6, %v3280_v38, %v3282_v33 }
 0x68e   : > { %3483 = vmax.xlane.f32.xlu0 %v3482_v43  ;;  %18628 = vst [vmem:[#allocation59_spill] sm:$0xff] %v15388_v60  ;;  %v3485_v50 = vsel %vm3367_vm2, %v15388_v60, -inf  ;;  %v3488_v20 = vsel %vm3367_vm2, %v15411_v53, -inf  ;;  %v3491_v33 = vsel %vm3367_vm2, %v15418_v4, -inf }
 0x68f   : > { %v12340_v26 = vpop.f32.mrf.mxu1 }
 0x690   : > { %3522 = vmax.xlane.f32.xlu1 %v3521_v9  ;;  %v3316_v43 = vrot.slane %v12340_v26, 7  ;;  %v3544_v9 = vsub.f32 %v15094_v17, %v3376_v55  ;;  %v3494_v26 = vsel %vm3367_vm2, %v15393_v27, -inf  ;;  %v3311_v55 = vrot.slane %v2994_v62, 7 }
 0x691   : > { %v2997_v63 = vpop.f32.mrf.mxu1  ;;  %v3379_v45 = vpop.xlane.xlu1 %3378  ;;  %v3542_v27 = vsub.f32 %v15098_v0, %v3370_v30  ;;  %v18632_v0 = vrot.slane %v15274_v54, 4 }
 0x692   : > { %3525 = vmax.xlane.f32.xlu0 %v3524_v13  ;;  %v3317_v17 = vsel %vm2804_vm12, %v3314_v28, %v3316_v43  ;;  %v3604_v29 = vmul.f32 1.442695, %v3544_v9  ;;  %v3312_v60 = vrot.slane %v2997_v63, 7  ;;  %v3545_v62 = vsub.f32 %v15107_v40, %v3379_v45 }
 0x693   : > { %v3388_v1 = vpop.xlane.xlu0 %3387  ;;  %v15395_v25 = vpop.f32.mrf.mxu1  ;;  %v15432_v30 = vsel %vm2804_vm12, %v18632_v0, %v3311_v55  ;;  %v3600_v63 = vmul.f32 1.442695, %v3542_v27 }
 0x694   : > { %3486 = vmax.xlane.f32.xlu1 %v3485_v50  ;;  %v3543_v50 = vsub.f32 %v15102_v21, %v3373_v57  ;;  %v15424_v57 = vsel %vm2489_vm13, %v3317_v17, %v3326_v41  ;;  %13512 = vpow2.f32 %v3604_v29  ;;  %v3548_v38 = vsub.f32 %v15112_v12, %v3388_v1 }
 0x695   : > { %v15408_v13 = vpop.f32.mrf.mxu1  ;;  %v3518_v41 = vsel %vm3367_vm2, %v15424_v57, -inf  ;;  %v15439_v45 = vsel %vm2804_vm12, %v3311_v55, %v3312_v60  ;;  %v3509_v27 = vsel %vm3367_vm2, %v15432_v30, -inf  ;;  %v15445_v1 = vsel %vm2804_vm12, %v3312_v60, %v3314_v28 }
 0x696   : > { %3495 = vmax.xlane.f32.xlu0 %v3494_v26  ;;  %v3602_v22 = vmul.f32 1.442695, %v3543_v50  ;;  %v3342_v9 = vrot.slane %v15408_v13, 5  ;;  %v3606_v50 = vmul.f32 1.442695, %v3545_v62  ;;  %v3345_v55 = vrot.slane %v15395_v25, 5 }
 0x697   : > { %v3382_v16 = vpop.xlane.xlu0 %3381  ;;  %v12352_v21 = vpop.f32.mrf.mxu1  ;;  %v3612_v13 = vmul.f32 1.442695, %v3548_v38 }
 0x698   : > { %3498 = vmax.xlane.f32.xlu1 %v3497_v58  ;;  %13514 = vpow2.f32 %v3602_v22  ;;  %v3347_v12 = vrot.slane %v12352_v21, 5  ;;  %v3546_v29 = vsub.f32 %v15117_v5, %v3382_v16  ;;  %v3512_v22 = vsel %vm3367_vm2, %v15439_v45, -inf }
 0x699   : > { %v3391_v26 = vpop.xlane.xlu1 %3390  ;;  %v3123_v40 = vpop.f32.mrf.mxu1  ;;  %13516 = vpow2.f32 %v3600_v63  ;;  %v3515_v5 = vsel %vm3367_vm2, %v15445_v1, -inf }
 0x69a   : > { %3489 = vmax.xlane.f32.xlu0 %v3488_v20  ;;  %v18633_v20 = vrot.slane %v15328_v37, 2  ;;  %13518 = vpow2.f32 %v3606_v50  ;;  %v3549_v60 = vsub.f32 %v15122_v14, %v3391_v26  ;;  %v15460_v16 = vsel %vm2156_vm9, %v3345_v55, %v3347_v12 }
 0x69b   : > { %v3385_v43 = vpop.xlane.xlu0 %3384  ;;  %13520 = vpow2.f32 %v3612_v13  ;;  %v3608_v25 = vmul.f32 1.442695, %v3546_v29 }
 0x69c   : > { %3492 = vmax.xlane.f32.xlu1 %v3491_v33  ;;  %v3547_v54 = vsub.f32 %v15125_v42, %v3385_v43  ;;  %v3343_v42 = vrot.slane %v3123_v40, 5  ;;  %v15454_v62 = vsel %vm2156_vm9, %v18633_v20, %v3342_v9  ;;  %v3614_v26 = vmul.f32 1.442695, %v3549_v60 }
 0x69d   : > { %v3397_v58 = vpop.xlane.xlu1 %3396  ;;  %v3530_v33 = vsel %vm3367_vm2, %v15454_v62, -inf }
 0x69e   : > { %3519 = vmax.xlane.f32.xlu0 %v3518_v41  ;;  %v3610_v28 = vmul.f32 1.442695, %v3547_v54  ;;  %v15466_v14 = vsel %vm2156_vm9, %v3343_v42, %v3345_v55  ;;  %v3551_v0 = vsub.f32 %v15132_v15, %v3397_v58  ;;  %v3539_v41 = vsel %vm3367_vm2, %v15460_v16, -inf }
 0x69f   : > { %v3394_v17 = vpop.xlane.xlu0 %3393  ;;  %v15472_v40 = vsel %vm2156_vm9, %v3342_v9, %v3343_v42  ;;  %v3536_v54 = vsel %vm3367_vm2, %v15466_v14, -inf }
 0x6a0   : > { %3510 = vmax.xlane.f32.xlu1 %v3509_v27  ;;  %v3550_v37 = vsub.f32 %v15135_v59, %v3394_v17  ;;  %13522 = vpow2.f32 %v3610_v28  ;;  %v3618_v15 = vmul.f32 1.442695, %v3551_v0  ;;  %v3533_v9 = vsel %vm3367_vm2, %v15472_v40, -inf }
 0x6a1   : > { %13524 = vpow2.f32 %v3608_v25  ;;  %v15477_v17 = vpop.eup %13512 }
 0x6a2   : > { %3513 = vmax.xlane.f32.xlu0 %v3512_v22  ;;  %v3616_v59 = vmul.f32 1.442695, %v3550_v37  ;;  %13526 = vpow2.f32 %v3614_v26  ;;  %v3722_v22 = vsel %vm3367_vm2, %v15477_v17, 0.0 }
 0x6a3   : > { %v3400_v21 = vpop.xlane.xlu0 %3399  ;;  %v3409_v43 = vpop.xlane.xlu1 %3408 }
 0x6a4   : > { %3516 = vmax.xlane.f32.xlu1 %v3515_v5  ;;  %v3552_v50 = vsub.f32 %v15143_v24, %v3400_v21  ;;  %v3555_v58 = vsub.f32 %v15146_v35, %v3409_v43  ;;  %13528 = vpow2.f32 %v3616_v59 }
 0x6a5   : > { %v15482_v13 = vpop.eup %13514  ;;  %13530 = vpow2.f32 %v3618_v15 }
 0x6a6   : > { %3531 = vmax.xlane.f32.xlu0 %v3530_v33  ;;  %v3620_v24 = vmul.f32 1.442695, %v3552_v50  ;;  %v15487_v55 = vpop.eup %13516  ;;  %v3626_v35 = vmul.f32 1.442695, %v3555_v58  ;;  %v3719_v60 = vsel %vm3367_vm2, %v15482_v13, 0.0 }
 0x6a7   : > { %v3406_v63 = vpop.xlane.xlu0 %3405  ;;  %v3403_v38 = vpop.xlane.xlu1 %3402  ;;  %v3716_v5 = vsel %vm3367_vm2, %v15487_v55, 0.0 }
 0x6a8   : > { %3540 = vmax.xlane.f32.xlu1 %v3539_v41  ;;  %v3554_v29 = vsub.f32 %v15153_v52, %v3406_v63  ;;  %v3553_v42 = vsub.f32 %v15156_v36, %v3403_v38  ;;  %v15492_v28 = vpop.eup %13518  ;;  %13532 = vpow2.f32 %v3620_v24 }
 0x6a9   : > { %v15497_v25 = vpop.eup %13520  ;;  %13534 = vpow2.f32 %v3626_v35  ;;  %v3725_v26 = vsel %vm3367_vm2, %v15492_v28, 0.0 }
 0x6aa   : > { %3537 = vmax.xlane.f32.xlu0 %v3536_v54  ;;  %v3624_v21 = vmul.f32 1.442695, %v3554_v29  ;;  %v3622_v36 = vmul.f32 1.442695, %v3553_v42  ;;  %v3734_v41 = vsel %vm3367_vm2, %v15497_v25, 0.0 }
 0x6ab   : > { %v3412_v27 = vpop.xlane.xlu0 %3411  ;;  %v3421_v12 = vpop.xlane.xlu1 %3420 }
 0x6ac   : > { %3534 = vmax.xlane.f32.xlu1 %v3533_v9  ;;  %v3556_v52 = vsub.f32 %v15163_v34, %v3412_v27  ;;  %v3559_v37 = vsub.f32 %v15166_v49, %v3421_v12  ;;  %13536 = vpow2.f32 %v3624_v21 }
 0x6ad   : > { %v15502_v0 = vpop.eup %13522  ;;  %13538 = vpow2.f32 %v3622_v36 }
 0x6ae   : > { %3723 = vadd.xlane.f32.xlu0 %v3722_v22  ;;  %v3628_v34 = vmul.f32 1.442695, %v3556_v52  ;;  %v15507_v59 = vpop.eup %13524  ;;  %v3634_v49 = vmul.f32 1.442695, %v3559_v37  ;;  %v3731_v15 = vsel %vm3367_vm2, %v15502_v0, 0.0 }
 0x6af   : > { %v3418_v20 = vpop.xlane.xlu0 %3417  ;;  %v3415_v43 = vpop.xlane.xlu1 %3414  ;;  %v3728_v9 = vsel %vm3367_vm2, %v15507_v59, 0.0 }
 0x6b0   : > { %3720 = vadd.xlane.f32.xlu1 %v3719_v60  ;;  %v3558_v63 = vsub.f32 %v15173_v32, %v3418_v20  ;;  %v3557_v50 = vsub.f32 %v15176_v3, %v3415_v43  ;;  %v15512_v58 = vpop.eup %13526  ;;  %13540 = vpow2.f32 %v3628_v34 }
 0x6b1   : > { %v15517_v24 = vpop.eup %13528  ;;  %13542 = vpow2.f32 %v3634_v49  ;;  %v3737_v35 = vsel %vm3367_vm2, %v15512_v58, 0.0 }
 0x6b2   : > { %3717 = vadd.xlane.f32.xlu0 %v3716_v5  ;;  %v3632_v32 = vmul.f32 1.442695, %v3558_v63  ;;  %v3630_v3 = vmul.f32 1.442695, %v3557_v50  ;;  %v15522_v42 = vpop.eup %13530  ;;  %v3740_v21 = vsel %vm3367_vm2, %v15517_v24, 0.0 }
 0x6b3   : > { %v3424_v33 = vpop.xlane.xlu0 %3423  ;;  %v3743_v36 = vsel %vm3367_vm2, %v15522_v42, 0.0 }
 0x6b4   : > { %3726 = vadd.xlane.f32.xlu1 %v3725_v26  ;;  %v3560_v27 = vsub.f32 %v15183_v46, %v3424_v33  ;;  %13544 = vpow2.f32 %v3632_v32 }
 0x6b5   : > { %v3427_v38 = vpop.xlane.xlu1 %3426  ;;  %v15527_v52 = vpop.eup %13532  ;;  %13546 = vpow2.f32 %v3630_v3 }
 0x6b6   : > { %3735 = vadd.xlane.f32.xlu0 %v3734_v41  ;;  %v3561_v29 = vsub.f32 %v15188_v56, %v3427_v38  ;;  %v3636_v46 = vmul.f32 1.442695, %v3560_v27  ;;  %v15532_v37 = vpop.eup %13534  ;;  %v3746_v26 = vsel %vm3367_vm2, %v15527_v52, 0.0 }
 0x6b7   : > { %v3430_v54 = vpop.xlane.xlu0 %3429  ;;  %v3755_v41 = vsel %vm3367_vm2, %v15532_v37, 0.0 }
 0x6b8   : > { %3732 = vadd.xlane.f32.xlu1 %v3731_v15  ;;  %v3562_v20 = vsub.f32 %v15191_v61, %v3430_v54  ;;  %v3638_v56 = vmul.f32 1.442695, %v3561_v29  ;;  %13548 = vpow2.f32 %v3636_v46 }
 0x6b9   : > { %v3433_v12 = vpop.xlane.xlu1 %3432  ;;  %v15537_v34 = vpop.eup %13536 }
 0x6ba   : > { %3729 = vadd.xlane.f32.xlu0 %v3728_v9  ;;  %v3563_v43 = vsub.f32 %v15199_v19, %v3433_v12  ;;  %v3640_v61 = vmul.f32 1.442695, %v3562_v20  ;;  %13550 = vpow2.f32 %v3638_v56  ;;  %v15542_v49 = vpop.eup %13538  ;;  %v3752_v15 = vsel %vm3367_vm2, %v15537_v34, 0.0 }
 0x6bb   : > { %v3442_v22 = vpop.xlane.xlu0 %3441  ;;  %v3749_v12 = vsel %vm3367_vm2, %v15542_v49, 0.0 }
 0x6bc   : > { %3738 = vadd.xlane.f32.xlu1 %v3737_v35  ;;  %v3566_v33 = vsub.f32 %v15204_v44, %v3442_v22  ;;  %v3642_v19 = vmul.f32 1.442695, %v3563_v43  ;;  %13552 = vpow2.f32 %v3640_v61 }
 0x6bd   : > { %v3439_v60 = vpop.xlane.xlu1 %3438  ;;  %v15547_v32 = vpop.eup %13540 }
 0x6be   : > { %3741 = vadd.xlane.f32.xlu0 %v3740_v21  ;;  %v3565_v38 = vsub.f32 %v15209_v2, %v3439_v60  ;;  %v3648_v44 = vmul.f32 1.442695, %v3566_v33  ;;  %13554 = vpow2.f32 %v3642_v19  ;;  %v15552_v9 = vpop.eup %13542  ;;  %v3758_v22 = vsel %vm3367_vm2, %v15547_v32, 0.0 }
 0x6bf   : > { %v3436_v5 = vpop.xlane.xlu0 %3435  ;;  %v3767_v60 = vsel %vm3367_vm2, %v15552_v9, 0.0 }
 0x6c0   : > { %3744 = vadd.xlane.f32.xlu1 %v3743_v36  ;;  %v3564_v54 = vsub.f32 %v15212_v18, %v3436_v5  ;;  %v3646_v27 = vmul.f32 1.442695, %v3565_v38  ;;  %13556 = vpow2.f32 %v3648_v44 }
 0x6c1   : > { %v3445_v63 = vpop.xlane.xlu1 %3444  ;;  %v15557_v35 = vpop.eup %13544 }
 0x6c2   : > { %3747 = vadd.xlane.f32.xlu0 %v3746_v26  ;;  %v3567_v2 = vsub.f32 %v15219_v7, %v3445_v63  ;;  %v3644_v29 = vmul.f32 1.442695, %v3564_v54  ;;  %13558 = vpow2.f32 %v3646_v27  ;;  %v15562_v21 = vpop.eup %13546  ;;  %v3764_v43 = vsel %vm3367_vm2, %v15557_v35, 0.0 }
 0x6c3   : > { %v3454_v50 = vpop.xlane.xlu0 %3453 }
 0x6c4   : > { %3756 = vadd.xlane.f32.xlu1 %v3755_v41  ;;  %v3570_v18 = vsub.f32 %v15224_v8, %v3454_v50  ;;  %v3650_v7 = vmul.f32 1.442695, %v3567_v2  ;;  %13560 = vpow2.f32 %v3644_v29 }
 0x6c5   : > { %v3451_v3 = vpop.xlane.xlu1 %3450  ;;  %v15567_v5 = vpop.eup %13548 }
 0x6c6   : > { %3753 = vadd.xlane.f32.xlu0 %v3752_v15  ;;  %v3569_v20 = vsub.f32 %v15229_v39, %v3451_v3  ;;  %v3656_v56 = vmul.f32 1.442695, %v3570_v18  ;;  %13562 = vpow2.f32 %v3650_v7  ;;  %v3761_v39 = vsel %vm3367_vm2, %v15562_v21, 0.0 }
 0x6c7   : > { %v3448_v46 = vpop.xlane.xlu0 %3447  ;;  %v15571_v61 = vpop.eup %13550  ;;  %v3770_v26 = vsel %vm3367_vm2, %v15567_v5, 0.0 }
 0x6c8   : > { %3750 = vadd.xlane.f32.xlu1 %v3749_v12  ;;  %v3568_v8 = vsub.f32 %v15232_v47, %v3448_v46  ;;  %v3654_v36 = vmul.f32 1.442695, %v3569_v20  ;;  %13564 = vpow2.f32 %v3656_v56  ;;  %v3773_v63 = vsel %vm3367_vm2, %v15571_v61, 0.0 }
 0x6c9   : > { %v15575_v47 = vpop.eup %13552 }
 0x6ca   : > { %3759 = vadd.xlane.f32.xlu0 %v3758_v22  ;;  %v3652_v33 = vmul.f32 1.442695, %v3568_v8  ;;  %13566 = vpow2.f32 %v3654_v36  ;;  %v3776_v38 = vsel %vm3367_vm2, %v15575_v47, 0.0 }
 0x6cb   : > { %v15579_v19 = vpop.eup %13554 }
 0x6cc   : > { %3768 = vadd.xlane.f32.xlu1 %v3767_v60  ;;  %13568 = vpow2.f32 %v3652_v33  ;;  %v3779_v50 = vsel %vm3367_vm2, %v15579_v19, 0.0 }
 0x6cd   : > { %v15583_v41 = vpop.eup %13556 }
 0x6ce   : > { %3765 = vadd.xlane.f32.xlu0 %v3764_v43  ;;  %v3788_v54 = vsel %vm3367_vm2, %v15583_v41, 0.0 }
 0x6cf   : > { %v15587_v44 = vpop.eup %13558 }
 0x6d0   : > { %3762 = vadd.xlane.f32.xlu1 %v3761_v39  ;;  %v3785_v27 = vsel %vm3367_vm2, %v15587_v44, 0.0 }
 0x6d1   : > { %v15591_v15 = vpop.eup %13560 }
 0x6d2   : > { %3771 = vadd.xlane.f32.xlu0 %v3770_v26  ;;  %v3782_v12 = vsel %vm3367_vm2, %v15591_v15, 0.0 }
 0x6d3   : > { %v15595_v2 = vpop.eup %13562 }
 0x6d4   : > { %3774 = vadd.xlane.f32.xlu1 %v3773_v63  ;;  %v3791_v29 = vsel %vm3367_vm2, %v15595_v2, 0.0 }
 0x6d5   : > { %v15599_v3 = vpop.eup %13564 }
 0x6d6   : > { %3777 = vadd.xlane.f32.xlu0 %v3776_v38  ;;  %v3800_v22 = vsel %vm3367_vm2, %v15599_v3, 0.0 }
 0x6d7   : > { %v15603_v18 = vpop.eup %13566 }
 0x6d8   : > { %3780 = vadd.xlane.f32.xlu1 %v3779_v50  ;;  %v3797_v7 = vsel %vm3367_vm2, %v15603_v18, 0.0 }
 0x6d9   : > { %v15607_v46 = vpop.eup %13568 }
 0x6da   : > { %3789 = vadd.xlane.f32.xlu0 %v3788_v54  ;;  %v3794_v20 = vsel %vm3367_vm2, %v15607_v46, 0.0 }
 0x6dc   : > { %3786 = vadd.xlane.f32.xlu1 %v3785_v27 }
 0x6de   : > { %3783 = vadd.xlane.f32.xlu0 %v3782_v12 }
 0x6e0   : > { %3792 = vadd.xlane.f32.xlu1 %v3791_v29 }
 0x6e2   : > { %3801 = vadd.xlane.f32.xlu0 %v3800_v22 }
 0x6e4   : > { %3798 = vadd.xlane.f32.xlu1 %v3797_v7 }
 0x6e6   : > { %3795 = vadd.xlane.f32.xlu0 %v3794_v20 }
 0x6f6   : > { %v3463_v60 = vpop.xlane.xlu1 %3462 }
 0x6f7   : > { %v3573_v56 = vsub.f32 %v15260_v51, %v3463_v60 }
 0x6f9   : > { %v3662_v8 = vmul.f32 1.442695, %v3573_v56 }
 0x6fa   : > { %v3457_v43 = vpop.xlane.xlu1 %3456 }
 0x6fb   : > { %13570 = vpow2.f32 %v3662_v8  ;;  %v3571_v36 = vsub.f32 %v15268_v23, %v3457_v43  ;;  %v18634_v8 = vld [vmem:[#allocation46_spill] sm:$0xff] }
 0x6fc   : > { %v3460_v39 = vpop.xlane.xlu0 %3459 }
 0x6fd   : > { %v3658_v33 = vmul.f32 1.442695, %v3571_v36  ;;  %v3572_v26 = vsub.f32 %v15276_v48, %v3460_v39 }
 0x6ff   : > { %13572 = vpow2.f32 %v3658_v33  ;;  %v3660_v63 = vmul.f32 1.442695, %v3572_v26  ;;  %v18635_v26 = vld [vmem:[#allocation48_spill] sm:$0xff] }
 0x701   : > { %13574 = vpow2.f32 %v3660_v63 }
 0x703   : > { %v3466_v38 = vpop.xlane.xlu0 %3465 }
 0x704   : > { %v3574_v50 = vsub.f32 %v15287_v31, %v3466_v38 }
 0x705   : > { %v3475_v54 = vpop.xlane.xlu1 %3474 }
 0x706   : > { %v3664_v27 = vmul.f32 1.442695, %v3574_v50  ;;  %v3577_v12 = vsub.f32 %v15297_v6, %v3475_v54  ;;  %v18636_v50 = vld [vmem:[#allocation49_spill] sm:$0xff] }
 0x707   : > { %v3472_v51 = vpop.xlane.xlu0 %3471 }
 0x708   : > { %v15618_v29 = vpop.eup %13570  ;;  %13576 = vpow2.f32 %v3664_v27  ;;  %v3670_v22 = vmul.f32 1.442695, %v3577_v12  ;;  %v3576_v23 = vsub.f32 %v15304_v10, %v3472_v51 }
 0x709   : > { %v3469_v7 = vpop.xlane.xlu1 %3468  ;;  %v3809_v48 = vsel %vm3367_vm2, %v15618_v29, 0.0 }
 0x70a   : > { %13578 = vpow2.f32 %v3670_v22  ;;  %v3575_v20 = vsub.f32 %v15307_v11, %v3469_v7  ;;  %3810 = vadd.xlane.f32.xlu0 %v3809_v48  ;;  %v3668_v31 = vmul.f32 1.442695, %v3576_v23  ;;  %v18637_v22 = vld [vmem:[#allocation51_spill] sm:$0xff] }
 0x70b   : > { %v3508_v60 = vpop.xlane.xlu0 %3507 }
 0x70c   : > { %v15624_v56 = vpop.eup %13572  ;;  %v3666_v6 = vmul.f32 1.442695, %v3575_v20  ;;  %v3588_v43 = vsub.f32 %v18634_v8, %v3508_v60  ;;  %v18638_v20 = vld [vmem:[#allocation52_spill] sm:$0xff] }
 0x70d   : > { %v3505_v36 = vpop.xlane.xlu1 %3504  ;;  %v3803_v39 = vsel %vm3367_vm2, %v15624_v56, 0.0 }
 0x70e   : > { %v15629_v10 = vpop.eup %13574  ;;  %13580 = vpow2.f32 %v3666_v6  ;;  %v3692_v33 = vmul.f32 1.442695, %v3588_v43  ;;  %v3587_v63 = vsub.f32 %v18635_v26, %v3505_v36  ;;  %3804 = vadd.xlane.f32.xlu1 %v3803_v39  ;;  %v18639_v43 = vld [vmem:[#allocation54_spill] sm:$0xff] }
 0x70f   : > { %13582 = vpow2.f32 %v3668_v31  ;;  %v3502_v11 = vpop.xlane.xlu0 %3501  ;;  %v3806_v12 = vsel %vm3367_vm2, %v15629_v10, 0.0 }
 0x710   : > { %13584 = vpow2.f32 %v3692_v33  ;;  %v3690_v38 = vmul.f32 1.442695, %v3587_v63  ;;  %v3586_v54 = vsub.f32 %v18636_v50, %v3502_v11  ;;  %v18640_v11 = vld [vmem:[#allocation55_spill] sm:$0xff] }
 0x711   : > { %v3481_v27 = vpop.xlane.xlu1 %3480 }
 0x712   : > { %v3688_v51 = vmul.f32 1.442695, %v3586_v54  ;;  %v3579_v23 = vsub.f32 %v18637_v22, %v3481_v27  ;;  %3807 = vadd.xlane.f32.xlu1 %v3806_v12  ;;  %13586 = vpow2.f32 %v3690_v38  ;;  %v18641_v27 = vld [vmem:[#allocation56_spill] sm:$0xff] }
 0x713   : > { %v3478_v7 = vpop.xlane.xlu0 %3477 }
 0x714   : > { %13588 = vpow2.f32 %v3688_v51  ;;  %v3674_v48 = vmul.f32 1.442695, %v3579_v23  ;;  %v3578_v60 = vsub.f32 %v18638_v20, %v3478_v7  ;;  %v18642_v20 = vld [vmem:[#allocation58_spill] sm:$0xff] }
 0x715   : > { %v15637_v31 = vpop.eup %13576  ;;  %v3529_v6 = vpop.xlane.xlu1 %3528 }
 0x716   : > { %13590 = vpow2.f32 %v3674_v48  ;;  %v3672_v8 = vmul.f32 1.442695, %v3578_v60  ;;  %v3595_v36 = vsub.f32 %v18639_v43, %v3529_v6  ;;  %v3812_v39 = vsel %vm3367_vm2, %v15637_v31, 0.0 }
 0x717   : > { %v15642_v33 = vpop.eup %13578  ;;  %v3484_v26 = vpop.xlane.xlu0 %3483  ;;  %3813 = vadd.xlane.f32.xlu1 %v3812_v39  ;;  %v18644_v39 = vld [vmem:[#allocation59_spill] sm:$0xff] }
 0x718   : > { %13592 = vpow2.f32 %v3672_v8  ;;  %v3706_v63 = vmul.f32 1.442695, %v3595_v36  ;;  %v3580_v38 = vsub.f32 %v18640_v11, %v3484_v26  ;;  %v3821_v51 = vsel %vm3367_vm2, %v15642_v33, 0.0 }
 0x719   : > { %v3523_v50 = vpop.xlane.xlu1 %3522 }
 0x71a   : > { %v3676_v54 = vmul.f32 1.442695, %v3580_v38  ;;  %v3593_v12 = vsub.f32 %v18641_v27, %v3523_v50  ;;  %13594 = vpow2.f32 %v3706_v63  ;;  %v18645_v50 = vld [vmem:[#allocation60_spill] sm:$0xff] }
 0x71b   : > { %v15648_v22 = vpop.eup %13580  ;;  %v3526_v23 = vpop.xlane.xlu0 %3525  ;;  %3822 = vadd.xlane.f32.xlu1 %v3821_v51 }
 0x71c   : > { %v15650_v7 = vpop.eup %13582  ;;  %13596 = vpow2.f32 %v3676_v54  ;;  %v3702_v48 = vmul.f32 1.442695, %v3593_v12  ;;  %v3594_v60 = vsub.f32 %v18642_v20, %v3526_v23  ;;  %v3815_v6 = vsel %vm3367_vm2, %v15648_v22, 0.0  ;;  %v18647_v20 = vld [vmem:[#allocation61_spill] sm:$0xff] }
 0x71d   : > { %v15655_v8 = vpop.eup %13584  ;;  %v3487_v43 = vpop.xlane.xlu1 %3486  ;;  %3816 = vadd.xlane.f32.xlu0 %v3815_v6  ;;  %v3818_v27 = vsel %vm3367_vm2, %v15650_v7, 0.0 }
 0x71e   : > { %18643 = vst [vmem:[#allocation46_spill] sm:$0xff] %v15655_v8  ;;  %13598 = vpow2.f32 %v3702_v48  ;;  %v3704_v36 = vmul.f32 1.442695, %v3594_v60  ;;  %v3581_v26 = vsub.f32 %v18644_v39, %v3487_v43  ;;  %v3854_v63 = vsel %vm3367_vm2, %v15655_v8, 0.0 }
 0x71f   : > { %v3496_v11 = vpop.xlane.xlu0 %3495  ;;  %3855 = vadd.xlane.f32.xlu1 %v3854_v63  ;;  %v15660_v38 = vpop.eup %13586 }
 0x720   : > { %v3584_v54 = vsub.f32 %v18645_v50, %v3496_v11  ;;  %13600 = vpow2.f32 %v3704_v36  ;;  %v3678_v23 = vmul.f32 1.442695, %v3581_v26  ;;  %v3851_v63 = vsel %vm3367_vm2, %v15660_v38, 0.0 }
 0x721   : > { %v15665_v12 = vpop.eup %13588  ;;  %v3499_v51 = vpop.xlane.xlu1 %3498  ;;  %3819 = vadd.xlane.f32.xlu0 %v3818_v27 }
 0x722   : > { %18646 = vst [vmem:[#allocation48_spill] sm:$0xff] %v15665_v12  ;;  %v3684_v48 = vmul.f32 1.442695, %v3584_v54  ;;  %v3585_v60 = vsub.f32 %v18647_v20, %v3499_v51  ;;  %v3848_v6 = vsel %vm3367_vm2, %v15665_v12, 0.0 }
 0x723   : > { %v15670_v43 = vpop.eup %13590  ;;  %v3490_v39 = vpop.xlane.xlu0 %3489  ;;  %3849 = vadd.xlane.f32.xlu1 %v3848_v6 }
 0x724   : > { %13602 = vpow2.f32 %v3684_v48  ;;  %v3686_v36 = vmul.f32 1.442695, %v3585_v60  ;;  %v3582_v50 = vsub.f32 %v15411_v53, %v3490_v39  ;;  %v3827_v27 = vsel %vm3367_vm2, %v15670_v43, 0.0 }
 0x725   : > { %v15674_v11 = vpop.eup %13592  ;;  %v3493_v26 = vpop.xlane.xlu1 %3492  ;;  %3852 = vadd.xlane.f32.xlu0 %v3851_v63  ;;  %13604 = vpow2.f32 %v3678_v23 }
 0x726   : > { %v3583_v54 = vsub.f32 %v15418_v4, %v3493_v26  ;;  %v3824_v60 = vsel %vm3367_vm2, %v15674_v11, 0.0  ;;  %13606 = vpow2.f32 %v3686_v36  ;;  %v3680_v53 = vmul.f32 1.442695, %v3582_v50 }
 0x727   : > { %v3520_v51 = vpop.xlane.xlu0 %3519  ;;  %3828 = vadd.xlane.f32.xlu1 %v3827_v27  ;;  %v15680_v20 = vpop.eup %13594 }
 0x728   : > { %18648 = vst [vmem:[#allocation49_spill] sm:$0xff] %v15680_v20  ;;  %v3682_v48 = vmul.f32 1.442695, %v3583_v54  ;;  %v3592_v6 = vsub.f32 %v15424_v57, %v3520_v51  ;;  %v3875_v36 = vsel %vm3367_vm2, %v15680_v20, 0.0 }
 0x729   : > { %v15685_v8 = vpop.eup %13596  ;;  %v3511_v23 = vpop.xlane.xlu1 %3510  ;;  %3825 = vadd.xlane.f32.xlu0 %v3824_v60 }
 0x72a   : > { %13608 = vpow2.f32 %v3682_v48  ;;  %v3589_v4 = vsub.f32 %v15432_v30, %v3511_v23  ;;  %v3830_v39 = vsel %vm3367_vm2, %v15685_v8, 0.0  ;;  %v3700_v57 = vmul.f32 1.442695, %v3592_v6 }
 0x72b   : > { %v15690_v63 = vpop.eup %13598  ;;  %v3514_v26 = vpop.xlane.xlu0 %3513  ;;  %3831 = vadd.xlane.f32.xlu1 %v3830_v39  ;;  %13610 = vpow2.f32 %v3680_v53 }
 0x72c   : > { %18649 = vst [vmem:[#allocation51_spill] sm:$0xff] %v15690_v63  ;;  %v3694_v54 = vmul.f32 1.442695, %v3589_v4  ;;  %v3590_v27 = vsub.f32 %v15439_v45, %v3514_v26  ;;  %v3869_v30 = vsel %vm3367_vm2, %v15690_v63, 0.0 }
 0x72d   : > { %v15695_v50 = vpop.xlane.xlu1 %3516  ;;  %3876 = vadd.xlane.f32.xlu0 %v3875_v36  ;;  %v15697_v51 = vpop.eup %13600 }
 0x72e   : > { %18650 = vst [vmem:[#allocation52_spill] sm:$0xff] %v15697_v51  ;;  %13612 = vpow2.f32 %v3694_v54  ;;  %v3696_v6 = vmul.f32 1.442695, %v3590_v27  ;;  %v3872_v23 = vsel %vm3367_vm2, %v15697_v51, 0.0 }
 0x72f   : > { %v15701_v48 = vpop.xlane.xlu0 %3531  ;;  %3870 = vadd.xlane.f32.xlu1 %v3869_v30  ;;  %13614 = vpow2.f32 %v3700_v57 }
 0x730   : > { %13616 = vpow2.f32 %v3696_v6 }
 0x731   : > { %v15703_v60 = vpop.eup %13602  ;;  %v15705_v45 = vpop.xlane.xlu1 %3540 }
 0x732   : > { %18651 = vst [vmem:[#allocation54_spill] sm:$0xff] %v15703_v60  ;;  %v3842_v53 = vsel %vm3367_vm2, %v15703_v60, 0.0  ;;  %v15711_v4 = vpop.eup %13604 }
 0x733   : > { %18652 = vst [vmem:[#allocation55_spill] sm:$0xff] %v15711_v4  ;;  %3843 = vadd.xlane.f32.xlu0 %v3842_v53  ;;  %v3538_v39 = vpop.xlane.xlu0 %3537  ;;  %3873 = vadd.xlane.f32.xlu1 %v3872_v23  ;;  %v15714_v54 = vpop.eup %13606  ;;  %v3833_v30 = vsel %vm3367_vm2, %v15711_v4, 0.0 }
 0x734   : > { %v3598_v26 = vsub.f32 %v15466_v14, %v3538_v39  ;;  %18653 = vst [vmem:[#allocation56_spill] sm:$0xff] %v15714_v54 }
 0x735   : > { %v3535_v57 = vpop.xlane.xlu1 %3534 }
 0x736   : > { %v3712_v27 = vmul.f32 1.442695, %v3598_v26  ;;  %v3597_v36 = vsub.f32 %v15472_v40, %v3535_v57  ;;  %v3845_v40 = vsel %vm3367_vm2, %v15714_v54, 0.0 }
 0x737   : > { %v15719_v63 = vpop.eup %13608  ;;  %v3724_v20 = vpop.xlane.xlu0 %3723  ;;  %3834 = vadd.xlane.f32.xlu1 %v3833_v30 }
 0x738   : > { %18654 = vst [vmem:[#allocation58_spill] sm:$0xff] %v15719_v63  ;;  %13618 = vpow2.f32 %v3712_v27  ;;  %v3710_v53 = vmul.f32 1.442695, %v3597_v36  ;;  %v3839_v6 = vsel %vm3367_vm2, %v15719_v63, 0.0  ;;  %v15723_v23 = vpop.eup %13610 }
 0x739   : > { %13620 = vrcp.f32 %v3724_v20  ;;  %3840 = vadd.xlane.f32.xlu0 %v3839_v6  ;;  %v3721_v14 = vpop.xlane.xlu1 %3720  ;;  %18655 = vst [vmem:[#allocation59_spill] sm:$0xff] %v15723_v23  ;;  %v3836_v36 = vsel %vm3367_vm2, %v15723_v23, 0.0 }
 0x73a   : > { %13622 = vpow2.f32 %v3710_v53 }
 0x73b   : > { %v15727_v39 = vpop.eup %13612  ;;  %13624 = vrcp.f32 %v3721_v14  ;;  %v3718_v26 = vpop.xlane.xlu0 %3717  ;;  %3846 = vadd.xlane.f32.xlu1 %v3845_v40 }
 0x73c   : > { %18656 = vst [vmem:[#allocation60_spill] sm:$0xff] %v15727_v39  ;;  %13626 = vrcp.f32 %v3718_v26  ;;  %v3857_v57 = vsel %vm3367_vm2, %v15727_v39, 0.0  ;;  %v15731_v27 = vpop.eup %13614 }
 0x73d   : > { %18657 = vst [vmem:[#allocation61_spill] sm:$0xff] %v15731_v27  ;;  %3858 = vadd.xlane.f32.xlu0 %v3857_v57  ;;  %v3727_v20 = vpop.xlane.xlu1 %3726  ;;  %v3866_v53 = vsel %vm3367_vm2, %v15731_v27, 0.0  ;;  %v15737_v6 = vpop.eup %13616 }
 0x73e   : > { %13628 = vrcp.f32 %v3727_v20  ;;  %18658 = vst [vmem:[#allocation62_spill] sm:$0xff] %v15737_v6  ;;  %v3860_v26 = vsel %vm3367_vm2, %v15737_v6, 0.0 }
 0x73f   : > { %v3736_v30 = vpop.xlane.xlu0 %3735  ;;  %3837 = vadd.xlane.f32.xlu1 %v3836_v36 }
 0x741   : > { %3867 = vadd.xlane.f32.xlu0 %v3866_v53  ;;  %v3733_v14 = vpop.xlane.xlu1 %3732 }
 0x742   : > { %13630 = vrcp.f32 %v3733_v14 }
 0x743   : > { %13632 = vrcp.f32 %v3736_v30  ;;  %v3730_v40 = vpop.xlane.xlu0 %3729 }
 0x744   : > { %13634 = vrcp.f32 %v3730_v40 }
 0x745   : > { %v15741_v57 = vpop.eup %13618  ;;  %3861 = vadd.xlane.f32.xlu0 %v3860_v26  ;;  %v3739_v20 = vpop.xlane.xlu1 %3738 }
 0x746   : > { %18659 = vst [vmem:[#allocation63_spill] sm:$0xff] %v15741_v57  ;;  %v13621_v63 = vpop.eup %13620  ;;  %13636 = vrcp.f32 %v3739_v20  ;;  %v3884_v20 = vsel %vm3367_vm2, %v15741_v57, 0.0 }
 0x747   : > { %v15743_v36 = vpop.eup %13622  ;;  %v3742_v27 = vpop.xlane.xlu0 %3741  ;;  %v3950_v54 = vmul.f32 %v13621_v63, %v15477_v17  ;;  %v18662_v17 = vld [vmem:[#allocation26_spill] sm:$0xff] }
 0x748   : > { %18660 = vst [vmem:[#allocation64_spill] sm:$0xff] %v15743_v36  ;;  %v13625_v23 = vpop.eup %13624  ;;  %v3881_v53 = vsel %vm3367_vm2, %v15743_v36, 0.0  ;;  %13638 = vrcp.f32 %v3742_v27 }
 0x749   : > { %v13627_v14 = vpop.eup %13626  ;;  %3882 = vadd.xlane.f32.xlu0 %v3881_v53  ;;  %v3745_v30 = vpop.xlane.xlu1 %3744  ;;  %v3949_v6 = vmul.f32 %v13625_v23, %v15482_v13  ;;  %v18661_v23 = vld [vmem:[#allocation24_spill] sm:$0xff] }
 0x74a   : > { %13640 = vrcp.f32 %v3745_v30  ;;  %v3948_v40 = vmul.f32 %v13627_v14, %v15487_v55  ;;  %v18664_v30 = vld [vmem:[#allocation25_spill] sm:$0xff] }
 0x74b   : > { %v13629_v26 = vpop.eup %13628  ;;  %v3748_v51 = vpop.xlane.xlu0 %3747 }
 0x74c   : > { %v4006_v39 = vpack.c.bf16 %v3949_v6, %v3948_v40  ;;  %v3951_v60 = vmul.f32 %v13629_v26, %v15492_v28  ;;  %v18665_v40 = vld [vmem:[#allocation29_spill] sm:$0xff] }
 0x74d   : > { %3885 = vadd.xlane.f32.xlu0 %v3884_v20  ;;  %v3757_v36 = vpop.xlane.xlu1 %3756  ;;  %v15763_v26 = vand.u32 %v18665_v40, %v18664_v30 }
 0x74e   : > { %13642 = vrcp.f32 %v3757_v36  ;;  %12357 = vmatprep.mubr.msk.bf16.mxu0 %vm3367_vm2, %v4006_v39  ;;  %v4007_v27 = vpack.c.bf16 %v3951_v60, %v3950_v54  ;;  %v18663_v36 = vld [vmem:[#allocation28_spill] sm:$0xff] }
 0x74f   : > { %v13631_v53 = vpop.eup %13630  ;;  %13644 = vrcp.f32 %v3748_v51  ;;  %v3754_v55 = vpop.xlane.xlu0 %3753 }
 0x750   : > { %v13633_v13 = vpop.eup %13632  ;;  %13646 = vrcp.f32 %v3754_v55  ;;  %5331 = vrot.lane.b32.xlu1 %v18661_v23, %s14144_s26  ;;  %12358 = vmatmul.mubr.msk.bf16.vlgmr.msra.gmra.mxu0 %vm3367_vm2, %v4007_v27  ;;  %v4100_v63 = vshrl.u32 %v4007_v27, 16  ;;  %v4103_v14 = vshll.u32 %v4007_v27, 16  ;;  %v3953_v51 = vmul.f32 %v13631_v53, %v15502_v0 }
 0x751   : > { %v13635_v6 = vpop.eup %13634  ;;  %12370 = vmatpush3.bf16.msra.mxu0 %v18662_v17  ;;  %v3751_v28 = vpop.xlane.xlu1 %3750  ;;  %v3954_v20 = vmul.f32 %v13633_v13, %v15497_v25 }
 0x752   : > { %12371 = vmatprep.subr.bf16.mxu0 %v18663_v36  ;;  %13648 = vrcp.f32 %v3751_v28  ;;  %v3952_v60 = vmul.f32 %v13635_v6, %v15507_v59  ;;  %v4102_v57 = vrot.slane %v4100_v63, 6  ;;  %v4105_v28 = vrot.slane %v4103_v14, 7 }
 0x753   : > { %v13637_v54 = vpop.eup %13636  ;;  %v3760_v39 = vpop.xlane.xlu0 %3759 }
 0x754   : > { %v3955_v55 = vmul.f32 %v13637_v54, %v15512_v58  ;;  %v4008_v17 = vpack.c.bf16 %v3953_v51, %v3952_v60  ;;  %13650 = vrcp.f32 %v3760_v39  ;;  %v4106_v14 = vor.u32 %v4105_v28, %v4102_v57 }
 0x755   : > { %12372 = vmatpush3.bf16.msra.mxu0 %v18663_v36  ;;  %v3769_v27 = vpop.xlane.xlu1 %3768  ;;  %v13639_v12 = vpop.eup %13638 }
 0x756   : > { %12385 = vmatprep.subr.bf16.mxu0 %v15763_v26  ;;  %v4108_v0 = vshrl.u32 %v4008_v17, 16  ;;  %v4111_v59 = vshll.u32 %v4008_v17, 16  ;;  %v4009_v53 = vpack.c.bf16 %v3955_v55, %v3954_v20  ;;  %13652 = vrcp.f32 %v3769_v27 }
 0x757   : > { %v13641_v6 = vpop.eup %13640  ;;  %v3766_v40 = vpop.xlane.xlu0 %3765  ;;  %v3956_v36 = vmul.f32 %v13639_v12, %v15517_v24  ;;  %v3591_v20 = vsub.f32 %v15445_v1, %v15695_v50  ;;  %v3596_v24 = vsub.f32 %v15454_v62, %v15701_v48 }
 0x758   : > { %13654 = vrcp.f32 %v3766_v40  ;;  %v4110_v25 = vrot.slane %v4108_v0, 6  ;;  %v4113_v13 = vrot.slane %v4111_v59, 7  ;;  %v4117_v58 = vshrl.u32 %v4009_v53, 16 }
 0x759   : > { %v3763_v60 = vpop.xlane.xlu1 %3762  ;;  %v4120_v51 = vshll.u32 %v4009_v53, 16  ;;  %v3957_v63 = vmul.f32 %v13641_v6, %v15522_v42  ;;  %v4191_v57 = vrot.slane %v4009_v53, 5 }
 0x75a   : > { %13656 = vrcp.f32 %v3763_v60  ;;  %v4114_v54 = vor.u32 %v4113_v13, %v4110_v25  ;;  %v4119_v39 = vrot.slane %v4117_v58, 6  ;;  %v3698_v25 = vmul.f32 1.442695, %v3591_v20 }
 0x75b   : > { %v13643_v4 = vpop.eup %13642  ;;  %v3772_v55 = vpop.xlane.xlu0 %3771  ;;  %v4122_v17 = vrot.slane %v4120_v51, 7  ;;  %v4010_v27 = vpack.c.bf16 %v3957_v63, %v3956_v36  ;;  %v18667_v36 = vld [vmem:[#allocation32_spill] sm:$0xff] }
 0x75c   : > { %v13645_v0 = vpop.eup %13644  ;;  %13658 = vrcp.f32 %v3772_v55  ;;  %v4115_v59 = vsel %vm2212_vm11, %v4106_v14, %v4114_v54  ;;  %v3961_v50 = vmul.f32 %v13643_v4, %v15532_v37  ;;  %v3599_v37 = vsub.f32 %v15460_v16, %v15705_v45  ;;  %v18666_v4 = vld [vmem:[#allocation27_spill] sm:$0xff] }
 0x75d   : > { %v13647_v40 = vpop.eup %13646  ;;  %12365 = vmatprep.mubr.msk.bf16.mxu1 %vm3367_vm2, %v4115_v59  ;;  %v3775_v42 = vpop.xlane.xlu1 %3774  ;;  %v4123_v12 = vor.u32 %v4122_v17, %v4119_v39  ;;  %v4192_v28 = vrot.slane %v4010_v27, 5  ;;  %v3958_v62 = vmul.f32 %v13645_v0, %v15527_v52 }
 0x75e   : > { %13660 = vrcp.f32 %v3775_v42  ;;  %v3960_v1 = vmul.f32 %v13647_v40, %v15537_v34  ;;  %v3708_v34 = vmul.f32 1.442695, %v3596_v24  ;;  %v3714_v0 = vmul.f32 1.442695, %v3599_v37 }
 0x75f   : > { %v13649_v6 = vpop.eup %13648  ;;  %v3778_v13 = vpop.xlane.xlu0 %3777  ;;  %v4124_v58 = vsel %vm2212_vm11, %v4114_v54, %v4123_v12  ;;  %v4193_v60 = vsel %vm2156_vm9, %v4191_v57, %v4192_v28  ;;  %v18668_v54 = vld [vmem:[#allocation30_spill] sm:$0xff] }
 0x760   : > { %v3959_v48 = vmul.f32 %v13649_v6, %v15542_v49  ;;  %13662 = vrcp.f32 %v3778_v13  ;;  %12366 = vmatmul.mubr.msk.bf16.vlgmr.msra.gmra.mxu1 %vm3367_vm2, %v4124_v58  ;;  %12373 = vmatprep.mubr.msk.bf16.mxu0 %vm3367_vm2, %v4193_v60  ;;  %v4012_v53 = vpack.c.bf16 %v3961_v50, %v3960_v1  ;;  %v15791_v39 = vand.u32 %v18668_v54, %v18664_v30  ;;  %v18669_v50 = vld [vmem:[#allocation23_spill] sm:$0xff] }
 0x761   : > { %12378 = vmatpush3.bf16.msra.mxu1 %v18666_v4  ;;  %v3781_v51 = vpop.xlane.xlu1 %3780  ;;  %v13651_v49 = vpop.eup %13650 }
 0x762   : > { %12379 = vmatprep.subr.bf16.mxu1 %v18667_v36  ;;  %13664 = vrcp.f32 %v3781_v51  ;;  %v4011_v63 = vpack.c.bf16 %v3959_v48, %v3958_v62  ;;  %v4268_v52 = vshrl.u32 %v4012_v53, 16  ;;  %v4271_v14 = vshll.u32 %v4012_v53, 16  ;;  %v18670_v48 = vld [vmem:[#allocation31_spill] sm:$0xff] }
 0x763   : > { %v3790_v20 = vpop.xlane.xlu0 %3789  ;;  %5412 = vrot.lane.b32.xlu0 %v18661_v23, %s14146_s28  ;;  %v13653_v55 = vpop.eup %13652  ;;  %13666 = vpow2.f32 %v3698_v25  ;;  %v3962_v6 = vmul.f32 %v13651_v49, %v15547_v32 }
 0x764   : > { %v4194_v16 = vrot.slane %v4011_v63, 5  ;;  %v4260_v45 = vshrl.u32 %v4011_v63, 16  ;;  %v4263_v17 = vshll.u32 %v4011_v63, 16  ;;  %13668 = vpow2.f32 %v3708_v34 }
 0x765   : > { %v13655_v27 = vpop.eup %13654  ;;  %12380 = vmatpush3.bf16.msra.mxu1 %v18667_v36  ;;  %v3787_v59 = vpop.xlane.xlu1 %3786  ;;  %v4270_v40 = vrot.slane %v4268_v52, 3  ;;  %v4273_v24 = vrot.slane %v4271_v14, 4  ;;  %v3965_v13 = vmul.f32 %v13653_v55, %v15552_v9 }
 0x766   : > { %12393 = vmatprep.subr.bf16.mxu1 %v15791_v39  ;;  %13670 = vrcp.f32 %v3787_v59  ;;  %v4195_v42 = vsel %vm2156_vm9, %v4192_v28, %v4194_v16  ;;  %v4262_v12 = vrot.slane %v4260_v45, 3  ;;  %v4265_v23 = vrot.slane %v4263_v17, 4 }
 0x767   : > { %v13657_v57 = vpop.eup %13656  ;;  %13672 = vrcp.f32 %v3790_v20  ;;  %v3784_v1 = vpop.xlane.xlu0 %3783  ;;  %5410 = vrot.lane.b32.xlu0 %v18669_v50, %s14146_s28  ;;  %12374 = vmatmul.mubr.msk.bf16.vlgmr.msra.gmra.mxu0 %vm3367_vm2, %v4195_v42  ;;  %v3964_v25 = vmul.f32 %v13655_v27, %v15557_v35  ;;  %v4274_v58 = vor.u32 %v4273_v24, %v4270_v40  ;;  %v18671_v35 = vld [vmem:[#allocation33_spill] sm:$0xff] }
 0x768   : > { %13674 = vrcp.f32 %v3784_v1  ;;  %12386 = vmatpush3.bf16.msra.mxu0 %v15763_v26  ;;  %v4266_v28 = vor.u32 %v4265_v23, %v4262_v12  ;;  %v3963_v60 = vmul.f32 %v13657_v57, %v15562_v21  ;;  %v4582_v9 = vand.u32 %v18671_v35, %v18664_v30 }
 0x769   : > { %v13659_v62 = vpop.eup %13658  ;;  %12387 = vmatprep.subr.bf16.mxu0 %v18670_v48  ;;  %v3793_v53 = vpop.xlane.xlu1 %3792  ;;  %v4014_v34 = vpack.c.bf16 %v3965_v13, %v3964_v25 }
 0x76a   : > { %13676 = vrcp.f32 %v3793_v53  ;;  %v4275_v37 = vsel %vm2860_vm14, %v4266_v28, %v4274_v58  ;;  %v4013_v32 = vpack.c.bf16 %v3963_v60, %v3962_v6  ;;  %v3966_v26 = vmul.f32 %v13659_v62, %v15567_v5  ;;  %v18672_v62 = vld [vmem:[#allocation34_spill] sm:$0xff] }
 0x76b   : > { %v13661_v4 = vpop.eup %13660  ;;  %13678 = vpow2.f32 %v3714_v0  ;;  %v15811_v51 = vpop.xlane.xlu0 %3801  ;;  %12381 = vmatprep.mubr.msk.bf16.mxu1 %vm3367_vm2, %v4275_v37  ;;  %v4415_v63 = vrot.slane %v4014_v34, 2 }
 0x76c   : > { %v3967_v21 = vmul.f32 %v13661_v4, %v15571_v61  ;;  %12388 = vmatpush3.bf16.msra.mxu0 %v18670_v48  ;;  %v4414_v36 = vrot.slane %v4013_v32, 2  ;;  %v4277_v52 = vshrl.u32 %v4013_v32, 16  ;;  %v4280_v54 = vshll.u32 %v4013_v32, 16  ;;  %v18674_v4 = vld [vmem:[#allocation37_spill] sm:$0xff] }
 0x76d   : > { %v13663_v14 = vpop.eup %13662  ;;  %12401 = vmatprep.subr.bf16.mxu0 %v4582_v9  ;;  %v3799_v49 = vpop.xlane.xlu1 %3798  ;;  %v4804_v35 = vand.u32 %v18674_v4, %v18664_v30 }
 0x76e   : > { %13680 = vrcp.f32 %v3799_v49  ;;  %v4416_v20 = vsel %vm2489_vm13, %v4414_v36, %v4415_v63  ;;  %v4279_v55 = vrot.slane %v4277_v52, 3  ;;  %v4015_v5 = vpack.c.bf16 %v3967_v21, %v3966_v26 }
 0x76f   : > { %v13665_v16 = vpop.eup %13664  ;;  %v3796_v45 = vpop.xlane.xlu0 %3795  ;;  %12389 = vmatprep.mubr.msk.bf16.mxu0 %vm3367_vm2, %v4416_v20  ;;  %v4282_v17 = vrot.slane %v4280_v54, 4  ;;  %v3968_v27 = vmul.f32 %v13663_v14, %v15575_v47 }
 0x770   : > { %13682 = vrcp.f32 %v3796_v45  ;;  %v4417_v61 = vrot.slane %v4015_v5, 2  ;;  %v3969_v0 = vmul.f32 %v13665_v16, %v15579_v19  ;;  %v15820_v59 = vpop.eup %13666  ;;  %v4486_v24 = vshll.u32 %v4015_v5, 16  ;;  %v18676_v45 = vld [vmem:[#allocation38_spill] sm:$0xff] }
 0x771   : > { %v4283_v40 = vor.u32 %v4282_v17, %v4279_v55  ;;  %v15822_v42 = vpop.eup %13668  ;;  %v3863_v47 = vsel %vm3367_vm2, %v15820_v59, 0.0  ;;  %v4484_v19 = vshrl.u32 %v4015_v5, 16  ;;  %13684 = vrcp.f32 %v15811_v51 }
 0x772   : > { %v4418_v12 = vsel %vm2489_vm13, %v4415_v63, %v4417_v61  ;;  %v4016_v23 = vpack.c.bf16 %v3969_v0, %v3968_v27  ;;  %v4488_v6 = vrot.slane %v4486_v24, 1  ;;  %v3878_v21 = vsel %vm3367_vm2, %v15822_v42, 0.0 }
 0x773   : > { %v13671_v57 = vpop.eup %13670  ;;  %v4284_v1 = vsel %vm2860_vm14, %v4274_v58, %v4283_v40  ;;  %12390 = vmatmul.mubr.msk.bf16.vlgmr.msra.gmra.mxu0 %vm3367_vm2, %v4418_v12  ;;  %v18673_v58 = vld [vmem:[#allocation35_spill] sm:$0xff]  ;;  %v18677_v40 = vld [vmem:[#allocation40_spill] sm:$0xff] }
 0x774   : > { %v13673_v25 = vpop.eup %13672  ;;  %12382 = vmatmul.mubr.msk.bf16.vlgmr.msra.gmra.mxu1 %vm3367_vm2, %v4284_v1  ;;  %12402 = vmatpush3.bf16.msra.mxu0 %v4582_v9  ;;  %v4491_v13 = vshll.u32 %v4016_v23, 16  ;;  %v4495_v60 = vshrl.u32 %v4016_v23, 16  ;;  %v4489_v48 = vor.u32 %v4488_v6, %v4484_v19  ;;  %v3971_v37 = vmul.f32 %v13671_v57, %v15587_v44  ;;  %v18675_v9 = vld [vmem:[#allocation36_spill] sm:$0xff] }
 0x775   : > { %v13675_v28 = vpop.eup %13674  ;;  %12394 = vmatpush3.bf16.msra.mxu1 %v15791_v39  ;;  %3864 = vadd.xlane.f32.xlu1 %v3863_v47  ;;  %v4672_v39 = vand.u32 %v18675_v9, %v18664_v30  ;;  %v3972_v26 = vmul.f32 %v13673_v25, %v15583_v41  ;;  %v4565_v14 = vrot.slane %v4016_v23, 7  ;;  %v4894_v24 = vand.u32 %v18677_v40, %v18664_v30 }
 0x776   : > { %12395 = vmatprep.subr.bf16.mxu1 %v18672_v62  ;;  %12403 = vmatprep.subr.bf16.mxu0 %v18673_v58  ;;  %v4493_v53 = vrot.slane %v4491_v13, 1  ;;  %v3970_v34 = vmul.f32 %v13675_v28, %v15591_v15 }
 0x777   : > { %v13677_v32 = vpop.eup %13676 }
 0x778   : > { %v15842_v36 = vpop.eup %13678  ;;  %v3973_v63 = vmul.f32 %v13677_v32, %v15595_v2  ;;  %12404 = vmatpush3.bf16.msra.mxu0 %v18673_v58  ;;  %v4494_v44 = vsel %vm4482_vm3, %v4489_v48, %v4493_v53  ;;  %v4497_v15 = vor.u32 %v4495_v60, %v4493_v53  ;;  %v4017_v52 = vpack.c.bf16 %v3971_v37, %v3970_v34 }
 0x779   : > { %12396 = vmatpush3.bf16.msra.mxu1 %v18672_v62  ;;  %3879 = vadd.xlane.f32.xlu1 %v3878_v21  ;;  %v3887_v2 = vsel %vm3367_vm2, %v15842_v36, 0.0 }
 0x77a   : > { %12409 = vmatprep.subr.bf16.mxu1 %v4672_v39  ;;  %12417 = vmatprep.subr.bf16.mxu0 %v4804_v35  ;;  %v4566_v41 = vrot.slane %v4017_v52, 7  ;;  %v4018_v49 = vpack.c.bf16 %v3973_v63, %v3972_v26 }
 0x77b   : > { %v13681_v54 = vpop.eup %13680  ;;  %12397 = vmatprep.mubr.msk.bf16.mxu1 %vm3367_vm2, %v4494_v44 }
 0x77c   : > { %12398 = vmatmul.mubr.msk.bf16.vlgmr.msra.gmra.mxu1 %vm3367_vm2, %v4497_v15  ;;  %v4567_v20 = vsel %vm2804_vm12, %v4565_v14, %v4566_v41  ;;  %v4568_v55 = vrot.slane %v4018_v49, 7  ;;  %v3975_v16 = vmul.f32 %v13681_v54, %v15603_v18  ;;  %v4635_v27 = vshrl.u32 %v4018_v49, 16  ;;  %v18678_v18 = vld [vmem:[#allocation42_spill] sm:$0xff] }
 0x77d   : > { %v13683_v5 = vpop.eup %13682  ;;  %12410 = vmatpush3.bf16.msra.mxu1 %v4672_v39  ;;  %3888 = vadd.xlane.f32.xlu1 %v3887_v2  ;;  %v4638_v0 = vshll.u32 %v4018_v49, 16 }
 0x77e   : > { %12411 = vmatprep.subr.bf16.mxu1 %v18676_v45  ;;  %12405 = vmatprep.mubr.msk.bf16.mxu0 %vm3367_vm2, %v4567_v20  ;;  %v4569_v17 = vsel %vm2804_vm12, %v4566_v41, %v4568_v55  ;;  %v3974_v61 = vmul.f32 %v13683_v5, %v15607_v46  ;;  %v4637_v23 = vrot.slane %v4635_v27, 5  ;;  %v18679_v46 = vld [vmem:[#allocation44_spill] sm:$0xff]  ;;  %v13685_v34 = vpop.eup %13684  ;;  %v18681_v27 = vld [vmem:[#allocation41_spill] sm:$0xff] }
 0x77f   : > { %12406 = vmatmul.mubr.msk.bf16.vlgmr.msra.gmra.mxu0 %vm3367_vm2, %v4569_v17  ;;  %v4640_v57 = vrot.slane %v4638_v0, 6  ;;  %v15865_v25 = vand.u32 %v18679_v46, %v18664_v30  ;;  %v3976_v4 = vmul.f32 %v13685_v34, %v15599_v3  ;;  %v15885_v0 = vand.u32 %v18681_v27, %v18664_v30 }
 0x780   : > { %12418 = vmatpush3.bf16.msra.mxu0 %v4804_v35  ;;  %v4019_v12 = vpack.c.bf16 %v3975_v16, %v3974_v61 }
 0x781   : > { %12412 = vmatpush3.bf16.msra.mxu1 %v18676_v45  ;;  %12419 = vmatprep.subr.bf16.mxu0 %v18678_v18  ;;  %v4641_v13 = vor.u32 %v4640_v57, %v4637_v23  ;;  %v18680_v45 = vld [vmem:[#allocation39_spill] sm:$0xff] }
 0x782   : > { %12425 = vmatprep.subr.bf16.mxu1 %v4894_v24  ;;  %v4643_v1 = vshrl.u32 %v4019_v12, 16  ;;  %v4646_v6 = vshll.u32 %v4019_v12, 16 }
 0x784   : > { %12420 = vmatpush3.bf16.msra.mxu0 %v18678_v18  ;;  %v4645_v47 = vrot.slane %v4643_v1, 5  ;;  %v4648_v19 = vrot.slane %v4646_v6, 6 }
 0x785   : > { %12433 = vmatprep.subr.bf16.mxu0 %v15865_v25 }
 0x786   : > { %v4649_v28 = vor.u32 %v4648_v19, %v4645_v47 }
 0x788   : > { %v4650_v60 = vsel %vm18502_vm4, %v4641_v13, %v4649_v28 }
 0x789   : > { %12413 = vmatprep.mubr.msk.bf16.mxu1 %vm3367_vm2, %v4650_v60 }
 0x78e   : > { %5329 = vrot.lane.b32.xlu1 %v18669_v50, %s14144_s26 }
 0x793   : > { %v3811_v62 = vpop.xlane.xlu0 %3810 }
 0x797   : > { %v3805_v58 = vpop.xlane.xlu1 %3804 }
 0x798   : > { %13686 = vrcp.f32 %v3805_v58 }
 0x799   : > { %13688 = vrcp.f32 %v3811_v62 }
 0x79b   : > { %v3808_v48 = vpop.xlane.xlu1 %3807 }
 0x79c   : > { %13690 = vrcp.f32 %v3808_v48 }
 0x7a0   : > { %v3814_v53 = vpop.xlane.xlu1 %3813 }
 0x7a1   : > { %13692 = vrcp.f32 %v3814_v53 }
 0x7a4   : > { %v3823_v37 = vpop.xlane.xlu1 %3822 }
 0x7a5   : > { %v13687_v32 = vpop.eup %13686 }
 0x7a6   : > { %v3977_v35 = vmul.f32 %v13687_v32, %v15624_v56  ;;  %v3817_v9 = vpop.xlane.xlu0 %3816  ;;  %v13689_v39 = vpop.eup %13688 }
 0x7a7   : > { %13694 = vrcp.f32 %v3817_v9  ;;  %v3979_v52 = vmul.f32 %v13689_v39, %v15618_v29 }
 0x7a8   : > { %v3856_v50 = vpop.xlane.xlu1 %3855  ;;  %v4020_v51 = vpack.c.bf16 %v3977_v35, %v3976_v4  ;;  %13696 = vrcp.f32 %v3823_v37  ;;  %v18683_v4 = vld [vmem:[#allocation53_spill] sm:$0xff] }
 0x7a9   : > { %v13691_v26 = vpop.eup %13690  ;;  %v15899_v35 = vand.u32 %v18683_v4, %v18664_v30  ;;  %v18693_v4 = vld [vmem:[#allocation49_spill] sm:$0xff] }
 0x7aa   : > { %v3820_v21 = vpop.xlane.xlu0 %3819  ;;  %v4652_v63 = vshrl.u32 %v4020_v51, 16  ;;  %v4655_v44 = vshll.u32 %v4020_v51, 16  ;;  %v3978_v15 = vmul.f32 %v13691_v26, %v15629_v10  ;;  %v4787_v2 = vrot.slane %v4020_v51, 4 }
 0x7ab   : > { %13698 = vrcp.f32 %v3820_v21 }
 0x7ac   : > { %v3850_v14 = vpop.xlane.xlu1 %3849  ;;  %v4654_v41 = vrot.slane %v4652_v63, 5  ;;  %v4657_v3 = vrot.slane %v4655_v44, 6  ;;  %v4021_v49 = vpack.c.bf16 %v3979_v52, %v3978_v15 }
 0x7ae   : > { %v3853_v56 = vpop.xlane.xlu0 %3852  ;;  %v4658_v54 = vor.u32 %v4657_v3, %v4654_v41  ;;  %v4788_v20 = vrot.slane %v4021_v49, 4  ;;  %v13693_v29 = vpop.eup %13692 }
 0x7af   : > { %v3980_v40 = vmul.f32 %v13693_v29, %v15637_v31 }
 0x7b0   : > { %v3829_v55 = vpop.xlane.xlu1 %3828  ;;  %v4659_v5 = vsel %vm18502_vm4, %v4649_v28, %v4658_v54  ;;  %v4789_v16 = vsel %vm1907_vm15, %v4787_v2, %v4788_v20  ;;  %vm18503_vm4 = vsmask.f32 6400 }
 0x7b1   : > { %13700 = vrcp.f32 %v3829_v55  ;;  %12414 = vmatmul.mubr.msk.bf16.vlgmr.msra.gmra.mxu1 %vm3367_vm2, %v4659_v5  ;;  %12421 = vmatprep.mubr.msk.bf16.mxu0 %vm3367_vm2, %v4789_v16  ;;  %v18684_v16 = vld [vmem:[#allocation43_spill] sm:$0xff] }
 0x7b2   : > { %12426 = vmatpush3.bf16.msra.mxu1 %v4894_v24  ;;  %v3826_v10 = vpop.xlane.xlu0 %3825 }
 0x7b3   : > { %13702 = vrcp.f32 %v3826_v10  ;;  %12427 = vmatprep.subr.bf16.mxu1 %v18680_v45 }
 0x7b4   : > { %v13695_v17 = vpop.eup %13694  ;;  %v3832_v61 = vpop.xlane.xlu1 %3831  ;;  %13704 = vrcp.f32 %v3856_v50 }
 0x7b5   : > { %v3981_v12 = vmul.f32 %v13695_v17, %v15648_v22  ;;  %v13697_v18 = vpop.eup %13696  ;;  %13706 = vrcp.f32 %v3853_v56  ;;  %v18685_v17 = vld [vmem:[#allocation55_spill] sm:$0xff] }
 0x7b6   : > { %12428 = vmatpush3.bf16.msra.mxu1 %v18680_v45  ;;  %v3983_v46 = vmul.f32 %v13697_v18, %v15642_v33  ;;  %v3877_v19 = vpop.xlane.xlu0 %3876  ;;  %v18682_v33 = vld [vmem:[#allocation47_spill] sm:$0xff]  ;;  %13708 = vrcp.f32 %v3832_v61  ;;  %v18687_v18 = vld [vmem:[#allocation48_spill] sm:$0xff] }
 0x7b7   : > { %12441 = vmatprep.subr.bf16.mxu1 %v15885_v0  ;;  %v4022_v24 = vpack.c.bf16 %v3981_v12, %v3980_v40  ;;  %13710 = vrcp.f32 %v3850_v14  ;;  %v18686_v40 = vld [vmem:[#allocation45_spill] sm:$0xff] }
 0x7b8   : > { %v13699_v23 = vpop.eup %13698  ;;  %v3871_v57 = vpop.xlane.xlu1 %3870  ;;  %v15916_v12 = vand.u32 %v18686_v40, %v18664_v30 }
 0x7b9   : > { %v4790_v1 = vrot.slane %v4022_v24, 4  ;;  %v3982_v6 = vmul.f32 %v13699_v23, %v15650_v7  ;;  %v4857_v47 = vshrl.u32 %v4022_v24, 16  ;;  %v4860_v13 = vshll.u32 %v4022_v24, 16 }
 0x7bb   : > { %v4791_v31 = vsel %vm1907_vm15, %v4788_v20, %v4790_v1  ;;  %v4023_v28 = vpack.c.bf16 %v3983_v46, %v3982_v6  ;;  %v4859_v60 = vrot.slane %v4857_v47, 2  ;;  %v4862_v62 = vrot.slane %v4860_v13, 3  ;;  %v18688_v47 = vld [vmem:[#allocation54_spill] sm:$0xff]  ;;  %v18689_v13 = vld [vmem:[#allocation56_spill] sm:$0xff] }
 0x7bc   : > { %12422 = vmatmul.mubr.msk.bf16.vlgmr.msra.gmra.mxu0 %vm3367_vm2, %v4791_v31  ;;  %v3874_v22 = vpop.xlane.xlu1 %3873  ;;  %v3844_v7 = vpop.xlane.xlu0 %3843 }
 0x7bd   : > { %12434 = vmatpush3.bf16.msra.mxu0 %v15865_v25  ;;  %v4865_v58 = vshrl.u32 %v4023_v28, 16  ;;  %v4868_v48 = vshll.u32 %v4023_v28, 16  ;;  %v4863_v39 = vor.u32 %v4862_v62, %v4859_v60 }
 0x7be   : > { %v13701_v53 = vpop.eup %13700  ;;  %12435 = vmatprep.subr.bf16.mxu0 %v18682_v33 }
 0x7bf   : > { %v4867_v34 = vrot.slane %v4865_v58, 2  ;;  %v4870_v37 = vrot.slane %v4868_v48, 3  ;;  %v3985_v25 = vmul.f32 %v13701_v53, %v15670_v43  ;;  %v18691_v58 = vld [vmem:[#allocation60_spill] sm:$0xff] }
 0x7c0   : > { %v13703_v32 = vpop.eup %13702  ;;  %v3835_v9 = vpop.xlane.xlu1 %3834 }
 0x7c1   : > { %v3984_v50 = vmul.f32 %v13703_v32, %v15674_v11  ;;  %12436 = vmatpush3.bf16.msra.mxu0 %v18682_v33  ;;  %13712 = vrcp.f32 %v3835_v9  ;;  %v4871_v51 = vor.u32 %v4870_v37, %v4867_v34  ;;  %v13705_v49 = vpop.eup %13704  ;;  %v18692_v33 = vld [vmem:[#allocation52_spill] sm:$0xff] }
 0x7c2   : > { %13714 = vrcp.f32 %v3877_v19  ;;  %12449 = vmatprep.subr.bf16.mxu0 %v15899_v35  ;;  %v3841_v26 = vpop.xlane.xlu0 %3840  ;;  %v13707_v54 = vpop.eup %13706 }
 0x7c3   : > { %13716 = vrcp.f32 %v3844_v7  ;;  %v4872_v21 = vsel %vm18500_vm5, %v4863_v39, %v4871_v51  ;;  %v4024_v63 = vpack.c.bf16 %v3985_v25, %v3984_v50  ;;  %v13709_v20 = vpop.eup %13708  ;;  %v3993_v29 = vmul.f32 %v13707_v54, %v15660_v38  ;;  %v18694_v50 = vld [vmem:[#allocation59_spill] sm:$0xff] }
 0x7c4   : > { %13718 = vrcp.f32 %v3874_v22  ;;  %12429 = vmatprep.mubr.msk.bf16.mxu1 %vm3367_vm2, %v4872_v21  ;;  %v3847_v44 = vpop.xlane.xlu1 %3846  ;;  %v13711_v55 = vpop.eup %13710  ;;  %v3986_v45 = vmul.f32 %v13709_v20, %v15685_v8  ;;  %v18690_v22 = vld [vmem:[#allocation46_spill] sm:$0xff] }
 0x7c5   : > { %13720 = vrcp.f32 %v3847_v44  ;;  %v4874_v43 = vshrl.u32 %v4024_v63, 16  ;;  %v4877_v15 = vshll.u32 %v4024_v63, 16  ;;  %v3992_v24 = vmul.f32 %v13711_v55, %v18687_v18 }
 0x7c6   : > { %13722 = vrcp.f32 %v3841_v26  ;;  %v3859_v11 = vpop.xlane.xlu0 %3858  ;;  %v4948_v6 = vrot.slane %v4024_v63, 1  ;;  %v3994_v60 = vmul.f32 %v13705_v49, %v18690_v22  ;;  %v18695_v26 = vld [vmem:[#allocation58_spill] sm:$0xff] }
 0x7c7   : > { %13724 = vrcp.f32 %v3859_v11  ;;  %v4876_v52 = vrot.slane %v4874_v43, 2  ;;  %v4879_v14 = vrot.slane %v4877_v15, 3  ;;  %v4028_v38 = vpack.c.bf16 %v3993_v29, %v3992_v24  ;;  %v18696_v15 = vld [vmem:[#allocation51_spill] sm:$0xff] }
 0x7c8   : > { %13726 = vrcp.f32 %v3871_v57  ;;  %v3838_v41 = vpop.xlane.xlu1 %3837 }
 0x7c9   : > { %13728 = vrcp.f32 %v3838_v41  ;;  %v4880_v3 = vor.u32 %v4879_v14, %v4876_v52  ;;  %v5163_v32 = vrot.slane %v4028_v38, 6  ;;  %v18697_v14 = vld [vmem:[#allocation57_spill] sm:$0xff] }
 0x7ca   : > { %v3868_v56 = vpop.xlane.xlu0 %3867 }
 0x7cb   : > { %13730 = vrcp.f32 %v3868_v56  ;;  %v4881_v2 = vsel %vm18500_vm5, %v4871_v51, %v4880_v3  ;;  %v18698_v3 = vld [vmem:[#allocation61_spill] sm:$0xff]  ;;  %vm18501_vm5 = vsmask.f32 256 }
 0x7cc   : > { %12430 = vmatmul.mubr.msk.bf16.vlgmr.msra.gmra.mxu1 %vm3367_vm2, %v4881_v2  ;;  %v5332_v44 = vpop.permute.xlu1 %5331 }
 0x7cd   : > { %12442 = vmatpush3.bf16.msra.mxu1 %v15885_v0  ;;  %v5341_v20 = vand.u32 %v5332_v44, %v18664_v30 }
 0x7ce   : > { %v13713_v5 = vpop.eup %13712  ;;  %12443 = vmatprep.subr.bf16.mxu1 %v18684_v16  ;;  %v15920_v1 = vpop.xlane.xlu0 %3861 }
 0x7cf   : > { %v13715_v10 = vpop.eup %13714  ;;  %v3987_v61 = vmul.f32 %v13713_v5, %v18685_v17  ;;  %13732 = vrcp.f32 %v15920_v1  ;;  %v18700_v1 = vld [vmem:[#allocation62_spill] sm:$0xff] }
 0x7d0   : > { %v13717_v27 = vpop.eup %13716  ;;  %v4001_v9 = vmul.f32 %v13715_v10, %v18693_v4 }
 0x7d1   : > { %v13719_v23 = vpop.eup %13718  ;;  %12444 = vmatpush3.bf16.msra.mxu1 %v18684_v16  ;;  %v4025_v0 = vpack.c.bf16 %v3987_v61, %v3986_v45  ;;  %v3990_v19 = vmul.f32 %v13717_v27, %v18688_v47 }
 0x7d2   : > { %v13721_v57 = vpop.eup %13720  ;;  %12457 = vmatprep.subr.bf16.mxu1 %v15916_v12  ;;  %v4000_v34 = vmul.f32 %v13719_v23, %v18692_v33  ;;  %v3883_v43 = vpop.xlane.xlu0 %3882 }
 0x7d3   : > { %v13723_v8 = vpop.eup %13722  ;;  %v4949_v46 = vrot.slane %v4025_v0, 1  ;;  %v3991_v31 = vmul.f32 %v13721_v57, %v18689_v13  ;;  %v5016_v5 = vshrl.u32 %v4025_v0, 16 }
 0x7d4   : > { %v13725_v28 = vpop.eup %13724  ;;  %v3989_v21 = vmul.f32 %v13723_v8, %v18695_v26  ;;  %v4032_v56 = vpack.c.bf16 %v4001_v9, %v4000_v34 }
 0x7d5   : > { %v13727_v62 = vpop.eup %13726  ;;  %v3995_v48 = vmul.f32 %v13725_v28, %v18691_v58  ;;  %v4950_v53 = vsel %vm1292_vm6, %v4948_v6, %v4949_v46  ;;  %v4027_v7 = vpack.c.bf16 %v3991_v31, %v3990_v19  ;;  %v5018_v24 = vrot.slane %v5016_v5, 7  ;;  %v18699_v6 = vld [vmem:[#allocation50_spill] sm:$0xff] }
 0x7d6   : > { %v13729_v37 = vpop.eup %13728  ;;  %12437 = vmatprep.mubr.msk.bf16.mxu0 %vm3367_vm2, %v4950_v53  ;;  %v3999_v11 = vmul.f32 %v13727_v62, %v18696_v15  ;;  %v15945_v10 = vrot.slane %v4032_v56, 3  ;;  %v3886_v61 = vpop.xlane.xlu0 %3885 }
 0x7d7   : > { %12438 = vmatmul.mubr.msk.bf16.vlgmr.msra.gmra.mxu0 %vm3367_vm2, %v4949_v46  ;;  %v5162_v39 = vrot.slane %v4027_v7, 6  ;;  %v15932_v25 = vpack.c.bf16 %v3995_v48, %v3994_v60  ;;  %v3988_v51 = vmul.f32 %v13729_v37, %v18694_v50  ;;  %v5028_v52 = vshrl.u32 %v4027_v7, 16  ;;  %v18701_v50 = vld [vmem:[#allocation64_spill] sm:$0xff] }
 0x7d8   : > { %v13731_v63 = vpop.eup %13730  ;;  %12450 = vmatpush3.bf16.msra.mxu0 %v15899_v35  ;;  %v5031_v40 = vshll.u32 %v4027_v7, 16 }
 0x7d9   : > { %12451 = vmatprep.subr.bf16.mxu0 %v18697_v14  ;;  %v5164_v41 = vsel %vm1276_vm10, %v5162_v39, %v5163_v32  ;;  %v3998_v49 = vmul.f32 %v13731_v63, %v18698_v3  ;;  %v4026_v54 = vpack.c.bf16 %v3989_v21, %v3988_v51  ;;  %v5165_v2 = vrot.slane %v15932_v25, 6 }
 0x7da   : > { %12453 = vmatprep.mubr.msk.bf16.mxu0 %vm3367_vm2, %v5164_v41  ;;  %v5030_v16 = vrot.slane %v5028_v52, 7  ;;  %v5413_v8 = vpop.permute.xlu0 %5412  ;;  %v5232_v22 = vshrl.u32 %v15932_v25, 16  ;;  %v5235_v60 = vshll.u32 %v15932_v25, 16  ;;  %v18702_v52 = vld [vmem:[#allocation63_spill] sm:$0xff] }
 0x7db   : > { %v4031_v55 = vpack.c.bf16 %v3999_v11, %v3998_v49  ;;  %v5020_v35 = vshrl.u32 %v4026_v54, 16  ;;  %v5023_v17 = vshll.u32 %v4026_v54, 16  ;;  %v5166_v27 = vsel %vm1276_vm10, %v5163_v32, %v5165_v2 }
 0x7dc   : > { %12452 = vmatpush3.bf16.msra.mxu0 %v18697_v14  ;;  %v5033_v0 = vor.u32 %v5031_v40, %v5030_v16  ;;  %v5422_v46 = vand.u32 %v5413_v8, %v18664_v30  ;;  %v13733_v31 = vpop.eup %13732  ;;  %v5234_v37 = vrot.slane %v5232_v22, 4  ;;  %v5237_v32 = vrot.slane %v5235_v60, 5 }
 0x7dd   : > { %12465 = vmatprep.subr.bf16.mxu0 %v5341_v20  ;;  %v5324_v29 = vrot.slane %v4031_v55, 3  ;;  %v5022_v45 = vrot.slane %v5020_v35, 7  ;;  %v5249_v62 = vshrl.u32 %v4031_v55, 16  ;;  %v5252_v58 = vshll.u32 %v4031_v55, 16 }
 0x7de   : > { %v3996_v48 = vmul.f32 %v13733_v31, %v18700_v1 }
 0x7df   : > { %12454 = vmatmul.mubr.msk.bf16.vlgmr.msra.gmra.mxu0 %vm3367_vm2, %v5166_v27  ;;  %v5326_v18 = vsel %vm1259_vm1, %v5324_v29, %v15945_v10  ;;  %v5025_v23 = vor.u32 %v5023_v17, %v5022_v45  ;;  %v5034_v38 = vsel %vm18501_vm5, %v5022_v45, %v5033_v0  ;;  %v5251_v4 = vrot.slane %v5249_v62, 4  ;;  %v5411_v45 = vpop.permute.xlu0 %5410 }
 0x7e0   : > { %12466 = vmatpush3.bf16.msra.mxu0 %v5341_v20  ;;  %12469 = vmatprep.mubr.msk.bf16.mxu0 %vm3367_vm2, %v5326_v18  ;;  %v5254_v9 = vrot.slane %v5252_v58, 5 }
 0x7e1   : > { %v5026_v57 = vsel %vm18501_vm5, %v5018_v24, %v5025_v23  ;;  %vm18504_vm5 = vsmask.f32 3328 }
 0x7e2   : > { %12445 = vmatprep.mubr.msk.bf16.mxu1 %vm3367_vm2, %v5026_v57  ;;  %v5255_v11 = vor.u32 %v5254_v9, %v5251_v4 }
 0x7e3   : > { %12446 = vmatmul.mubr.msk.bf16.vlgmr.msra.gmra.mxu1 %vm3367_vm2, %v5034_v38 }
 0x7e4   : > { %12458 = vmatpush3.bf16.msra.mxu1 %v15916_v12 }
 0x7e5   : > { %12459 = vmatprep.subr.bf16.mxu1 %v18699_v6 }
 0x7e8   : > { %12460 = vmatpush3.bf16.msra.mxu1 %v18699_v6 }
 0x7e9   : > { %12473 = vmatprep.subr.bf16.mxu1 %v5422_v46 }
 0x7fe   : > { %v3865_v47 = vpop.xlane.xlu1 %3864 }
 0x7ff   : > { %13734 = vrcp.f32 %v3865_v47 }
 0x800   : > { %13736 = vrcp.f32 %v3883_v43 }
 0x802   : > { %v3880_v19 = vpop.xlane.xlu1 %3879 }
 0x803   : > { %13738 = vrcp.f32 %v3880_v19 }
 0x804   : > { %13740 = vrcp.f32 %v3886_v61 }
 0x806   : > { %v3889_v13 = vpop.xlane.xlu1 %3888 }
 0x807   : > { %13742 = vrcp.f32 %v3889_v13 }
 0x80a   : > { %v5330_v28 = vpop.permute.xlu1 %5329 }
 0x80b   : > { %12467 = vmatprep.subr.bf16.mxu0 %v5330_v28 }
 0x80c   : > { %v13735_v12 = vpop.eup %13734  ;;  %12468 = vmatpush3.bf16.msra.mxu0 %v5330_v28 }
 0x80d   : > { %v3997_v53 = vmul.f32 %v13735_v12, %v15820_v59  ;;  %v13737_v7 = vpop.eup %13736  ;;  %v5238_v59 = vor.u32 %v5237_v32, %v5234_v37 }
 0x80e   : > { %v4003_v51 = vmul.f32 %v13737_v7, %v18701_v50 }
 0x80f   : > { %v4030_v33 = vpack.c.bf16 %v3997_v53, %v3996_v48 }
 0x810   : > { %v13739_v34 = vpop.eup %13738  ;;  %v15975_v5 = vpop.f32.mrf.mxu0 }
 0x811   : > { %v13741_v39 = vpop.eup %13740  ;;  %v4002_v26 = vmul.f32 %v13739_v34, %v15822_v42  ;;  %v5240_v21 = vshrl.u32 %v4030_v33, 16  ;;  %v5243_v25 = vshll.u32 %v4030_v33, 16 }
 0x812   : > { %v4004_v14 = vmul.f32 %v13741_v39, %v18702_v52  ;;  %v15978_v61 = vpop.f32.mrf.mxu0 }
 0x813   : > { %v5242_v63 = vrot.slane %v5240_v21, 4  ;;  %v5245_v44 = vrot.slane %v5243_v25, 5  ;;  %v4033_v43 = vpack.c.bf16 %v4003_v51, %v4002_v26  ;;  %v13400_v25 = vld [vmem:[%s18422_s6 + $0x8] sm:$0xff]  }
 0x814   : > { %v13743_v15 = vpop.eup %13742  ;;  %v15982_v23 = vpop.f32.mrf.mxu0  ;;  %12481 = vmatprep.subr.bf16.mxu0 %v13400_v25 }
 0x815   : > { %v5246_v41 = vor.u32 %v5245_v44, %v5242_v63  ;;  %v5327_v3 = vrot.slane %v4033_v43, 3  ;;  %v4005_v49 = vmul.f32 %v13743_v15, %v15842_v36  ;;  %v5394_v56 = vshrl.u32 %v4033_v43, 16  ;;  %v13401_v63 = vld [vmem:[%s18422_s6] sm:$0xff]  }
 0x816   : > { %v5397_v54 = vshll.u32 %v4033_v43, 16  ;;  %v15985_v38 = vpop.f32.mrf.mxu0 }
 0x817   : > { %v5247_v2 = vsel %vm18504_vm5, %v5238_v59, %v5246_v41  ;;  %v5328_v42 = vsel %vm1259_vm1, %v15945_v10, %v5327_v3  ;;  %v5256_v20 = vsel %vm18504_vm5, %v5246_v41, %v5255_v11  ;;  %v4034_v55 = vpack.c.bf16 %v4005_v49, %v4004_v14 }
 0x818   : > { %12461 = vmatprep.mubr.msk.bf16.mxu1 %vm3367_vm2, %v5247_v2  ;;  %12470 = vmatmul.mubr.msk.bf16.vlgmr.msra.gmra.mxu0 %vm3367_vm2, %v5328_v42  ;;  %v5396_v35 = vrot.slane %v5394_v56, 1  ;;  %v5399_v36 = vrot.slane %v5397_v54, 2  ;;  %vm18505_vm5 = vcmask 195584  }
 0x819   : > { %12462 = vmatmul.mubr.msk.bf16.vlgmr.msra.gmra.mxu1 %vm3367_vm2, %v5256_v20  ;;  %v5402_v16 = vshrl.u32 %v4034_v55, 16  ;;  %v5405_v29 = vshll.u32 %v4034_v55, 16  ;;  %12482 = vmatpush3.bf16.msra.mxu0 %v13400_v25 }
 0x81a   : > { %12474 = vmatpush3.bf16.msra.mxu1 %v5422_v46  ;;  %v5400_v27 = vor.u32 %v5399_v36, %v5396_v35  ;;  %12483 = vmatprep.subr.bf16.mxu0 %v13401_v63 }
 0x81b   : > { %12475 = vmatprep.subr.bf16.mxu1 %v5411_v45  ;;  %v5404_v17 = vrot.slane %v5402_v16, 1  ;;  %v5407_v10 = vrot.slane %v5405_v29, 2 }
 0x81d   : > { %v5408_v40 = vor.u32 %v5407_v10, %v5404_v17  ;;  %12484 = vmatpush3.bf16.msra.mxu0 %v13401_v63 }
 0x81e   : > { %12476 = vmatpush3.bf16.msra.mxu1 %v5411_v45 }
 0x81f   : > { %v5409_v18 = vsel %vm18503_vm4, %v5400_v27, %v5408_v40  ;;  %12853 = vmatprep.subr.bf16.mxu1 %v13400_v25  ;;  %vm4400_vm4 = vcmask 130048  }
 0x820   : > { %v12367_v24 = vpop.f32.mrf.mxu1  ;;  %12477 = vmatprep.mubr.msk.bf16.mxu1 %vm3367_vm2, %v5409_v18 }
 0x821   : > { %12478 = vmatmul.mubr.msk.bf16.vlgmr.msra.gmra.mxu1 %vm3367_vm2, %v5408_v40 }
 0x822   : > { %v4173_v0 = vpop.f32.mrf.mxu1  ;;  %12855 = vmatpush3.bf16.msra.mxu1 %v13400_v25 }
 0x823   : > { %12854 = vmatprep.subr.bf16.mxu1 %v13401_v63 }
 0x824   : > { %v12368_v57 = vpop.f32.mrf.mxu1 }
 0x826   : > { %v4176_v8 = vpop.f32.mrf.mxu1  ;;  %12856 = vmatpush3.bf16.msra.mxu1 %v13401_v63 }
 0x827   : > { %v13007_v6 = vpack.i.bf16 %v12368_v57, %v4176_v8  ;;  %v12375_v46 = vpop.f32.mrf.mxu0 }
 0x829   : > { %13008 = vrot.lane.b32.xlu1 %v13007_v6, %s14148_s25  ;;  %v4244_v47 = vpop.f32.mrf.mxu0 }
 0x82b   : > { %v12376_v19 = vpop.f32.mrf.mxu0 }
 0x82d   : > { %v4247_v13 = vpop.f32.mrf.mxu0 }
 0x82e   : > { %v13012_v31 = vpack.i.bf16 %v12376_v19, %v4247_v13 }
 0x830   : > { %13013 = vrot.lane.b32.xlu0 %v13012_v31, %s14149_s29 }
 0x833   : > { %v15989_v28 = vpop.f32.mrf.mxu0 }
 0x834   : > { %v12383_v12 = vpop.f32.mrf.mxu1 }
 0x835   : > { %v15991_v22 = vpop.f32.mrf.mxu0 }
 0x836   : > { %v4333_v60 = vpop.f32.mrf.mxu1 }
 0x837   : > { %v15993_v58 = vpop.f32.mrf.mxu0 }
 0x838   : > { %v12384_v62 = vpop.f32.mrf.mxu1 }
 0x839   : > { %v15995_v7 = vpop.f32.mrf.mxu0 }
 0x83a   : > { %v4336_v1 = vpop.f32.mrf.mxu1 }
 0x83b   : > { %v13017_v48 = vpack.i.bf16 %v12384_v62, %v4336_v1 }
 0x83c   : > { %v12399_v53 = vpop.f32.mrf.mxu1 }
 0x83d   : > { %13018 = vrot.lane.b32.xlu0 %v13017_v48, %s14150_s30 }
 0x83e   : > { %v4546_v33 = vpop.f32.mrf.mxu1 }
 0x83f   : > { %v13022_v34 = vpack.i.bf16 %v4173_v0, %v4546_v33  ;;  %v12407_v37 = vpop.f32.mrf.mxu0 }
 0x840   : > { %v12400_v32 = vpop.f32.mrf.mxu1 }
 0x841   : > { %13023 = vrot.lane.b32.xlu1 %v13022_v34, %s14148_s25  ;;  %v4618_v4 = vpop.f32.mrf.mxu0  ;;  %v13047_v52 = vpack.i.bf16 %v12400_v32, %v12399_v53 }
 0x842   : > { %v4549_v9 = vpop.f32.mrf.mxu1  ;;  %v13032_v39 = vpack.i.bf16 %v4244_v47, %v4618_v4 }
 0x843   : > { %v13027_v50 = vpack.i.bf16 %v4549_v9, %v12367_v24  ;;  %v12408_v51 = vpop.f32.mrf.mxu0 }
 0x844   : > { %13033 = vrot.lane.b32.xlu0 %v13032_v39, %s14149_s29  ;;  %v13057_v41 = vpack.i.bf16 %v12408_v51, %v12407_v37 }
 0x845   : > { %13028 = vrot.lane.b32.xlu1 %v13027_v50, %s14148_s25  ;;  %v4621_v26 = vpop.f32.mrf.mxu0 }
 0x846   : > { %v13037_v21 = vpack.i.bf16 %v4621_v26, %v12375_v46 }
 0x849   : > { %13038 = vrot.lane.b32.xlu1 %v13037_v21, %s14149_s29 }
 0x871   : > { %v12415_v44 = vpop.f32.mrf.mxu1 }
 0x873   : > { %v4708_v43 = vpop.f32.mrf.mxu1 }
 0x874   : > { %v13042_v15 = vpack.i.bf16 %v4333_v60, %v4708_v43 }
 0x875   : > { %v12416_v59 = vpop.f32.mrf.mxu1 }
 0x876   : > { %13043 = vrot.lane.b32.xlu0 %v13042_v15, %s14150_s30  ;;  %v13062_v3 = vpack.i.bf16 %v12416_v59, %v12415_v44 }
 0x877   : > { %v4711_v11 = vpop.f32.mrf.mxu1 }
 0x878   : > { %v13052_v14 = vpack.i.bf16 %v4711_v11, %v12383_v12 }
 0x87a   : > { %13048 = vrot.lane.b32.xlu0 %v13047_v52, %s14148_s25  ;;  %13053 = vrot.lane.b32.xlu1 %v13052_v14, %s14150_s30 }
 0x87c   : > { %v16013_v49 = vpop.f32.mrf.mxu0 }
 0x87e   : > { %13058 = vrot.lane.b32.xlu1 %v13057_v41, %s14149_s29  ;;  %v16015_v54 = vpop.f32.mrf.mxu0 }
 0x880   : > { %v16017_v20 = vpop.f32.mrf.mxu0 }
 0x882   : > { %13063 = vrot.lane.b32.xlu1 %v13062_v3, %s14150_s30  ;;  %v16019_v36 = vpop.f32.mrf.mxu0 }
 0x88c   : > { %v12431_v56 = vpop.f32.mrf.mxu1 }
 0x88e   : > { %v4930_v2 = vpop.f32.mrf.mxu1 }
 0x890   : > { %v12432_v42 = vpop.f32.mrf.mxu1 }
 0x891   : > { %v13077_v27 = vpack.i.bf16 %v12432_v42, %v12431_v56 }
 0x892   : > { %v4933_v55 = vpop.f32.mrf.mxu1 }
 0x893   : > { %v13067_v35 = vpack.i.bf16 %v4933_v55, %v4930_v2 }
 0x895   : > { %13068 = vrot.lane.b32.xlu0 %v13067_v35, %s14148_s25 }
 0x897   : > { %v12439_v16 = vpop.f32.mrf.mxu0 }
 0x899   : > { %v4999_v29 = vpop.f32.mrf.mxu0 }
 0x89b   : > { %v12440_v45 = vpop.f32.mrf.mxu0  ;;  %v13009_v13 = vpop.permute.xlu1 %13008 }
 0x89c   : > { %v13082_v0 = vpack.i.bf16 %v12440_v45, %v12439_v16  ;;  %v13010_v25 = vunpack.i.l.bf16 %v13009_v13  ;;  %v13011_v41 = vunpack.i.h.bf16 %v13009_v13 }
 0x89d   : > { %v5002_v17 = vpop.f32.mrf.mxu0 }
 0x89e   : > { %v13072_v10 = vpack.i.bf16 %v5002_v17, %v4999_v29  ;;  %v4397_v2 = vsel %vm1900_vm8, %v15985_v38, %v13010_v25 }
 0x89f   : > { %v16027_v6 = vpop.f32.mrf.mxu0 }
 0x8a0   : > { %13073 = vrot.lane.b32.xlu0 %v13072_v10, %s14149_s29 }
 0x8a1   : > { %v16029_v46 = vpop.f32.mrf.mxu0 }
 0x8a2   : > { %v13014_v60 = vpop.permute.xlu0 %13013 }
 0x8a3   : > { %v12447_v40 = vpop.f32.mrf.mxu1  ;;  %v16031_v47 = vpop.f32.mrf.mxu0  ;;  %v13015_v59 = vunpack.i.l.bf16 %v13014_v60  ;;  %v13016_v42 = vunpack.i.h.bf16 %v13014_v60 }
 0x8a4   : > { %13078 = vrot.lane.b32.xlu0 %v13077_v27, %s14148_s25 }
 0x8a5   : > { %v5083_v18 = vpop.f32.mrf.mxu1  ;;  %v16033_v19 = vpop.f32.mrf.mxu0 }
 0x8a6   : > { %5134 = vrot.lane.b32.xlu1 %v5083_v18, %s14150_s30 }
 0x8a7   : > { %v12448_v24 = vpop.f32.mrf.mxu1 }
 0x8a9   : > { %v5086_v57 = vpop.f32.mrf.mxu1 }
 0x8aa   : > { %13083 = vrot.lane.b32.xlu1 %v13082_v0, %s14149_s29  ;;  %v13087_v8 = vpack.i.bf16 %v12447_v40, %v5086_v57  ;;  %v4402_v40 = vsel %vm4400_vm4, %v4397_v2, %v13015_v59 }
 0x8ae   : > { %13088 = vrot.lane.b32.xlu1 %v13087_v8, %s14150_s30 }
 0x8af   : > { %v13019_v37 = vpop.permute.xlu0 %13018 }
 0x8b0   : > { %v13020_v3 = vunpack.i.l.bf16 %v13019_v37  ;;  %v13021_v55 = vunpack.i.h.bf16 %v13019_v37 }
 0x8b3   : > { %v13024_v1 = vpop.permute.xlu1 %13023 }
 0x8b4   : > { %v13026_v63 = vunpack.i.h.bf16 %v13024_v1  ;;  %v13025_v43 = vunpack.i.l.bf16 %v13024_v1 }
 0x8b6   : > { %v13034_v51 = vpop.permute.xlu0 %13033  ;;  %v4396_v35 = vsel %vm1900_vm8, %v15978_v61, %v13026_v63  ;;  %v4771_v29 = vsel %vm1900_vm8, %v15991_v22, %v13025_v43  ;;  %v4399_v61 = vsel %vm1900_vm8, %v15982_v23, %v13011_v41  ;;  %v4407_v22 = vsel %vm18505_vm5, %v4402_v40, %v13020_v3 }
 0x8b7   : > { %v16039_v39 = vpop.permute.xlu1 %13028  ;;  %v13036_v11 = vunpack.i.h.bf16 %v13034_v51  ;;  %v13035_v52 = vunpack.i.l.bf16 %v13034_v51  ;;  %v4404_v8 = vsel %vm4400_vm4, %v4399_v61, %v13016_v42 }
 0x8b8   : > { %v13030_v45 = vunpack.i.l.bf16 %v16039_v39  ;;  %v4409_v1 = vsel %vm18505_vm5, %v4404_v8, %v13021_v55 }
 0x8b9   : > { %v4401_v38 = vsel %vm4400_vm4, %v4396_v35, %v13036_v11  ;;  %v4775_v18 = vsel %vm4400_vm4, %v4771_v29, %v13035_v52 }
 0x8ba   : > { %v4398_v23 = vsel %vm1900_vm8, %v15975_v5, %v13030_v45 }
 0x8bb   : > { %v13039_v56 = vpop.permute.xlu1 %13038 }
 0x8d8   : > { %v16035_v31 = vpop.f32.mrf.mxu0 }
 0x8d9   : > { %v12463_v12 = vpop.f32.mrf.mxu1 }
 0x8da   : > { %v5377_v62 = vpop.f32.mrf.mxu0 }
 0x8db   : > { %v5305_v48 = vpop.f32.mrf.mxu1 }
 0x8dc   : > { %v16037_v53 = vpop.f32.mrf.mxu0 }
 0x8dd   : > { %v12464_v33 = vpop.f32.mrf.mxu1  ;;  %v13112_v13 = vpack.i.bf16 %v16037_v53, %v16035_v31 }
 0x8de   : > { %v5380_v34 = vpop.f32.mrf.mxu0  ;;  %v13107_v26 = vpack.i.bf16 %v12464_v33, %v12463_v12 }
 0x8df   : > { %v13097_v32 = vpack.i.bf16 %v5380_v34, %v5377_v62  ;;  %v5308_v4 = vpop.f32.mrf.mxu1  ;;  %v13041_v34 = vunpack.i.h.bf16 %v13039_v56 }
 0x8e0   : > { %v13092_v9 = vpack.i.bf16 %v5308_v4, %v5305_v48  ;;  %v13031_v48 = vunpack.i.h.bf16 %v16039_v39 }
 0x8e1   : > { %v12479_v50 = vpop.f32.mrf.mxu1  ;;  %13098 = vrot.lane.b32.xlu1 %v13097_v32, %s14149_s29 }
 0x8e2   : > { %13093 = vrot.lane.b32.xlu0 %v13092_v9, %s14148_s25  ;;  %v4772_v39 = vsel %vm1900_vm8, %v15995_v7, %v13031_v48 }
 0x8e3   : > { %v5458_v21 = vpop.f32.mrf.mxu1  ;;  %v4776_v51 = vsel %vm4400_vm4, %v4772_v39, %v13041_v34 }
 0x8e4   : > { %v13102_v44 = vpack.i.bf16 %v5458_v21, %v12448_v24  ;;  %v13040_v24 = vunpack.i.l.bf16 %v13039_v56 }
 0x8e5   : > { %v12480_v15 = vpop.f32.mrf.mxu1  ;;  %13108 = vrot.lane.b32.xlu1 %v13107_v26, %s14148_s25 }
 0x8e6   : > { %v13117_v14 = vpack.i.bf16 %v12480_v15, %v12479_v50  ;;  %13103 = vrot.lane.b32.xlu0 %v13102_v44, %s14150_s30  ;;  %v4403_v37 = vsel %vm4400_vm4, %v4398_v23, %v13040_v24 }
 0x8e7   : > { %v5461_v17 = vpop.f32.mrf.mxu1 }
 0x8e8   : > { %v13044_v16 = vpop.permute.xlu0 %13043 }
 0x8e9   : > { %v13046_v10 = vunpack.i.h.bf16 %v13044_v16  ;;  %v13045_v27 = vunpack.i.l.bf16 %v13044_v16  ;;  %13118 = vrot.lane.b32.xlu1 %v13117_v14, %s14150_s30 }
 0x8ea   : > { %5511 = vrot.lane.b32.xlu0 %v5461_v17, %s14150_s30 }
 0x8eb   : > { %v4406_v0 = vsel %vm18505_vm5, %v4401_v38, %v13046_v10  ;;  %v4779_v57 = vsel %vm18505_vm5, %v4775_v18, %v13045_v27 }
 0x8ec   : > { %v5537_v12 = vrot.slane %v4779_v57, 3  ;;  %v13054_v60 = vpop.permute.xlu1 %13053  ;;  %v5583_v62 = vpack.c.bf16 %v4407_v22, %v4406_v0  ;;  %v13049_v32 = vpop.permute.xlu0 %13048 }
 0x8ed   : > { %v13055_v33 = vunpack.i.l.bf16 %v13054_v60  ;;  %v13056_v31 = vunpack.i.h.bf16 %v13054_v60  ;;  %v13050_v5 = vunpack.i.l.bf16 %v13049_v32  ;;  %v13051_v3 = vunpack.i.h.bf16 %v13049_v32 }
 0x8ee   : > { %v5580_v4 = vsel %vm1259_vm1, %v4409_v1, %v5537_v12  ;;  %13113 = vrot.lane.b32.xlu0 %v13112_v13, %s14149_s29  ;;  %12485 = vmatprep.mubr.msk.bf16.mxu0 %vm630_vm0, %v5583_v62 }
 0x8ef   : > { %v4408_v53 = vsel %vm18505_vm5, %v4403_v37, %v13055_v33  ;;  %v4780_v21 = vsel %vm18505_vm5, %v4776_v51, %v13056_v31  ;;  %v4773_v63 = vsel %vm1900_vm8, %v15989_v28, %v13050_v5  ;;  %v4774_v28 = vsel %vm1900_vm8, %v15993_v58, %v13051_v3 }
 0x8f0   : > { %v5584_v9 = vpack.c.bf16 %v5580_v4, %v4408_v53  ;;  %v13059_v50 = vpop.permute.xlu1 %13058  ;;  %v5538_v43 = vrot.slane %v4780_v21, 3 }
 0x8f1   : > { %v13060_v26 = vunpack.i.l.bf16 %v13059_v50  ;;  %v13061_v56 = vunpack.i.h.bf16 %v13059_v50 }
 0x8f2   : > { %12486 = vmatmul.mubr.msk.bf16.vlgmr.msra.gmra.mxu0 %vm630_vm0, %v5584_v9  ;;  %v5539_v7 = vsel %vm1259_vm1, %v5537_v12, %v5538_v43 }
 0x8f3   : > { %v4777_v15 = vsel %vm4400_vm4, %v4773_v63, %v13060_v26  ;;  %v4778_v35 = vsel %vm4400_vm4, %v4774_v28, %v13061_v56 }
 0x8f4   : > { %v13064_v25 = vpop.permute.xlu1 %13063 }
 0x8f5   : > { %v13065_v44 = vunpack.i.l.bf16 %v13064_v25  ;;  %v13066_v2 = vunpack.i.h.bf16 %v13064_v25 }
 0x8f7   : > { %v4781_v59 = vsel %vm18505_vm5, %v4777_v15, %v13065_v44  ;;  %v4782_v29 = vsel %vm18505_vm5, %v4778_v35, %v13066_v2 }
 0x8f8   : > { %v5540_v11 = vrot.slane %v4781_v59, 3  ;;  %v5542_v17 = vrot.slane %v4782_v29, 3 }
 0x8fa   : > { %v5541_v52 = vsel %vm1259_vm1, %v5538_v43, %v5540_v11  ;;  %v5543_v61 = vsel %vm1259_vm1, %v5540_v11, %v5542_v17 }
 0x8fb   : > { %v5585_v14 = vpack.c.bf16 %v5541_v52, %v5539_v7 }
 0x8fd   : > { %12489 = vmatprep.mubr.msk.bf16.mxu0 %vm630_vm0, %v5585_v14 }
 0x907   : > { %v13069_v41 = vpop.permute.xlu0 %13068 }
 0x908   : > { %v13070_v55 = vunpack.i.l.bf16 %v13069_v41  ;;  %v13071_v22 = vunpack.i.h.bf16 %v13069_v41 }
 0x90a   : > { %v5146_v45 = vsel %vm1900_vm8, %v16015_v54, %v13070_v55  ;;  %v5147_v12 = vsel %vm1900_vm8, %v16019_v36, %v13071_v22 }
 0x912   : > { %v13074_v42 = vpop.permute.xlu0 %13073 }
 0x913   : > { %v13075_v16 = vunpack.i.l.bf16 %v13074_v42  ;;  %v13076_v8 = vunpack.i.h.bf16 %v13074_v42 }
 0x915   : > { %v5150_v10 = vsel %vm4400_vm4, %v5146_v45, %v13075_v16  ;;  %v5151_v48 = vsel %vm4400_vm4, %v5147_v12, %v13076_v8 }
 0x916   : > { %v13079_v38 = vpop.permute.xlu0 %13078 }
 0x917   : > { %v13080_v0 = vunpack.i.l.bf16 %v13079_v38  ;;  %v13081_v9 = vunpack.i.h.bf16 %v13079_v38 }
 0x918   : > { %v5135_v27 = vpop.permute.xlu1 %5134 }
 0x919   : > { %v5154_v40 = vsel %vm18505_vm5, %v5150_v10, %v5135_v27  ;;  %v5148_v60 = vsel %vm1900_vm8, %v16013_v49, %v13080_v0  ;;  %v5149_v25 = vsel %vm1900_vm8, %v16017_v20, %v13081_v9 }
 0x91a   : > { %v5553_v18 = vrot.slane %v5154_v40, 6 }
 0x91c   : > { %v5581_v24 = vsel %vm1276_vm10, %v5542_v17, %v5553_v18  ;;  %v13084_v58 = vpop.permute.xlu1 %13083 }
 0x91d   : > { %v5586_v57 = vpack.c.bf16 %v5581_v24, %v5543_v61  ;;  %v13085_v13 = vunpack.i.l.bf16 %v13084_v58  ;;  %v13086_v5 = vunpack.i.h.bf16 %v13084_v58 }
 0x91f   : > { %12490 = vmatmul.mubr.msk.bf16.gmra.mxu0 %vm630_vm0, %v5586_v57  ;;  %v5152_v23 = vsel %vm4400_vm4, %v5148_v60, %v13085_v13  ;;  %v5153_v59 = vsel %vm4400_vm4, %v5149_v25, %v13086_v5  ;;  %v18703_v60 = vld [vmem:[#allocation3_spill] sm:$0xff] }
 0x920   : > { %v13089_v54 = vpop.permute.xlu1 %13088 }
 0x921   : > { %v13091_v62 = vunpack.i.h.bf16 %v13089_v54  ;;  %v13090_v1 = vunpack.i.l.bf16 %v13089_v54 }
 0x923   : > { %v5155_v33 = vsel %vm18505_vm5, %v5151_v48, %v13090_v1  ;;  %v5156_v34 = vsel %vm18505_vm5, %v5152_v23, %v13091_v62  ;;  %v16140_v1 = vld [vmem:[%s18425_s9] sm:$0xf]  ;;  %v18704_v48 = vld [vmem:[#allocation21_spill] sm:$0xff] }
 0x924   : > { %v5554_v37 = vrot.slane %v5155_v33, 6  ;;  %v5556_v32 = vrot.slane %v5156_v34, 6  ;;  %v16144_v23 = vrot.slane %v16140_v1, %v18704_v48  ;;  %v18705_v33 = vld [vmem:[#allocation4_spill] sm:$0xff] }
 0x926   : > { %v5555_v4 = vsel %vm1276_vm10, %v5553_v18, %v5554_v37  ;;  %v5557_v31 = vsel %vm1276_vm10, %v5554_v37, %v5556_v32 }
 0x927   : > { %v5587_v36 = vpack.c.bf16 %v5557_v31, %v5555_v4 }
 0x929   : > { %12493 = vmatprep.mubr.msk.bf16.mxu1 %vm630_vm0, %v5587_v36  ;;  %v18706_v36 = vld [vmem:[#allocation5_spill] sm:$0xff] }
 0x953   : > { %v13099_v49 = vpop.permute.xlu1 %13098 }
 0x954   : > { %v13094_v53 = vpop.permute.xlu0 %13093  ;;  %v13100_v26 = vunpack.i.l.bf16 %v13099_v49  ;;  %v13101_v11 = vunpack.i.h.bf16 %v13099_v49 }
 0x955   : > { %v13096_v50 = vunpack.i.h.bf16 %v13094_v53  ;;  %v13095_v39 = vunpack.i.l.bf16 %v13094_v53  ;;  %v18707_v53 = vld [vmem:[#allocation6_spill] sm:$0xff] }
 0x957   : > { %v5521_v51 = vsel %vm1900_vm8, %v16029_v46, %v13095_v39  ;;  %v13109_v63 = vpop.permute.xlu1 %13108  ;;  %v5522_v15 = vsel %vm1900_vm8, %v16033_v19, %v13096_v50 }
 0x958   : > { %v13104_v21 = vpop.permute.xlu0 %13103  ;;  %v5525_v7 = vsel %vm4400_vm4, %v5521_v51, %v13100_v26  ;;  %v5526_v20 = vsel %vm4400_vm4, %v5522_v15, %v13101_v11  ;;  %v13111_v2 = vunpack.i.h.bf16 %v13109_v63  ;;  %v13110_v42 = vunpack.i.l.bf16 %v13109_v63  ;;  %v18709_v15 = vld [vmem:[#allocation7_spill] sm:$0xff] }
 0x959   : > { %v13106_v44 = vunpack.i.h.bf16 %v13104_v21  ;;  %v13105_v43 = vunpack.i.l.bf16 %v13104_v21 }
 0x95a   : > { %v5524_v27 = vsel %vm1900_vm8, %v16031_v47, %v13111_v2  ;;  %v5523_v40 = vsel %vm1900_vm8, %v16027_v6, %v13110_v42 }
 0x95b   : > { %v5157_v52 = vsel %vm18505_vm5, %v5153_v59, %v13105_v43  ;;  %v5529_v46 = vsel %vm18505_vm5, %v5525_v7, %v13106_v44  ;;  %v13119_v55 = vpop.permute.xlu1 %13118  ;;  %v18708_v44 = vld [vmem:[#allocation8_spill] sm:$0xff] }
 0x95c   : > { %v5558_v14 = vrot.slane %v5157_v52, 6  ;;  %v5568_v41 = vrot.slane %v5529_v46, 1  ;;  %v5512_v3 = vpop.permute.xlu0 %5511  ;;  %v13121_v38 = vunpack.i.h.bf16 %v13119_v55  ;;  %v13120_v18 = vunpack.i.l.bf16 %v13119_v55 }
 0x95d   : > { %v5530_v56 = vsel %vm18505_vm5, %v5526_v20, %v5512_v3  ;;  %v18711_v3 = vld [vmem:[#allocation9_spill] sm:$0xff] }
 0x95e   : > { %v5559_v19 = vsel %vm1276_vm10, %v5556_v32, %v5558_v14  ;;  %v5569_v28 = vrot.slane %v5530_v56, 1  ;;  %v18710_v14 = vld [vmem:[#allocation10_spill] sm:$0xff] }
 0x95f   : > { %v5582_v35 = vsel %vm1292_vm6, %v5559_v19, %v5568_v41 }
 0x960   : > { %v5570_v16 = vsel %vm1292_vm6, %v5568_v41, %v5569_v28  ;;  %v13114_v29 = vpop.permute.xlu0 %13113 }
 0x961   : > { %v5588_v45 = vpack.c.bf16 %v5570_v16, %v5582_v35  ;;  %v13116_v17 = vunpack.i.h.bf16 %v13114_v29  ;;  %v13115_v10 = vunpack.i.l.bf16 %v13114_v29  ;;  %v18712_v16 = vld [vmem:[#allocation11_spill] sm:$0xff] }
 0x963   : > { %v5527_v24 = vsel %vm4400_vm4, %v5523_v40, %v13115_v10  ;;  %v5528_v58 = vsel %vm4400_vm4, %v5524_v27, %v13116_v17  ;;  %12494 = vmatmul.mubr.msk.bf16.vlgmr.msra.gmra.mxu1 %vm630_vm0, %v5588_v45  ;;  %v18713_v17 = vld [vmem:[#allocation12_spill] sm:$0xff] }
 0x964   : > { %v5531_v61 = vsel %vm18505_vm5, %v5527_v24, %v13120_v18  ;;  %v5532_v22 = vsel %vm18505_vm5, %v5528_v58, %v13121_v38  ;;  %v18714_v24 = vld [vmem:[#allocation13_spill] sm:$0xff]  ;;  %vm6309_vm5 = vcmask 523264  }
 0x965   : > { %v5571_v0 = vrot.slane %v5531_v61, 1  ;;  %v5573_v57 = vrot.slane %v5532_v22, 1  ;;  %v18715_v61 = vld [vmem:[#allocation14_spill] sm:$0xff] }
 0x967   : > { %v5572_v8 = vsel %vm1292_vm6, %v5569_v28, %v5571_v0  ;;  %v5574_v47 = vsel %vm1292_vm6, %v5571_v0, %v5573_v57  ;;  %v5590_v6 = vpack.c.bf16 %v5573_v57, %v5573_v57 }
 0x968   : > { %v5589_v13 = vpack.c.bf16 %v5574_v47, %v5572_v8 }
 0x96a   : > { %12497 = vmatprep.mubr.msk.bf16.mxu1 %vm630_vm0, %v5589_v13 }
 0x96b   : > { %12498 = vmatmul.mubr.msk.bf16.gmra.mxu1 %vm630_vm0, %v5590_v6 }
 0x9b2   : > { %v12487_v54 = vpop.f32.mrf.mxu0 }
 0x9b3   : > { %v5729_v62 = vadd.f32 %v12487_v54, %v18703_v60  ;;  %v18716_v54 = vld [vmem:[#allocation16_spill] sm:$0xff]  ;;  %v18717_v60 = vld [vmem:[#allocation15_spill] sm:$0xff] }
 0x9b4   : > { %v5665_v12 = vpop.f32.mrf.mxu0 }
 0x9b5   : > { %v5727_v34 = vadd.f32 %v5665_v12, %v18705_v33  ;;  %v16151_v31 = vadd.f32 %v16144_v23, %v5729_v62 }
 0x9b6   : > { %v12488_v37 = vpop.f32.mrf.mxu0 }
 0x9b7   : > { %v16148_v32 = vadd.f32 %v16144_v23, %v5727_v34  ;;  %v5730_v49 = vadd.f32 %v12488_v37, %v18706_v36  ;;  %v5767_v51 = vsel %vm630_vm0, %v16151_v31, 0.0 }
 0x9b8   : > { %v5668_v4 = vpop.f32.mrf.mxu0 }
 0x9b9   : > { %v5728_v9 = vadd.f32 %v5668_v4, %v18707_v53  ;;  %v5761_v50 = vsel %vm630_vm0, %v16148_v32, 0.0  ;;  %v16161_v5 = vadd.f32 %v16144_v23, %v5730_v49  ;;  %v18718_v49 = vld [vmem:[#allocation17_spill] sm:$0xff] }
 0x9ba   : > { %5762 = vadd.xlane.f32.xlu0 %v5761_v50 }
 0x9bb   : > { %v16158_v39 = vadd.f32 %v16144_v23, %v5728_v9  ;;  %v5770_v21 = vsel %vm630_vm0, %v16161_v5, 0.0 }
 0x9bd   : > { %v5764_v26 = vsel %vm630_vm0, %v16158_v39, 0.0 }
 0x9be   : > { %5768 = vadd.xlane.f32.xlu0 %v5767_v51  ;;  %5765 = vadd.xlane.f32.xlu1 %v5764_v26 }
 0x9c2   : > { %5771 = vadd.xlane.f32.xlu0 %v5770_v21 }
 0x9df   : > { %v12491_v25 = vpop.f32.mrf.mxu0 }
 0x9e0   : > { %v5733_v43 = vadd.f32 %v12491_v25, %v18708_v44 }
 0x9e1   : > { %v5681_v63 = vpop.f32.mrf.mxu0 }
 0x9e2   : > { %v5731_v59 = vadd.f32 %v5681_v63, %v18709_v15  ;;  %v16175_v46 = vadd.f32 %v16144_v23, %v5733_v43 }
 0x9e3   : > { %v12492_v11 = vpop.f32.mrf.mxu0 }
 0x9e4   : > { %v16172_v7 = vadd.f32 %v16144_v23, %v5731_v59  ;;  %v5734_v41 = vadd.f32 %v12492_v11, %v18710_v14  ;;  %v5779_v19 = vsel %vm630_vm0, %v16175_v46, 0.0 }
 0x9e5   : > { %v5684_v52 = vpop.f32.mrf.mxu0 }
 0x9e6   : > { %v5732_v20 = vadd.f32 %v5684_v52, %v18711_v3  ;;  %v5773_v56 = vsel %vm630_vm0, %v16172_v7, 0.0  ;;  %v16185_v42 = vadd.f32 %v16144_v23, %v5734_v41 }
 0x9e7   : > { %5774 = vadd.xlane.f32.xlu1 %v5773_v56 }
 0x9e8   : > { %v16182_v2 = vadd.f32 %v16144_v23, %v5732_v20  ;;  %v5782_v55 = vsel %vm630_vm0, %v16185_v42, 0.0 }
 0x9ea   : > { %v5776_v28 = vsel %vm630_vm0, %v16182_v2, 0.0 }
 0x9eb   : > { %5780 = vadd.xlane.f32.xlu1 %v5779_v19  ;;  %5777 = vadd.xlane.f32.xlu0 %v5776_v28 }
 0x9ef   : > { %5783 = vadd.xlane.f32.xlu0 %v5782_v55 }
 0xa23   : > { %v12495_v35 = vpop.f32.mrf.mxu1 }
 0xa24   : > { %v5737_v29 = vadd.f32 %v12495_v35, %v18712_v16 }
 0xa25   : > { %v5697_v45 = vpop.f32.mrf.mxu1 }
 0xa26   : > { %v5735_v10 = vadd.f32 %v5697_v45, %v18713_v17  ;;  %v16199_v38 = vadd.f32 %v16144_v23, %v5737_v29  ;;  %v13402_v45 = vld [vmem:[%s18423_s7 + $0x8] sm:$0xff]  }
 0xa27   : > { %v12496_v27 = vpop.f32.mrf.mxu1  ;;  %12501 = vmatprep.subr.bf16.mxu1 %v13402_v45 }
 0xa28   : > { %v16196_v40 = vadd.f32 %v16144_v23, %v5735_v10  ;;  %v5738_v58 = vadd.f32 %v12496_v27, %v18714_v24  ;;  %v5791_v13 = vsel %vm630_vm0, %v16199_v38, 0.0  ;;  %12502 = vmatpush3.bf16.msra.mxu1 %v13402_v45 }
 0xa29   : > { %v5700_v18 = vpop.f32.mrf.mxu1 }
 0xa2a   : > { %v5736_v22 = vadd.f32 %v5700_v18, %v18715_v61  ;;  %v5785_v0 = vsel %vm630_vm0, %v16196_v40, 0.0  ;;  %v16211_v6 = vadd.f32 %v16144_v23, %v5738_v58  ;;  %v13403_v18 = vld [vmem:[%s18423_s7] sm:$0xff]  }
 0xa2b   : > { %v12499_v57 = vpop.f32.mrf.mxu1  ;;  %5786 = vadd.xlane.f32.xlu1 %v5785_v0  ;;  %12503 = vmatprep.subr.bf16.mxu1 %v13403_v18 }
 0xa2c   : > { %v16206_v8 = vadd.f32 %v16144_v23, %v5736_v22  ;;  %v5741_v12 = vadd.f32 %v12499_v57, %v18716_v54  ;;  %v5794_v50 = vsel %vm630_vm0, %v16211_v6, 0.0  ;;  %12504 = vmatpush3.bf16.msra.mxu1 %v13403_v18 }
 0xa2d   : > { %v5713_v47 = vpop.f32.mrf.mxu1 }
 0xa2e   : > { %v5739_v62 = vadd.f32 %v5713_v47, %v18717_v60  ;;  %v5788_v33 = vsel %vm630_vm0, %v16206_v8, 0.0  ;;  %v16221_v36 = vadd.f32 %v16144_v23, %v5741_v12 }
 0xa2f   : > { %v12500_v34 = vpop.f32.mrf.mxu1  ;;  %5792 = vadd.xlane.f32.xlu1 %v5791_v13  ;;  %5789 = vadd.xlane.f32.xlu0 %v5788_v33 }
 0xa30   : > { %v16218_v37 = vadd.f32 %v16144_v23, %v5739_v62  ;;  %v5803_v26 = vsel %vm1501_vm7, %v16221_v36, 0.0 }
 0xa31   : > { %v5716_v4 = vpop.f32.mrf.mxu1 }
 0xa32   : > { %v5740_v53 = vadd.f32 %v5716_v4, %v18718_v49  ;;  %v5797_v9 = vsel %vm630_vm0, %v16218_v37, 0.0 }
 0xa33   : > { %5798 = vadd.xlane.f32.xlu1 %v5797_v9  ;;  %5795 = vadd.xlane.f32.xlu0 %v5794_v50 }
 0xa34   : > { %v16229_v51 = vadd.f32 %v16144_v23, %v5740_v53 }
 0xa36   : > { %v5800_v21 = vsel %vm630_vm0, %v16229_v51, 0.0 }
 0xa37   : > { %5804 = vadd.xlane.f32.xlu1 %v5803_v26  ;;  %5801 = vadd.xlane.f32.xlu0 %v5800_v21 }
 0xa43   : > { %v5763_v25 = vpop.xlane.xlu0 %5762 }
 0xa44   : > { %v5806_v63 = vmul.f32 0.03125, %v5763_v25 }
 0xa46   : > { %v16236_v44 = vsub.f32 %v16148_v32, %v5806_v63 }
 0xa47   : > { %v5769_v43 = vpop.xlane.xlu0 %5768  ;;  %v5766_v15 = vpop.xlane.xlu1 %5765 }
 0xa48   : > { %v5808_v59 = vmul.f32 0.03125, %v5769_v43  ;;  %v5807_v11 = vmul.f32 0.03125, %v5766_v15  ;;  %v5836_v23 = vmul.f32 %v16236_v44, %v16236_v44 }
 0xa4a   : > { %v16241_v52 = vsub.f32 %v16151_v31, %v5808_v59  ;;  %v16244_v14 = vsub.f32 %v16158_v39, %v5807_v11  ;;  %v5851_v41 = vsel %vm630_vm0, %v5836_v23, 0.0 }
 0xa4b   : > { %v5772_v3 = vpop.xlane.xlu0 %5771  ;;  %5852 = vadd.xlane.f32.xlu0 %v5851_v41 }
 0xa4c   : > { %v5809_v20 = vmul.f32 0.03125, %v5772_v3  ;;  %v5837_v56 = vmul.f32 %v16244_v14, %v16244_v14  ;;  %v5838_v19 = vmul.f32 %v16241_v52, %v16241_v52 }
 0xa4e   : > { %v16252_v28 = vsub.f32 %v16161_v5, %v5809_v20  ;;  %v5854_v55 = vsel %vm630_vm0, %v5837_v56, 0.0  ;;  %v5857_v35 = vsel %vm630_vm0, %v5838_v19, 0.0 }
 0xa4f   : > { %5855 = vadd.xlane.f32.xlu1 %v5854_v55  ;;  %5858 = vadd.xlane.f32.xlu0 %v5857_v35 }
 0xa50   : > { %v5839_v16 = vmul.f32 %v16252_v28, %v16252_v28 }
 0xa52   : > { %v5860_v29 = vsel %vm630_vm0, %v5839_v16, 0.0 }
 0xa53   : > { %5861 = vadd.xlane.f32.xlu1 %v5860_v29 }
 0xa70   : > { %v5775_v17 = vpop.xlane.xlu1 %5774 }
 0xa71   : > { %v5810_v10 = vmul.f32 0.03125, %v5775_v17 }
 0xa73   : > { %v16263_v27 = vsub.f32 %v16172_v7, %v5810_v10 }
 0xa74   : > { %v5781_v24 = vpop.xlane.xlu1 %5780  ;;  %v5778_v58 = vpop.xlane.xlu0 %5777 }
 0xa75   : > { %v5812_v61 = vmul.f32 0.03125, %v5781_v24  ;;  %v5811_v22 = vmul.f32 0.03125, %v5778_v58  ;;  %v5840_v0 = vmul.f32 %v16263_v27, %v16263_v27 }
 0xa77   : > { %v16271_v57 = vsub.f32 %v16175_v46, %v5812_v61  ;;  %v16274_v47 = vsub.f32 %v16182_v2, %v5811_v22  ;;  %v5863_v13 = vsel %vm630_vm0, %v5840_v0, 0.0 }
 0xa78   : > { %5864 = vadd.xlane.f32.xlu0 %v5863_v13  ;;  %v5784_v54 = vpop.xlane.xlu0 %5783 }
 0xa79   : > { %v5813_v12 = vmul.f32 0.03125, %v5784_v54  ;;  %v5842_v60 = vmul.f32 %v16271_v57, %v16271_v57  ;;  %v5841_v62 = vmul.f32 %v16274_v47, %v16274_v47 }
 0xa7b   : > { %v16282_v33 = vsub.f32 %v16185_v42, %v5813_v12  ;;  %v5869_v34 = vsel %vm630_vm0, %v5842_v60, 0.0  ;;  %v5866_v4 = vsel %vm630_vm0, %v5841_v62, 0.0 }
 0xa7c   : > { %5870 = vadd.xlane.f32.xlu0 %v5869_v34  ;;  %5867 = vadd.xlane.f32.xlu1 %v5866_v4 }
 0xa7d   : > { %v5843_v49 = vmul.f32 %v16282_v33, %v16282_v33 }
 0xa7f   : > { %v5872_v53 = vsel %vm630_vm0, %v5843_v49, 0.0 }
 0xa80   : > { %5873 = vadd.xlane.f32.xlu1 %v5872_v53 }
 0xab4   : > { %v5787_v9 = vpop.xlane.xlu1 %5786 }
 0xab5   : > { %v5814_v50 = vmul.f32 0.03125, %v5787_v9 }
 0xab7   : > { %v16290_v26 = vsub.f32 %v16196_v40, %v5814_v50 }
 0xab8   : > { %v5793_v21 = vpop.xlane.xlu1 %5792  ;;  %v5790_v25 = vpop.xlane.xlu0 %5789 }
 0xab9   : > { %v5816_v63 = vmul.f32 0.03125, %v5793_v21  ;;  %v5815_v43 = vmul.f32 0.03125, %v5790_v25  ;;  %v5844_v15 = vmul.f32 %v16290_v26, %v16290_v26 }
 0xabb   : > { %v16295_v59 = vsub.f32 %v16199_v38, %v5816_v63  ;;  %v16298_v11 = vsub.f32 %v16206_v8, %v5815_v43  ;;  %v5875_v23 = vsel %vm630_vm0, %v5844_v15, 0.0 }
 0xabc   : > { %v5799_v41 = vpop.xlane.xlu1 %5798  ;;  %5876 = vadd.xlane.f32.xlu0 %v5875_v23  ;;  %v5796_v3 = vpop.xlane.xlu0 %5795 }
 0xabd   : > { %v5818_v20 = vmul.f32 0.03125, %v5799_v41  ;;  %v5817_v56 = vmul.f32 0.03125, %v5796_v3  ;;  %v5846_v19 = vmul.f32 %v16295_v59, %v16295_v59  ;;  %v5845_v55 = vmul.f32 %v16298_v11, %v16298_v11 }
 0xabf   : > { %v16306_v35 = vsub.f32 %v16218_v37, %v5818_v20  ;;  %v16309_v16 = vsub.f32 %v16211_v6, %v5817_v56  ;;  %v5881_v29 = vsel %vm630_vm0, %v5846_v19, 0.0  ;;  %v5878_v45 = vsel %vm630_vm0, %v5845_v55, 0.0 }
 0xac0   : > { %v5805_v17 = vpop.xlane.xlu1 %5804  ;;  %5882 = vadd.xlane.f32.xlu0 %v5881_v29  ;;  %5879 = vadd.xlane.f32.xlu1 %v5878_v45  ;;  %v5802_v10 = vpop.xlane.xlu0 %5801  ;;  %v18719_v29 = vld [vmem:[#allocation20_spill] sm:$0xff] }
 0xac1   : > { %v5820_v18 = vmul.f32 0.03125, %v5805_v17  ;;  %v5819_v24 = vmul.f32 0.03125, %v5802_v10  ;;  %v5848_v58 = vmul.f32 %v16306_v35, %v16306_v35  ;;  %v5847_v61 = vmul.f32 %v16309_v16, %v16309_v16 }
 0xac3   : > { %v16318_v22 = vsub.f32 %v16221_v36, %v5820_v18  ;;  %v16321_v0 = vsub.f32 %v16229_v51, %v5819_v24  ;;  %v5887_v13 = vsel %vm630_vm0, %v5848_v58, 0.0  ;;  %v5884_v54 = vsel %vm630_vm0, %v5847_v61, 0.0  ;;  %v18720_v61 = vld [vmem:[#allocation22_spill] sm:$0xff] }
 0xac4   : > { %5888 = vadd.xlane.f32.xlu0 %v5887_v13  ;;  %5885 = vadd.xlane.f32.xlu1 %v5884_v54 }
 0xac5   : > { %v5850_v12 = vmul.f32 %v16318_v22, %v16318_v22  ;;  %v5849_v60 = vmul.f32 %v16321_v0, %v16321_v0 }
 0xac7   : > { %v5893_v62 = vsel %vm1501_vm7, %v5850_v12, 0.0  ;;  %v5890_v34 = vsel %vm630_vm0, %v5849_v60, 0.0 }
 0xac8   : > { %5894 = vadd.xlane.f32.xlu0 %v5893_v62  ;;  %5891 = vadd.xlane.f32.xlu1 %v5890_v34 }
 0xad4   : > { %v5853_v4 = vpop.xlane.xlu0 %5852 }
 0xad5   : > { %v5896_v49 = vmul.f32 0.03125, %v5853_v4 }
 0xad7   : > { %v5911_v53 = vadd.f32 1e-05, %v5896_v49 }
 0xad8   : > { %v5856_v9 = vpop.xlane.xlu1 %5855  ;;  %v5859_v50 = vpop.xlane.xlu0 %5858 }
 0xad9   : > { %13744 = vrsqrt.f32 %v5911_v53  ;;  %v5897_v21 = vmul.f32 0.03125, %v5856_v9  ;;  %v5898_v25 = vmul.f32 0.03125, %v5859_v50 }
 0xadb   : > { %v5912_v63 = vadd.f32 1e-05, %v5897_v21  ;;  %v5913_v43 = vadd.f32 1e-05, %v5898_v25 }
 0xadc   : > { %v5862_v15 = vpop.xlane.xlu1 %5861 }
 0xadd   : > { %13746 = vrsqrt.f32 %v5912_v63  ;;  %v5899_v23 = vmul.f32 0.03125, %v5862_v15 }
 0xade   : > { %13748 = vrsqrt.f32 %v5913_v43 }
 0xadf   : > { %v5914_v41 = vadd.f32 1e-05, %v5899_v23 }
 0xae1   : > { %13750 = vrsqrt.f32 %v5914_v41 }
 0xae6   : > { %v13745_v3 = vpop.eup %13744 }
 0xae7   : > { %v5941_v20 = vmul.f32 %v13745_v3, %v16236_v44 }
 0xae9   : > { %v5956_v45 = vmul.f32 %v5941_v20, %v18719_v29 }
 0xaea   : > { %v13747_v56 = vpop.eup %13746 }
 0xaeb   : > { %v13749_v19 = vpop.eup %13748  ;;  %v5942_v55 = vmul.f32 %v13747_v56, %v16244_v14  ;;  %v5971_v13 = vadd.f32 %v5956_v45, %v18720_v61 }
 0xaec   : > { %v5943_v17 = vmul.f32 %v13749_v19, %v16241_v52 }
 0xaed   : > { %v5957_v10 = vmul.f32 %v5942_v55, %v18719_v29 }
 0xaee   : > { %v13751_v18 = vpop.eup %13750  ;;  %v5958_v24 = vmul.f32 %v5943_v17, %v18719_v29 }
 0xaef   : > { %v5944_v58 = vmul.f32 %v13751_v18, %v16252_v28  ;;  %v5972_v54 = vadd.f32 %v5957_v10, %v18720_v61 }
 0xaf0   : > { %v5973_v14 = vadd.f32 %v5958_v24, %v18720_v61 }
 0xaf1   : > { %v5959_v44 = vmul.f32 %v5944_v58, %v18719_v29  ;;  %v5986_v12 = vpack.c.bf16 %v5972_v54, %v5971_v13 }
 0xaf3   : > { %v5974_v60 = vadd.f32 %v5959_v44, %v18720_v61  ;;  %12505 = vmatprep.mubr.msk.bf16.mxu1 %vm630_vm0, %v5986_v12 }
 0xaf5   : > { %v5987_v52 = vpack.c.bf16 %v5974_v60, %v5973_v14 }
 0xaf7   : > { %12506 = vmatmul.mubr.msk.bf16.vlgmr.msra.gmra.mxu1 %vm630_vm0, %v5987_v52 }
 0xb01   : > { %v5865_v62 = vpop.xlane.xlu0 %5864 }
 0xb02   : > { %v5900_v34 = vmul.f32 0.03125, %v5865_v62 }
 0xb04   : > { %v5915_v4 = vadd.f32 1e-05, %v5900_v34 }
 0xb05   : > { %v5868_v28 = vpop.xlane.xlu1 %5867  ;;  %v5871_v49 = vpop.xlane.xlu0 %5870 }
 0xb06   : > { %13752 = vrsqrt.f32 %v5915_v4  ;;  %v5901_v53 = vmul.f32 0.03125, %v5868_v28  ;;  %v5902_v9 = vmul.f32 0.03125, %v5871_v49 }
 0xb08   : > { %v5916_v50 = vadd.f32 1e-05, %v5901_v53  ;;  %v5917_v21 = vadd.f32 1e-05, %v5902_v9  ;;  %v13404_v9 = vld [vmem:[%s18424_s8 + $0x18] sm:$0xff]  }
 0xb09   : > { %v5874_v25 = vpop.xlane.xlu1 %5873  ;;  %12521 = vmatprep.subr.bf16.mxu0 %v13404_v9 }
 0xb0a   : > { %13754 = vrsqrt.f32 %v5916_v50  ;;  %v5903_v63 = vmul.f32 0.03125, %v5874_v25  ;;  %12522 = vmatpush3.bf16.msra.mxu0 %v13404_v9 }
 0xb0b   : > { %13756 = vrsqrt.f32 %v5917_v21 }
 0xb0c   : > { %v5918_v43 = vadd.f32 1e-05, %v5903_v63 }
 0xb0e   : > { %13758 = vrsqrt.f32 %v5918_v43 }
 0xb13   : > { %v13753_v15 = vpop.eup %13752 }
 0xb14   : > { %v5945_v23 = vmul.f32 %v13753_v15, %v16263_v27 }
 0xb16   : > { %v5960_v56 = vmul.f32 %v5945_v23, %v18719_v29  ;;  %v13405_v23 = vld [vmem:[%s18424_s8 + $0x10] sm:$0xff]  }
 0xb17   : > { %v13755_v41 = vpop.eup %13754  ;;  %12523 = vmatprep.subr.bf16.mxu0 %v13405_v23 }
 0xb18   : > { %v13757_v3 = vpop.eup %13756  ;;  %v5946_v20 = vmul.f32 %v13755_v41, %v16274_v47  ;;  %v5975_v10 = vadd.f32 %v5960_v56, %v18720_v61  ;;  %12524 = vmatpush3.bf16.msra.mxu0 %v13405_v23  ;;  %v13406_v56 = vld [vmem:[%s18424_s8 + $0x8] sm:$0xff]  }
 0xb19   : > { %v5947_v19 = vmul.f32 %v13757_v3, %v16271_v57  ;;  %12525 = vmatprep.subr.bf16.mxu0 %v13406_v56 }
 0xb1a   : > { %v5961_v55 = vmul.f32 %v5946_v20, %v18719_v29 }
 0xb1b   : > { %v13759_v45 = vpop.eup %13758  ;;  %v5962_v24 = vmul.f32 %v5947_v19, %v18719_v29 }
 0xb1c   : > { %v5948_v17 = vmul.f32 %v13759_v45, %v16282_v33  ;;  %v5976_v18 = vadd.f32 %v5961_v55, %v18720_v61  ;;  %12526 = vmatpush3.bf16.msra.mxu0 %v13406_v56  ;;  %v13407_v55 = vld [vmem:[%s18424_s8] sm:$0xff]  }
 0xb1d   : > { %v5977_v47 = vadd.f32 %v5962_v24, %v18720_v61  ;;  %12527 = vmatprep.subr.bf16.mxu0 %v13407_v55 }
 0xb1e   : > { %v5988_v27 = vpack.c.bf16 %v5976_v18, %v5975_v10  ;;  %v5963_v58 = vmul.f32 %v5948_v17, %v18719_v29 }
 0xb20   : > { %12509 = vmatprep.mubr.msk.bf16.mxu1 %vm630_vm0, %v5988_v27  ;;  %v5978_v57 = vadd.f32 %v5963_v58, %v18720_v61  ;;  %12528 = vmatpush3.bf16.msra.mxu0 %v13407_v55 }
 0xb22   : > { %v5989_v13 = vpack.c.bf16 %v5978_v57, %v5977_v47 }
 0xb24   : > { %12510 = vmatmul.mubr.msk.bf16.gmra.mxu1 %vm630_vm0, %v5989_v13 }
 0xb45   : > { %v5877_v54 = vpop.xlane.xlu0 %5876 }
 0xb46   : > { %v5904_v33 = vmul.f32 0.03125, %v5877_v54 }
 0xb48   : > { %v5919_v44 = vadd.f32 1e-05, %v5904_v33 }
 0xb49   : > { %v5880_v12 = vpop.xlane.xlu1 %5879  ;;  %v5883_v14 = vpop.xlane.xlu0 %5882 }
 0xb4a   : > { %13760 = vrsqrt.f32 %v5919_v44  ;;  %v5905_v60 = vmul.f32 0.03125, %v5880_v12  ;;  %v5906_v52 = vmul.f32 0.03125, %v5883_v14 }
 0xb4c   : > { %v5920_v62 = vadd.f32 1e-05, %v5905_v60  ;;  %v5921_v34 = vadd.f32 1e-05, %v5906_v52 }
 0xb4d   : > { %v5886_v4 = vpop.xlane.xlu1 %5885  ;;  %v5889_v28 = vpop.xlane.xlu0 %5888 }
 0xb4e   : > { %13762 = vrsqrt.f32 %v5920_v62  ;;  %v5907_v49 = vmul.f32 0.03125, %v5886_v4  ;;  %v5908_v53 = vmul.f32 0.03125, %v5889_v28 }
 0xb4f   : > { %13764 = vrsqrt.f32 %v5921_v34 }
 0xb50   : > { %v5922_v50 = vadd.f32 1e-05, %v5907_v49  ;;  %v5923_v21 = vadd.f32 1e-05, %v5908_v53 }
 0xb51   : > { %v5892_v25 = vpop.xlane.xlu1 %5891  ;;  %v5895_v63 = vpop.xlane.xlu0 %5894 }
 0xb52   : > { %13766 = vrsqrt.f32 %v5922_v50  ;;  %v5909_v43 = vmul.f32 0.03125, %v5892_v25  ;;  %v5910_v15 = vmul.f32 0.03125, %v5895_v63 }
 0xb53   : > { %13768 = vrsqrt.f32 %v5923_v21 }
 0xb54   : > { %v5924_v41 = vadd.f32 1e-05, %v5909_v43  ;;  %v5925_v3 = vadd.f32 1e-05, %v5910_v15 }
 0xb56   : > { %13770 = vrsqrt.f32 %v5924_v41 }
 0xb57   : > { %v13761_v20 = vpop.eup %13760  ;;  %13772 = vrsqrt.f32 %v5925_v3 }
 0xb58   : > { %v5949_v19 = vmul.f32 %v13761_v20, %v16290_v26 }
 0xb5a   : > { %v5964_v18 = vmul.f32 %v5949_v19, %v18719_v29 }
 0xb5b   : > { %v13763_v45 = vpop.eup %13762 }
 0xb5c   : > { %v13765_v17 = vpop.eup %13764  ;;  %v5950_v10 = vmul.f32 %v13763_v45, %v16298_v11  ;;  %v5979_v57 = vadd.f32 %v5964_v18, %v18720_v61 }
 0xb5d   : > { %v5951_v24 = vmul.f32 %v13765_v17, %v16295_v59 }
 0xb5e   : > { %v5965_v27 = vmul.f32 %v5950_v10, %v18719_v29 }
 0xb5f   : > { %v13767_v58 = vpop.eup %13766  ;;  %v5966_v54 = vmul.f32 %v5951_v24, %v18719_v29 }
 0xb60   : > { %v13769_v26 = vpop.eup %13768  ;;  %v5952_v47 = vmul.f32 %v13767_v58, %v16309_v16  ;;  %v5980_v13 = vadd.f32 %v5965_v27, %v18720_v61 }
 0xb61   : > { %v5953_v11 = vmul.f32 %v13769_v26, %v16306_v35  ;;  %v5981_v14 = vadd.f32 %v5966_v54, %v18720_v61 }
 0xb62   : > { %v5990_v33 = vpack.c.bf16 %v5980_v13, %v5979_v57  ;;  %v5967_v44 = vmul.f32 %v5952_v47, %v18719_v29 }
 0xb63   : > { %v13771_v12 = vpop.eup %13770  ;;  %v5968_v52 = vmul.f32 %v5953_v11, %v18719_v29 }
 0xb64   : > { %v13773_v59 = vpop.eup %13772  ;;  %12513 = vmatprep.mubr.msk.bf16.mxu1 %vm630_vm0, %v5990_v33  ;;  %v5982_v60 = vadd.f32 %v5967_v44, %v18720_v61  ;;  %v5954_v16 = vmul.f32 %v13771_v12, %v16321_v0 }
 0xb65   : > { %v5955_v62 = vmul.f32 %v13773_v59, %v16318_v22  ;;  %v5983_v28 = vadd.f32 %v5968_v52, %v18720_v61  ;;  %v18721_v22 = vld [vmem:[#allocation18_spill] sm:$0xff] }
 0xb66   : > { %v5991_v34 = vpack.c.bf16 %v5982_v60, %v5981_v14  ;;  %v5969_v35 = vmul.f32 %v5954_v16, %v18719_v29  ;;  %v18507_v50 = vsub.s32 2, %v18721_v22 }
 0xb67   : > { %v5970_v4 = vmul.f32 %v5955_v62, %v18719_v29 }
 0xb68   : > { %12514 = vmatmul.mubr.msk.bf16.gmra.mxu1 %vm630_vm0, %v5991_v34  ;;  %v5984_v49 = vadd.f32 %v5969_v35, %v18720_v61  ;;  %v16400_v29 = vrot.slane %v16140_v1, %v18507_v50 }
 0xb69   : > { %v5985_v9 = vadd.f32 %v5970_v4, %v18720_v61 }
 0xb6a   : > { %v5992_v53 = vpack.c.bf16 %v5984_v49, %v5983_v28 }
 0xb6b   : > { %v5993_v0 = vpack.c.bf16 %v5985_v9, %v5985_v9 }
 0xb6c   : > { %12517 = vmatprep.mubr.msk.bf16.mxu1 %vm630_vm0, %v5992_v53 }
 0xb70   : > { %12518 = vmatmul.mubr.msk.bf16.gmra.mxu1 %vm630_vm0, %v5993_v0 }
 0xbb7   : > { %v12507_v21 = vpop.f32.mrf.mxu1 }
 0xbb8   : > { %v6081_v25 = vadd.f32 %v12507_v21, %v16400_v29 }
 0xbb9   : > { %v6072_v63 = vpop.f32.mrf.mxu1 }
 0xbba   : > { %v6151_v43 = vmul.f32 0.044715, %v6081_v25  ;;  %v6073_v15 = vadd.f32 %v6072_v63, %v16400_v29  ;;  %v6136_v28 = vmul.f32 0.5, %v6081_v25 }
 0xbbb   : > { %v12508_v61 = vpop.f32.mrf.mxu1 }
 0xbbc   : > { %v6166_v23 = vmul.f32 %v6151_v43, %v6081_v25  ;;  %v6149_v41 = vmul.f32 0.044715, %v6073_v15  ;;  %v6084_v3 = vadd.f32 %v12508_v61, %v16400_v29  ;;  %v6134_v34 = vmul.f32 0.5, %v6073_v15 }
 0xbbd   : > { %v6075_v20 = vpop.f32.mrf.mxu1 }
 0xbbe   : > { %v6181_v56 = vmul.f32 %v6166_v23, %v6081_v25  ;;  %v6164_v19 = vmul.f32 %v6149_v41, %v6073_v15  ;;  %v6152_v55 = vmul.f32 0.044715, %v6084_v3  ;;  %v6076_v45 = vadd.f32 %v6075_v20, %v16400_v29 }
 0xbbf   : > { %v6137_v62 = vmul.f32 0.5, %v6084_v3 }
 0xbc0   : > { %v6196_v1 = vadd.f32 %v6181_v56, %v6081_v25  ;;  %v6179_v17 = vmul.f32 %v6164_v19, %v6073_v15  ;;  %v6167_v10 = vmul.f32 %v6152_v55, %v6084_v3  ;;  %v6150_v18 = vmul.f32 0.044715, %v6076_v45 }
 0xbc1   : > { %v6135_v35 = vmul.f32 0.5, %v6076_v45 }
 0xbc2   : > { %v6211_v24 = vmul.f32 0.7978846, %v6196_v1  ;;  %v6194_v27 = vadd.f32 %v6179_v17, %v6073_v15  ;;  %v6182_v58 = vmul.f32 %v6167_v10, %v6084_v3  ;;  %v6165_v26 = vmul.f32 %v6150_v18, %v6076_v45 }
 0xbc4   : > { %v6209_v47 = vmul.f32 0.7978846, %v6194_v27  ;;  %v6197_v57 = vadd.f32 %v6182_v58, %v6084_v3  ;;  %v6180_v13 = vmul.f32 %v6165_v26, %v6076_v45  ;;  %13774 = vtanh.f32 %v6211_v24 }
 0xbc6   : > { %v6212_v54 = vmul.f32 0.7978846, %v6197_v57  ;;  %13776 = vtanh.f32 %v6209_v47  ;;  %v6195_v11 = vadd.f32 %v6180_v13, %v6076_v45 }
 0xbc8   : > { %13778 = vtanh.f32 %v6212_v54  ;;  %v6210_v33 = vmul.f32 0.7978846, %v6195_v11 }
 0xbca   : > { %13780 = vtanh.f32 %v6210_v33 }
 0xbd1   : > { %v13775_v44 = vpop.eup %13774 }
 0xbd2   : > { %v6241_v52 = vadd.f32 1.0, %v13775_v44 }
 0xbd3   : > { %v13777_v12 = vpop.eup %13776 }
 0xbd4   : > { %v6239_v60 = vadd.f32 1.0, %v13777_v12  ;;  %v6256_v0 = vmul.f32 %v6241_v52, %v6136_v28 }
 0xbd5   : > { %v13779_v59 = vpop.eup %13778 }
 0xbd6   : > { %v6242_v14 = vadd.f32 1.0, %v13779_v59  ;;  %v6254_v53 = vmul.f32 %v6239_v60, %v6134_v34 }
 0xbd7   : > { %v13781_v16 = vpop.eup %13780 }
 0xbd8   : > { %v6240_v4 = vadd.f32 1.0, %v13781_v16  ;;  %v6257_v49 = vmul.f32 %v6242_v14, %v6137_v62 }
 0xbda   : > { %v6255_v9 = vmul.f32 %v6240_v4, %v6135_v35  ;;  %v6270_v63 = vpack.c.bf16 %v6257_v49, %v6256_v0 }
 0xbdc   : > { %v6269_v21 = vpack.c.bf16 %v6255_v9, %v6254_v53 }
 0xbde   : > { %12529 = vmatprep.mubr.msk.bf16.mxu0 %vm6309_vm5, %v6269_v21 }
 0xbdf   : > { %12530 = vmatmul.mubr.msk.bf16.vlgmr.msra.gmra.mxu0 %vm6309_vm5, %v6270_v63 }
 0xbe4   : > { %v12511_v43 = vpop.f32.mrf.mxu1 }
 0xbe5   : > { %v6097_v61 = vadd.f32 %v12511_v43, %v16400_v29 }
 0xbe6   : > { %v6088_v23 = vpop.f32.mrf.mxu1 }
 0xbe7   : > { %v6155_v41 = vmul.f32 0.044715, %v6097_v61  ;;  %v6089_v15 = vadd.f32 %v6088_v23, %v16400_v29  ;;  %v6140_v53 = vmul.f32 0.5, %v6097_v61 }
 0xbe8   : > { %v12512_v3 = vpop.f32.mrf.mxu1 }
 0xbe9   : > { %v6170_v25 = vmul.f32 %v6155_v41, %v6097_v61  ;;  %v6153_v20 = vmul.f32 0.044715, %v6089_v15  ;;  %v6100_v56 = vadd.f32 %v12512_v3, %v16400_v29  ;;  %v6138_v4 = vmul.f32 0.5, %v6089_v15 }
 0xbea   : > { %v6091_v19 = vpop.f32.mrf.mxu1 }
 0xbeb   : > { %v6185_v55 = vmul.f32 %v6170_v25, %v6097_v61  ;;  %v6168_v45 = vmul.f32 %v6153_v20, %v6089_v15  ;;  %v6156_v1 = vmul.f32 0.044715, %v6100_v56  ;;  %v6092_v17 = vadd.f32 %v6091_v19, %v16400_v29 }
 0xbec   : > { %v6141_v34 = vmul.f32 0.5, %v6100_v56 }
 0xbed   : > { %v6200_v10 = vadd.f32 %v6185_v55, %v6097_v61  ;;  %v6183_v18 = vmul.f32 %v6168_v45, %v6089_v15  ;;  %v6171_v24 = vmul.f32 %v6156_v1, %v6100_v56  ;;  %v6154_v27 = vmul.f32 0.044715, %v6092_v17 }
 0xbee   : > { %v6139_v28 = vmul.f32 0.5, %v6092_v17 }
 0xbef   : > { %v6215_v58 = vmul.f32 0.7978846, %v6200_v10  ;;  %v6198_v26 = vadd.f32 %v6183_v18, %v6089_v15  ;;  %v6186_v47 = vmul.f32 %v6171_v24, %v6100_v56  ;;  %v6169_v57 = vmul.f32 %v6154_v27, %v6092_v17 }
 0xbf1   : > { %v6213_v13 = vmul.f32 0.7978846, %v6198_v26  ;;  %v6201_v54 = vadd.f32 %v6186_v47, %v6100_v56  ;;  %v6184_v11 = vmul.f32 %v6169_v57, %v6092_v17  ;;  %13782 = vtanh.f32 %v6215_v58 }
 0xbf3   : > { %v6216_v33 = vmul.f32 0.7978846, %v6201_v54  ;;  %13784 = vtanh.f32 %v6213_v13  ;;  %v6199_v44 = vadd.f32 %v6184_v11, %v6092_v17 }
 0xbf5   : > { %13786 = vtanh.f32 %v6216_v33  ;;  %v6214_v12 = vmul.f32 0.7978846, %v6199_v44 }
 0xbf7   : > { %13788 = vtanh.f32 %v6214_v12 }
 0xbfe   : > { %v13783_v59 = vpop.eup %13782 }
 0xbff   : > { %v6245_v35 = vadd.f32 1.0, %v13783_v59 }
 0xc00   : > { %v13785_v14 = vpop.eup %13784 }
 0xc01   : > { %v6243_v52 = vadd.f32 1.0, %v13785_v14  ;;  %v6260_v63 = vmul.f32 %v6245_v35, %v6140_v53 }
 0xc02   : > { %v13787_v60 = vpop.eup %13786 }
 0xc03   : > { %v6246_v16 = vadd.f32 1.0, %v13787_v60  ;;  %v6258_v0 = vmul.f32 %v6243_v52, %v6138_v4 }
 0xc04   : > { %v13789_v62 = vpop.eup %13788 }
 0xc05   : > { %v6244_v49 = vadd.f32 1.0, %v13789_v62  ;;  %v6261_v9 = vmul.f32 %v6246_v16, %v6141_v34 }
 0xc07   : > { %v6259_v21 = vmul.f32 %v6244_v49, %v6139_v28  ;;  %v6272_v23 = vpack.c.bf16 %v6261_v9, %v6260_v63 }
 0xc09   : > { %v6271_v43 = vpack.c.bf16 %v6259_v21, %v6258_v0 }
 0xc0b   : > { %12533 = vmatprep.mubr.msk.bf16.mxu0 %vm6309_vm5, %v6271_v43 }
 0xc0c   : > { %12534 = vmatmul.mubr.msk.bf16.gmra.mxu0 %vm6309_vm5, %v6272_v23 }
 0xc28   : > { %v12515_v41 = vpop.f32.mrf.mxu1 }
 0xc29   : > { %v16415_v3 = vadd.f32 %v12515_v41, %v16400_v29 }
 0xc2a   : > { %v6104_v25 = vpop.f32.mrf.mxu1 }
 0xc2b   : > { %v6159_v15 = vmul.f32 0.044715, %v16415_v3  ;;  %v6105_v20 = vadd.f32 %v6104_v25, %v16400_v29 }
 0xc2c   : > { %v12516_v61 = vpop.f32.mrf.mxu1 }
 0xc2d   : > { %v6174_v56 = vmul.f32 %v6159_v15, %v16415_v3  ;;  %v6157_v19 = vmul.f32 0.044715, %v6105_v20  ;;  %v6116_v55 = vadd.f32 %v12516_v61, %v16400_v29 }
 0xc2e   : > { %v6107_v45 = vpop.f32.mrf.mxu1 }
 0xc2f   : > { %v6189_v1 = vmul.f32 %v6174_v56, %v16415_v3  ;;  %v6172_v17 = vmul.f32 %v6157_v19, %v6105_v20  ;;  %v6160_v10 = vmul.f32 0.044715, %v6116_v55  ;;  %v6108_v18 = vadd.f32 %v6107_v45, %v16400_v29 }
 0xc30   : > { %v12519_v24 = vpop.f32.mrf.mxu1 }
 0xc31   : > { %v6204_v27 = vadd.f32 %v6189_v1, %v16415_v3  ;;  %v6187_v58 = vmul.f32 %v6172_v17, %v6105_v20  ;;  %v6175_v26 = vmul.f32 %v6160_v10, %v6116_v55  ;;  %v16425_v47 = vadd.f32 %v12519_v24, %v16400_v29 }
 0xc32   : > { %v6158_v57 = vmul.f32 0.044715, %v6108_v18  ;;  %v6120_v13 = vpop.f32.mrf.mxu1 }
 0xc33   : > { %v6219_v54 = vmul.f32 0.7978846, %v6204_v27  ;;  %v6202_v11 = vadd.f32 %v6187_v58, %v6105_v20  ;;  %v6190_v33 = vmul.f32 %v6175_v26, %v6116_v55  ;;  %v6163_v12 = vmul.f32 0.044715, %v16425_v47 }
 0xc34   : > { %v6173_v44 = vmul.f32 %v6158_v57, %v6108_v18  ;;  %v6121_v59 = vadd.f32 %v6120_v13, %v16400_v29  ;;  %v12520_v14 = vpop.f32.mrf.mxu1  ;;  %v6145_v27 = vmul.f32 0.5, %v6116_v55  ;;  %v6142_v26 = vmul.f32 0.5, %v6105_v20 }
 0xc35   : > { %v6217_v60 = vmul.f32 0.7978846, %v6202_v11  ;;  %v6205_v16 = vadd.f32 %v6190_v33, %v6116_v55  ;;  %v6178_v62 = vmul.f32 %v6163_v12, %v16425_v47  ;;  %13790 = vtanh.f32 %v6219_v54 }
 0xc36   : > { %v6188_v52 = vmul.f32 %v6173_v44, %v6108_v18  ;;  %v6161_v34 = vmul.f32 0.044715, %v6121_v59  ;;  %v6123_v35 = vpop.f32.mrf.mxu1  ;;  %v6143_v57 = vmul.f32 0.5, %v6108_v18  ;;  %v6144_v54 = vmul.f32 0.5, %v16415_v3 }
 0xc37   : > { %v6220_v4 = vmul.f32 0.7978846, %v6205_v16  ;;  %v6124_v28 = vadd.f32 %v6123_v35, %v16400_v29  ;;  %13792 = vtanh.f32 %v6217_v60  ;;  %v6193_v53 = vmul.f32 %v6178_v62, %v16425_v47 }
 0xc38   : > { %v6203_v49 = vadd.f32 %v6188_v52, %v6108_v18  ;;  %v6176_v9 = vmul.f32 %v6161_v34, %v6121_v59  ;;  %v6148_v55 = vmul.f32 0.5, %v16425_v47  ;;  %v6146_v20 = vmul.f32 0.5, %v6121_v59 }
 0xc39   : > { %13794 = vtanh.f32 %v6220_v4  ;;  %v6162_v0 = vmul.f32 0.044715, %v6124_v28  ;;  %v6208_v63 = vadd.f32 %v6193_v53, %v16425_v47  ;;  %v6147_v18 = vmul.f32 0.5, %v6124_v28 }
 0xc3a   : > { %v6218_v21 = vmul.f32 0.7978846, %v6203_v49  ;;  %v6191_v43 = vmul.f32 %v6176_v9, %v6121_v59 }
 0xc3b   : > { %v6177_v23 = vmul.f32 %v6162_v0, %v6124_v28  ;;  %v6223_v41 = vmul.f32 0.7978846, %v6208_v63 }
 0xc3c   : > { %13796 = vtanh.f32 %v6218_v21  ;;  %v6206_v25 = vadd.f32 %v6191_v43, %v6121_v59  ;;  %v18506_v21 = vsub.s32 3, %v18721_v22  ;;  %v14127_v59 = vld [vmem:[%s18425_s9] sm:$0xf] }
 0xc3d   : > { %v6192_v15 = vmul.f32 %v6177_v23, %v6124_v28  ;;  %13798 = vtanh.f32 %v6223_v41 }
 0xc3e   : > { %v6221_v61 = vmul.f32 0.7978846, %v6206_v25 }
 0xc3f   : > { %v6207_v56 = vadd.f32 %v6192_v15, %v6124_v28  ;;  %v16446_v28 = vrot.slane %v14127_v59, %v18506_v21 }
 0xc40   : > { %13800 = vtanh.f32 %v6221_v61 }
 0xc41   : > { %v6222_v29 = vmul.f32 0.7978846, %v6207_v56 }
 0xc42   : > { %v13791_v19 = vpop.eup %13790 }
 0xc43   : > { %13802 = vtanh.f32 %v6222_v29  ;;  %v6249_v58 = vadd.f32 1.0, %v13791_v19 }
 0xc44   : > { %v13793_v45 = vpop.eup %13792 }
 0xc45   : > { %v6247_v10 = vadd.f32 1.0, %v13793_v45  ;;  %v6264_v60 = vmul.f32 %v6249_v58, %v6144_v54 }
 0xc46   : > { %v13795_v1 = vpop.eup %13794 }
 0xc47   : > { %v6250_v17 = vadd.f32 1.0, %v13795_v1  ;;  %v6262_v44 = vmul.f32 %v6247_v10, %v6142_v26 }
 0xc49   : > { %v13797_v24 = vpop.eup %13796  ;;  %v6265_v11 = vmul.f32 %v6250_v17, %v6145_v27 }
 0xc4a   : > { %v6248_v13 = vadd.f32 1.0, %v13797_v24  ;;  %v13799_v33 = vpop.eup %13798 }
 0xc4b   : > { %v6274_v52 = vpack.c.bf16 %v6265_v11, %v6264_v60  ;;  %v6253_v34 = vadd.f32 1.0, %v13799_v33 }
 0xc4c   : > { %v6263_v12 = vmul.f32 %v6248_v13, %v6143_v57 }
 0xc4d   : > { %v13801_v14 = vpop.eup %13800  ;;  %v6268_v53 = vmul.f32 %v6253_v34, %v6148_v55 }
 0xc4e   : > { %v6273_v16 = vpack.c.bf16 %v6263_v12, %v6262_v44  ;;  %v6251_v62 = vadd.f32 1.0, %v13801_v14 }
 0xc4f   : > { %v6276_v0 = vpack.c.bf16 %v6268_v53, %v6268_v53 }
 0xc50   : > { %v13803_v35 = vpop.eup %13802  ;;  %12537 = vmatprep.mubr.msk.bf16.mxu0 %vm6309_vm5, %v6273_v16  ;;  %v6266_v4 = vmul.f32 %v6251_v62, %v6146_v20 }
 0xc51   : > { %12538 = vmatmul.mubr.msk.bf16.gmra.mxu0 %vm6309_vm5, %v6274_v52  ;;  %v6252_v3 = vadd.f32 1.0, %v13803_v35 }
 0xc53   : > { %v6267_v49 = vmul.f32 %v6252_v3, %v6147_v18 }
 0xc55   : > { %v6275_v9 = vpack.c.bf16 %v6267_v49, %v6266_v4 }
 0xc57   : > { %12541 = vmatprep.mubr.msk.bf16.mxu0 %vm6309_vm5, %v6275_v9 }
 0xc59   : > { %12542 = vmatmul.mubr.msk.bf16.gmra.mxu0 %vm6309_vm5, %v6276_v0 }
 0xc9f   : > { %v12531_v63 = vpop.f32.mrf.mxu0 }
 0xca0   : > { %v6432_v47 = vadd.f32 %v12531_v63, %v16151_v31 }
 0xca1   : > { %v6368_v43 = vpop.f32.mrf.mxu0 }
 0xca2   : > { %v6430_v23 = vadd.f32 %v6368_v43, %v16148_v32  ;;  %v16453_v61 = vadd.f32 %v16446_v28, %v6432_v47 }
 0xca3   : > { %v12532_v41 = vpop.f32.mrf.mxu0 }
 0xca4   : > { %v16450_v25 = vadd.f32 %v16446_v28, %v6430_v23  ;;  %18723 = vst [vmem:[#allocation26_spill] sm:$0xff] %v16453_v61  ;;  %v6433_v31 = vadd.f32 %v12532_v41, %v16161_v5  ;;  %v6474_v45 = vsel %vm630_vm0, %v16453_v61, 0.0 }
 0xca5   : > { %v6371_v15 = vpop.f32.mrf.mxu0 }
 0xca6   : > { %18722 = vst [vmem:[#allocation24_spill] sm:$0xff] %v16450_v25  ;;  %v6431_v56 = vadd.f32 %v6371_v15, %v16158_v39  ;;  %v6468_v29 = vsel %vm630_vm0, %v16450_v25, 0.0  ;;  %v16463_v32 = vadd.f32 %v16446_v28, %v6433_v31 }
 0xca7   : > { %6469 = vadd.xlane.f32.xlu1 %v6468_v29 }
 0xca8   : > { %v16460_v19 = vadd.f32 %v16446_v28, %v6431_v56  ;;  %18725 = vst [vmem:[#allocation29_spill] sm:$0xff] %v16463_v32  ;;  %v6477_v39 = vsel %vm630_vm0, %v16463_v32, 0.0 }
 0xcaa   : > { %18724 = vst [vmem:[#allocation28_spill] sm:$0xff] %v16460_v19  ;;  %v6471_v1 = vsel %vm630_vm0, %v16460_v19, 0.0 }
 0xcab   : > { %6475 = vadd.xlane.f32.xlu1 %v6474_v45  ;;  %6472 = vadd.xlane.f32.xlu0 %v6471_v1 }
 0xcaf   : > { %6478 = vadd.xlane.f32.xlu0 %v6477_v39 }
 0xccc   : > { %v12535_v5 = vpop.f32.mrf.mxu0 }
 0xccd   : > { %v6436_v10 = vadd.f32 %v12535_v5, %v16175_v46 }
 0xcce   : > { %v6384_v17 = vpop.f32.mrf.mxu0 }
 0xccf   : > { %v6434_v24 = vadd.f32 %v6384_v17, %v16172_v7  ;;  %v16477_v57 = vadd.f32 %v16446_v28, %v6436_v10 }
 0xcd0   : > { %v12536_v27 = vpop.f32.mrf.mxu0 }
 0xcd1   : > { %v16474_v58 = vadd.f32 %v16446_v28, %v6434_v24  ;;  %18727 = vst [vmem:[#allocation32_spill] sm:$0xff] %v16477_v57  ;;  %v6437_v13 = vadd.f32 %v12536_v27, %v16185_v42  ;;  %v6486_v33 = vsel %vm630_vm0, %v16477_v57, 0.0 }
 0xcd2   : > { %v6387_v26 = vpop.f32.mrf.mxu0 }
 0xcd3   : > { %18726 = vst [vmem:[#allocation27_spill] sm:$0xff] %v16474_v58  ;;  %v6435_v54 = vadd.f32 %v6387_v26, %v16182_v2  ;;  %v6480_v11 = vsel %vm630_vm0, %v16474_v58, 0.0  ;;  %v16487_v7 = vadd.f32 %v16446_v28, %v6437_v13 }
 0xcd4   : > { %6481 = vadd.xlane.f32.xlu1 %v6480_v11 }
 0xcd5   : > { %v16484_v46 = vadd.f32 %v16446_v28, %v6435_v54  ;;  %18729 = vst [vmem:[#allocation23_spill] sm:$0xff] %v16487_v7  ;;  %v6489_v2 = vsel %vm630_vm0, %v16487_v7, 0.0 }
 0xcd7   : > { %18728 = vst [vmem:[#allocation30_spill] sm:$0xff] %v16484_v46  ;;  %v6483_v44 = vsel %vm630_vm0, %v16484_v46, 0.0 }
 0xcd8   : > { %6487 = vadd.xlane.f32.xlu1 %v6486_v33  ;;  %6484 = vadd.xlane.f32.xlu0 %v6483_v44  ;;  %v13408_v44 = vld [vmem:[%s18421_s5 + $0x18] sm:$0xff]  }
 0xcd9   : > { %12545 = vmatprep.subr.bf16.mxu1 %v13408_v44 }
 0xcda   : > { %12546 = vmatpush3.bf16.msra.mxu1 %v13408_v44 }
 0xcdc   : > { %6490 = vadd.xlane.f32.xlu0 %v6489_v2 }
 0xd11   : > { %v12539_v42 = vpop.f32.mrf.mxu0 }
 0xd12   : > { %v6440_v12 = vadd.f32 %v12539_v42, %v16199_v38 }
 0xd13   : > { %v6400_v14 = vpop.f32.mrf.mxu0 }
 0xd14   : > { %v6438_v60 = vadd.f32 %v6400_v14, %v16196_v40  ;;  %v16501_v62 = vadd.f32 %v16446_v28, %v6440_v12  ;;  %v13409_v12 = vld [vmem:[%s18421_s5 + $0x10] sm:$0xff]  }
 0xd15   : > { %v12540_v16 = vpop.f32.mrf.mxu0  ;;  %12547 = vmatprep.subr.bf16.mxu1 %v13409_v12 }
 0xd16   : > { %v16498_v52 = vadd.f32 %v16446_v28, %v6438_v60  ;;  %18731 = vst [vmem:[#allocation33_spill] sm:$0xff] %v16501_v62  ;;  %v6441_v35 = vadd.f32 %v12540_v16, %v16211_v6  ;;  %v6498_v3 = vsel %vm630_vm0, %v16501_v62, 0.0  ;;  %12548 = vmatpush3.bf16.msra.mxu1 %v13409_v12 }
 0xd17   : > { %v6403_v34 = vpop.f32.mrf.mxu0 }
 0xd18   : > { %18730 = vst [vmem:[#allocation31_spill] sm:$0xff] %v16498_v52  ;;  %v6439_v55 = vadd.f32 %v6403_v34, %v16206_v8  ;;  %v6492_v20 = vsel %vm630_vm0, %v16498_v52, 0.0  ;;  %v16513_v4 = vadd.f32 %v16446_v28, %v6441_v35 }
 0xd19   : > { %6493 = vadd.xlane.f32.xlu1 %v6492_v20  ;;  %v12543_v38 = vpop.f32.mrf.mxu0 }
 0xd1a   : > { %v16508_v18 = vadd.f32 %v16446_v28, %v6439_v55  ;;  %18733 = vst [vmem:[#allocation35_spill] sm:$0xff] %v16513_v4  ;;  %v6444_v49 = vadd.f32 %v12543_v38, %v16221_v36  ;;  %v6501_v36 = vsel %vm630_vm0, %v16513_v4, 0.0 }
 0xd1b   : > { %v6416_v40 = vpop.f32.mrf.mxu0 }
 0xd1c   : > { %18732 = vst [vmem:[#allocation34_spill] sm:$0xff] %v16508_v18  ;;  %v6442_v6 = vadd.f32 %v6416_v40, %v16218_v37  ;;  %v6495_v8 = vsel %vm630_vm0, %v16508_v18, 0.0  ;;  %v16523_v63 = vadd.f32 %v16446_v28, %v6444_v49 }
 0xd1d   : > { %6499 = vadd.xlane.f32.xlu1 %v6498_v3  ;;  %6496 = vadd.xlane.f32.xlu0 %v6495_v8  ;;  %v12544_v53 = vpop.f32.mrf.mxu0 }
 0xd1e   : > { %v16520_v9 = vadd.f32 %v16446_v28, %v6442_v6  ;;  %18735 = vst [vmem:[#allocation36_spill] sm:$0xff] %v16523_v63  ;;  %v6510_v59 = vsel %vm1501_vm7, %v16523_v63, 0.0 }
 0xd1f   : > { %v6419_v0 = vpop.f32.mrf.mxu0 }
 0xd20   : > { %18734 = vst [vmem:[#allocation37_spill] sm:$0xff] %v16520_v9  ;;  %v6443_v43 = vadd.f32 %v6419_v0, %v16229_v51  ;;  %v6504_v37 = vsel %vm630_vm0, %v16520_v9, 0.0 }
 0xd21   : > { %6502 = vadd.xlane.f32.xlu0 %v6501_v36  ;;  %6505 = vadd.xlane.f32.xlu1 %v6504_v37 }
 0xd22   : > { %v16531_v47 = vadd.f32 %v16446_v28, %v6443_v43 }
 0xd24   : > { %18736 = vst [vmem:[#allocation38_spill] sm:$0xff] %v16531_v47  ;;  %v6507_v23 = vsel %vm630_vm0, %v16531_v47, 0.0 }
 0xd25   : > { %6511 = vadd.xlane.f32.xlu1 %v6510_v59  ;;  %6508 = vadd.xlane.f32.xlu0 %v6507_v23 }
 0xd30   : > { %v6470_v51 = vpop.xlane.xlu1 %6469 }
 0xd31   : > { %v6513_v41 = vmul.f32 0.03125, %v6470_v51 }
 0xd33   : > { %v16538_v15 = vsub.f32 %v16450_v25, %v6513_v41 }
 0xd34   : > { %v6476_v31 = vpop.xlane.xlu1 %6475  ;;  %v6473_v56 = vpop.xlane.xlu0 %6472 }
 0xd35   : > { %v6515_v29 = vmul.f32 0.03125, %v6476_v31  ;;  %v6514_v45 = vmul.f32 0.03125, %v6473_v56  ;;  %v6543_v28 = vmul.f32 %v16538_v15, %v16538_v15 }
 0xd37   : > { %v16543_v1 = vsub.f32 %v16453_v61, %v6515_v29  ;;  %v16546_v39 = vsub.f32 %v16460_v19, %v6514_v45  ;;  %v6558_v5 = vsel %vm630_vm0, %v6543_v28, 0.0 }
 0xd38   : > { %6559 = vadd.xlane.f32.xlu0 %v6558_v5  ;;  %v6479_v17 = vpop.xlane.xlu0 %6478 }
 0xd39   : > { %v6516_v10 = vmul.f32 0.03125, %v6479_v17  ;;  %v6545_v24 = vmul.f32 %v16543_v1, %v16543_v1  ;;  %v6544_v27 = vmul.f32 %v16546_v39, %v16546_v39 }
 0xd3b   : > { %v16554_v26 = vsub.f32 %v16463_v32, %v6516_v10  ;;  %v6564_v13 = vsel %vm630_vm0, %v6545_v24, 0.0  ;;  %v6561_v54 = vsel %vm630_vm0, %v6544_v27, 0.0 }
 0xd3c   : > { %6565 = vadd.xlane.f32.xlu0 %v6564_v13  ;;  %6562 = vadd.xlane.f32.xlu1 %v6561_v54 }
 0xd3d   : > { %v6546_v11 = vmul.f32 %v16554_v26, %v16554_v26 }
 0xd3f   : > { %v6567_v33 = vsel %vm630_vm0, %v6546_v11, 0.0 }
 0xd40   : > { %6568 = vadd.xlane.f32.xlu1 %v6567_v33 }
 0xd5d   : > { %v6482_v2 = vpop.xlane.xlu1 %6481 }
 0xd5e   : > { %v6517_v42 = vmul.f32 0.03125, %v6482_v2 }
 0xd60   : > { %v16568_v14 = vsub.f32 %v16474_v58, %v6517_v42 }
 0xd61   : > { %v6488_v60 = vpop.xlane.xlu1 %6487  ;;  %v6485_v16 = vpop.xlane.xlu0 %6484 }
 0xd62   : > { %v6519_v34 = vmul.f32 0.03125, %v6488_v60  ;;  %v6518_v35 = vmul.f32 0.03125, %v6485_v16  ;;  %v6547_v55 = vmul.f32 %v16568_v14, %v16568_v14 }
 0xd64   : > { %v16573_v20 = vsub.f32 %v16477_v57, %v6519_v34  ;;  %v16576_v38 = vsub.f32 %v16484_v46, %v6518_v35  ;;  %v6570_v40 = vsel %vm630_vm0, %v6547_v55, 0.0 }
 0xd65   : > { %6571 = vadd.xlane.f32.xlu0 %v6570_v40  ;;  %v6491_v3 = vpop.xlane.xlu0 %6490 }
 0xd66   : > { %v6520_v49 = vmul.f32 0.03125, %v6491_v3  ;;  %v6549_v6 = vmul.f32 %v16573_v20, %v16573_v20  ;;  %v6548_v8 = vmul.f32 %v16576_v38, %v16576_v38 }
 0xd68   : > { %v16584_v53 = vsub.f32 %v16487_v7, %v6520_v49  ;;  %v6576_v0 = vsel %vm630_vm0, %v6549_v6, 0.0  ;;  %v6573_v43 = vsel %vm630_vm0, %v6548_v8, 0.0 }
 0xd69   : > { %6577 = vadd.xlane.f32.xlu0 %v6576_v0  ;;  %6574 = vadd.xlane.f32.xlu1 %v6573_v43 }
 0xd6a   : > { %v6550_v36 = vmul.f32 %v16584_v53, %v16584_v53 }
 0xd6c   : > { %v6579_v37 = vsel %vm630_vm0, %v6550_v36, 0.0 }
 0xd6d   : > { %6580 = vadd.xlane.f32.xlu1 %v6579_v37 }
 0xda2   : > { %v6494_v59 = vpop.xlane.xlu1 %6493 }
 0xda3   : > { %v6521_v23 = vmul.f32 0.03125, %v6494_v59 }
 0xda5   : > { %v16592_v51 = vsub.f32 %v16498_v52, %v6521_v23 }
 0xda6   : > { %v6500_v41 = vpop.xlane.xlu1 %6499  ;;  %v6497_v31 = vpop.xlane.xlu0 %6496 }
 0xda7   : > { %v6523_v56 = vmul.f32 0.03125, %v6500_v41  ;;  %v6522_v29 = vmul.f32 0.03125, %v6497_v31  ;;  %v6551_v45 = vmul.f32 %v16592_v51, %v16592_v51 }
 0xda9   : > { %v16597_v28 = vsub.f32 %v16501_v62, %v6523_v56  ;;  %v16600_v5 = vsub.f32 %v16508_v18, %v6522_v29  ;;  %v6582_v17 = vsel %vm630_vm0, %v6551_v45, 0.0 }
 0xdaa   : > { %v6506_v10 = vpop.xlane.xlu1 %6505  ;;  %6583 = vadd.xlane.f32.xlu0 %v6582_v17  ;;  %v6503_v24 = vpop.xlane.xlu0 %6502 }
 0xdab   : > { %v6525_v27 = vmul.f32 0.03125, %v6506_v10  ;;  %v6524_v13 = vmul.f32 0.03125, %v6503_v24  ;;  %v6553_v54 = vmul.f32 %v16597_v28, %v16597_v28  ;;  %v6552_v11 = vmul.f32 %v16600_v5, %v16600_v5 }
 0xdad   : > { %v16608_v33 = vsub.f32 %v16520_v9, %v6525_v27  ;;  %v16611_v44 = vsub.f32 %v16513_v4, %v6524_v13  ;;  %v6588_v2 = vsel %vm630_vm0, %v6553_v54, 0.0  ;;  %v6585_v42 = vsel %vm630_vm0, %v6552_v11, 0.0  ;;  %v11753_v13 = vld [vmem:[%s18420_s4 + $0x2] sm:$0x3] }
 0xdae   : > { %v6512_v12 = vpop.xlane.xlu1 %6511  ;;  %6589 = vadd.xlane.f32.xlu0 %v6588_v2  ;;  %6586 = vadd.xlane.f32.xlu1 %v6585_v42  ;;  %v6509_v60 = vpop.xlane.xlu0 %6508  ;;  %v18737_v11 = vld [vmem:[#allocation19_spill] sm:$0xff] }
 0xdaf   : > { %v6527_v16 = vmul.f32 0.03125, %v6512_v12  ;;  %v6526_v34 = vmul.f32 0.03125, %v6509_v60  ;;  %v6555_v35 = vmul.f32 %v16608_v33, %v16608_v33  ;;  %v6554_v55 = vmul.f32 %v16611_v44, %v16611_v44 }
 0xdb0   : > { %v16637_v2 = vrot.slane %v11753_v13, %v18737_v11 }
 0xdb1   : > { %v16620_v40 = vsub.f32 %v16523_v63, %v6527_v16  ;;  %v16623_v3 = vsub.f32 %v16531_v47, %v6526_v34  ;;  %v6594_v49 = vsel %vm630_vm0, %v6555_v35, 0.0  ;;  %v6591_v6 = vsel %vm630_vm0, %v6554_v55, 0.0 }
 0xdb2   : > { %6595 = vadd.xlane.f32.xlu0 %v6594_v49  ;;  %6592 = vadd.xlane.f32.xlu1 %v6591_v6  ;;  %18738 = vst [vmem:[#allocation40_spill] sm:$0xff] %v16637_v2  ;;  %v16641_v16 = vrot.slane %v11753_v13, %v18704_v48 }
 0xdb3   : > { %v6557_v8 = vmul.f32 %v16620_v40, %v16620_v40  ;;  %v6556_v0 = vmul.f32 %v16623_v3, %v16623_v3 }
 0xdb4   : > { %18739 = vst [vmem:[#allocation42_spill] sm:$0xff] %v16641_v16 }
 0xdb5   : > { %v6600_v43 = vsel %vm1501_vm7, %v6557_v8, 0.0  ;;  %v6597_v36 = vsel %vm630_vm0, %v6556_v0, 0.0 }
 0xdb6   : > { %6601 = vadd.xlane.f32.xlu0 %v6600_v43  ;;  %6598 = vadd.xlane.f32.xlu1 %v6597_v36 }
 0xdc1   : > { %v6560_v37 = vpop.xlane.xlu0 %6559 }
 0xdc2   : > { %v6603_v59 = vmul.f32 0.03125, %v6560_v37 }
 0xdc4   : > { %v6618_v23 = vadd.f32 1e-05, %v6603_v59 }
 0xdc5   : > { %v6563_v41 = vpop.xlane.xlu1 %6562  ;;  %v6566_v31 = vpop.xlane.xlu0 %6565 }
 0xdc6   : > { %13804 = vrsqrt.f32 %v6618_v23  ;;  %v6604_v56 = vmul.f32 0.03125, %v6563_v41  ;;  %v6605_v29 = vmul.f32 0.03125, %v6566_v31 }
 0xdc8   : > { %v6619_v45 = vadd.f32 1e-05, %v6604_v56  ;;  %v6620_v17 = vadd.f32 1e-05, %v6605_v29 }
 0xdc9   : > { %v6569_v10 = vpop.xlane.xlu1 %6568 }
 0xdca   : > { %13806 = vrsqrt.f32 %v6619_v45  ;;  %v6606_v24 = vmul.f32 0.03125, %v6569_v10 }
 0xdcb   : > { %13808 = vrsqrt.f32 %v6620_v17 }
 0xdcc   : > { %v6621_v27 = vadd.f32 1e-05, %v6606_v24 }
 0xdce   : > { %13810 = vrsqrt.f32 %v6621_v27 }
 0xdd3   : > { %v13805_v54 = vpop.eup %13804 }
 0xdd4   : > { %v6648_v42 = vmul.f32 %v13805_v54, %v16538_v15 }
 0xdd6   : > { %v6667_v35 = vmul.f32 %v16637_v2, %v6648_v42 }
 0xdd7   : > { %v13807_v12 = vpop.eup %13806 }
 0xdd8   : > { %v13809_v60 = vpop.eup %13808  ;;  %v6649_v34 = vmul.f32 %v13807_v12, %v16546_v39  ;;  %v6686_v15 = vadd.f32 %v16641_v16, %v6667_v35 }
 0xdd9   : > { %v6650_v55 = vmul.f32 %v13809_v60, %v16543_v1 }
 0xdda   : > { %v6668_v49 = vmul.f32 %v16637_v2, %v6649_v34 }
 0xddb   : > { %v13811_v6 = vpop.eup %13810  ;;  %v6669_v8 = vmul.f32 %v16637_v2, %v6650_v55 }
 0xddc   : > { %v6651_v0 = vmul.f32 %v13811_v6, %v16554_v26  ;;  %v6687_v43 = vadd.f32 %v16641_v16, %v6668_v49 }
 0xddd   : > { %v6688_v39 = vadd.f32 %v16641_v16, %v6669_v8 }
 0xdde   : > { %v6670_v36 = vmul.f32 %v16637_v2, %v6651_v0  ;;  %v6701_v37 = vpack.c.bf16 %v6687_v43, %v6686_v15 }
 0xde0   : > { %v6689_v59 = vadd.f32 %v16641_v16, %v6670_v36  ;;  %12549 = vmatprep.mubr.msk.bf16.mxu1 %vm630_vm0, %v6701_v37 }
 0xde2   : > { %v6702_v1 = vpack.c.bf16 %v6689_v59, %v6688_v39 }
 0xde4   : > { %12550 = vmatmul.mubr.msk.bf16.vlgmr.msra.gmra.mxu1 %vm630_vm0, %v6702_v1 }
 0xdee   : > { %v6572_v23 = vpop.xlane.xlu0 %6571 }
 0xdef   : > { %v6607_v41 = vmul.f32 0.03125, %v6572_v23 }
 0xdf1   : > { %v6622_v31 = vadd.f32 1e-05, %v6607_v41 }
 0xdf2   : > { %v6575_v26 = vpop.xlane.xlu1 %6574  ;;  %v6578_v56 = vpop.xlane.xlu0 %6577 }
 0xdf3   : > { %13812 = vrsqrt.f32 %v6622_v31  ;;  %v6608_v29 = vmul.f32 0.03125, %v6575_v26  ;;  %v6609_v45 = vmul.f32 0.03125, %v6578_v56 }
 0xdf5   : > { %v6623_v17 = vadd.f32 1e-05, %v6608_v29  ;;  %v6624_v10 = vadd.f32 1e-05, %v6609_v45 }
 0xdf6   : > { %v6581_v24 = vpop.xlane.xlu1 %6580 }
 0xdf7   : > { %13814 = vrsqrt.f32 %v6623_v17  ;;  %v6610_v27 = vmul.f32 0.03125, %v6581_v24 }
 0xdf8   : > { %13816 = vrsqrt.f32 %v6624_v10 }
 0xdf9   : > { %v6625_v13 = vadd.f32 1e-05, %v6610_v27 }
 0xdfb   : > { %13818 = vrsqrt.f32 %v6625_v13 }
 0xe00   : > { %v13813_v54 = vpop.eup %13812 }
 0xe01   : > { %v6652_v42 = vmul.f32 %v13813_v54, %v16568_v14 }
 0xe03   : > { %v6671_v35 = vmul.f32 %v16637_v2, %v6652_v42 }
 0xe04   : > { %v13815_v12 = vpop.eup %13814 }
 0xe05   : > { %v13817_v60 = vpop.eup %13816  ;;  %v6653_v34 = vmul.f32 %v13815_v12, %v16576_v38  ;;  %v6690_v0 = vadd.f32 %v16641_v16, %v6671_v35 }
 0xe06   : > { %v6654_v55 = vmul.f32 %v13817_v60, %v16573_v20 }
 0xe07   : > { %v6672_v49 = vmul.f32 %v16637_v2, %v6653_v34 }
 0xe08   : > { %v13819_v6 = vpop.eup %13818  ;;  %v6673_v43 = vmul.f32 %v16637_v2, %v6654_v55 }
 0xe09   : > { %v6655_v8 = vmul.f32 %v13819_v6, %v16584_v53  ;;  %v6691_v15 = vadd.f32 %v16641_v16, %v6672_v49 }
 0xe0a   : > { %v6692_v38 = vadd.f32 %v16641_v16, %v6673_v43 }
 0xe0b   : > { %v6703_v14 = vpack.c.bf16 %v6691_v15, %v6690_v0  ;;  %v6674_v36 = vmul.f32 %v16637_v2, %v6655_v8 }
 0xe0d   : > { %12553 = vmatprep.mubr.msk.bf16.mxu1 %vm630_vm0, %v6703_v14  ;;  %v6693_v20 = vadd.f32 %v16641_v16, %v6674_v36 }
 0xe0f   : > { %v6704_v37 = vpack.c.bf16 %v6693_v20, %v6692_v38 }
 0xe11   : > { %12554 = vmatmul.mubr.msk.bf16.gmra.mxu1 %vm630_vm0, %v6704_v37 }
 0xe33   : > { %v6584_v39 = vpop.xlane.xlu0 %6583 }
 0xe34   : > { %v6611_v53 = vmul.f32 0.03125, %v6584_v39 }
 0xe36   : > { %v6626_v59 = vadd.f32 1e-05, %v6611_v53 }
 0xe37   : > { %v6587_v1 = vpop.xlane.xlu1 %6586  ;;  %v6590_v23 = vpop.xlane.xlu0 %6589 }
 0xe38   : > { %13820 = vrsqrt.f32 %v6626_v59  ;;  %v6612_v41 = vmul.f32 0.03125, %v6587_v1  ;;  %v6613_v31 = vmul.f32 0.03125, %v6590_v23 }
 0xe3a   : > { %v6627_v26 = vadd.f32 1e-05, %v6612_v41  ;;  %v6628_v56 = vadd.f32 1e-05, %v6613_v31 }
 0xe3b   : > { %v6593_v29 = vpop.xlane.xlu1 %6592  ;;  %v6596_v45 = vpop.xlane.xlu0 %6595 }
 0xe3c   : > { %13822 = vrsqrt.f32 %v6627_v26  ;;  %v6614_v17 = vmul.f32 0.03125, %v6593_v29  ;;  %v6615_v10 = vmul.f32 0.03125, %v6596_v45 }
 0xe3d   : > { %13824 = vrsqrt.f32 %v6628_v56 }
 0xe3e   : > { %v6629_v24 = vadd.f32 1e-05, %v6614_v17  ;;  %v6630_v27 = vadd.f32 1e-05, %v6615_v10 }
 0xe3f   : > { %v6599_v13 = vpop.xlane.xlu1 %6598  ;;  %v6602_v54 = vpop.xlane.xlu0 %6601 }
 0xe40   : > { %13826 = vrsqrt.f32 %v6629_v24  ;;  %v6616_v42 = vmul.f32 0.03125, %v6599_v13  ;;  %v6617_v12 = vmul.f32 0.03125, %v6602_v54 }
 0xe41   : > { %13828 = vrsqrt.f32 %v6630_v27 }
 0xe42   : > { %v6631_v60 = vadd.f32 1e-05, %v6616_v42  ;;  %v6632_v34 = vadd.f32 1e-05, %v6617_v12 }
 0xe44   : > { %13830 = vrsqrt.f32 %v6631_v60 }
 0xe45   : > { %v13821_v35 = vpop.eup %13820  ;;  %13832 = vrsqrt.f32 %v6632_v34 }
 0xe46   : > { %v6656_v55 = vmul.f32 %v13821_v35, %v16592_v51 }
 0xe48   : > { %v6675_v0 = vmul.f32 %v16637_v2, %v6656_v55 }
 0xe49   : > { %v13823_v49 = vpop.eup %13822 }
 0xe4a   : > { %v13825_v6 = vpop.eup %13824  ;;  %v6657_v8 = vmul.f32 %v13823_v49, %v16600_v5  ;;  %v6694_v20 = vadd.f32 %v16641_v16, %v6675_v0 }
 0xe4b   : > { %v6658_v15 = vmul.f32 %v13825_v6, %v16597_v28 }
 0xe4c   : > { %v6676_v43 = vmul.f32 %v16637_v2, %v6657_v8 }
 0xe4d   : > { %v13827_v14 = vpop.eup %13826  ;;  %v6677_v51 = vmul.f32 %v16637_v2, %v6658_v15 }
 0xe4e   : > { %v13829_v36 = vpop.eup %13828  ;;  %v6659_v38 = vmul.f32 %v13827_v14, %v16611_v44  ;;  %v6695_v37 = vadd.f32 %v16641_v16, %v6676_v43 }
 0xe4f   : > { %v6660_v39 = vmul.f32 %v13829_v36, %v16608_v33  ;;  %v6696_v28 = vadd.f32 %v16641_v16, %v6677_v51 }
 0xe50   : > { %v6705_v53 = vpack.c.bf16 %v6695_v37, %v6694_v20  ;;  %v6678_v5 = vmul.f32 %v16637_v2, %v6659_v38 }
 0xe51   : > { %v13831_v59 = vpop.eup %13830  ;;  %v6679_v41 = vmul.f32 %v16637_v2, %v6660_v39 }
 0xe52   : > { %v13833_v1 = vpop.eup %13832  ;;  %12557 = vmatprep.mubr.msk.bf16.mxu1 %vm630_vm0, %v6705_v53  ;;  %v6697_v23 = vadd.f32 %v16641_v16, %v6678_v5  ;;  %v6661_v44 = vmul.f32 %v13831_v59, %v16623_v3 }
 0xe53   : > { %v6662_v31 = vmul.f32 %v13833_v1, %v16620_v40  ;;  %v6698_v29 = vadd.f32 %v16641_v16, %v6679_v41  ;;  %v11754_v40 = vld [vmem:[%s18425_s9 + $0x4] sm:$0xf] }
 0xe54   : > { %v6706_v26 = vpack.c.bf16 %v6697_v23, %v6696_v28  ;;  %v6680_v33 = vmul.f32 %v16637_v2, %v6661_v44  ;;  %v16699_v27 = vrot.slane %v11754_v40, %v18737_v11 }
 0xe55   : > { %v6681_v56 = vmul.f32 %v16637_v2, %v6662_v31 }
 0xe56   : > { %12558 = vmatmul.mubr.msk.bf16.gmra.mxu1 %vm630_vm0, %v6706_v26  ;;  %v6699_v45 = vadd.f32 %v16641_v16, %v6680_v33 }
 0xe57   : > { %v6700_v10 = vadd.f32 %v16641_v16, %v6681_v56 }
 0xe58   : > { %v6707_v17 = vpack.c.bf16 %v6699_v45, %v6698_v29 }
 0xe59   : > { %v6708_v3 = vpack.c.bf16 %v6700_v10, %v6700_v10 }
 0xe5a   : > { %12561 = vmatprep.mubr.msk.bf16.mxu1 %vm630_vm0, %v6707_v17 }
 0xe5e   : > { %12562 = vmatmul.mubr.msk.bf16.gmra.mxu1 %vm630_vm0, %v6708_v3 }
 0xea4   : > { %v12551_v24 = vpop.f32.mrf.mxu1 }
 0xea5   : > { %v6797_v42 = vadd.f32 %v12551_v24, %v16699_v27 }
 0xea6   : > { %v6788_v13 = vpop.f32.mrf.mxu1 }
 0xea7   : > { %v6789_v34 = vadd.f32 %v6788_v13, %v16699_v27 }
 0xea8   : > { %v12552_v54 = vpop.f32.mrf.mxu1 }
 0xea9   : > { %v6800_v12 = vadd.f32 %v12552_v54, %v16699_v27 }
 0xeaa   : > { %v6791_v60 = vpop.f32.mrf.mxu1 }
 0xeab   : > { %v13122_v35 = vpack.i.bf16 %v6800_v12, %v6797_v42  ;;  %v6792_v55 = vadd.f32 %v6791_v60, %v16699_v27  ;;  %v16711_v11 = vpack.c.bf16 %v6800_v12, %v6797_v42  ;;  %v7162_v51 = vrot.slane %v6800_v12, 5 }
 0xead   : > { %v13127_v49 = vpack.i.bf16 %v6792_v55, %v6789_v34  ;;  %v16705_v6 = vpack.c.bf16 %v6792_v55, %v6789_v34  ;;  %13123 = vrot.lane.b32.xlu0 %v13122_v35, %s14139_s20  ;;  %v7217_v5 = vshrl.u32 %v16711_v11, 16  ;;  %v7220_v23 = vshll.u32 %v16711_v11, 16 }
 0xeaf   : > { %13128 = vrot.lane.b32.xlu1 %v13127_v49, %s14139_s20  ;;  %12567 = vmatprep.mubr.msk.bf16.mxu0 %vm1900_vm8, %v16705_v6  ;;  %v7219_v17 = vrot.slane %v7217_v5, 6  ;;  %v7222_v40 = vrot.slane %v7220_v23, 7 }
 0xeb1   : > { %6968 = vrot.lane.b32.xlu0 %v16705_v6, %s14140_s21  ;;  %v7223_v60 = vor.u32 %v7222_v40, %v7219_v17 }
 0xeb3   : > { %6970 = vrot.lane.b32.xlu1 %v16711_v11, %s14140_s21 }
 0xeb5   : > { %7032 = vrot.lane.b32.xlu0 %v16705_v6, %s14141_s22 }
 0xeb7   : > { %7034 = vrot.lane.b32.xlu1 %v16711_v11, %s14141_s22 }
 0xeb9   : > { %7094 = vrot.lane.b32.xlu0 %v16705_v6, %s14142_s23 }
 0xebb   : > { %7096 = vrot.lane.b32.xlu1 %v16711_v11, %s14142_s23 }
 0xed1   : > { %v12555_v8 = vpop.f32.mrf.mxu1 }
 0xed2   : > { %v6813_v36 = vadd.f32 %v12555_v8, %v16699_v27 }
 0xed3   : > { %v6804_v0 = vpop.f32.mrf.mxu1 }
 0xed4   : > { %v6805_v15 = vadd.f32 %v6804_v0, %v16699_v27  ;;  %v7167_v59 = vrot.slane %v6813_v36, 5 }
 0xed5   : > { %v12556_v43 = vpop.f32.mrf.mxu1 }
 0xed6   : > { %v7163_v38 = vrot.slane %v6805_v15, 5  ;;  %v16728_v20 = vadd.f32 %v12556_v43, %v16699_v27 }
 0xed7   : > { %v6807_v14 = vpop.f32.mrf.mxu1 }
 0xed8   : > { %v6808_v37 = vadd.f32 %v6807_v14, %v16699_v27  ;;  %v7164_v1 = vsel %vm2156_vm9, %v7162_v51, %v7163_v38  ;;  %v16734_v28 = vpack.c.bf16 %v16728_v20, %v6813_v36  ;;  %v7169_v44 = vrot.slane %v16728_v20, 5 }
 0xeda   : > { %v6852_v39 = vpack.c.bf16 %v6808_v37, %v6805_v15  ;;  %v7165_v53 = vrot.slane %v6808_v37, 5  ;;  %v7234_v10 = vshrl.u32 %v16734_v28, 16  ;;  %v7237_v3 = vshll.u32 %v16734_v28, 16 }
 0xedb   : > { %v7170_v24 = vsel %vm2156_vm9, %v7167_v59, %v7169_v44 }
 0xedc   : > { %v7166_v41 = vsel %vm2156_vm9, %v7163_v38, %v7165_v53  ;;  %v7225_v31 = vshrl.u32 %v6852_v39, 16  ;;  %v7228_v26 = vshll.u32 %v6852_v39, 16  ;;  %v7168_v56 = vsel %vm2156_vm9, %v7165_v53, %v7167_v59 }
 0xedd   : > { %v13132_v33 = vpack.i.bf16 %v7166_v41, %v7164_v1  ;;  %v13137_v13 = vpack.i.bf16 %v7170_v24, %v7168_v56  ;;  %v7236_v42 = vrot.slane %v7234_v10, 6  ;;  %v7239_v12 = vrot.slane %v7237_v3, 7 }
 0xede   : > { %v7227_v29 = vrot.slane %v7225_v31, 6  ;;  %v7230_v45 = vrot.slane %v7228_v26, 7  ;;  %v7493_v41 = vrot.slane %v16728_v20, 2 }
 0xedf   : > { %13133 = vrot.lane.b32.xlu1 %v13132_v33, %s14139_s20  ;;  %v7240_v35 = vor.u32 %v7239_v12, %v7236_v42  ;;  %v7549_v42 = vrot.slane %v16734_v28, 5 }
 0xee0   : > { %v7231_v54 = vor.u32 %v7230_v45, %v7227_v29 }
 0xee2   : > { %v16746_v34 = vsel %vm2212_vm11, %v7223_v60, %v7231_v54  ;;  %v16751_v55 = vsel %vm2212_vm11, %v7231_v54, %v7240_v35 }
 0xee3   : > { %13138 = vrot.lane.b32.xlu1 %v13137_v13, %s14139_s20 }
 0xee7   : > { %7300 = vrot.lane.b32.xlu1 %v16746_v34, %s14140_s21 }
 0xeeb   : > { %7302 = vrot.lane.b32.xlu1 %v16751_v55, %s14140_s21 }
 0xeef   : > { %7364 = vrot.lane.b32.xlu1 %v16746_v34, %s14141_s22 }
 0xef3   : > { %7366 = vrot.lane.b32.xlu1 %v16751_v55, %s14141_s22 }
 0xef7   : > { %7426 = vrot.lane.b32.xlu1 %v16746_v34, %s14142_s23 }
 0xefb   : > { %7428 = vrot.lane.b32.xlu1 %v16751_v55, %s14142_s23 }
 0xf16   : > { %v12559_v49 = vpop.f32.mrf.mxu1 }
 0xf17   : > { %v6829_v15 = vadd.f32 %v12559_v49, %v16699_v27 }
 0xf18   : > { %v6820_v8 = vpop.f32.mrf.mxu1 }
 0xf19   : > { %v6821_v14 = vadd.f32 %v6820_v8, %v16699_v27  ;;  %v7498_v51 = vrot.slane %v6829_v15, 2  ;;  %v7806_v8 = vrot.slane %v6829_v15, 7 }
 0xf1a   : > { %v12560_v0 = vpop.f32.mrf.mxu1 }
 0xf1b   : > { %v6832_v37 = vadd.f32 %v12560_v0, %v16699_v27  ;;  %v7494_v59 = vrot.slane %v6821_v14, 2 }
 0xf1c   : > { %v6823_v43 = vpop.f32.mrf.mxu1 }
 0xf1d   : > { %v6824_v36 = vadd.f32 %v6823_v43, %v16699_v27  ;;  %v6855_v31 = vpack.c.bf16 %v6832_v37, %v6829_v15  ;;  %v7495_v45 = vsel %vm2489_vm13, %v7493_v41, %v7494_v59  ;;  %v7807_v35 = vrot.slane %v6832_v37, 7 }
 0xf1e   : > { %v12563_v38 = vpop.f32.mrf.mxu1 }
 0xf1f   : > { %v7496_v39 = vrot.slane %v6824_v36, 2  ;;  %v16767_v5 = vpop.permute.xlu0 %13123  ;;  %v6854_v1 = vpack.c.bf16 %v6824_v36, %v6821_v14  ;;  %v6845_v17 = vadd.f32 %v12563_v38, %v16699_v27  ;;  %v7862_v13 = vshrl.u32 %v6855_v31, 16 }
 0xf20   : > { %v6836_v53 = vpop.f32.mrf.mxu1  ;;  %v7865_v20 = vshll.u32 %v6855_v31, 16  ;;  %v7552_v60 = vrot.slane %v6855_v31, 5  ;;  %v7808_v15 = vsel %vm2804_vm12, %v7806_v8, %v7807_v35 }
 0xf21   : > { %v7499_v23 = vsel %vm2489_vm13, %v7496_v39, %v7498_v51  ;;  %v7497_v26 = vsel %vm2489_vm13, %v7494_v59, %v7496_v39  ;;  %v6837_v33 = vadd.f32 %v6836_v53, %v16699_v27  ;;  %v7550_v3 = vrot.slane %v6854_v1, 5 }
 0xf22   : > { %v12564_v44 = vpop.f32.mrf.mxu1  ;;  %v13147_v10 = vpack.i.bf16 %v7498_v51, %v7499_v23  ;;  %v13142_v40 = vpack.i.bf16 %v7497_v26, %v7495_v45  ;;  %v6857_v49 = vpack.c.bf16 %v6845_v17, %v6845_v17  ;;  %v7867_v36 = vrot.slane %v7865_v20, 4 }
 0xf23   : > { %v6969_v29 = vpop.permute.xlu0 %6968  ;;  %v7809_v54 = vrot.slane %v6837_v33, 7  ;;  %v16781_v0 = vsel %vm2156_vm9, %v7549_v42, %v7550_v3  ;;  %v16784_v38 = vsel %vm2156_vm9, %v7550_v3, %v7552_v60  ;;  %v13129_v3 = vpop.permute.xlu1 %13128 }
 0xf24   : > { %v6839_v56 = vpop.f32.mrf.mxu1  ;;  %12573 = vmatprep.mubr.msk.bf16.mxu1 %vm1900_vm8, %v6969_v29  ;;  %13148 = vrot.lane.b32.xlu1 %v13147_v10, %s14139_s20  ;;  %v7879_v37 = vshrl.u32 %v6857_v49, 16  ;;  %v7882_v53 = vshll.u32 %v6857_v49, 16  ;;  %v7813_v29 = vrot.slane %v6845_v17, 7  ;;  %v13131_v49 = vunpack.i.h.bf16 %v13129_v3 }
 0xf25   : > { %v6840_v24 = vadd.f32 %v6839_v56, %v16699_v27  ;;  %13143 = vrot.lane.b32.xlu0 %v13142_v40, %s14139_s20  ;;  %v7864_v27 = vrot.slane %v7862_v13, 3  ;;  %v7810_v51 = vsel %vm2804_vm12, %v7807_v35, %v7809_v54 }
 0xf26   : > { %v13152_v1 = vpack.i.bf16 %v7810_v51, %v7808_v15  ;;  %v7881_v44 = vrot.slane %v7879_v37, 3  ;;  %v7884_v41 = vrot.slane %v7882_v53, 4  ;;  %v13126_v51 = vunpack.i.h.bf16 %v16767_v5 }
 0xf27   : > { %v6856_v12 = vpack.c.bf16 %v6840_v24, %v6837_v33  ;;  %v7868_v23 = vor.u32 %v7867_v36, %v7864_v27  ;;  %v7811_v33 = vrot.slane %v6840_v24, 7  ;;  %v16816_v24 = vpop.permute.xlu1 %6970 }
 0xf28   : > { %7612 = vrot.lane.b32.xlu1 %v16781_v0, %s14140_s21  ;;  %v7885_v26 = vor.u32 %v7884_v41, %v7881_v44 }
 0xf29   : > { %v7870_v43 = vshrl.u32 %v6856_v12, 16  ;;  %v7873_v14 = vshll.u32 %v6856_v12, 16  ;;  %7740 = vrot.lane.b32.xlu0 %v16784_v38, %s14142_s23  ;;  %v7812_v45 = vsel %vm2804_vm12, %v7809_v54, %v7811_v33  ;;  %v7814_v10 = vsel %vm2804_vm12, %v7811_v33, %v7813_v29 }
 0xf2a   : > { %v13157_v40 = vpack.i.bf16 %v7814_v10, %v7812_v45  ;;  %v13130_v54 = vunpack.i.l.bf16 %v13129_v3 }
 0xf2b   : > { %v7872_v28 = vrot.slane %v7870_v43, 3  ;;  %v7875_v39 = vrot.slane %v7873_v14, 4  ;;  %v16820_v17 = vpop.permute.xlu1 %7034  ;;  %v13125_v14 = vunpack.i.l.bf16 %v16767_v5 }
 0xf2c   : > { %7614 = vrot.lane.b32.xlu1 %v16784_v38, %s14140_s21 }
 0xf2d   : > { %v7876_v59 = vor.u32 %v7875_v39, %v7872_v28  ;;  %13153 = vrot.lane.b32.xlu0 %v13152_v1, %s14139_s20  ;;  %v16838_v1 = vpop.permute.xlu0 %7032 }
 0xf2f   : > { %v16796_v31 = vsel %vm2860_vm14, %v7868_v23, %v7876_v59  ;;  %v16803_v56 = vsel %vm2860_vm14, %v7876_v59, %v7885_v26  ;;  %v16822_v13 = vpop.permute.xlu1 %7096 }
 0xf30   : > { %18740 = vst [vmem:[#allocation44_spill] sm:$0xff] %v16796_v31  ;;  %7676 = vrot.lane.b32.xlu1 %v16781_v0, %s14141_s22  ;;  %18741 = vst [vmem:[#allocation39_spill] sm:$0xff] %v16803_v56 }
 0xf31   : > { %7945 = vrot.lane.b32.xlu0 %v16796_v31, %s14140_s21  ;;  %v16844_v23 = vpop.permute.xlu0 %7094 }
 0xf34   : > { %7678 = vrot.lane.b32.xlu1 %v16784_v38, %s14141_s22 }
 0xf35   : > { %7947 = vrot.lane.b32.xlu0 %v16803_v56, %s14140_s21 }
 0xf38   : > { %7738 = vrot.lane.b32.xlu1 %v16781_v0, %s14142_s23 }
 0xf39   : > { %8009 = vrot.lane.b32.xlu0 %v16796_v31, %s14141_s22 }
 0xf3c   : > { %13158 = vrot.lane.b32.xlu1 %v13157_v40, %s14139_s20  ;;  %s11542_s20 = sshll.u32 %s11534_s14, 2 }
 0xf3d   : > { %p362_p4 = scmp.lt.s32.totalorder %s11542_s20, 7 }
 0xf3f   : > { %s18882_s20 = smov (!%p362_p4, %s11542_s20), 7 }
 0xf40   : > { %8071 = vrot.lane.b32.xlu1 %v16796_v31, %s14142_s23  ;;  %s11898_s21 = sshll.u32 %s18882_s20, 5 }
 0xf51   : > { %v13134_v20 = vpop.permute.xlu1 %13133 }
 0xf52   : > { %v13135_v42 = vunpack.i.l.bf16 %v13134_v20  ;;  %v13136_v60 = vunpack.i.h.bf16 %v13134_v20 }
 0xf54   : > { %v13162_v12 = vpack.i.bf16 %v13135_v42, %v13130_v54  ;;  %v13164_v8 = vpack.i.bf16 %v13136_v60, %v13131_v49 }
 0xf55   : > { %v13139_v35 = vpop.permute.xlu1 %13138 }
 0xf56   : > { %v13140_v43 = vunpack.i.l.bf16 %v13139_v35  ;;  %v13141_v27 = vunpack.i.h.bf16 %v13139_v35 }
 0xf57   : > { %13163 = vxpose.xlu0.b32.start [1/4] (short) (narrow) %v13162_v12, 32 }
 0xf58   : > { %v13166_v36 = vpack.i.bf16 %v13140_v43, %v13125_v14  ;;  %v13168_v28 = vpack.i.bf16 %v13141_v27, %v13126_v51 }
 0xf59   : > { %v16826_v39 = vpop.permute.xlu1 %7300 }
 0xf5b   : > { %13165 = vxpose.xlu0.b32.cont [2/4] (short) (narrow) %v13164_v8, 32 }
 0xf5d   : > { %v16828_v15 = vpop.permute.xlu1 %7302 }
 0xf5f   : > { %13167 = vxpose.xlu0.b32.cont [3/4] (short) (narrow) %v13166_v36, 32 }
 0xf61   : > { %v16830_v37 = vpop.permute.xlu1 %7364 }
 0xf63   : > { %13169 = vxpose.xlu0.b32.end [4/4] (short) (narrow) %v13168_v28, 32 }
 0xf65   : > { %v16832_v53 = vpop.permute.xlu1 %7366 }
 0xf69   : > { %v16834_v59 = vpop.permute.xlu1 %7426 }
 0xf6d   : > { %v16842_v5 = vpop.permute.xlu1 %7428 }
 0xf8c   : > { %8011 = vrot.lane.b32.xlu0 %v16803_v56, %s14141_s22 }
 0xf90   : > { %8073 = vrot.lane.b32.xlu0 %v16803_v56, %s14142_s23 }
 0xf94   : > { %9124 = vrot.lane.b32.xlu0 %v16711_v11, %s14145_s27 }
 0xf96   : > { %v13149_v44 = vpop.permute.xlu1 %13148 }
 0xf97   : > { %v13144_v41 = vpop.permute.xlu0 %13143  ;;  %v13150_v8 = vunpack.i.l.bf16 %v13149_v44  ;;  %v13151_v36 = vunpack.i.h.bf16 %v13149_v44 }
 0xf98   : > { %9122 = vrot.lane.b32.xlu0 %v16705_v6, %s14145_s27  ;;  %v13145_v10 = vunpack.i.l.bf16 %v13144_v41  ;;  %v13146_v42 = vunpack.i.h.bf16 %v13144_v41 }
 0xf9a   : > { %v16850_v26 = vpop.permute.xlu1 %7612 }
 0xf9b   : > { %v16852_v33 = vpop.permute.xlu0 %7740 }
 0xf9c   : > { %9284 = vrot.lane.b32.xlu0 %v16711_v11, %s14146_s28 }
 0xf9e   : > { %v16856_v29 = vpop.permute.xlu1 %7614 }
 0xf9f   : > { %v13154_v45 = vpop.permute.xlu0 %13153 }
 0xfa0   : > { %v13155_v3 = vunpack.i.l.bf16 %v13154_v45  ;;  %9282 = vrot.lane.b32.xlu0 %v16705_v6, %s14146_s28  ;;  %v13156_v40 = vunpack.i.h.bf16 %v13154_v45 }
 0xfa2   : > { %v13190_v20 = vpack.i.bf16 %v13155_v3, %v13145_v10  ;;  %v16860_v54 = vpop.permute.xlu1 %7676  ;;  %v13192_v12 = vpack.i.bf16 %v13156_v40, %v13146_v42 }
 0xfa3   : > { %v16882_v28 = vpop.permute.xlu0 %7945 }
 0xfa4   : > { %13191 = vxpose.xlu1.b32.start [1/4] (short) (narrow) %v13190_v20, 32  ;;  %9491 = vrot.lane.b32.xlu0 %v16746_v34, %s14145_s27 }
 0xfa6   : > { %v16864_v60 = vpop.permute.xlu1 %7678 }
 0xfa7   : > { %v16884_v41 = vpop.permute.xlu0 %7947 }
 0xfa8   : > { %13193 = vxpose.xlu1.b32.cont [2/4] (short) (narrow) %v13192_v12, 32  ;;  %9653 = vrot.lane.b32.xlu0 %v16751_v55, %s14146_s28 }
 0xfaa   : > { %v16868_v35 = vpop.permute.xlu1 %7738 }
 0xfab   : > { %v16886_v44 = vpop.permute.xlu0 %8009 }
 0xfac   : > { %9651 = vrot.lane.b32.xlu0 %v16746_v34, %s14146_s28 }
 0xfae   : > { %v13159_v49 = vpop.permute.xlu1 %13158 }
 0xfaf   : > { %v13160_v43 = vunpack.i.l.bf16 %v13159_v49  ;;  %v13161_v14 = vunpack.i.h.bf16 %v13159_v49 }
 0xfb0   : > { %9873 = vrot.lane.b32.xlu0 %v16784_v38, %s14145_s27 }
 0xfb1   : > { %v13194_v27 = vpack.i.bf16 %v13160_v43, %v13150_v8  ;;  %v13196_v51 = vpack.i.bf16 %v13161_v14, %v13151_v36 }
 0xfb3   : > { %13195 = vxpose.xlu1.b32.cont [3/4] (short) (narrow) %v13194_v27, 32 }
 0xfb4   : > { %9941 = vrot.lane.b32.xlu0 %v16784_v38, %s14144_s26 }
 0xfb7   : > { %13197 = vxpose.xlu1.b32.end [4/4] (short) (narrow) %v13196_v51, 32 }
 0xfb8   : > { %9939 = vrot.lane.b32.xlu0 %v16781_v0, %s14144_s26 }
 0xfbc   : > { %10155 = vrot.lane.b32.xlu0 %v16803_v56, %s14143_s24 }
 0xfc0   : > { %10153 = vrot.lane.b32.xlu0 %v16796_v31, %s14143_s24 }
 0xfd3   : > { %v13170_v45 = vpop.trf.xlu0 }
 0xfd4   : > { %v13171_v10 = vunpack.i.l.bf16 %v13170_v45  ;;  %v13174_v12 = vunpack.i.h.bf16 %v13170_v45 }
 0xfd5   : > { %9036 = vrot.lane.b32.xlu1 %v16711_v11, %s14143_s24 }
 0xfd7   : > { %v13175_v3 = vpop.trf.xlu0 }
 0xfd8   : > { %v13176_v40 = vunpack.i.l.bf16 %v13175_v3  ;;  %v13179_v49 = vunpack.i.h.bf16 %v13175_v3 }
 0xfd9   : > { %9034 = vrot.lane.b32.xlu1 %v16705_v6, %s14143_s24 }
 0xfda   : > { %v6906_v20 = vpack.c.bf16 %v13176_v40, %v13171_v10  ;;  %v7215_v10 = vpack.c.bf16 %v13179_v49, %v13174_v12 }
 0xfdb   : > { %v13180_v42 = vpop.trf.xlu0 }
 0xfdc   : > { %12873 = vmatprep.subr.msk.bf16.mxu0 %vm1907_vm15, %v6906_v20  ;;  %v6915_v8 = vsel %vm1907_vm15, %v6906_v20, 0  ;;  %v6973_v43 = vrot.slane %v6906_v20, 4  ;;  %v13181_v14 = vunpack.i.l.bf16 %v13180_v42  ;;  %v13184_v45 = vunpack.i.h.bf16 %v13180_v42 }
 0xfdd   : > { %9195 = vrot.lane.b32.xlu1 %v16711_v11, %s14144_s26  ;;  %12566 = vmatpush3.bf16.msra.mxu0 %v6915_v8  ;;  %v7305_v12 = vrot.slane %v7215_v10, 4 }
 0xfde   : > { %12874 = vmatprep.subr.msk.bf16.mxu1 %vm1907_vm15, %v6973_v43  ;;  %v6981_v36 = vsel %vm1907_vm15, %v6973_v43, 0 }
 0xfdf   : > { %v13185_v27 = vpop.trf.xlu0  ;;  %12572 = vmatpush3.bf16.msra.mxu1 %v6981_v36 }
 0xfe0   : > { %v13186_v51 = vunpack.i.l.bf16 %v13185_v27  ;;  %v13189_v3 = vunpack.i.h.bf16 %v13185_v27  ;;  %12568 = vmatmul.mubr.msk.bf16.vlgmr.msra.gmra.mxu0 %vm1900_vm8, %v16711_v11 }
 0xfe1   : > { %9193 = vrot.lane.b32.xlu1 %v16705_v6, %s14144_s26  ;;  %12579 = vmatprep.mubr.msk.bf16.mxu0 %vm1900_vm8, %v16838_v1  ;;  %v7313_v1 = vsel %vm1907_vm15, %v7305_v12, 0 }
 0xfe2   : > { %v6907_v40 = vpack.c.bf16 %v13186_v51, %v13181_v14  ;;  %12574 = vmatmul.mubr.msk.bf16.vlgmr.msra.gmra.mxu1 %vm1900_vm8, %v16816_v24  ;;  %v7216_v6 = vpack.c.bf16 %v13189_v3, %v13184_v45  ;;  %v7249_v24 = vsel %vm1907_vm15, %v7215_v10, 0 }
 0xfe3   : > { %12585 = vmatprep.mubr.msk.bf16.mxu1 %vm1900_vm8, %v16844_v23 }
 0xfe4   : > { %12875 = vmatprep.subr.msk.bf16.mxu0 %vm1907_vm15, %v6907_v40  ;;  %v7043_v20 = vsel %vm1907_vm15, %v6907_v40, 0  ;;  %v7099_v42 = vrot.slane %v6907_v40, 4  ;;  %v7431_v23 = vrot.slane %v7216_v6, 4 }
 0xfe5   : > { %9415 = vrot.lane.b32.xlu1 %v16751_v55, %s14143_s24  ;;  %12578 = vmatpush3.bf16.msra.mxu0 %v7043_v20 }
 0xfe6   : > { %12876 = vmatprep.subr.msk.bf16.mxu1 %vm1907_vm15, %v7099_v42  ;;  %v7107_v11 = vsel %vm1907_vm15, %v7099_v42, 0  ;;  %12877 = vmatprep.subr.msk.bf16.mxu0 %vm1907_vm15, %v7215_v10 }
 0xfe7   : > { %12584 = vmatpush3.bf16.msra.mxu1 %v7107_v11 }
 0xfe8   : > { %12878 = vmatprep.subr.msk.bf16.mxu1 %vm1907_vm15, %v7305_v12  ;;  %12580 = vmatmul.mubr.msk.bf16.vlgmr.msra.gmra.mxu0 %vm1900_vm8, %v16820_v17  ;;  %v7375_v17 = vsel %vm1907_vm15, %v7216_v6, 0 }
 0xfe9   : > { %9493 = vrot.lane.b32.xlu1 %v16751_v55, %s14145_s27  ;;  %12591 = vmatprep.mubr.msk.bf16.mxu0 %vm1900_vm8, %v16746_v34 }
 0xfea   : > { %12590 = vmatpush3.bf16.msra.mxu0 %v7249_v24  ;;  %12586 = vmatmul.mubr.msk.bf16.vlgmr.msra.gmra.mxu1 %vm1900_vm8, %v16822_v13  ;;  %v7439_v13 = vsel %vm1907_vm15, %v7431_v23, 0 }
 0xfeb   : > { %12879 = vmatprep.subr.msk.bf16.mxu0 %vm1907_vm15, %v7216_v6  ;;  %12597 = vmatprep.mubr.msk.bf16.mxu1 %vm1900_vm8, %v16826_v39 }
 0xfec   : > { %12596 = vmatpush3.bf16.msra.mxu1 %v7313_v1 }
 0xfed   : > { %9413 = vrot.lane.b32.xlu1 %v16746_v34, %s14143_s24  ;;  %12880 = vmatprep.subr.msk.bf16.mxu1 %vm1907_vm15, %v7431_v23 }
 0xff0   : > { %12592 = vmatmul.mubr.msk.bf16.vlgmr.msra.gmra.mxu0 %vm1900_vm8, %v16751_v55 }
 0xff1   : > { %9564 = vrot.lane.b32.xlu1 %v16751_v55, %s14144_s26  ;;  %12603 = vmatprep.mubr.msk.bf16.mxu0 %vm1900_vm8, %v16830_v37 }
 0xff2   : > { %12602 = vmatpush3.bf16.msra.mxu0 %v7375_v17  ;;  %12598 = vmatmul.mubr.msk.bf16.vlgmr.msra.gmra.mxu1 %vm1900_vm8, %v16828_v15 }
 0xff3   : > { %12609 = vmatprep.mubr.msk.bf16.mxu1 %vm1900_vm8, %v16834_v59  ;;  %12608 = vmatpush3.bf16.msra.mxu1 %v7439_v13 }
 0xff5   : > { %9562 = vrot.lane.b32.xlu1 %v16746_v34, %s14144_s26  ;;  %v8072_v34 = vpop.permute.xlu1 %8071 }
 0xff8   : > { %12604 = vmatmul.mubr.msk.bf16.vlgmr.msra.gmra.mxu0 %vm1900_vm8, %v16832_v53 }
 0xff9   : > { %9784 = vrot.lane.b32.xlu1 %v16784_v38, %s14143_s24  ;;  %12615 = vmatprep.mubr.msk.bf16.mxu0 %vm1900_vm8, %v16781_v0 }
 0xffa   : > { %12610 = vmatmul.mubr.msk.bf16.vlgmr.msra.gmra.mxu1 %vm1900_vm8, %v16842_v5 }
 0xffb   : > { %12621 = vmatprep.mubr.msk.bf16.mxu1 %vm1900_vm8, %v16850_v26 }
 0xffd   : > { %9782 = vrot.lane.b32.xlu1 %v16781_v0, %s14143_s24 }
 0xffe   : > { %v8012_v3 = vpop.permute.xlu0 %8011 }
0x1001   : > { %9871 = vrot.lane.b32.xlu1 %v16781_v0, %s14145_s27 }
0x1005   : > { %10024 = vrot.lane.b32.xlu1 %v16784_v38, %s14146_s28 }
0x1009   : > { %10022 = vrot.lane.b32.xlu1 %v16781_v0, %s14146_s28 }
0x100d   : > { %10244 = vrot.lane.b32.xlu1 %v16803_v56, %s14145_s27 }
0x1011   : > { %10242 = vrot.lane.b32.xlu1 %v16796_v31, %s14145_s27  ;;  %s18352_s27 = scalar_lea.vmem %s18426_s10, %s11898_s21 }
0x1027   : > { %v13198_v55 = vpop.trf.xlu1 }
0x1028   : > { %v13199_v15 = vunpack.i.l.bf16 %v13198_v55  ;;  %v13202_v14 = vunpack.i.h.bf16 %v13198_v55 }
0x102b   : > { %v13203_v39 = vpop.trf.xlu1 }
0x102c   : > { %v13204_v37 = vunpack.i.l.bf16 %v13203_v39  ;;  %v13207_v49 = vunpack.i.h.bf16 %v13203_v39 }
0x102e   : > { %v7544_v53 = vpack.c.bf16 %v13204_v37, %v13199_v15  ;;  %v7859_v51 = vpack.c.bf16 %v13207_v49, %v13202_v14 }
0x102f   : > { %v13208_v59 = vpop.trf.xlu1 }
0x1030   : > { %12881 = vmatprep.subr.msk.bf16.mxu0 %vm1907_vm15, %v7544_v53  ;;  %v7561_v5 = vsel %vm1907_vm15, %v7544_v53, 0  ;;  %v7617_v26 = vrot.slane %v7544_v53, 4  ;;  %v13209_v0 = vunpack.i.l.bf16 %v13208_v59  ;;  %v13212_v10 = vunpack.i.h.bf16 %v13208_v59 }
0x1031   : > { %12614 = vmatpush3.bf16.msra.mxu0 %v7561_v5 }
0x1032   : > { %12882 = vmatprep.subr.msk.bf16.mxu1 %vm1907_vm15, %v7617_v26  ;;  %v7625_v43 = vsel %vm1907_vm15, %v7617_v26, 0 }
0x1033   : > { %v13213_v8 = vpop.trf.xlu1  ;;  %12620 = vmatpush3.bf16.msra.mxu1 %v7625_v43 }
0x1034   : > { %v13214_v27 = vunpack.i.l.bf16 %v13213_v8  ;;  %12616 = vmatmul.mubr.msk.bf16.vlgmr.msra.gmra.mxu0 %vm1900_vm8, %v16784_v38  ;;  %v13217_v45 = vunpack.i.h.bf16 %v13213_v8 }
0x1035   : > { %12627 = vmatprep.mubr.msk.bf16.mxu0 %vm1900_vm8, %v16860_v54  ;;  %v7950_v54 = vrot.slane %v7859_v51, 4 }
0x1036   : > { %v7545_v36 = vpack.c.bf16 %v13214_v27, %v13209_v0  ;;  %12622 = vmatmul.mubr.msk.bf16.vlgmr.msra.gmra.mxu1 %vm1900_vm8, %v16856_v29  ;;  %v7860_v42 = vpack.c.bf16 %v13217_v45, %v13212_v10  ;;  %v7894_v29 = vsel %vm1907_vm15, %v7859_v51, 0 }
0x1037   : > { %12633 = vmatprep.mubr.msk.bf16.mxu1 %vm1900_vm8, %v16868_v35  ;;  %v8074_v35 = vpop.permute.xlu0 %8073  ;;  %v7958_v12 = vsel %vm1907_vm15, %v7950_v54, 0 }
0x1038   : > { %12883 = vmatprep.subr.msk.bf16.mxu0 %vm1907_vm15, %v7545_v36  ;;  %v7687_v40 = vsel %vm1907_vm15, %v7545_v36, 0  ;;  %v7743_v20 = vrot.slane %v7545_v36, 4  ;;  %v8076_v6 = vrot.slane %v7860_v42, 4  ;;  %v8020_v11 = vsel %vm1907_vm15, %v7860_v42, 0 }
0x1039   : > { %12626 = vmatpush3.bf16.msra.mxu0 %v7687_v40 }
0x103a   : > { %12884 = vmatprep.subr.msk.bf16.mxu1 %vm1907_vm15, %v7743_v20  ;;  %v7751_v38 = vsel %vm1907_vm15, %v7743_v20, 0  ;;  %12885 = vmatprep.subr.msk.bf16.mxu0 %vm1907_vm15, %v7859_v51 }
0x103b   : > { %12632 = vmatpush3.bf16.msra.mxu1 %v7751_v38 }
0x103c   : > { %12886 = vmatprep.subr.msk.bf16.mxu1 %vm1907_vm15, %v7950_v54  ;;  %12628 = vmatmul.mubr.msk.bf16.vlgmr.msra.gmra.mxu0 %vm1900_vm8, %v16864_v60  ;;  %v9125_v60 = vpop.permute.xlu0 %9124 }
0x103d   : > { %12639 = vmatprep.mubr.msk.bf16.mxu0 %vm1900_vm8, %v16796_v31  ;;  %12638 = vmatpush3.bf16.msra.mxu0 %v7894_v29 }
0x103e   : > { %12634 = vmatmul.mubr.msk.bf16.vlgmr.msra.gmra.mxu1 %vm1900_vm8, %v16852_v33  ;;  %12887 = vmatprep.subr.msk.bf16.mxu0 %vm1907_vm15, %v7860_v42  ;;  %v9134_v33 = vand.u32 %v9125_v60, %v18664_v30 }
0x103f   : > { %12645 = vmatprep.mubr.msk.bf16.mxu1 %vm1900_vm8, %v16882_v28  ;;  %12644 = vmatpush3.bf16.msra.mxu1 %v7958_v12  ;;  %v8084_v28 = vsel %vm1907_vm15, %v8076_v6, 0 }
0x1040   : > { %12888 = vmatprep.subr.msk.bf16.mxu1 %vm1907_vm15, %v8076_v6  ;;  %v9123_v23 = vpop.permute.xlu0 %9122 }
0x1044   : > { %12640 = vmatmul.mubr.msk.bf16.vlgmr.msra.gmra.mxu0 %vm1900_vm8, %v16803_v56 }
0x1045   : > { %12651 = vmatprep.mubr.msk.bf16.mxu0 %vm1900_vm8, %v16886_v44  ;;  %12650 = vmatpush3.bf16.msra.mxu0 %v8020_v11 }
0x1046   : > { %12646 = vmatmul.mubr.msk.bf16.vlgmr.msra.gmra.mxu1 %vm1900_vm8, %v16884_v41  ;;  %v9285_v41 = vpop.permute.xlu0 %9284 }
0x1047   : > { %v9037_v24 = vpop.permute.xlu1 %9036  ;;  %12656 = vmatpush3.bf16.msra.mxu1 %v8084_v28  ;;  %12657 = vmatprep.mubr.msk.bf16.mxu1 %vm1900_vm8, %v8072_v34  ;;  %v17015_v34 = vand.u32 %v9285_v41, %v18664_v30 }
0x1048   : > { %v9046_v1 = vand.u32 %v9037_v24, %v18664_v30  ;;  %12669 = vmatprep.subr.bf16.mxu1 %v9134_v33 }
0x1049   : > { %18743 = vst [vmem:[#allocation47_spill] sm:$0xff] %v17015_v34 }
0x104a   : > { %12661 = vmatprep.subr.bf16.mxu0 %v9046_v1 }
0x104b   : > { %v9035_v17 = vpop.permute.xlu1 %9034 }
0x104c   : > { %12652 = vmatmul.mubr.msk.bf16.vlgmr.msra.gmra.mxu0 %vm1900_vm8, %v8012_v3 }
0x104d   : > { %12662 = vmatpush3.bf16.msra.mxu0 %v9046_v1 }
0x104e   : > { %12663 = vmatprep.subr.bf16.mxu0 %v9035_v17  ;;  %12658 = vmatmul.mubr.msk.bf16.vlgmr.msra.gmra.mxu1 %vm1900_vm8, %v8074_v35 }
0x104f   : > { %v9196_v44 = vpop.permute.xlu1 %9195  ;;  %12670 = vmatpush3.bf16.msra.mxu1 %v9134_v33 }
0x1050   : > { %v17012_v13 = vand.u32 %v9196_v44, %v18664_v30  ;;  %12671 = vmatprep.subr.bf16.mxu1 %v9123_v23 }
0x1051   : > { %12664 = vmatpush3.bf16.msra.mxu0 %v9035_v17 }
0x1052   : > { %18742 = vst [vmem:[#allocation41_spill] sm:$0xff] %v17012_v13  ;;  %12677 = vmatprep.subr.bf16.mxu0 %v17012_v13 }
0x1053   : > { %12672 = vmatpush3.bf16.msra.mxu1 %v9123_v23 }
0x1054   : > { %12685 = vmatprep.subr.bf16.mxu1 %v17015_v34 }
0x10a0   : > { %v17019_v55 = vpop.f32.mrf.mxu0 }
0x10a1   : > { %v8373_v39 = vsel %vm3367_vm2, %v17019_v55, -inf }
0x10a2   : > { %v12575_v15 = vpop.f32.mrf.mxu1  ;;  %8374 = vmax.xlane.f32.xlu0 %v8373_v39  ;;  %v17023_v37 = vpop.f32.mrf.mxu0 }
0x10a3   : > { %v8367_v26 = vsel %vm3367_vm2, %v17023_v37, -inf  ;;  %v8142_v14 = vrot.slane %v12575_v15, 3 }
0x10a4   : > { %v12570_v53 = vpop.f32.mrf.mxu0  ;;  %v7017_v59 = vpop.f32.mrf.mxu1 }
0x10a5   : > { %v8139_v5 = vrot.slane %v7017_v59, 3 }
0x10a6   : > { %v12576_v49 = vpop.f32.mrf.mxu1  ;;  %8368 = vmax.xlane.f32.xlu0 %v8367_v26  ;;  %v17027_v0 = vpop.f32.mrf.mxu0 }
0x10a7   : > { %v8144_v8 = vrot.slane %v12576_v49, 3  ;;  %v17030_v43 = vsel %vm1259_vm1, %v12570_v53, %v8139_v5  ;;  %v8370_v10 = vsel %vm3367_vm2, %v17027_v0, -inf }
0x10a8   : > { %v7020_v27 = vpop.f32.mrf.mxu1  ;;  %v17032_v36 = vpop.f32.mrf.mxu0  ;;  %v8376_v51 = vsel %vm3367_vm2, %v17030_v43, -inf }
0x10a9   : > { %8377 = vmax.xlane.f32.xlu1 %v8376_v51  ;;  %v8140_v45 = vrot.slane %v7020_v27, 3  ;;  %v17039_v20 = vsel %vm1259_vm1, %v8142_v14, %v8144_v8  ;;  %v8158_v49 = vrot.slane %v17032_v36, 6 }
0x10aa   : > { %v12587_v3 = vpop.f32.mrf.mxu1  ;;  %8371 = vmax.xlane.f32.xlu0 %v8370_v10  ;;  %v7079_v40 = vpop.f32.mrf.mxu0  ;;  %v8385_v42 = vsel %vm3367_vm2, %v17039_v20, -inf }
0x10ab   : > { %v17046_v12 = vsel %vm1259_vm1, %v8139_v5, %v8140_v45  ;;  %v8155_v6 = vrot.slane %v7079_v40, 6  ;;  %v8173_v28 = vrot.slane %v12587_v3, 1  ;;  %v17065_v39 = vsel %vm1259_vm1, %v8140_v45, %v8142_v14 }
0x10ac   : > { %v12582_v38 = vpop.f32.mrf.mxu0  ;;  %v17041_v54 = vpop.f32.mrf.mxu1  ;;  %v8379_v1 = vsel %vm3367_vm2, %v17046_v12, -inf  ;;  %v8382_v51 = vsel %vm3367_vm2, %v17065_v39, -inf }
0x10ad   : > { %v8160_v15 = vrot.slane %v12582_v38, 6  ;;  %v8170_v14 = vrot.slane %v17041_v54, 1  ;;  %v17084_v40 = vsel %vm1276_vm10, %v8144_v8, %v8155_v6 }
0x10ae   : > { %v12588_v29 = vpop.f32.mrf.mxu1  ;;  %8386 = vmax.xlane.f32.xlu0 %v8385_v42  ;;  %v7082_v35 = vpop.f32.mrf.mxu0 }
0x10af   : > { %v8156_v60 = vrot.slane %v7082_v35, 6  ;;  %v8175_v27 = vrot.slane %v12588_v29, 1  ;;  %v8161_v54 = vsel %vm1276_vm10, %v8158_v49, %v8160_v15 }
0x10b0   : > { %v17048_v11 = vpop.f32.mrf.mxu1  ;;  %v17050_v33 = vpop.f32.mrf.mxu0 }
0x10b1   : > { %v18510_v24 = vrot.slane %v17048_v11, 1  ;;  %v17056_v23 = vsel %vm1276_vm10, %v8155_v6, %v8156_v60  ;;  %v17102_v6 = vsel %vm1292_vm6, %v8161_v54, %v8170_v14  ;;  %v18744_v22 = vrot.slane %v17048_v11, 1 }
0x10b2   : > { %v17058_v17 = vpop.f32.mrf.mxu1  ;;  %8380 = vmax.xlane.f32.xlu0 %v8379_v1  ;;  %v17060_v44 = vpop.f32.mrf.mxu0  ;;  %v8391_v41 = vsel %vm3367_vm2, %v17056_v23, -inf  ;;  %v8388_v1 = vsel %vm3367_vm2, %v17084_v40, -inf }
0x10b3   : > { %v18509_v53 = vrot.slane %v17060_v44, 4  ;;  %8392 = vmax.xlane.f32.xlu1 %v8391_v41  ;;  %v17071_v59 = vsel %vm1292_vm6, %v18510_v24, %v8173_v28  ;;  %v18745_v2 = vrot.slane %v17060_v44, 4 }
0x10b4   : > { %v12594_v5 = vpop.f32.mrf.mxu0  ;;  %v17073_v26 = vpop.f32.mrf.mxu1  ;;  %v8403_v3 = vsel %vm3367_vm2, %v17071_v59, -inf }
0x10b5   : > { %v8191_v38 = vrot.slane %v12594_v5, 4  ;;  %v18508_v42 = vrot.slane %v17073_v26, 7  ;;  %v17090_v36 = vsel %vm1907_vm15, %v8175_v27, %v18509_v53  ;;  %v18746_v44 = vrot.slane %v17073_v26, 7 }
0x10b6   : > { %v17079_v10 = vpop.f32.mrf.mxu1  ;;  %8383 = vmax.xlane.f32.xlu0 %v8382_v51  ;;  %v7288_v45 = vpop.f32.mrf.mxu0  ;;  %v8409_v8 = vsel %vm3367_vm2, %v17090_v36, -inf }
0x10b7   : > { %8404 = vmax.xlane.f32.xlu1 %v8403_v3  ;;  %v8187_v41 = vrot.slane %v7288_v45, 4  ;;  %v17107_v15 = vsel %vm2804_vm12, %v8191_v38, %v18508_v42  ;;  %v8189_v3 = vrot.slane %v17050_v33, 4  ;;  %v17117_v45 = vsel %vm1292_vm6, %v8173_v28, %v8175_v27 }
0x10b8   : > { %v17093_v29 = vpop.f32.mrf.mxu1  ;;  %v17095_v35 = vpop.f32.mrf.mxu0  ;;  %v8421_v54 = vsel %vm3367_vm2, %v17107_v15, -inf  ;;  %v8205_v33 = vrot.slane %v17058_v17, 7  ;;  %v8406_v53 = vsel %vm3367_vm2, %v17117_v45, -inf  ;;  %v17129_v28 = vsel %vm1276_vm10, %v8156_v60, %v8158_v49 }
0x10b9   : > { %v17121_v21 = vsel %vm1907_vm15, %v8187_v41, %v8189_v3  ;;  %v8220_v24 = vrot.slane %v17095_v35, 2  ;;  %v8394_v17 = vsel %vm3367_vm2, %v17129_v28, -inf  ;;  %v17142_v60 = vsel %vm1292_vm6, %v8170_v14, %v18744_v22 }
0x10ba   : > { %8389 = vmax.xlane.f32.xlu0 %v8388_v1  ;;  %v17109_v5 = vpop.f32.mrf.mxu1  ;;  %v7411_v51 = vpop.f32.mrf.mxu0  ;;  %v8397_v1 = vsel %vm3367_vm2, %v17102_v6, -inf  ;;  %v8400_v16 = vsel %vm3367_vm2, %v17142_v60, -inf  ;;  %v17153_v11 = vsel %vm1907_vm15, %v8189_v3, %v8191_v38  ;;  %v17165_v47 = vsel %vm1907_vm15, %v18745_v2, %v8187_v41 }
0x10bb   : > { %8410 = vmax.xlane.f32.xlu1 %v8409_v8  ;;  %v8203_v8 = vrot.slane %v17093_v29, 7  ;;  %v8236_v35 = vrot.slane %v17109_v5, 5  ;;  %v8418_v5 = vsel %vm3367_vm2, %v17153_v11, -inf }
0x10bc   : > { %v12606_v50 = vpop.f32.mrf.mxu0  ;;  %v7475_v42 = vpop.f32.mrf.mxu1 }
0x10bd   : > { %v8222_v27 = vrot.slane %v12606_v50, 2  ;;  %v17132_v29 = vsel %vm2804_vm12, %v8203_v8, %v8205_v33  ;;  %v17178_v2 = vsel %vm2804_vm12, %v18746_v44, %v8203_v8 }
0x10be   : > { %8398 = vmax.xlane.f32.xlu0 %v8397_v1  ;;  %v8415_v1 = vsel %vm3367_vm2, %v17121_v21, -inf }
0x10bf   : > { %8422 = vmax.xlane.f32.xlu1 %v8421_v54  ;;  %v12612_v54 = vpop.f32.mrf.mxu1  ;;  %v17145_v49 = vsel %vm2489_vm13, %v8220_v24, %v8222_v27 }
0x10c0   : > { %v8238_v50 = vrot.slane %v12612_v54, 5 }
0x10c1   : > { %v7478_v54 = vpop.f32.mrf.mxu1 }
0x10c2   : > { %8407 = vmax.xlane.f32.xlu0 %v8406_v53  ;;  %v8427_v53 = vsel %vm3367_vm2, %v17132_v29, -inf  ;;  %v17156_v14 = vsel %vm2156_vm9, %v8236_v35, %v8238_v50  ;;  %v8234_v38 = vrot.slane %v7478_v54, 5  ;;  %v8207_v50 = vrot.slane %v17079_v10, 7 }
0x10c3   : > { %8416 = vmax.xlane.f32.xlu1 %v8415_v1  ;;  %v7414_v1 = vpop.f32.mrf.mxu0  ;;  %v8424_v10 = vsel %vm3367_vm2, %v17178_v2, -inf }
0x10c4   : > { %v8218_v22 = vrot.slane %v7414_v1, 2  ;;  %v8412_v1 = vsel %vm3367_vm2, %v17165_v47, -inf }
0x10c6   : > { %8395 = vmax.xlane.f32.xlu0 %v8394_v17  ;;  %v8439_v17 = vsel %vm3367_vm2, %v17145_v49, -inf }
0x10c7   : > { %8428 = vmax.xlane.f32.xlu1 %v8427_v53  ;;  %v8217_v53 = vrot.slane %v7411_v51, 2  ;;  %v8233_v51 = vrot.slane %v7475_v42, 5  ;;  %v8208_v42 = vsel %vm2804_vm12, %v8205_v33, %v8207_v50  ;;  %v17199_v33 = vsel %vm2489_vm13, %v8218_v22, %v8220_v24 }
0x10c8   : > { %v8436_v50 = vsel %vm3367_vm2, %v17199_v33, -inf }
0x10c9   : > { %v17168_v3 = vsel %vm2489_vm13, %v8217_v53, %v8218_v22  ;;  %v17181_v41 = vsel %vm2156_vm9, %v8233_v51, %v8234_v38  ;;  %v17194_v8 = vsel %vm2156_vm9, %v8222_v27, %v8233_v51 }
0x10ca   : > { %8401 = vmax.xlane.f32.xlu0 %v8400_v16  ;;  %v8451_v16 = vsel %vm3367_vm2, %v17156_v14, -inf  ;;  %v8445_v54 = vsel %vm3367_vm2, %v17181_v41, -inf }
0x10cb   : > { %8440 = vmax.xlane.f32.xlu1 %v8439_v17  ;;  %v8433_v17 = vsel %vm3367_vm2, %v17168_v3, -inf }
0x10ce   : > { %8419 = vmax.xlane.f32.xlu0 %v8418_v5  ;;  %v17189_v5 = vsel %vm2489_vm13, %v8208_v42, %v8217_v53  ;;  %v17204_v53 = vsel %vm2156_vm9, %v8234_v38, %v8236_v35  ;;  %v17220_v35 = vpop.permute.xlu0 %9282 }
0x10cf   : > { %8452 = vmax.xlane.f32.xlu1 %v8451_v16  ;;  %v8430_v26 = vsel %vm3367_vm2, %v17189_v5, -inf  ;;  %v8442_v16 = vsel %vm3367_vm2, %v17194_v8, -inf  ;;  %v8448_v27 = vsel %vm3367_vm2, %v17204_v53, -inf  ;;  %18750 = vst [vmem:[#allocation45_spill] sm:$0xff] %v17220_v35 }
0x10d2   : > { %8413 = vmax.xlane.f32.xlu0 %v8412_v1  ;;  %v17206_v1 = vpop.permute.xlu1 %9193  ;;  %v17233_v62 = vpop.permute.xlu0 %9491 }
0x10d3   : > { %8434 = vmax.xlane.f32.xlu1 %v8433_v17  ;;  %18747 = vst [vmem:[#allocation53_spill] sm:$0xff] %v17206_v1  ;;  %18752 = vst [vmem:[#allocation54_spill] sm:$0xff] %v17233_v62 }
0x10d6   : > { %8425 = vmax.xlane.f32.xlu0 %v8424_v10  ;;  %v17210_v51 = vpop.permute.xlu1 %9415 }
0x10d7   : > { %8446 = vmax.xlane.f32.xlu1 %v8445_v54  ;;  %18748 = vst [vmem:[#allocation43_spill] sm:$0xff] %v17210_v51 }
0x10da   : > { %8431 = vmax.xlane.f32.xlu0 %v8430_v26  ;;  %v17212_v17 = vpop.permute.xlu1 %9493 }
0x10db   : > { %18749 = vst [vmem:[#allocation55_spill] sm:$0xff] %v17212_v17 }
0x10de   : > { %8443 = vmax.xlane.f32.xlu0 %v8442_v16  ;;  %v17222_v38 = vpop.permute.xlu1 %9413 }
0x10df   : > { %18751 = vst [vmem:[#allocation48_spill] sm:$0xff] %v17222_v38 }
0x10e2   : > { %8437 = vmax.xlane.f32.xlu0 %v8436_v50 }
0x10e6   : > { %8449 = vmax.xlane.f32.xlu0 %v8448_v27 }
0x10f4   : > { %v17214_v44 = vpop.f32.mrf.mxu0 }
0x10f5   : > { %v8460_v24 = vsel %vm3367_vm2, %v17214_v44, -inf }
0x10f6   : > { %v12623_v22 = vpop.f32.mrf.mxu1  ;;  %8461 = vmax.xlane.f32.xlu0 %v8460_v24  ;;  %v17218_v10 = vpop.f32.mrf.mxu0 }
0x10f7   : > { %v8454_v16 = vsel %vm3367_vm2, %v17218_v10, -inf  ;;  %v8251_v9 = vrot.slane %v12623_v22, 3 }
0x10f8   : > { %v12618_v42 = vpop.f32.mrf.mxu0  ;;  %v7661_v54 = vpop.f32.mrf.mxu1 }
0x10f9   : > { %v8248_v26 = vrot.slane %v7661_v54, 3  ;;  %v17235_v54 = vpop.permute.xlu1 %9564 }
0x10fa   : > { %v12624_v50 = vpop.f32.mrf.mxu1  ;;  %8455 = vmax.xlane.f32.xlu0 %v8454_v16  ;;  %v17226_v27 = vpop.f32.mrf.mxu0  ;;  %18753 = vst [vmem:[#allocation56_spill] sm:$0xff] %v17235_v54 }
0x10fb   : > { %v8253_v63 = vrot.slane %v12624_v50, 3  ;;  %v8457_v24 = vsel %vm3367_vm2, %v17226_v27, -inf  ;;  %v17231_v52 = vsel %vm1259_vm1, %v12618_v42, %v8248_v26  ;;  %v17252_v54 = vpop.permute.xlu0 %9653 }
0x10fc   : > { %v7664_v18 = vpop.f32.mrf.mxu1  ;;  %8458 = vmax.xlane.f32.xlu1 %v8457_v24  ;;  %v12629_v4 = vpop.f32.mrf.mxu0  ;;  %v8463_v24 = vsel %vm3367_vm2, %v17231_v52, -inf  ;;  %18754 = vst [vmem:[#allocation46_spill] sm:$0xff] %v17252_v54 }
0x10fd   : > { %v8249_v46 = vrot.slane %v7664_v18, 3  ;;  %v17238_v16 = vsel %vm1259_vm1, %v8251_v9, %v8253_v63  ;;  %v8267_v32 = vrot.slane %v12629_v4, 6  ;;  %v17254_v38 = vpop.permute.xlu1 %9562 }
0x10fe   : > { %v7723_v7 = vpop.f32.mrf.mxu0  ;;  %v12635_v22 = vpop.f32.mrf.mxu1  ;;  %v8472_v50 = vsel %vm3367_vm2, %v17238_v16, -inf  ;;  %18755 = vst [vmem:[#allocation60_spill] sm:$0xff] %v17254_v38 }
0x10ff   : > { %8473 = vmax.xlane.f32.xlu0 %v8472_v50  ;;  %v17245_v42 = vsel %vm1259_vm1, %v8248_v26, %v8249_v46  ;;  %v8264_v58 = vrot.slane %v7723_v7, 6  ;;  %v17248_v18 = vsel %vm1259_vm1, %v8249_v46, %v8251_v9  ;;  %v17277_v17 = vpop.permute.xlu0 %9651 }
0x1100   : > { %v7787_v57 = vpop.f32.mrf.mxu1  ;;  %8464 = vmax.xlane.f32.xlu1 %v8463_v24  ;;  %v12630_v19 = vpop.f32.mrf.mxu0  ;;  %v8466_v50 = vsel %vm3367_vm2, %v17245_v42, -inf  ;;  %v8469_v7 = vsel %vm3367_vm2, %v17248_v18, -inf  ;;  %18756 = vst [vmem:[#allocation52_spill] sm:$0xff] %v17277_v17 }
0x1101   : > { %v8279_v25 = vrot.slane %v7787_v57, 1  ;;  %v8269_v48 = vrot.slane %v12630_v19, 6  ;;  %v17263_v24 = vsel %vm1276_vm10, %v8253_v63, %v8264_v58  ;;  %v17279_v35 = vpop.permute.xlu1 %9784 }
0x1102   : > { %v7726_v61 = vpop.f32.mrf.mxu0  ;;  %v12636_v62 = vpop.f32.mrf.mxu1  ;;  %18757 = vst [vmem:[#allocation49_spill] sm:$0xff] %v17279_v35 }
0x1103   : > { %v8265_v26 = vrot.slane %v7726_v61, 6  ;;  %8467 = vmax.xlane.f32.xlu0 %v8466_v50  ;;  %v8270_v46 = vsel %vm1276_vm10, %v8267_v32, %v8269_v48  ;;  %v8284_v9 = vrot.slane %v12636_v62, 1  ;;  %v8282_v61 = vrot.slane %v12635_v22, 1  ;;  %v17293_v35 = vpop.permute.xlu0 %9873 }
0x1104   : > { %v7790_v4 = vpop.f32.mrf.mxu1  ;;  %8470 = vmax.xlane.f32.xlu1 %v8469_v7  ;;  %v12641_v19 = vpop.f32.mrf.mxu0  ;;  %v17260_v57 = vsel %vm1292_vm6, %v8270_v46, %v8279_v25  ;;  %v8475_v48 = vsel %vm3367_vm2, %v17263_v24, -inf  ;;  %18758 = vst [vmem:[#allocation59_spill] sm:$0xff] %v17293_v35 }
0x1105   : > { %v8484_v54 = vsel %vm3367_vm2, %v17260_v57, -inf  ;;  %v8280_v38 = vrot.slane %v7790_v4, 1  ;;  %v17270_v62 = vsel %vm1276_vm10, %v8264_v58, %v8265_v26  ;;  %v17275_v63 = vsel %vm1292_vm6, %v8282_v61, %v8284_v9  ;;  %v17295_v30 = vpop.permute.xlu1 %9782 }
0x1106   : > { %v7930_v50 = vpop.f32.mrf.mxu0  ;;  %v17272_v7 = vpop.f32.mrf.mxu1  ;;  %v8493_v58 = vsel %vm3367_vm2, %v17275_v63, -inf  ;;  %v17289_v51 = vsel %vm1276_vm10, %v8265_v26, %v8267_v32  ;;  %18759 = vst [vmem:[#allocation58_spill] sm:$0xff] %v17295_v30  ;;  %v8298_v26 = vrot.slane %v12641_v19, 4 }
0x1107   : > { %8485 = vmax.xlane.f32.xlu0 %v8484_v54  ;;  %v8478_v54 = vsel %vm3367_vm2, %v17270_v62, -inf  ;;  %v8295_v22 = vrot.slane %v7930_v50, 4  ;;  %v17286_v4 = vsel %vm1292_vm6, %v8280_v38, %v8282_v61  ;;  %v8481_v61 = vsel %vm3367_vm2, %v17289_v51, -inf }
0x1108   : > { %8476 = vmax.xlane.f32.xlu1 %v8475_v48  ;;  %v12642_v46 = vpop.f32.mrf.mxu0  ;;  %v7994_v48 = vpop.f32.mrf.mxu1  ;;  %v8490_v17 = vsel %vm3367_vm2, %v17286_v4, -inf  ;;  %v17305_v32 = vsel %vm1292_vm6, %v8279_v25, %v8280_v38 }
0x1109   : > { %v8311_v50 = vrot.slane %v7994_v48, 7  ;;  %v17300_v31 = vsel %vm1907_vm15, %v8284_v9, %v8295_v22  ;;  %18760 = vst [vmem:[#allocation51_spill] sm:$0xff] %v17305_v32  ;;  %v17317_v25 = vpop.permute.xlu0 %9941  ;;  %v17319_v38 = vpop.permute.xlu1 %9871 }
0x110a   : > { %v7933_v34 = vpop.f32.mrf.mxu0  ;;  %v8496_v30 = vsel %vm3367_vm2, %v17300_v31, -inf  ;;  %18763 = vst [vmem:[#allocation50_spill] sm:$0xff] %v17317_v25  ;;  %18764 = vst [vmem:[#allocation62_spill] sm:$0xff] %v17319_v38  ;;  %v8314_v25 = vrot.slane %v17272_v7, 7 }
0x110b   : > { %8479 = vmax.xlane.f32.xlu0 %v8478_v54  ;;  %v8300_v54 = vrot.slane %v12642_v46, 4  ;;  %v8296_v48 = vrot.slane %v7933_v34, 4 }
0x110c   : > { %8494 = vmax.xlane.f32.xlu1 %v8493_v58  ;;  %v12648_v58 = vpop.f32.mrf.mxu1  ;;  %v17302_v1 = vpop.f32.mrf.mxu0 }
0x110d   : > { %v17312_v46 = vsel %vm2804_vm12, %v8300_v54, %v8311_v50  ;;  %v17326_v13 = vsel %vm1907_vm15, %v8296_v48, %v8298_v26 }
0x110e   : > { %18761 = vst [vmem:[#allocation57_spill] sm:$0xff] %v17312_v46  ;;  %v7997_v9 = vpop.f32.mrf.mxu1  ;;  %v8056_v35 = vpop.f32.mrf.mxu0  ;;  %v8508_v34 = vsel %vm3367_vm2, %v17312_v46, -inf  ;;  %v8502_v38 = vsel %vm3367_vm2, %v17326_v13, -inf }
0x110f   : > { %8491 = vmax.xlane.f32.xlu0 %v8490_v17  ;;  %v8487_v17 = vsel %vm3367_vm2, %v17305_v32, -inf  ;;  %v17334_v46 = vpop.permute.xlu0 %9939 }
0x1110   : > { %8482 = vmax.xlane.f32.xlu1 %v8481_v61  ;;  %v17315_v61 = vsel %vm1907_vm15, %v8298_v26, %v8300_v54  ;;  %v12659_v56 = vpop.f32.mrf.mxu1  ;;  %v17329_v54 = vsel %vm1907_vm15, %v8295_v22, %v8296_v48  ;;  %18766 = vst [vmem:[#allocation63_spill] sm:$0xff] %v17334_v46  ;;  %v8326_v22 = vrot.slane %v8056_v35, 2  ;;  %v8329_v46 = vrot.slane %v17302_v1, 2 }
0x1111   : > { %18762 = vst [vmem:[#allocation61_spill] sm:$0xff] %v17315_v61  ;;  %v8505_v19 = vsel %vm3367_vm2, %v17315_v61, -inf  ;;  %18765 = vst [vmem:[#allocation64_spill] sm:$0xff] %v17329_v54  ;;  %v8499_v26 = vsel %vm3367_vm2, %v17329_v54, -inf }
0x1112   : > { %v8120_v48 = vpop.f32.mrf.mxu1 }
0x1113   : > { %8497 = vmax.xlane.f32.xlu0 %v8496_v30  ;;  %v8312_v30 = vrot.slane %v7997_v9, 7  ;;  %v17336_v9 = vpop.permute.xlu1 %10024  ;;  %v8342_v54 = vrot.slane %v8120_v48, 5  ;;  %v17358_v1 = vpop.permute.xlu0 %10155 }
0x1114   : > { %8488 = vmax.xlane.f32.xlu1 %v8487_v17  ;;  %v12654_v17 = vpop.f32.mrf.mxu0  ;;  %18767 = vst [vmem:[#allocation3_spill] sm:$0xff] %v17336_v9  ;;  %18769 = vst [vmem:[#allocation5_spill] sm:$0xff] %v17358_v1 }
0x1115   : > { %v8331_v61 = vrot.slane %v12654_v17, 2  ;;  %v17344_v7 = vsel %vm2804_vm12, %v8311_v50, %v8312_v30 }
0x1116   : > { %v8059_v32 = vpop.f32.mrf.mxu0  ;;  %18768 = vst [vmem:[#allocation4_spill] sm:$0xff] %v17344_v7 }
0x1117   : > { %8509 = vmax.xlane.f32.xlu0 %v8508_v34  ;;  %v8316_v34 = vrot.slane %v12648_v58, 7  ;;  %v8327_v17 = vrot.slane %v8059_v32, 2  ;;  %v17352_v9 = vsel %vm2489_vm13, %v8329_v46, %v8331_v61  ;;  %v17370_v48 = vsel %vm2156_vm9, %v8331_v61, %v8342_v54 }
0x1118   : > { %8506 = vmax.xlane.f32.xlu1 %v8505_v19  ;;  %v17341_v19 = vsel %vm2804_vm12, %v8312_v30, %v8314_v25  ;;  %v17360_v30 = vpop.permute.xlu1 %10022  ;;  %v8526_v32 = vsel %vm3367_vm2, %v17352_v9, -inf }
0x1119   : > { %v8514_v58 = vsel %vm3367_vm2, %v17341_v19, -inf  ;;  %v8317_v35 = vsel %vm2804_vm12, %v8314_v25, %v8316_v34  ;;  %18770 = vst [vmem:[#allocation6_spill] sm:$0xff] %v17360_v30  ;;  %v17367_v25 = vsel %vm2489_vm13, %v8326_v22, %v8327_v17  ;;  %v17374_v30 = vpop.permute.xlu0 %10153  ;;  %v17384_v61 = vsel %vm2489_vm13, %v8327_v17, %v8329_v46 }
0x111a   : > { %v17356_v50 = vsel %vm2489_vm13, %v8317_v35, %v8326_v22  ;;  %v8520_v35 = vsel %vm3367_vm2, %v17367_v25, -inf  ;;  %18771 = vst [vmem:[#allocation8_spill] sm:$0xff] %v17374_v30 }
0x111b   : > { %8503 = vmax.xlane.f32.xlu0 %v8502_v38  ;;  %v8511_v38 = vsel %vm3367_vm2, %v17344_v7, -inf  ;;  %v8517_v7 = vsel %vm3367_vm2, %v17356_v50, -inf }
0x111c   : > { %8500 = vmax.xlane.f32.xlu1 %v8499_v26  ;;  %v12660_v26 = vpop.f32.mrf.mxu1  ;;  %v17381_v22 = vpop.permute.xlu1 %10244 }
0x111d   : > { %18772 = vst [vmem:[#allocation7_spill] sm:$0xff] %v17381_v22 }
0x111e   : > { %v8123_v34 = vpop.f32.mrf.mxu1 }
0x111f   : > { %8515 = vmax.xlane.f32.xlu0 %v8514_v58  ;;  %v8347_v58 = vrot.slane %v12660_v26, 5  ;;  %v8343_v1 = vrot.slane %v8123_v34, 5  ;;  %v8529_v26 = vsel %vm3367_vm2, %v17370_v48, -inf  ;;  %v8523_v34 = vsel %vm3367_vm2, %v17384_v61, -inf }
0x1120   : > { %8512 = vmax.xlane.f32.xlu1 %v8511_v38  ;;  %v8345_v38 = vrot.slane %v12659_v56, 5 }
0x1122   : > { %v17395_v30 = vsel %vm2156_vm9, %v8343_v1, %v8345_v38 }
0x1123   : > { %8527 = vmax.xlane.f32.xlu0 %v8526_v32  ;;  %v17379_v32 = vsel %vm2156_vm9, %v8345_v38, %v8347_v58  ;;  %18774 = vst [vmem:[#allocation9_spill] sm:$0xff] %v17395_v30  ;;  %v8535_v22 = vsel %vm3367_vm2, %v17395_v30, -inf }
0x1124   : > { %8518 = vmax.xlane.f32.xlu1 %v8517_v7  ;;  %v8538_v56 = vsel %vm3367_vm2, %v17379_v32, -inf }
0x1127   : > { %8521 = vmax.xlane.f32.xlu0 %v8520_v35  ;;  %v17391_v35 = vsel %vm2156_vm9, %v8342_v54, %v8343_v1 }
0x1128   : > { %8530 = vmax.xlane.f32.xlu1 %v8529_v26  ;;  %18773 = vst [vmem:[#allocation10_spill] sm:$0xff] %v17391_v35  ;;  %v17397_v26 = vpop.permute.xlu1 %10242  ;;  %v8532_v17 = vsel %vm3367_vm2, %v17391_v35, -inf }
0x1129   : > { %18775 = vst [vmem:[#allocation11_spill] sm:$0xff] %v17397_v26 }
0x112b   : > { %8539 = vmax.xlane.f32.xlu0 %v8538_v56  ;;  %v8375_v7 = vpop.xlane.xlu0 %8374 }
0x112c   : > { %v8543_v58 = vsub.f32 %v17019_v55, %v8375_v7  ;;  %8524 = vmax.xlane.f32.xlu1 %v8523_v34 }
0x112e   : > { %v8603_v46 = vmul.f32 1.442695, %v8543_v58 }
0x112f   : > { %8533 = vmax.xlane.f32.xlu0 %v8532_v17  ;;  %v8369_v56 = vpop.xlane.xlu0 %8368 }
0x1130   : > { %13834 = vpow2.f32 %v8603_v46  ;;  %v8541_v54 = vsub.f32 %v17023_v37, %v8369_v56  ;;  %8536 = vmax.xlane.f32.xlu1 %v8535_v22 }
0x1132   : > { %v8599_v55 = vmul.f32 1.442695, %v8541_v54  ;;  %v8378_v7 = vpop.xlane.xlu1 %8377 }
0x1133   : > { %v8544_v1 = vsub.f32 %v17030_v43, %v8378_v7  ;;  %v8372_v38 = vpop.xlane.xlu0 %8371 }
0x1134   : > { %13836 = vpow2.f32 %v8599_v55  ;;  %v8542_v34 = vsub.f32 %v17027_v0, %v8372_v38 }
0x1135   : > { %v8605_v58 = vmul.f32 1.442695, %v8544_v1 }
0x1136   : > { %v8601_v26 = vmul.f32 1.442695, %v8542_v34 }
0x1137   : > { %v8387_v35 = vpop.xlane.xlu0 %8386 }
0x1138   : > { %13838 = vpow2.f32 %v8601_v26  ;;  %v8547_v17 = vsub.f32 %v17039_v20, %v8387_v35 }
0x1139   : > { %13840 = vpow2.f32 %v8605_v58 }
0x113a   : > { %v8611_v30 = vmul.f32 1.442695, %v8547_v17 }
0x113b   : > { %v8381_v46 = vpop.xlane.xlu0 %8380 }
0x113c   : > { %13842 = vpow2.f32 %v8611_v30  ;;  %v8545_v37 = vsub.f32 %v17046_v12, %v8381_v46  ;;  %v8393_v22 = vpop.xlane.xlu1 %8392 }
0x113d   : > { %v17408_v56 = vpop.eup %13834  ;;  %v8549_v34 = vsub.f32 %v17056_v23, %v8393_v22 }
0x113e   : > { %v8607_v43 = vmul.f32 1.442695, %v8545_v37  ;;  %v8721_v54 = vsel %vm3367_vm2, %v17408_v56, 0.0 }
0x113f   : > { %v8384_v0 = vpop.xlane.xlu0 %8383  ;;  %8722 = vadd.xlane.f32.xlu1 %v8721_v54 }
0x1140   : > { %13844 = vpow2.f32 %v8607_v43  ;;  %v8546_v26 = vsub.f32 %v17065_v39, %v8384_v0  ;;  %v8405_v55 = vpop.xlane.xlu1 %8404 }
0x1141   : > { %v17413_v20 = vpop.eup %13836  ;;  %v8553_v0 = vsub.f32 %v17071_v59, %v8405_v55 }
0x1142   : > { %v8609_v35 = vmul.f32 1.442695, %v8546_v26  ;;  %v8715_v30 = vsel %vm3367_vm2, %v17413_v20, 0.0 }
0x1143   : > { %v8390_v12 = vpop.xlane.xlu0 %8389  ;;  %8716 = vadd.xlane.f32.xlu1 %v8715_v30 }
0x1144   : > { %13846 = vpow2.f32 %v8609_v35  ;;  %v8548_v7 = vsub.f32 %v17084_v40, %v8390_v12  ;;  %v8411_v1 = vpop.xlane.xlu1 %8410  ;;  %v8615_v40 = vmul.f32 1.442695, %v8549_v34 }
0x1145   : > { %v17418_v38 = vpop.eup %13838  ;;  %v8555_v59 = vsub.f32 %v17090_v36, %v8411_v1 }
0x1146   : > { %v8613_v58 = vmul.f32 1.442695, %v8548_v7  ;;  %v8718_v39 = vsel %vm3367_vm2, %v17418_v38, 0.0  ;;  %v17423_v17 = vpop.eup %13840  ;;  %v8623_v7 = vmul.f32 1.442695, %v8553_v0 }
0x1147   : > { %v8399_v46 = vpop.xlane.xlu0 %8398  ;;  %8719 = vadd.xlane.f32.xlu0 %v8718_v39  ;;  %v8724_v22 = vsel %vm3367_vm2, %v17423_v17, 0.0 }
0x1148   : > { %13848 = vpow2.f32 %v8613_v58  ;;  %v8551_v37 = vsub.f32 %v17102_v6, %v8399_v46  ;;  %v8423_v43 = vpop.xlane.xlu1 %8422 }
0x1149   : > { %v17426_v54 = vpop.eup %13842 }
0x114a   : > { %v8619_v26 = vmul.f32 1.442695, %v8551_v37  ;;  %v8733_v23 = vsel %vm3367_vm2, %v17426_v54, 0.0 }
0x114b   : > { %v8408_v35 = vpop.xlane.xlu0 %8407  ;;  %8734 = vadd.xlane.f32.xlu1 %v8733_v23  ;;  %8725 = vadd.xlane.f32.xlu0 %v8724_v22 }
0x114c   : > { %13850 = vpow2.f32 %v8619_v26  ;;  %v8554_v30 = vsub.f32 %v17117_v45, %v8408_v35  ;;  %v8417_v6 = vpop.xlane.xlu1 %8416  ;;  %v8627_v45 = vmul.f32 1.442695, %v8555_v59  ;;  %v8559_v26 = vsub.f32 %v17107_v15, %v8423_v43 }
0x114d   : > { %v17434_v12 = vpop.eup %13844  ;;  %13852 = vpow2.f32 %v8615_v40  ;;  %v8557_v22 = vsub.f32 %v17121_v21, %v8417_v6 }
0x114e   : > { %v8625_v55 = vmul.f32 1.442695, %v8554_v30  ;;  %v8727_v34 = vsel %vm3367_vm2, %v17434_v12, 0.0 }
0x114f   : > { %v8396_v58 = vpop.xlane.xlu0 %8395  ;;  %8728 = vadd.xlane.f32.xlu1 %v8727_v34 }
0x1150   : > { %13854 = vpow2.f32 %v8625_v55  ;;  %v8550_v39 = vsub.f32 %v17129_v28, %v8396_v58  ;;  %v8429_v46 = vpop.xlane.xlu1 %8428  ;;  %v8635_v28 = vmul.f32 1.442695, %v8559_v26 }
0x1151   : > { %v17440_v37 = vpop.eup %13846  ;;  %13856 = vpow2.f32 %v8623_v7  ;;  %v8561_v34 = vsub.f32 %v17132_v29, %v8429_v46 }
0x1152   : > { %v8617_v40 = vmul.f32 1.442695, %v8550_v39  ;;  %v8730_v36 = vsel %vm3367_vm2, %v17440_v37, 0.0 }
0x1153   : > { %v8402_v1 = vpop.xlane.xlu0 %8401  ;;  %8731 = vadd.xlane.f32.xlu0 %v8730_v36  ;;  %v8639_v36 = vmul.f32 1.442695, %v8561_v34 }
0x1154   : > { %13858 = vpow2.f32 %v8617_v40  ;;  %v8552_v0 = vsub.f32 %v17142_v60, %v8402_v1  ;;  %v8441_v35 = vpop.xlane.xlu1 %8440  ;;  %v8631_v60 = vmul.f32 1.442695, %v8557_v22 }
0x1155   : > { %v17446_v23 = vpop.eup %13848  ;;  %13860 = vpow2.f32 %v8627_v45  ;;  %v8565_v29 = vsub.f32 %v17145_v49, %v8441_v35 }
0x1156   : > { %v8621_v30 = vmul.f32 1.442695, %v8552_v0  ;;  %v8736_v15 = vsel %vm3367_vm2, %v17446_v23, 0.0 }
0x1157   : > { %v8420_v43 = vpop.xlane.xlu0 %8419  ;;  %8737 = vadd.xlane.f32.xlu0 %v8736_v15  ;;  %v8647_v49 = vmul.f32 1.442695, %v8565_v29 }
0x1158   : > { %13862 = vpow2.f32 %v8621_v30  ;;  %v8558_v7 = vsub.f32 %v17153_v11, %v8420_v43  ;;  %v8453_v6 = vpop.xlane.xlu1 %8452 }
0x1159   : > { %v17452_v59 = vpop.eup %13850  ;;  %13864 = vpow2.f32 %v8635_v28  ;;  %v8569_v22 = vsub.f32 %v17156_v14, %v8453_v6 }
0x115a   : > { %v17454_v55 = vpop.eup %13852  ;;  %v8633_v58 = vmul.f32 1.442695, %v8558_v7  ;;  %v8745_v21 = vsel %vm3367_vm2, %v17452_v59, 0.0 }
0x115b   : > { %v8414_v39 = vpop.xlane.xlu0 %8413  ;;  %8746 = vadd.xlane.f32.xlu1 %v8745_v21  ;;  %v8739_v11 = vsel %vm3367_vm2, %v17454_v55, 0.0  ;;  %v8655_v14 = vmul.f32 1.442695, %v8569_v22 }
0x115c   : > { %13866 = vpow2.f32 %v8633_v58  ;;  %v8556_v45 = vsub.f32 %v17165_v47, %v8414_v39  ;;  %v8435_v30 = vpop.xlane.xlu1 %8434 }
0x115d   : > { %v17460_v26 = vpop.eup %13854  ;;  %13868 = vpow2.f32 %v8631_v60  ;;  %v8563_v6 = vsub.f32 %v17168_v3, %v8435_v30 }
0x115e   : > { %v17464_v40 = vpop.eup %13856  ;;  %v8629_v46 = vmul.f32 1.442695, %v8556_v45  ;;  %v8754_v1 = vsel %vm3367_vm2, %v17460_v26, 0.0 }
0x115f   : > { %v8426_v0 = vpop.xlane.xlu0 %8425  ;;  %8740 = vadd.xlane.f32.xlu1 %v8739_v11  ;;  %8755 = vadd.xlane.f32.xlu0 %v8754_v1  ;;  %v8751_v15 = vsel %vm3367_vm2, %v17464_v40, 0.0  ;;  %v8643_v3 = vmul.f32 1.442695, %v8563_v6 }
0x1160   : > { %13870 = vpow2.f32 %v8629_v46  ;;  %v8560_v47 = vsub.f32 %v17178_v2, %v8426_v0  ;;  %v8447_v11 = vpop.xlane.xlu1 %8446 }
0x1161   : > { %v17470_v28 = vpop.eup %13858  ;;  %13872 = vpow2.f32 %v8639_v36  ;;  %v8567_v0 = vsub.f32 %v17181_v41, %v8447_v11 }
0x1162   : > { %v17475_v43 = vpop.eup %13860  ;;  %v8637_v35 = vmul.f32 1.442695, %v8560_v47  ;;  %v8742_v7 = vsel %vm3367_vm2, %v17470_v28, 0.0 }
0x1163   : > { %v8432_v60 = vpop.xlane.xlu0 %8431  ;;  %8752 = vadd.xlane.f32.xlu1 %v8751_v15  ;;  %8743 = vadd.xlane.f32.xlu0 %v8742_v7  ;;  %v8757_v58 = vsel %vm3367_vm2, %v17475_v43, 0.0 }
0x1164   : > { %13874 = vpow2.f32 %v8637_v35  ;;  %v8562_v2 = vsub.f32 %v17189_v5, %v8432_v60  ;;  %v8651_v35 = vmul.f32 1.442695, %v8567_v0 }
0x1165   : > { %v17480_v34 = vpop.eup %13862  ;;  %13876 = vpow2.f32 %v8647_v49 }
0x1166   : > { %v17484_v21 = vpop.eup %13864  ;;  %v8641_v39 = vmul.f32 1.442695, %v8562_v2  ;;  %v8748_v45 = vsel %vm3367_vm2, %v17480_v34, 0.0 }
0x1167   : > { %v8444_v36 = vpop.xlane.xlu0 %8443  ;;  %8758 = vadd.xlane.f32.xlu1 %v8757_v58  ;;  %8749 = vadd.xlane.f32.xlu0 %v8748_v45  ;;  %v8769_v46 = vsel %vm3367_vm2, %v17484_v21, 0.0 }
0x1168   : > { %13878 = vpow2.f32 %v8641_v39  ;;  %v8566_v5 = vsub.f32 %v17194_v8, %v8444_v36 }
0x1169   : > { %v17490_v29 = vpop.eup %13866  ;;  %13880 = vpow2.f32 %v8655_v14 }
0x116a   : > { %v17494_v1 = vpop.eup %13868  ;;  %v8649_v47 = vmul.f32 1.442695, %v8566_v5  ;;  %v8766_v22 = vsel %vm3367_vm2, %v17490_v29, 0.0 }
0x116b   : > { %v8438_v30 = vpop.xlane.xlu0 %8437  ;;  %8770 = vadd.xlane.f32.xlu1 %v8769_v46  ;;  %8767 = vadd.xlane.f32.xlu0 %v8766_v22  ;;  %v8763_v49 = vsel %vm3367_vm2, %v17494_v1, 0.0 }
0x116c   : > { %13882 = vpow2.f32 %v8649_v47  ;;  %v8564_v8 = vsub.f32 %v17199_v33, %v8438_v30 }
0x116d   : > { %v17500_v15 = vpop.eup %13870  ;;  %13884 = vpow2.f32 %v8643_v3 }
0x116e   : > { %v8645_v7 = vmul.f32 1.442695, %v8564_v8  ;;  %v8760_v41 = vsel %vm3367_vm2, %v17500_v15, 0.0  ;;  %v17506_v60 = vpop.eup %13872 }
0x116f   : > { %v8450_v2 = vpop.xlane.xlu0 %8449  ;;  %8764 = vadd.xlane.f32.xlu1 %v8763_v49  ;;  %8761 = vadd.xlane.f32.xlu0 %v8760_v41  ;;  %v8775_v6 = vsel %vm3367_vm2, %v17506_v60, 0.0 }
0x1170   : > { %13886 = vpow2.f32 %v8645_v7  ;;  %v8568_v14 = vsub.f32 %v17204_v53, %v8450_v2 }
0x1171   : > { %v17509_v33 = vpop.eup %13874  ;;  %13888 = vpow2.f32 %v8651_v35 }
0x1172   : > { %v8653_v58 = vmul.f32 1.442695, %v8568_v14  ;;  %v8772_v39 = vsel %vm3367_vm2, %v17509_v33, 0.0  ;;  %v17515_v45 = vpop.eup %13876 }
0x1173   : > { %8776 = vadd.xlane.f32.xlu1 %v8775_v6  ;;  %8773 = vadd.xlane.f32.xlu0 %v8772_v39  ;;  %v8787_v53 = vsel %vm3367_vm2, %v17515_v45, 0.0 }
0x1174   : > { %13890 = vpow2.f32 %v8653_v58 }
0x1175   : > { %v17517_v11 = vpop.eup %13878 }
0x1176   : > { %v17519_v36 = vpop.eup %13880  ;;  %v8778_v5 = vsel %vm3367_vm2, %v17517_v11, 0.0 }
0x1177   : > { %18776 = vst [vmem:[#allocation12_spill] sm:$0xff] %v17519_v36  ;;  %8788 = vadd.xlane.f32.xlu1 %v8787_v53  ;;  %8779 = vadd.xlane.f32.xlu0 %v8778_v5  ;;  %v8799_v3 = vsel %vm3367_vm2, %v17519_v36, 0.0 }
0x1179   : > { %v17525_v46 = vpop.eup %13882 }
0x117a   : > { %v8790_v0 = vsel %vm3367_vm2, %v17525_v46, 0.0  ;;  %v17531_v47 = vpop.eup %13884 }
0x117b   : > { %8800 = vadd.xlane.f32.xlu1 %v8799_v3  ;;  %8791 = vadd.xlane.f32.xlu0 %v8790_v0  ;;  %v8781_v30 = vsel %vm3367_vm2, %v17531_v47, 0.0 }
0x117d   : > { %v17533_v22 = vpop.eup %13886 }
0x117e   : > { %v8784_v8 = vsel %vm3367_vm2, %v17533_v22, 0.0  ;;  %v17539_v49 = vpop.eup %13888 }
0x117f   : > { %v8462_v35 = vpop.xlane.xlu0 %8461  ;;  %8782 = vadd.xlane.f32.xlu1 %v8781_v30  ;;  %8785 = vadd.xlane.f32.xlu0 %v8784_v8  ;;  %v8793_v14 = vsel %vm3367_vm2, %v17539_v49, 0.0 }
0x1180   : > { %v8572_v7 = vsub.f32 %v17214_v44, %v8462_v35 }
0x1181   : > { %v17542_v41 = vpop.eup %13890 }
0x1182   : > { %v8661_v2 = vmul.f32 1.442695, %v8572_v7  ;;  %v8796_v58 = vsel %vm3367_vm2, %v17542_v41, 0.0 }
0x1183   : > { %v8456_v6 = vpop.xlane.xlu0 %8455  ;;  %8794 = vadd.xlane.f32.xlu1 %v8793_v14  ;;  %8797 = vadd.xlane.f32.xlu0 %v8796_v58 }
0x1184   : > { %13892 = vpow2.f32 %v8661_v2  ;;  %v8570_v39 = vsub.f32 %v17218_v10, %v8456_v6 }
0x1185   : > { %v8459_v53 = vpop.xlane.xlu1 %8458 }
0x1186   : > { %v8657_v5 = vmul.f32 1.442695, %v8570_v39  ;;  %v8571_v3 = vsub.f32 %v17226_v27, %v8459_v53 }
0x1188   : > { %13894 = vpow2.f32 %v8657_v5  ;;  %v8659_v44 = vmul.f32 1.442695, %v8571_v3  ;;  %v8474_v0 = vpop.xlane.xlu0 %8473 }
0x1189   : > { %v8576_v30 = vsub.f32 %v17238_v16, %v8474_v0  ;;  %v8465_v8 = vpop.xlane.xlu1 %8464 }
0x118a   : > { %13896 = vpow2.f32 %v8659_v44  ;;  %v8573_v35 = vsub.f32 %v17231_v52, %v8465_v8 }
0x118b   : > { %v8669_v7 = vmul.f32 1.442695, %v8576_v30 }
0x118c   : > { %v8663_v36 = vmul.f32 1.442695, %v8573_v35  ;;  %v8468_v14 = vpop.xlane.xlu0 %8467 }
0x118d   : > { %13898 = vpow2.f32 %v8669_v7  ;;  %v8574_v2 = vsub.f32 %v17245_v42, %v8468_v14  ;;  %v8471_v10 = vpop.xlane.xlu1 %8470 }
0x118e   : > { %13900 = vpow2.f32 %v8663_v36  ;;  %v8575_v58 = vsub.f32 %v17248_v18, %v8471_v10 }
0x118f   : > { %v8665_v27 = vmul.f32 1.442695, %v8574_v2 }
0x1190   : > { %v8667_v6 = vmul.f32 1.442695, %v8575_v58  ;;  %v8486_v39 = vpop.xlane.xlu0 %8485 }
0x1191   : > { %v17554_v53 = vpop.eup %13892  ;;  %13902 = vpow2.f32 %v8665_v27  ;;  %v8580_v16 = vsub.f32 %v17260_v57, %v8486_v39  ;;  %v8477_v5 = vpop.xlane.xlu1 %8476 }
0x1192   : > { %13904 = vpow2.f32 %v8667_v6  ;;  %v8577_v52 = vsub.f32 %v17263_v24, %v8477_v5  ;;  %v8808_v3 = vsel %vm3367_vm2, %v17554_v53, 0.0 }
0x1193   : > { %v8677_v42 = vmul.f32 1.442695, %v8580_v16  ;;  %8809 = vadd.xlane.f32.xlu0 %v8808_v3 }
0x1194   : > { %v8671_v36 = vmul.f32 1.442695, %v8577_v52  ;;  %v8480_v44 = vpop.xlane.xlu0 %8479 }
0x1195   : > { %v17560_v18 = vpop.eup %13894  ;;  %13906 = vpow2.f32 %v8677_v42  ;;  %v8578_v0 = vsub.f32 %v17270_v62, %v8480_v44  ;;  %v8495_v30 = vpop.xlane.xlu1 %8494 }
0x1196   : > { %13908 = vpow2.f32 %v8671_v36  ;;  %v8583_v57 = vsub.f32 %v17275_v63, %v8495_v30  ;;  %v8802_v8 = vsel %vm3367_vm2, %v17560_v18, 0.0 }
0x1197   : > { %v17566_v24 = vpop.eup %13896  ;;  %v8673_v35 = vmul.f32 1.442695, %v8578_v0  ;;  %8803 = vadd.xlane.f32.xlu0 %v8802_v8 }
0x1198   : > { %v8683_v7 = vmul.f32 1.442695, %v8583_v57  ;;  %v8492_v14 = vpop.xlane.xlu0 %8491  ;;  %v8805_v2 = vsel %vm3367_vm2, %v17566_v24, 0.0 }
0x1199   : > { %13910 = vpow2.f32 %v8673_v35  ;;  %v8582_v10 = vsub.f32 %v17286_v4, %v8492_v14  ;;  %v8483_v62 = vpop.xlane.xlu1 %8482  ;;  %8806 = vadd.xlane.f32.xlu1 %v8805_v2  ;;  %v18778_v35 = vld [vmem:[#allocation57_spill] sm:$0xff] }
0x119a   : > { %v17571_v58 = vpop.eup %13898  ;;  %13912 = vpow2.f32 %v8683_v7  ;;  %v8579_v63 = vsub.f32 %v17289_v51, %v8483_v62  ;;  %v18777_v51 = vld [vmem:[#allocation51_spill] sm:$0xff] }
0x119b   : > { %v17574_v27 = vpop.eup %13900  ;;  %v8681_v6 = vmul.f32 1.442695, %v8582_v10  ;;  %v8820_v39 = vsel %vm3367_vm2, %v17571_v58, 0.0  ;;  %v18779_v10 = vld [vmem:[#allocation61_spill] sm:$0xff] }
0x119c   : > { %v8675_v16 = vmul.f32 1.442695, %v8579_v63  ;;  %v8498_v5 = vpop.xlane.xlu0 %8497  ;;  %8821 = vadd.xlane.f32.xlu0 %v8820_v39  ;;  %v8811_v52 = vsel %vm3367_vm2, %v17574_v27, 0.0 }
0x119d   : > { %v8584_v4 = vsub.f32 %v17300_v31, %v8498_v5  ;;  %v8489_v3 = vpop.xlane.xlu1 %8488  ;;  %8812 = vadd.xlane.f32.xlu1 %v8811_v52 }
0x119e   : > { %v17581_v42 = vpop.eup %13902  ;;  %13914 = vpow2.f32 %v8675_v16  ;;  %v8581_v36 = vsub.f32 %v18777_v51, %v8489_v3 }
0x119f   : > { %v17584_v44 = vpop.eup %13904  ;;  %13916 = vpow2.f32 %v8681_v6  ;;  %v8685_v0 = vmul.f32 1.442695, %v8584_v4  ;;  %v8814_v30 = vsel %vm3367_vm2, %v17581_v42, 0.0 }
0x11a0   : > { %v8679_v57 = vmul.f32 1.442695, %v8581_v36  ;;  %v8510_v8 = vpop.xlane.xlu0 %8509  ;;  %8815 = vadd.xlane.f32.xlu0 %v8814_v30  ;;  %v8817_v31 = vsel %vm3367_vm2, %v17584_v44, 0.0  ;;  %v18780_v36 = vld [vmem:[#allocation64_spill] sm:$0xff] }
0x11a1   : > { %v8588_v7 = vsub.f32 %v18778_v35, %v8510_v8  ;;  %v8507_v14 = vpop.xlane.xlu1 %8506  ;;  %8818 = vadd.xlane.f32.xlu1 %v8817_v31 }
0x11a2   : > { %v17591_v2 = vpop.eup %13906  ;;  %13918 = vpow2.f32 %v8679_v57  ;;  %v8587_v62 = vsub.f32 %v18779_v10, %v8507_v14  ;;  %v18781_v10 = vld [vmem:[#allocation4_spill] sm:$0xff] }
0x11a3   : > { %v17594_v63 = vpop.eup %13908  ;;  %13920 = vpow2.f32 %v8685_v0  ;;  %v8693_v6 = vmul.f32 1.442695, %v8588_v7  ;;  %v8832_v39 = vsel %vm3367_vm2, %v17591_v2, 0.0 }
0x11a4   : > { %v8691_v16 = vmul.f32 1.442695, %v8587_v62  ;;  %v8504_v5 = vpop.xlane.xlu0 %8503  ;;  %8833 = vadd.xlane.f32.xlu0 %v8832_v39  ;;  %v8823_v52 = vsel %vm3367_vm2, %v17594_v63, 0.0 }
0x11a5   : > { %v8586_v4 = vsub.f32 %v17326_v13, %v8504_v5  ;;  %v8501_v3 = vpop.xlane.xlu1 %8500  ;;  %8824 = vadd.xlane.f32.xlu1 %v8823_v52 }
0x11a6   : > { %v17601_v51 = vpop.eup %13910  ;;  %13922 = vpow2.f32 %v8691_v16  ;;  %v8585_v30 = vsub.f32 %v18780_v36, %v8501_v3 }
0x11a7   : > { %v17604_v0 = vpop.eup %13912  ;;  %13924 = vpow2.f32 %v8693_v6  ;;  %v8826_v57 = vsel %vm3367_vm2, %v17601_v51, 0.0  ;;  %v8689_v8 = vmul.f32 1.442695, %v8586_v4 }
0x11a8   : > { %v8687_v31 = vmul.f32 1.442695, %v8585_v30  ;;  %v8516_v35 = vpop.xlane.xlu0 %8515  ;;  %8827 = vadd.xlane.f32.xlu0 %v8826_v57  ;;  %v8841_v13 = vsel %vm3367_vm2, %v17604_v0, 0.0 }
0x11a9   : > { %v8590_v7 = vsub.f32 %v17341_v19, %v8516_v35  ;;  %v8513_v14 = vpop.xlane.xlu1 %8512  ;;  %8842 = vadd.xlane.f32.xlu1 %v8841_v13 }
0x11aa   : > { %13926 = vpow2.f32 %v8687_v31  ;;  %v8589_v62 = vsub.f32 %v18781_v10, %v8513_v14 }
0x11ab   : > { %v17612_v39 = vpop.eup %13914  ;;  %13928 = vpow2.f32 %v8689_v8  ;;  %v8697_v16 = vmul.f32 1.442695, %v8590_v7 }
0x11ac   : > { %v17614_v6 = vpop.eup %13916  ;;  %v8695_v5 = vmul.f32 1.442695, %v8589_v62  ;;  %v8528_v52 = vpop.xlane.xlu0 %8527  ;;  %v8829_v4 = vsel %vm3367_vm2, %v17612_v39, 0.0 }
0x11ad   : > { %v8594_v3 = vsub.f32 %v17352_v9, %v8528_v52  ;;  %v8519_v36 = vpop.xlane.xlu1 %8518  ;;  %8830 = vadd.xlane.f32.xlu0 %v8829_v4  ;;  %v8838_v57 = vsel %vm3367_vm2, %v17614_v6, 0.0 }
0x11ae   : > { %13930 = vpow2.f32 %v8695_v5  ;;  %v8591_v19 = vsub.f32 %v17356_v50, %v8519_v36 }
0x11af   : > { %v17620_v30 = vpop.eup %13918  ;;  %13932 = vpow2.f32 %v8697_v16  ;;  %v8705_v8 = vmul.f32 1.442695, %v8594_v3 }
0x11b0   : > { %v17624_v31 = vpop.eup %13920  ;;  %v8699_v35 = vmul.f32 1.442695, %v8591_v19  ;;  %v8522_v13 = vpop.xlane.xlu0 %8521  ;;  %v8835_v7 = vsel %vm3367_vm2, %v17620_v30, 0.0 }
0x11b1   : > { %v8592_v9 = vsub.f32 %v17367_v25, %v8522_v13  ;;  %v8531_v14 = vpop.xlane.xlu1 %8530  ;;  %8836 = vadd.xlane.f32.xlu1 %v8835_v7  ;;  %8839 = vadd.xlane.f32.xlu0 %v8838_v57  ;;  %v8844_v62 = vsel %vm3367_vm2, %v17624_v31, 0.0 }
0x11b2   : > { %13934 = vpow2.f32 %v8699_v35  ;;  %v8595_v50 = vsub.f32 %v17370_v48, %v8531_v14 }
0x11b3   : > { %v17630_v10 = vpop.eup %13922  ;;  %13936 = vpow2.f32 %v8705_v8  ;;  %v8701_v5 = vmul.f32 1.442695, %v8592_v9 }
0x11b4   : > { %v17634_v16 = vpop.eup %13924  ;;  %v8707_v52 = vmul.f32 1.442695, %v8595_v50  ;;  %v8540_v4 = vpop.xlane.xlu0 %8539  ;;  %v8853_v25 = vsel %vm3367_vm2, %v17630_v10, 0.0 }
0x11b5   : > { %v8598_v3 = vsub.f32 %v17379_v32, %v8540_v4  ;;  %8854 = vadd.xlane.f32.xlu1 %v8853_v25  ;;  %v8525_v36 = vpop.xlane.xlu1 %8524  ;;  %8845 = vadd.xlane.f32.xlu0 %v8844_v62  ;;  %v8856_v57 = vsel %vm3367_vm2, %v17634_v16, 0.0  ;;  %v18784_v32 = vld [vmem:[#allocation10_spill] sm:$0xff] }
0x11b6   : > { %13938 = vpow2.f32 %v8707_v52  ;;  %v8593_v48 = vsub.f32 %v17384_v61, %v8525_v36 }
0x11b7   : > { %v17640_v19 = vpop.eup %13926  ;;  %13940 = vpow2.f32 %v8701_v5  ;;  %v8713_v8 = vmul.f32 1.442695, %v8598_v3 }
0x11b8   : > { %18782 = vst [vmem:[#allocation13_spill] sm:$0xff] %v17640_v19  ;;  %v8703_v35 = vmul.f32 1.442695, %v8593_v48  ;;  %v8534_v13 = vpop.xlane.xlu0 %8533  ;;  %v8847_v7 = vsel %vm3367_vm2, %v17640_v19, 0.0  ;;  %v17646_v9 = vpop.eup %13928 }
0x11b9   : > { %18783 = vst [vmem:[#allocation14_spill] sm:$0xff] %v17646_v9  ;;  %v8596_v14 = vsub.f32 %v18784_v32, %v8534_v13  ;;  %8848 = vadd.xlane.f32.xlu1 %v8847_v7  ;;  %8857 = vadd.xlane.f32.xlu0 %v8856_v57  ;;  %v8850_v5 = vsel %vm3367_vm2, %v17646_v9, 0.0  ;;  %v8537_v57 = vpop.xlane.xlu1 %8536 }
0x11ba   : > { %13942 = vpow2.f32 %v8703_v35 }
0x11bb   : > { %v17649_v61 = vpop.eup %13930  ;;  %13944 = vpow2.f32 %v8713_v8  ;;  %v8709_v50 = vmul.f32 1.442695, %v8596_v14 }
0x11bc   : > { %18785 = vst [vmem:[#allocation16_spill] sm:$0xff] %v17649_v61  ;;  %v8859_v62 = vsel %vm3367_vm2, %v17649_v61, 0.0  ;;  %v17655_v52 = vpop.eup %13932 }
0x11bd   : > { %18786 = vst [vmem:[#allocation15_spill] sm:$0xff] %v17655_v52  ;;  %8860 = vadd.xlane.f32.xlu1 %v8859_v62  ;;  %8851 = vadd.xlane.f32.xlu0 %v8850_v5  ;;  %13946 = vpow2.f32 %v8709_v50  ;;  %v8862_v3 = vsel %vm3367_vm2, %v17655_v52, 0.0 }
0x11bf   : > { %v17657_v4 = vpop.eup %13934 }
0x11c0   : > { %18787 = vst [vmem:[#allocation17_spill] sm:$0xff] %v17657_v4  ;;  %v8865_v25 = vsel %vm3367_vm2, %v17657_v4, 0.0  ;;  %v17663_v36 = vpop.eup %13936 }
0x11c1   : > { %18788 = vst [vmem:[#allocation20_spill] sm:$0xff] %v17663_v36  ;;  %8866 = vadd.xlane.f32.xlu1 %v8865_v25  ;;  %8863 = vadd.xlane.f32.xlu0 %v8862_v3  ;;  %v8874_v35 = vsel %vm3367_vm2, %v17663_v36, 0.0 }
0x11c3   : > { %v17665_v48 = vpop.eup %13938 }
0x11c4   : > { %18789 = vst [vmem:[#allocation22_spill] sm:$0xff] %v17665_v48  ;;  %v8877_v8 = vsel %vm3367_vm2, %v17665_v48, 0.0  ;;  %v17671_v13 = vpop.eup %13940 }
0x11c5   : > { %18790 = vst [vmem:[#allocation19_spill] sm:$0xff] %v17671_v13  ;;  %8878 = vadd.xlane.f32.xlu1 %v8877_v8  ;;  %8875 = vadd.xlane.f32.xlu0 %v8874_v35  ;;  %v8868_v50 = vsel %vm3367_vm2, %v17671_v13, 0.0 }
0x11c7   : > { %v17673_v7 = vpop.eup %13942 }
0x11c8   : > { %18791 = vst [vmem:[#allocation51_spill] sm:$0xff] %v17673_v7  ;;  %v8871_v32 = vsel %vm3367_vm2, %v17673_v7, 0.0  ;;  %v8723_v14 = vpop.xlane.xlu1 %8722  ;;  %v17679_v62 = vpop.eup %13944 }
0x11c9   : > { %18792 = vst [vmem:[#allocation57_spill] sm:$0xff] %v17679_v62  ;;  %8872 = vadd.xlane.f32.xlu1 %v8871_v32  ;;  %8869 = vadd.xlane.f32.xlu0 %v8868_v50  ;;  %v8886_v25 = vsel %vm3367_vm2, %v17679_v62, 0.0  ;;  %v18794_v50 = vld [vmem:[#allocation39_spill] sm:$0xff] }
0x11ca   : > { %v17683_v3 = vpop.eup %13946 }
0x11cb   : > { %18793 = vst [vmem:[#allocation61_spill] sm:$0xff] %v17683_v3  ;;  %v8880_v8 = vsel %vm3367_vm2, %v17683_v3, 0.0 }
0x11cc   : > { %v8717_v5 = vpop.xlane.xlu1 %8716 }
0x11cd   : > { %8887 = vadd.xlane.f32.xlu0 %v8886_v25  ;;  %13948 = vrcp.f32 %v8717_v5 }
0x11d0   : > { %v8720_v35 = vpop.xlane.xlu0 %8719 }
0x11d1   : > { %8881 = vadd.xlane.f32.xlu0 %v8880_v8  ;;  %13950 = vrcp.f32 %v8720_v35 }
0x11d2   : > { %13952 = vrcp.f32 %v8723_v14  ;;  %v18795_v14 = vld [vmem:[#allocation9_spill] sm:$0xff] }
0x11d3   : > { %v8597_v36 = vsub.f32 %v18795_v14, %v8537_v57 }
0x11d4   : > { %v8735_v48 = vpop.xlane.xlu1 %8734  ;;  %v8726_v13 = vpop.xlane.xlu0 %8725 }
0x11d5   : > { %13954 = vrcp.f32 %v8726_v13  ;;  %v8711_v61 = vmul.f32 1.442695, %v8597_v36 }
0x11d8   : > { %v8729_v32 = vpop.xlane.xlu1 %8728 }
0x11d9   : > { %13956 = vrcp.f32 %v8729_v32 }
0x11da   : > { %10395 = vrot.lane.b32.xlu1 %v18794_v50, %s14146_s28  ;;  %v13949_v62 = vpop.eup %13948 }
0x11db   : > { %v8947_v5 = vmul.f32 %v13949_v62, %v17413_v20  ;;  %v18796_v62 = vld [vmem:[#allocation41_spill] sm:$0xff] }
0x11dc   : > { %v8732_v4 = vpop.xlane.xlu0 %8731 }
0x11dd   : > { %13958 = vrcp.f32 %v8732_v4 }
0x11de   : > { %v13951_v25 = vpop.eup %13950  ;;  %13960 = vrcp.f32 %v8735_v48 }
0x11df   : > { %v8948_v3 = vmul.f32 %v13951_v25, %v17418_v38  ;;  %v13953_v35 = vpop.eup %13952  ;;  %v18797_v25 = vld [vmem:[#allocation53_spill] sm:$0xff] }
0x11e0   : > { %v8738_v8 = vpop.xlane.xlu0 %8737  ;;  %v8949_v32 = vmul.f32 %v13953_v35, %v17408_v56 }
0x11e1   : > { %13962 = vrcp.f32 %v8738_v8  ;;  %v9005_v13 = vpack.c.bf16 %v8948_v3, %v8947_v5  ;;  %v18799_v5 = vld [vmem:[#allocation25_spill] sm:$0xff]  ;;  %v18800_v8 = vld [vmem:[#allocation43_spill] sm:$0xff] }
0x11e2   : > { %v13955_v7 = vpop.eup %13954  ;;  %13964 = vpow2.f32 %v8711_v61  ;;  %v17706_v61 = vand.u32 %v18800_v8, %v18799_v5 }
0x11e3   : > { %12665 = vmatprep.mubr.msk.bf16.mxu0 %vm3367_vm2, %v9005_v13  ;;  %v8950_v52 = vmul.f32 %v13955_v7, %v17423_v17 }
0x11e4   : > { %v8747_v4 = vpop.xlane.xlu1 %8746 }
0x11e5   : > { %v9006_v48 = vpack.c.bf16 %v8950_v52, %v8949_v32  ;;  %13966 = vrcp.f32 %v8747_v4  ;;  %v18798_v52 = vld [vmem:[#allocation44_spill] sm:$0xff] }
0x11e6   : > { %v13957_v20 = vpop.eup %13956 }
0x11e7   : > { %10315 = vrot.lane.b32.xlu0 %v18794_v50, %s14144_s26  ;;  %12666 = vmatmul.mubr.msk.bf16.vlgmr.msra.gmra.mxu0 %vm3367_vm2, %v9006_v48  ;;  %v9097_v56 = vshrl.u32 %v9006_v48, 16  ;;  %v8951_v36 = vmul.f32 %v13957_v20, %v17434_v12  ;;  %v9100_v50 = vshll.u32 %v9006_v48, 16 }
0x11e8   : > { %v8741_v38 = vpop.xlane.xlu1 %8740  ;;  %v8756_v57 = vpop.xlane.xlu0 %8755  ;;  %12678 = vmatpush3.bf16.msra.mxu0 %v18796_v62 }
0x11e9   : > { %12679 = vmatprep.subr.bf16.mxu0 %v18797_v25  ;;  %13968 = vrcp.f32 %v8756_v57  ;;  %v9099_v12 = vrot.slane %v9097_v56, 6  ;;  %v9102_v48 = vrot.slane %v9100_v50, 7 }
0x11ea   : > { %v13959_v3 = vpop.eup %13958  ;;  %13970 = vrcp.f32 %v8741_v38 }
0x11eb   : > { %v13961_v17 = vpop.eup %13960  ;;  %10313 = vrot.lane.b32.xlu0 %v18798_v52, %s14144_s26  ;;  %v8952_v7 = vmul.f32 %v13959_v3, %v17440_v37 }
0x11ec   : > { %v8753_v35 = vpop.xlane.xlu1 %8752  ;;  %v8744_v14 = vpop.xlane.xlu0 %8743  ;;  %12680 = vmatpush3.bf16.msra.mxu0 %v18797_v25  ;;  %v8953_v4 = vmul.f32 %v13961_v17, %v17426_v54  ;;  %v9103_v25 = vor.u32 %v9102_v48, %v9099_v12 }
0x11ed   : > { %13972 = vrcp.f32 %v8753_v35  ;;  %v9007_v13 = vpack.c.bf16 %v8952_v7, %v8951_v36  ;;  %12693 = vmatprep.subr.bf16.mxu0 %v17706_v61 }
0x11ee   : > { %v13963_v32 = vpop.eup %13962  ;;  %13974 = vrcp.f32 %v8744_v14 }
0x11ef   : > { %v8954_v37 = vmul.f32 %v13963_v32, %v17446_v23  ;;  %v9105_v20 = vshrl.u32 %v9007_v13, 16  ;;  %v9108_v57 = vshll.u32 %v9007_v13, 16  ;;  %v17713_v23 = vpop.eup %13964 }
0x11f0   : > { %v8759_v62 = vpop.xlane.xlu1 %8758  ;;  %v8750_v38 = vpop.xlane.xlu0 %8749 }
0x11f1   : > { %v9008_v3 = vpack.c.bf16 %v8954_v37, %v8953_v4  ;;  %v9107_v8 = vrot.slane %v9105_v20, 6  ;;  %v9110_v9 = vrot.slane %v9108_v57, 7  ;;  %13976 = vrcp.f32 %v8750_v38  ;;  %v18801_v57 = vld [vmem:[#allocation47_spill] sm:$0xff] }
0x11f2   : > { %v13967_v50 = vpop.eup %13966 }
0x11f3   : > { %v9111_v36 = vor.u32 %v9110_v9, %v9107_v8  ;;  %v9114_v7 = vshrl.u32 %v9008_v3, 16  ;;  %v9117_v35 = vshll.u32 %v9008_v3, 16 }
0x11f4   : > { %v8771_v54 = vpop.xlane.xlu1 %8770  ;;  %v8768_v17 = vpop.xlane.xlu0 %8767 }
0x11f5   : > { %v9112_v14 = vsel %vm2212_vm11, %v9103_v25, %v9111_v36  ;;  %v9116_v56 = vrot.slane %v9114_v7, 6  ;;  %v9119_v19 = vrot.slane %v9117_v35, 7  ;;  %13978 = vrcp.f32 %v8768_v17 }
0x11f6   : > { %12673 = vmatprep.mubr.msk.bf16.mxu1 %vm3367_vm2, %v9112_v14  ;;  %v13969_v32 = vpop.eup %13968  ;;  %13980 = vrcp.f32 %v8759_v62  ;;  %v18803_v14 = vld [vmem:[#allocation55_spill] sm:$0xff] }
0x11f7   : > { %v9120_v13 = vor.u32 %v9119_v19, %v9116_v56  ;;  %v13971_v9 = vpop.eup %13970  ;;  %v8960_v8 = vmul.f32 %v13969_v32, %v17460_v26  ;;  %v18802_v19 = vld [vmem:[#allocation45_spill] sm:$0xff]  ;;  %v17728_v56 = vand.u32 %v18803_v14, %v18799_v5 }
0x11f8   : > { %v8765_v4 = vpop.xlane.xlu1 %8764  ;;  %v8762_v12 = vpop.xlane.xlu0 %8761  ;;  %v8955_v7 = vmul.f32 %v13971_v9, %v17454_v55  ;;  %v9188_v55 = vrot.slane %v9008_v3, 5 }
0x11f9   : > { %13982 = vrcp.f32 %v8765_v4  ;;  %v9121_v37 = vsel %vm2212_vm11, %v9111_v36, %v9120_v13  ;;  %v8883_v36 = vsel %vm3367_vm2, %v17713_v23, 0.0  ;;  %v8957_v13 = vmul.f32 %v13967_v50, %v17452_v59 }
0x11fa   : > { %v13973_v48 = vpop.eup %13972  ;;  %13984 = vrcp.f32 %v8762_v12  ;;  %12674 = vmatmul.mubr.msk.bf16.vlgmr.msra.gmra.mxu1 %vm3367_vm2, %v9121_v37 }
0x11fb   : > { %v13975_v20 = vpop.eup %13974  ;;  %12686 = vmatpush3.bf16.msra.mxu1 %v18801_v57  ;;  %v8959_v38 = vmul.f32 %v13973_v48, %v17464_v40  ;;  %13986 = vrcp.f32 %v8771_v54 }
0x11fc   : > { %12687 = vmatprep.subr.bf16.mxu1 %v18802_v19  ;;  %v8777_v62 = vpop.xlane.xlu1 %8776  ;;  %v8774_v25 = vpop.xlane.xlu0 %8773  ;;  %v8956_v35 = vmul.f32 %v13975_v20, %v17470_v28 }
0x11fd   : > { %v9011_v17 = vpack.c.bf16 %v8960_v8, %v8959_v38  ;;  %13988 = vrcp.f32 %v8774_v25 }
0x11fe   : > { %8884 = vadd.xlane.f32.xlu1 %v8883_v36  ;;  %v9009_v26 = vpack.c.bf16 %v8956_v35, %v8955_v7  ;;  %v13977_v40 = vpop.eup %13976  ;;  %13990 = vrcp.f32 %v8777_v62 }
0x11ff   : > { %12688 = vmatpush3.bf16.msra.mxu1 %v18802_v19  ;;  %v9265_v32 = vshrl.u32 %v9011_v17, 16  ;;  %v8958_v28 = vmul.f32 %v13977_v40, %v17480_v34  ;;  %v9268_v9 = vshll.u32 %v9011_v17, 16 }
0x1200   : > { %12701 = vmatprep.subr.bf16.mxu1 %v17728_v56  ;;  %v8789_v54 = vpop.xlane.xlu1 %8788  ;;  %v8780_v4 = vpop.xlane.xlu0 %8779  ;;  %v9189_v12 = vrot.slane %v9009_v26, 5 }
0x1201   : > { %13992 = vrcp.f32 %v8780_v4  ;;  %v9010_v48 = vpack.c.bf16 %v8958_v28, %v8957_v13  ;;  %v9267_v59 = vrot.slane %v9265_v32, 3  ;;  %v9270_v8 = vrot.slane %v9268_v9, 4 }
0x1202   : > { %v9190_v37 = vsel %vm2156_vm9, %v9188_v55, %v9189_v12  ;;  %v13979_v50 = vpop.eup %13978  ;;  %13994 = vrcp.f32 %v8789_v54  ;;  %v18804_v54 = vld [vmem:[#allocation48_spill] sm:$0xff] }
0x1203   : > { %12681 = vmatprep.mubr.msk.bf16.mxu0 %vm3367_vm2, %v9190_v37  ;;  %v9191_v57 = vrot.slane %v9010_v48, 5  ;;  %v9257_v34 = vshrl.u32 %v9010_v48, 16  ;;  %v9260_v38 = vshll.u32 %v9010_v48, 16  ;;  %v13981_v19 = vpop.eup %13980  ;;  %v8964_v14 = vmul.f32 %v13979_v50, %v17490_v29 }
0x1204   : > { %v17736_v20 = vpop.xlane.xlu1 %8800  ;;  %v8792_v3 = vpop.xlane.xlu0 %8791  ;;  %v9271_v55 = vor.u32 %v9270_v8, %v9267_v59  ;;  %v8961_v32 = vmul.f32 %v13981_v19, %v17475_v43 }
0x1205   : > { %13996 = vrcp.f32 %v8792_v3  ;;  %v9192_v25 = vsel %vm2156_vm9, %v9189_v12, %v9191_v57  ;;  %v9259_v7 = vrot.slane %v9257_v34, 3  ;;  %v9262_v35 = vrot.slane %v9260_v38, 4 }
0x1206   : > { %v13983_v62 = vpop.eup %13982  ;;  %12682 = vmatmul.mubr.msk.bf16.vlgmr.msra.gmra.mxu0 %vm3367_vm2, %v9192_v25  ;;  %vm18814_vm9 = vsmask.f32 2304 }
0x1207   : > { %v13985_v36 = vpop.eup %13984  ;;  %v8963_v17 = vmul.f32 %v13983_v62, %v17494_v1  ;;  %12694 = vmatpush3.bf16.msra.mxu0 %v17706_v61  ;;  %v9263_v13 = vor.u32 %v9262_v35, %v9259_v7  ;;  %v18805_v61 = vld [vmem:[#allocation56_spill] sm:$0xff]  ;;  %vm18816_vm11 = vmmov %vm18814_vm9 }
0x1208   : > { %v8783_v26 = vpop.xlane.xlu1 %8782  ;;  %v8786_v40 = vpop.xlane.xlu0 %8785  ;;  %v8962_v28 = vmul.f32 %v13985_v36, %v17500_v15  ;;  %12695 = vmatprep.subr.bf16.mxu0 %v18804_v54  ;;  %v9574_v37 = vand.u32 %v18805_v61, %v18799_v5 }
0x1209   : > { %13998 = vrcp.f32 %v8783_v26  ;;  %v9013_v4 = vpack.c.bf16 %v8964_v14, %v8963_v17  ;;  %v13987_v12 = vpop.eup %13986  ;;  %v9272_v1 = vsel %vm2860_vm14, %v9263_v13, %v9271_v55 }
0x120a   : > { %14000 = vrcp.f32 %v8786_v40  ;;  %v9012_v9 = vpack.c.bf16 %v8962_v28, %v8961_v32  ;;  %v13989_v29 = vpop.eup %13988  ;;  %12689 = vmatprep.mubr.msk.bf16.mxu1 %vm3367_vm2, %v9272_v1  ;;  %v8965_v38 = vmul.f32 %v13987_v12, %v17484_v21  ;;  %v18807_v12 = vld [vmem:[#allocation60_spill] sm:$0xff] }
0x120b   : > { %v9409_v48 = vrot.slane %v9013_v4, 2  ;;  %v8966_v43 = vmul.f32 %v13989_v29, %v17509_v33  ;;  %12696 = vmatpush3.bf16.msra.mxu0 %v18804_v54  ;;  %v13991_v34 = vpop.eup %13990  ;;  %v18806_v4 = vld [vmem:[#allocation54_spill] sm:$0xff] }
0x120c   : > { %v8795_v15 = vpop.xlane.xlu1 %8794  ;;  %v8798_v59 = vpop.xlane.xlu0 %8797  ;;  %v9408_v50 = vrot.slane %v9012_v9, 2  ;;  %v9274_v3 = vshrl.u32 %v9012_v9, 16  ;;  %v9277_v57 = vshll.u32 %v9012_v9, 16  ;;  %12709 = vmatprep.subr.bf16.mxu0 %v9574_v37  ;;  %v8967_v7 = vmul.f32 %v13991_v34, %v17506_v60 }
0x120d   : > { %14002 = vrcp.f32 %v8795_v15  ;;  %v9014_v33 = vpack.c.bf16 %v8966_v43, %v8965_v38  ;;  %v18809_v15 = vld [vmem:[#allocation49_spill] sm:$0xff] }
0x120e   : > { %14004 = vrcp.f32 %v8798_v59  ;;  %v9410_v8 = vsel %vm2489_vm13, %v9408_v50, %v9409_v48  ;;  %v9276_v19 = vrot.slane %v9274_v3, 3  ;;  %v9279_v62 = vrot.slane %v9277_v57, 4  ;;  %v13993_v25 = vpop.eup %13992 }
0x120f   : > { %10393 = vrot.lane.b32.xlu1 %v18798_v52, %s14146_s28  ;;  %12697 = vmatprep.mubr.msk.bf16.mxu0 %vm3367_vm2, %v9410_v8  ;;  %v8968_v36 = vmul.f32 %v13993_v25, %v17517_v11  ;;  %v9411_v21 = vrot.slane %v9014_v33, 2  ;;  %v9479_v17 = vshll.u32 %v9014_v33, 16  ;;  %v13995_v14 = vpop.eup %13994  ;;  %v9477_v60 = vshrl.u32 %v9014_v33, 16 }
0x1210   : > { %v9280_v35 = vor.u32 %v9279_v62, %v9276_v19  ;;  %v8971_v54 = vmul.f32 %v13995_v14, %v17515_v45  ;;  %v9794_v59 = vand.u32 %v18809_v15, %v18799_v5  ;;  %14006 = vrcp.f32 %v17736_v20  ;;  %v18815_v15 = vld [vmem:[#allocation12_spill] sm:$0xff] }
0x1211   : > { %v9015_v40 = vpack.c.bf16 %v8968_v36, %v8967_v7  ;;  %v9412_v32 = vsel %vm2489_vm13, %v9409_v48, %v9411_v21  ;;  %v9481_v52 = vrot.slane %v9479_v17, 1  ;;  %v18810_v7 = vld [vmem:[#allocation52_spill] sm:$0xff]  ;;  %v18811_v17 = vld [vmem:[#allocation59_spill] sm:$0xff] }
0x1212   : > { %v9281_v26 = vsel %vm2860_vm14, %v9271_v55, %v9280_v35  ;;  %v13997_v13 = vpop.eup %13996  ;;  %12698 = vmatmul.mubr.msk.bf16.vlgmr.msra.gmra.mxu0 %vm3367_vm2, %v9412_v32  ;;  %v17786_v14 = vand.u32 %v18811_v17, %v18799_v5  ;;  %v18812_v32 = vld [vmem:[#allocation58_spill] sm:$0xff]  ;;  %vm18826_vm14 = vsmask.f32 256 }
0x1213   : > { %12690 = vmatmul.mubr.msk.bf16.vlgmr.msra.gmra.mxu1 %vm3367_vm2, %v9281_v26  ;;  %v8972_v28 = vmul.f32 %v13997_v13, %v17525_v46  ;;  %v9484_v11 = vshll.u32 %v9015_v40, 16  ;;  %12710 = vmatpush3.bf16.msra.mxu0 %v9574_v37  ;;  %v9482_v1 = vor.u32 %v9481_v52, %v9477_v60  ;;  %v9488_v29 = vshrl.u32 %v9015_v40, 16  ;;  %v18808_v46 = vld [vmem:[#allocation46_spill] sm:$0xff] }
0x1214   : > { %12702 = vmatpush3.bf16.msra.mxu1 %v17728_v56  ;;  %12711 = vmatprep.subr.bf16.mxu0 %v18807_v12  ;;  %v9663_v48 = vand.u32 %v18808_v46, %v18799_v5  ;;  %v18813_v60 = vld [vmem:[#allocation50_spill] sm:$0xff] }
0x1215   : > { %12703 = vmatprep.subr.bf16.mxu1 %v18806_v4  ;;  %v9486_v9 = vrot.slane %v9484_v11, 1  ;;  %v9017_v43 = vpack.c.bf16 %v8972_v28, %v8971_v54  ;;  %v17796_v11 = vand.u32 %v18813_v60, %v18799_v5 }
0x1216   : > { %v13999_v55 = vpop.eup %13998 }
0x1217   : > { %v14001_v61 = vpop.eup %14000  ;;  %v8969_v56 = vmul.f32 %v13999_v55, %v17531_v47  ;;  %v9487_v45 = vsel %vm4482_vm3, %v9482_v1, %v9486_v9  ;;  %v9490_v37 = vor.u32 %v9488_v29, %v9486_v9  ;;  %12712 = vmatpush3.bf16.msra.mxu0 %v18807_v12  ;;  %v9557_v47 = vrot.slane %v9015_v40, 7 }
0x1218   : > { %12704 = vmatpush3.bf16.msra.mxu1 %v18806_v4  ;;  %v8970_v50 = vmul.f32 %v14001_v61, %v17533_v22  ;;  %12725 = vmatprep.subr.bf16.mxu0 %v9794_v59  ;;  %v9626_v8 = vshrl.u32 %v9017_v43, 16  ;;  %v9560_v25 = vrot.slane %v9017_v43, 7  ;;  %v9629_v33 = vshll.u32 %v9017_v43, 16 }
0x1219   : > { %12717 = vmatprep.subr.bf16.mxu1 %v9663_v48  ;;  %12705 = vmatprep.mubr.msk.bf16.mxu1 %vm3367_vm2, %v9487_v45  ;;  %vm18837_vm3 = vsmask.f32 3328 }
0x121a   : > { %v14003_v3 = vpop.eup %14002  ;;  %v9016_v57 = vpack.c.bf16 %v8970_v50, %v8969_v56  ;;  %v9631_v26 = vrot.slane %v9629_v33, 6 }
0x121b   : > { %v14005_v34 = vpop.eup %14004  ;;  %12706 = vmatmul.mubr.msk.bf16.vlgmr.msra.gmra.mxu1 %vm3367_vm2, %v9490_v37  ;;  %v8973_v38 = vmul.f32 %v14003_v3, %v17539_v49  ;;  %v9628_v49 = vrot.slane %v9626_v8, 5 }
0x121c   : > { %12718 = vmatpush3.bf16.msra.mxu1 %v9663_v48  ;;  %v8810_v19 = vpop.xlane.xlu0 %8809  ;;  %v9558_v62 = vrot.slane %v9016_v57, 7  ;;  %v8974_v22 = vmul.f32 %v14005_v34, %v17542_v41 }
0x121d   : > { %12719 = vmatprep.subr.bf16.mxu1 %v18810_v7  ;;  %14008 = vrcp.f32 %v8810_v19  ;;  %v9632_v54 = vor.u32 %v9631_v26, %v9628_v49  ;;  %v14007_v61 = vpop.eup %14006 }
0x121e   : > { %v9559_v35 = vsel %vm2804_vm12, %v9557_v47, %v9558_v62  ;;  %v9561_v36 = vsel %vm2804_vm12, %v9558_v62, %v9560_v25  ;;  %v9018_v21 = vpack.c.bf16 %v8974_v22, %v8973_v38  ;;  %vm18821_vm12 = vsmask.f32 5376 }
0x121f   : > { %12713 = vmatprep.mubr.msk.bf16.mxu0 %vm3367_vm2, %v9559_v35  ;;  %vm18822_vm13 = vmmov %vm18821_vm12 }
0x1220   : > { %12720 = vmatpush3.bf16.msra.mxu1 %v18810_v7  ;;  %12714 = vmatmul.mubr.msk.bf16.vlgmr.msra.gmra.mxu0 %vm3367_vm2, %v9561_v36  ;;  %v8804_v41 = vpop.xlane.xlu0 %8803  ;;  %v9634_v40 = vshrl.u32 %v9018_v21, 16  ;;  %v9637_v13 = vshll.u32 %v9018_v21, 16 }
0x1221   : > { %12726 = vmatpush3.bf16.msra.mxu0 %v9794_v59  ;;  %12733 = vmatprep.subr.bf16.mxu1 %v17786_v14  ;;  %14010 = vrcp.f32 %v8804_v41  ;;  %v8975_v59 = vmul.f32 %v14007_v61, %v18815_v15  ;;  %v18818_v61 = vld [vmem:[#allocation3_spill] sm:$0xff] }
0x1222   : > { %12727 = vmatprep.subr.bf16.mxu0 %v18812_v32  ;;  %v8807_v52 = vpop.xlane.xlu1 %8806  ;;  %v9636_v20 = vrot.slane %v9634_v40, 5  ;;  %v9639_v28 = vrot.slane %v9637_v13, 6 }
0x1223   : > { %14012 = vrcp.f32 %v8807_v52 }
0x1224   : > { %v9640_v4 = vor.u32 %v9639_v28, %v9636_v20 }
0x1225   : > { %12728 = vmatpush3.bf16.msra.mxu0 %v18812_v32  ;;  %v8822_v55 = vpop.xlane.xlu0 %8821 }
0x1226   : > { %12741 = vmatprep.subr.bf16.mxu0 %v17796_v11  ;;  %v8813_v12 = vpop.xlane.xlu1 %8812  ;;  %v9641_v1 = vsel %vm18814_vm9, %v9632_v54, %v9640_v4  ;;  %v18817_v54 = vld [vmem:[#allocation62_spill] sm:$0xff]  ;;  %vm18840_vm9 = vmmov %vm18837_vm3 }
0x1227   : > { %12721 = vmatprep.mubr.msk.bf16.mxu1 %vm3367_vm2, %v9641_v1  ;;  %14014 = vrcp.f32 %v8813_v12 }
0x1228   : > { %14016 = vrcp.f32 %v8822_v55 }
0x1229   : > { %v8816_v9 = vpop.xlane.xlu0 %8815 }
0x122a   : > { %14018 = vrcp.f32 %v8816_v9  ;;  %v8819_v29 = vpop.xlane.xlu1 %8818  ;;  %v14009_v46 = vpop.eup %14008 }
0x122b   : > { %14020 = vrcp.f32 %v8819_v29  ;;  %v8978_v57 = vmul.f32 %v14009_v46, %v17554_v53 }
0x122d   : > { %v8834_v48 = vpop.xlane.xlu0 %8833 }
0x122e   : > { %v14011_v43 = vpop.eup %14010  ;;  %v8825_v56 = vpop.xlane.xlu1 %8824 }
0x122f   : > { %v8976_v45 = vmul.f32 %v14011_v43, %v17560_v18  ;;  %14022 = vrcp.f32 %v8825_v56 }
0x1230   : > { %v14013_v37 = vpop.eup %14012 }
0x1231   : > { %v8828_v50 = vpop.xlane.xlu0 %8827  ;;  %v8977_v3 = vmul.f32 %v14013_v37, %v17566_v24  ;;  %v9019_v34 = vpack.c.bf16 %v8976_v45, %v8975_v59  ;;  %v18819_v59 = vld [vmem:[#allocation63_spill] sm:$0xff] }
0x1232   : > { %14024 = vrcp.f32 %v8828_v50  ;;  %v8843_v7 = vpop.xlane.xlu1 %8842 }
0x1233   : > { %v9020_v47 = vpack.c.bf16 %v8978_v57, %v8977_v3  ;;  %v9643_v38 = vshrl.u32 %v9019_v34, 16  ;;  %v9646_v8 = vshll.u32 %v9019_v34, 16  ;;  %14026 = vrcp.f32 %v8834_v48 }
0x1234   : > { %v14015_v19 = vpop.eup %14014  ;;  %v9777_v62 = vrot.slane %v9019_v34, 4  ;;  %v18820_v34 = vld [vmem:[#allocation5_spill] sm:$0xff] }
0x1235   : > { %v9778_v25 = vrot.slane %v9020_v47, 4  ;;  %v9645_v22 = vrot.slane %v9643_v38, 5  ;;  %v14017_v33 = vpop.eup %14016  ;;  %v9648_v35 = vrot.slane %v9646_v8, 6  ;;  %v8979_v53 = vmul.f32 %v14015_v19, %v17574_v27 }
0x1236   : > { %v8831_v18 = vpop.xlane.xlu0 %8830  ;;  %v8982_v26 = vmul.f32 %v14017_v33, %v17571_v58  ;;  %v10165_v47 = vand.u32 %v18820_v34, %v18799_v5 }
0x1237   : > { %v14019_v36 = vpop.eup %14018  ;;  %14028 = vrcp.f32 %v8831_v18  ;;  %v9779_v24 = vsel %vm1907_vm15, %v9777_v62, %v9778_v25  ;;  %v9649_v49 = vor.u32 %v9648_v35, %v9645_v22 }
0x1238   : > { %v14021_v21 = vpop.eup %14020  ;;  %v8980_v17 = vmul.f32 %v14019_v36, %v17581_v42  ;;  %12729 = vmatprep.mubr.msk.bf16.mxu0 %vm3367_vm2, %v9779_v24 }
0x1239   : > { %v8981_v41 = vmul.f32 %v14021_v21, %v17584_v44  ;;  %v9650_v32 = vsel %vm18816_vm11, %v9640_v4, %v9649_v49  ;;  %vm18842_vm11 = vsmask.f32 6400 }
0x123a   : > { %v9021_v40 = vpack.c.bf16 %v8980_v17, %v8979_v53  ;;  %v8837_v13 = vpop.xlane.xlu1 %8836  ;;  %v8840_v52 = vpop.xlane.xlu0 %8839  ;;  %12722 = vmatmul.mubr.msk.bf16.vlgmr.msra.gmra.mxu1 %vm3367_vm2, %v9650_v32  ;;  %v18823_v32 = vld [vmem:[#allocation6_spill] sm:$0xff] }
0x123b   : > { %14030 = vrcp.f32 %v8837_v13  ;;  %v9022_v20 = vpack.c.bf16 %v8982_v26, %v8981_v41  ;;  %12734 = vmatpush3.bf16.msra.mxu1 %v17786_v14  ;;  %v10034_v14 = vand.u32 %v18818_v61, %v18799_v5 }
0x123c   : > { %14032 = vrcp.f32 %v8840_v52  ;;  %v9780_v27 = vrot.slane %v9021_v40, 4  ;;  %v9846_v42 = vshrl.u32 %v9021_v40, 16  ;;  %v9849_v28 = vshll.u32 %v9021_v40, 16  ;;  %v14023_v60 = vpop.eup %14022  ;;  %12735 = vmatprep.subr.bf16.mxu1 %v18817_v54 }
0x123d   : > { %v9854_v44 = vshrl.u32 %v9022_v20, 16  ;;  %v9857_v58 = vshll.u32 %v9022_v20, 16  ;;  %14034 = vrcp.f32 %v8843_v7  ;;  %v8983_v43 = vmul.f32 %v14023_v60, %v17594_v63 }
0x123e   : > { %v8855_v55 = vpop.xlane.xlu1 %8854  ;;  %v8846_v12 = vpop.xlane.xlu0 %8845  ;;  %v9781_v4 = vsel %vm1907_vm15, %v9778_v25, %v9780_v27  ;;  %v9848_v1 = vrot.slane %v9846_v42, 2  ;;  %v9851_v9 = vrot.slane %v9849_v28, 3  ;;  %v18824_v28 = vld [vmem:[#allocation7_spill] sm:$0xff]  ;;  %vm18829_vm15 = vmmov %vm18826_vm14 }
0x123f   : > { %v14025_v29 = vpop.eup %14024  ;;  %12730 = vmatmul.mubr.msk.bf16.vlgmr.msra.gmra.mxu0 %vm3367_vm2, %v9781_v4  ;;  %v9856_v46 = vrot.slane %v9854_v44, 2  ;;  %v9859_v48 = vrot.slane %v9857_v58, 3  ;;  %12736 = vmatpush3.bf16.msra.mxu1 %v18817_v54  ;;  %14036 = vrcp.f32 %v8846_v12  ;;  %v10254_v60 = vand.u32 %v18824_v28, %v18799_v5  ;;  %v18825_v54 = vld [vmem:[#allocation8_spill] sm:$0xff] }
0x1240   : > { %v8984_v56 = vmul.f32 %v14025_v29, %v17601_v51  ;;  %12742 = vmatpush3.bf16.msra.mxu0 %v17796_v11  ;;  %v9852_v15 = vor.u32 %v9851_v9, %v9848_v1  ;;  %12749 = vmatprep.subr.bf16.mxu1 %v10034_v14  ;;  %v14027_v37 = vpop.eup %14026  ;;  %14038 = vrcp.f32 %v8855_v55 }
0x1241   : > { %12743 = vmatprep.subr.bf16.mxu0 %v18819_v59  ;;  %v9860_v45 = vor.u32 %v9859_v48, %v9856_v46  ;;  %v8986_v19 = vmul.f32 %v14027_v37, %v17591_v2 }
0x1242   : > { %v9023_v50 = vpack.c.bf16 %v8984_v56, %v8983_v43  ;;  %v8849_v3 = vpop.xlane.xlu1 %8848  ;;  %v8858_v57 = vpop.xlane.xlu0 %8857 }
0x1243   : > { %v9861_v63 = vsel %vm18821_vm12, %v9852_v15, %v9860_v45  ;;  %14040 = vrcp.f32 %v8858_v57  ;;  %v18828_v57 = vld [vmem:[#allocation14_spill] sm:$0xff] }
0x1244   : > { %v14029_v51 = vpop.eup %14028  ;;  %12744 = vmatpush3.bf16.msra.mxu0 %v18819_v59  ;;  %12737 = vmatprep.mubr.msk.bf16.mxu1 %vm3367_vm2, %v9861_v63  ;;  %v9863_v11 = vshrl.u32 %v9023_v50, 16  ;;  %v9866_v38 = vshll.u32 %v9023_v50, 16  ;;  %14042 = vrcp.f32 %v8849_v3  ;;  %v9936_v24 = vrot.slane %v9023_v50, 1  ;;  %v18827_v50 = vld [vmem:[#allocation13_spill] sm:$0xff] }
0x1245   : > { %12757 = vmatprep.subr.bf16.mxu0 %v10165_v47  ;;  %v8985_v8 = vmul.f32 %v14029_v51, %v17612_v39 }
0x1246   : > { %v8861_v62 = vpop.xlane.xlu1 %8860  ;;  %v8852_v25 = vpop.xlane.xlu0 %8851  ;;  %v9865_v22 = vrot.slane %v9863_v11, 2  ;;  %v9868_v33 = vrot.slane %v9866_v38, 3  ;;  %v18830_v38 = vld [vmem:[#allocation16_spill] sm:$0xff] }
0x1247   : > { %v9024_v7 = vpack.c.bf16 %v8986_v19, %v8985_v8  ;;  %14044 = vrcp.f32 %v8852_v25 }
0x1248   : > { %v14031_v18 = vpop.eup %14030  ;;  %v9869_v35 = vor.u32 %v9868_v33, %v9865_v22  ;;  %14046 = vrcp.f32 %v8861_v62  ;;  %v18831_v22 = vld [vmem:[#allocation15_spill] sm:$0xff] }
0x1249   : > { %v14033_v36 = vpop.eup %14032  ;;  %v9937_v21 = vrot.slane %v9024_v7, 1  ;;  %v8987_v53 = vmul.f32 %v14031_v18, %v17620_v30  ;;  %v10003_v27 = vshrl.u32 %v9024_v7, 16 }
0x124a   : > { %v8867_v17 = vpop.xlane.xlu1 %8866  ;;  %v8864_v49 = vpop.xlane.xlu0 %8863  ;;  %v9870_v39 = vsel %vm18822_vm13, %v9860_v45, %v9869_v35  ;;  %v8988_v2 = vmul.f32 %v14033_v36, %v17614_v6  ;;  %v18832_v35 = vld [vmem:[#allocation11_spill] sm:$0xff] }
0x124b   : > { %v14035_v41 = vpop.eup %14034  ;;  %12738 = vmatmul.mubr.msk.bf16.vlgmr.msra.gmra.mxu1 %vm3367_vm2, %v9870_v39  ;;  %v9938_v26 = vsel %vm1292_vm6, %v9936_v24, %v9937_v21  ;;  %14048 = vrcp.f32 %v8864_v49  ;;  %v10005_v9 = vrot.slane %v10003_v27, 7 }
0x124c   : > { %12750 = vmatpush3.bf16.msra.mxu1 %v10034_v14  ;;  %12745 = vmatprep.mubr.msk.bf16.mxu0 %vm3367_vm2, %v9938_v26  ;;  %v9025_v40 = vpack.c.bf16 %v8988_v2, %v8987_v53  ;;  %v14037_v13 = vpop.eup %14036  ;;  %v8989_v30 = vmul.f32 %v14035_v41, %v17604_v0  ;;  %14050 = vrcp.f32 %v8867_v17 }
0x124d   : > { %12751 = vmatprep.subr.bf16.mxu1 %v18823_v32  ;;  %12746 = vmatmul.mubr.msk.bf16.vlgmr.msra.gmra.mxu0 %vm3367_vm2, %v9937_v21  ;;  %v8990_v52 = vmul.f32 %v14037_v13, %v17624_v31  ;;  %v14039_v44 = vpop.eup %14038 }
0x124e   : > { %12758 = vmatpush3.bf16.msra.mxu0 %v10165_v47  ;;  %v8879_v6 = vpop.xlane.xlu1 %8878  ;;  %v8876_v20 = vpop.xlane.xlu0 %8875  ;;  %v10007_v42 = vshrl.u32 %v9025_v40, 16  ;;  %v10010_v12 = vshll.u32 %v9025_v40, 16  ;;  %v8993_v46 = vmul.f32 %v14039_v44, %v17630_v10 }
0x124f   : > { %12759 = vmatprep.subr.bf16.mxu0 %v18825_v54  ;;  %v9026_v58 = vpack.c.bf16 %v8990_v52, %v8989_v30  ;;  %14052 = vrcp.f32 %v8876_v20  ;;  %v18833_v20 = vld [vmem:[#allocation51_spill] sm:$0xff] }
0x1250   : > { %12752 = vmatpush3.bf16.msra.mxu1 %v18823_v32  ;;  %v10009_v55 = vrot.slane %v10007_v42, 7  ;;  %v14041_v0 = vpop.eup %14040  ;;  %v18834_v42 = vld [vmem:[#allocation20_spill] sm:$0xff] }
0x1251   : > { %12765 = vmatprep.subr.bf16.mxu1 %v10254_v60  ;;  %v8994_v31 = vmul.f32 %v14041_v0, %v17634_v16  ;;  %v10015_v61 = vshrl.u32 %v9026_v58, 16  ;;  %v14043_v14 = vpop.eup %14042  ;;  %v10018_v56 = vshll.u32 %v9026_v58, 16  ;;  %v10148_v51 = vrot.slane %v9026_v58, 6  ;;  %v18835_v58 = vld [vmem:[#allocation17_spill] sm:$0xff] }
0x1252   : > { %12760 = vmatpush3.bf16.msra.mxu0 %v18825_v54  ;;  %v8873_v4 = vpop.xlane.xlu1 %8872  ;;  %v8870_v1 = vpop.xlane.xlu0 %8869  ;;  %v10012_v29 = vor.u32 %v10010_v12, %v10009_v55  ;;  %v8991_v3 = vmul.f32 %v14043_v14, %v18827_v50  ;;  %v18836_v12 = vld [vmem:[#allocation19_spill] sm:$0xff] }
0x1253   : > { %14054 = vrcp.f32 %v8873_v4  ;;  %v10017_v43 = vrot.slane %v10015_v61, 7  ;;  %v9028_v59 = vpack.c.bf16 %v8994_v31, %v8993_v46 }
0x1254   : > { %14056 = vrcp.f32 %v8870_v1  ;;  %v10013_v48 = vsel %vm18826_vm14, %v10005_v9, %v10012_v29  ;;  %v14045_v15 = vpop.eup %14044 }
0x1255   : > { %12753 = vmatprep.mubr.msk.bf16.mxu1 %vm3367_vm2, %v10013_v48  ;;  %v14047_v16 = vpop.eup %14046  ;;  %v10020_v37 = vor.u32 %v10018_v56, %v10017_v43  ;;  %v8992_v34 = vmul.f32 %v14045_v15, %v18828_v57  ;;  %14058 = vrcp.f32 %v8879_v6  ;;  %v10151_v11 = vrot.slane %v9028_v59, 6  ;;  %v18838_v15 = vld [vmem:[#allocation22_spill] sm:$0xff] }
0x1256   : > { %v17851_v45 = vpop.xlane.xlu0 %8887  ;;  %v8995_v8 = vmul.f32 %v14047_v16, %v18830_v38  ;;  %v10396_v19 = vpop.permute.xlu1 %10395  ;;  %v10217_v7 = vshrl.u32 %v9028_v59, 16  ;;  %v10220_v18 = vshll.u32 %v9028_v59, 16  ;;  %v18839_v16 = vld [vmem:[#allocation61_spill] sm:$0xff] }
0x1257   : > { %v10021_v10 = vsel %vm18829_vm15, %v10009_v55, %v10020_v37  ;;  %v9027_v47 = vpack.c.bf16 %v8992_v34, %v8991_v3  ;;  %v10405_v17 = vand.u32 %v10396_v19, %v18799_v5 }
0x1258   : > { %v14049_v63 = vpop.eup %14048  ;;  %12754 = vmatmul.mubr.msk.bf16.vlgmr.msra.gmra.mxu1 %vm3367_vm2, %v10021_v10  ;;  %v10219_v2 = vrot.slane %v10217_v7, 4  ;;  %v10222_v41 = vrot.slane %v10220_v18, 5 }
0x1259   : > { %12766 = vmatpush3.bf16.msra.mxu1 %v10254_v60  ;;  %v10149_v25 = vrot.slane %v9027_v47, 6  ;;  %v8996_v33 = vmul.f32 %v14049_v63, %v18831_v22  ;;  %v14051_v53 = vpop.eup %14050 }
0x125a   : > { %v8882_v62 = vpop.xlane.xlu0 %8881  ;;  %12767 = vmatprep.subr.bf16.mxu1 %v18832_v35  ;;  %v10223_v54 = vor.u32 %v10222_v41, %v10219_v2  ;;  %v8997_v55 = vmul.f32 %v14051_v53, %v18835_v58 }
0x125b   : > { %14060 = vrcp.f32 %v8882_v62  ;;  %v10150_v36 = vsel %vm1276_vm10, %v10148_v51, %v10149_v25  ;;  %v10152_v24 = vsel %vm1276_vm10, %v10149_v25, %v10151_v11  ;;  %v9029_v21 = vpack.c.bf16 %v8996_v33, %v8995_v8  ;;  %v18841_v8 = vld [vmem:[#allocation57_spill] sm:$0xff] }
0x125c   : > { %12761 = vmatprep.mubr.msk.bf16.mxu0 %vm3367_vm2, %v10150_v36  ;;  %v14053_v49 = vpop.eup %14052  ;;  %14062 = vrcp.f32 %v17851_v45 }
0x125d   : > { %12768 = vmatpush3.bf16.msra.mxu1 %v18832_v35  ;;  %12762 = vmatmul.mubr.msk.bf16.vlgmr.msra.gmra.mxu0 %vm3367_vm2, %v10152_v24  ;;  %v10225_v26 = vshrl.u32 %v9029_v21, 16  ;;  %v10228_v40 = vshll.u32 %v9029_v21, 16  ;;  %v9000_v28 = vmul.f32 %v14053_v49, %v18834_v42 }
0x125e   : > { %v10316_v39 = vpop.permute.xlu0 %10315  ;;  %12781 = vmatprep.subr.bf16.mxu1 %v10405_v17 }
0x125f   : > { %v10325_v13 = vand.u32 %v10316_v39, %v18799_v5  ;;  %v10227_v30 = vrot.slane %v10225_v26, 4  ;;  %v10230_v52 = vrot.slane %v10228_v40, 5 }
0x1260   : > { %v14055_v32 = vpop.eup %14054 }
0x1261   : > { %v14057_v6 = vpop.eup %14056  ;;  %12773 = vmatprep.subr.bf16.mxu0 %v10325_v13  ;;  %v8999_v27 = vmul.f32 %v14055_v32, %v18833_v20  ;;  %v10231_v44 = vor.u32 %v10230_v52, %v10227_v30 }
0x1262   : > { %12774 = vmatpush3.bf16.msra.mxu0 %v10325_v13  ;;  %v10314_v60 = vpop.permute.xlu0 %10313  ;;  %v8998_v0 = vmul.f32 %v14057_v6, %v18836_v12  ;;  %v14059_v9 = vpop.eup %14058 }
0x1263   : > { %12775 = vmatprep.subr.bf16.mxu0 %v10314_v60  ;;  %v9031_v31 = vpack.c.bf16 %v9000_v28, %v8999_v27  ;;  %v10232_v5 = vsel %vm18837_vm3, %v10223_v54, %v10231_v44  ;;  %v9001_v59 = vmul.f32 %v14059_v9, %v18838_v15 }
0x1264   : > { %v9030_v4 = vpack.c.bf16 %v8998_v0, %v8997_v55  ;;  %12769 = vmatprep.mubr.msk.bf16.mxu1 %vm3367_vm2, %v10232_v5 }
0x1265   : > { %v10309_v1 = vrot.slane %v9031_v31, 3 }
0x1266   : > { %12776 = vmatpush3.bf16.msra.mxu0 %v10314_v60  ;;  %v10308_v29 = vrot.slane %v9030_v4, 3  ;;  %v10234_v61 = vshrl.u32 %v9030_v4, 16  ;;  %v10237_v14 = vshll.u32 %v9030_v4, 16 }
0x1268   : > { %v14061_v46 = vpop.eup %14060  ;;  %v10310_v48 = vsel %vm1259_vm1, %v10308_v29, %v10309_v1  ;;  %v10236_v43 = vrot.slane %v10234_v61, 4  ;;  %v10239_v56 = vrot.slane %v10237_v14, 5 }
0x1269   : > { %v9002_v37 = vmul.f32 %v14061_v46, %v18839_v16  ;;  %12777 = vmatprep.mubr.msk.bf16.mxu0 %vm3367_vm2, %v10310_v48  ;;  %v14063_v51 = vpop.eup %14062  ;;  %v13411_v16 = vld [vmem:[%s18422_s6 + $0x10] sm:$0xff]  }
0x126a   : > { %v10240_v50 = vor.u32 %v10239_v56, %v10236_v43  ;;  %v9004_v19 = vmul.f32 %v14063_v51, %v18841_v8 }
0x126b   : > { %v9032_v3 = vpack.c.bf16 %v9002_v37, %v9001_v59  ;;  %v13410_v59 = vld [vmem:[%s18422_s6 + $0x18] sm:$0xff]  }
0x126c   : > { %v10241_v57 = vsel %vm18840_vm9, %v10231_v44, %v10240_v50  ;;  %12789 = vmatprep.subr.bf16.mxu0 %v13410_v59 }
0x126d   : > { %12770 = vmatmul.mubr.msk.bf16.vlgmr.msra.gmra.mxu1 %vm3367_vm2, %v10241_v57  ;;  %v10311_v34 = vrot.slane %v9032_v3, 3  ;;  %v10377_v62 = vshrl.u32 %v9032_v3, 16  ;;  %v10380_v25 = vshll.u32 %v9032_v3, 16 }
0x126e   : > { %12782 = vmatpush3.bf16.msra.mxu1 %v10405_v17 }
0x126f   : > { %v10312_v10 = vsel %vm1259_vm1, %v10309_v1, %v10311_v34  ;;  %v10379_v33 = vrot.slane %v10377_v62, 1  ;;  %v10382_v7 = vrot.slane %v10380_v25, 2 }
0x1270   : > { %12778 = vmatmul.mubr.msk.bf16.vlgmr.msra.gmra.mxu0 %vm3367_vm2, %v10312_v10 }
0x1271   : > { %v10383_v24 = vor.u32 %v10382_v7, %v10379_v33  ;;  %12790 = vmatpush3.bf16.msra.mxu0 %v13410_v59 }
0x1272   : > { %12791 = vmatprep.subr.bf16.mxu0 %v13411_v16 }
0x1275   : > { %12792 = vmatpush3.bf16.msra.mxu0 %v13411_v16 }
0x1287   : > { %v8885_v47 = vpop.xlane.xlu1 %8884 }
0x1288   : > { %14064 = vrcp.f32 %v8885_v47 }
0x128b   : > { %v10394_v63 = vpop.permute.xlu1 %10393 }
0x128c   : > { %12783 = vmatprep.subr.bf16.mxu1 %v10394_v63 }
0x128d   : > { %12784 = vmatpush3.bf16.msra.mxu1 %v10394_v63 }
0x1295   : > { %v14065_v11 = vpop.eup %14064 }
0x1296   : > { %v9003_v38 = vmul.f32 %v14065_v11, %v17713_v23 }
0x1298   : > { %v9033_v22 = vpack.c.bf16 %v9004_v19, %v9003_v38 }
0x129a   : > { %v10385_v18 = vshrl.u32 %v9033_v22, 16  ;;  %v10388_v35 = vshll.u32 %v9033_v22, 16 }
0x129c   : > { %v10387_v36 = vrot.slane %v10385_v18, 1  ;;  %v10390_v45 = vrot.slane %v10388_v35, 2 }
0x129e   : > { %v10391_v21 = vor.u32 %v10390_v45, %v10387_v36 }
0x12a0   : > { %v10392_v53 = vsel %vm18842_vm11, %v10383_v24, %v10391_v21 }
0x12a1   : > { %12785 = vmatprep.mubr.msk.bf16.mxu1 %vm3367_vm2, %v10392_v53 }
0x12a2   : > { %12786 = vmatmul.mubr.msk.bf16.vlgmr.msra.gmra.mxu1 %vm3367_vm2, %v10391_v21  ;;  %vm18843_vm2 = vcmask 195584  }
0x12a3   : > { %vm18844_vm12 = vmmov %vm18843_vm2 }
0x12a4   : > { %vm18845_vm13 = vmmov %vm18843_vm2 }
0x12a5   : > { %vm18846_vm14 = vmmov %vm18843_vm2 }
0x12a6   : > { %vm18847_vm15 = vmmov %vm18843_vm2 }
0x12a7   : > { %v17887_v23 = vpop.f32.mrf.mxu0  ;;  %vm18848_vm3 = vmmov %vm18843_vm2 }
0x12a8   : > { %vm18849_vm9 = vmmov %vm18843_vm2 }
0x12a9   : > { %v17889_v39 = vpop.f32.mrf.mxu0  ;;  %vm18850_vm11 = vmmov %vm18843_vm2 }
0x12ab   : > { %v17891_v26 = vpop.f32.mrf.mxu0 }
0x12ad   : > { %v17894_v13 = vpop.f32.mrf.mxu0 }
0x12ba   : > { %v12675_v17 = vpop.f32.mrf.mxu1 }
0x12bc   : > { %v9170_v49 = vpop.f32.mrf.mxu1 }
0x12be   : > { %v12676_v2 = vpop.f32.mrf.mxu1 }
0x12c0   : > { %v9173_v41 = vpop.f32.mrf.mxu1 }
0x12c1   : > { %v13218_v40 = vpack.i.bf16 %v12676_v2, %v9173_v41 }
0x12c3   : > { %13219 = vrot.lane.b32.xlu0 %v13218_v40, %s14148_s25 }
0x12c6   : > { %v12683_v32 = vpop.f32.mrf.mxu0 }
0x12c8   : > { %v9241_v30 = vpop.f32.mrf.mxu0 }
0x12ca   : > { %v12684_v52 = vpop.f32.mrf.mxu0 }
0x12cc   : > { %v9244_v6 = vpop.f32.mrf.mxu0 }
0x12cd   : > { %v13223_v20 = vpack.i.bf16 %v12684_v52, %v9244_v6 }
0x12cf   : > { %13224 = vrot.lane.b32.xlu1 %v13223_v20, %s14149_s29 }
0x12d2   : > { %v17897_v42 = vpop.f32.mrf.mxu0 }
0x12d3   : > { %v12691_v27 = vpop.f32.mrf.mxu1 }
0x12d4   : > { %v17899_v60 = vpop.f32.mrf.mxu0 }
0x12d5   : > { %v9330_v28 = vpop.f32.mrf.mxu1 }
0x12d6   : > { %v17901_v58 = vpop.f32.mrf.mxu0 }
0x12d7   : > { %v12692_v54 = vpop.f32.mrf.mxu1 }
0x12d8   : > { %v17904_v31 = vpop.f32.mrf.mxu0 }
0x12d9   : > { %v9333_v44 = vpop.f32.mrf.mxu1 }
0x12da   : > { %v13228_v55 = vpack.i.bf16 %v12692_v54, %v9333_v44 }
0x12db   : > { %v12707_v12 = vpop.f32.mrf.mxu1 }
0x12dc   : > { %13229 = vrot.lane.b32.xlu1 %v13228_v55, %s14150_s30 }
0x12dd   : > { %v9539_v0 = vpop.f32.mrf.mxu1 }
0x12de   : > { %v13238_v5 = vpack.i.bf16 %v9170_v49, %v9539_v0 }
0x12df   : > { %v12708_v29 = vpop.f32.mrf.mxu1 }
0x12e0   : > { %13239 = vrot.lane.b32.xlu0 %v13238_v5, %s14148_s25  ;;  %v12715_v4 = vpop.f32.mrf.mxu0  ;;  %v13253_v48 = vpack.i.bf16 %v12708_v29, %v12707_v12 }
0x12e1   : > { %v9542_v56 = vpop.f32.mrf.mxu1 }
0x12e2   : > { %v9610_v1 = vpop.f32.mrf.mxu0  ;;  %v13258_v15 = vpack.i.bf16 %v9542_v56, %v12675_v17 }
0x12e3   : > { %v13233_v9 = vpack.i.bf16 %v9241_v30, %v9610_v1 }
0x12e4   : > { %v12716_v61 = vpop.f32.mrf.mxu0 }
0x12e5   : > { %v13243_v14 = vpack.i.bf16 %v12716_v61, %v12715_v4  ;;  %13234 = vrot.lane.b32.xlu1 %v13233_v9, %s14149_s29 }
0x12e6   : > { %v9613_v46 = vpop.f32.mrf.mxu0 }
0x12e7   : > { %13244 = vrot.lane.b32.xlu0 %v13243_v14, %s14149_s29  ;;  %v13248_v43 = vpack.i.bf16 %v9613_v46, %v12683_v32 }
0x12e9   : > { %13254 = vrot.lane.b32.xlu1 %v13253_v48, %s14148_s25 }
0x12eb   : > { %13249 = vrot.lane.b32.xlu0 %v13248_v43, %s14149_s29 }
0x12ef   : > { %13259 = vrot.lane.b32.xlu0 %v13258_v15, %s14148_s25 }
0x12fa   : > { %v12723_v37 = vpop.f32.mrf.mxu1 }
0x12fc   : > { %v9699_v50 = vpop.f32.mrf.mxu1 }
0x12fd   : > { %v13263_v3 = vpack.i.bf16 %v9330_v28, %v9699_v50 }
0x12fe   : > { %v12724_v57 = vpop.f32.mrf.mxu1 }
0x12ff   : > { %v17918_v34 = vpop.f32.mrf.mxu0  ;;  %v13268_v10 = vpack.i.bf16 %v12724_v57, %v12723_v37  ;;  %13264 = vrot.lane.b32.xlu1 %v13263_v3, %s14150_s30 }
0x1300   : > { %v9702_v47 = vpop.f32.mrf.mxu1 }
0x1301   : > { %13269 = vrot.lane.b32.xlu0 %v13268_v10, %s14150_s30  ;;  %v17922_v63 = vpop.f32.mrf.mxu0  ;;  %v13273_v51 = vpack.i.bf16 %v9702_v47, %v12691_v27 }
0x1303   : > { %v17925_v11 = vpop.f32.mrf.mxu0 }
0x1305   : > { %13274 = vrot.lane.b32.xlu0 %v13273_v51, %s14150_s30  ;;  %v17927_v38 = vpop.f32.mrf.mxu0 }
0x130b   : > { %v12739_v8 = vpop.f32.mrf.mxu1 }
0x130d   : > { %v9919_v19 = vpop.f32.mrf.mxu1  ;;  %v12747_v62 = vpop.f32.mrf.mxu0 }
0x130f   : > { %v9987_v25 = vpop.f32.mrf.mxu0  ;;  %v12740_v22 = vpop.f32.mrf.mxu1 }
0x1310   : > { %v13288_v53 = vpack.i.bf16 %v12740_v22, %v12739_v8 }
0x1311   : > { %v12748_v33 = vpop.f32.mrf.mxu0  ;;  %v9922_v36 = vpop.f32.mrf.mxu1 }
0x1312   : > { %v13293_v7 = vpack.i.bf16 %v12748_v33, %v12747_v62  ;;  %v13283_v45 = vpack.i.bf16 %v9922_v36, %v9919_v19 }
0x1313   : > { %v9990_v18 = vpop.f32.mrf.mxu0 }
0x1314   : > { %v13278_v35 = vpack.i.bf16 %v9990_v18, %v9987_v25  ;;  %13294 = vrot.lane.b32.xlu0 %v13293_v7, %s14149_s29 }
0x1316   : > { %13279 = vrot.lane.b32.xlu1 %v13278_v35, %s14149_s29 }
0x1318   : > { %v12755_v24 = vpop.f32.mrf.mxu1 }
0x131a   : > { %13284 = vrot.lane.b32.xlu1 %v13283_v45, %s14148_s25  ;;  %v10070_v21 = vpop.f32.mrf.mxu1 }
0x131c   : > { %v12756_v17 = vpop.f32.mrf.mxu1 }
0x131d   : > { %v17933_v41 = vpop.f32.mrf.mxu0  ;;  %v13303_v40 = vpack.i.bf16 %v12756_v17, %v12755_v24 }
0x131e   : > { %13289 = vrot.lane.b32.xlu1 %v13288_v53, %s14148_s25  ;;  %v10073_v49 = vpop.f32.mrf.mxu1 }
0x131f   : > { %v13298_v2 = vpack.i.bf16 %v10073_v49, %v10070_v21  ;;  %v17936_v32 = vpop.f32.mrf.mxu0 }
0x1321   : > { %13299 = vrot.lane.b32.xlu0 %v13298_v2, %s14150_s30  ;;  %v17939_v30 = vpop.f32.mrf.mxu0 }
0x1323   : > { %v17941_v6 = vpop.f32.mrf.mxu0 }
0x1325   : > { %13304 = vrot.lane.b32.xlu0 %v13303_v40, %s14150_s30 }
0x132d   : > { %v12771_v52 = vpop.f32.mrf.mxu1 }
0x132f   : > { %v10290_v20 = vpop.f32.mrf.mxu1 }
0x1330   : > { %v12779_v27 = vpop.f32.mrf.mxu0 }
0x1331   : > { %v12772_v28 = vpop.f32.mrf.mxu1 }
0x1332   : > { %v10361_v54 = vpop.f32.mrf.mxu0  ;;  %v13323_v4 = vpack.i.bf16 %v12772_v28, %v12771_v52 }
0x1333   : > { %v10293_v44 = vpop.f32.mrf.mxu1 }
0x1334   : > { %v13308_v55 = vpack.i.bf16 %v10293_v44, %v10290_v20  ;;  %v12780_v12 = vpop.f32.mrf.mxu0 }
0x1335   : > { %v13220_v1 = vpop.permute.xlu0 %13219  ;;  %v13328_v50 = vpack.i.bf16 %v12780_v12, %v12779_v27 }
0x1336   : > { %13309 = vrot.lane.b32.xlu1 %v13308_v55, %s14148_s25  ;;  %v10364_v0 = vpop.f32.mrf.mxu0  ;;  %v13221_v3 = vunpack.i.l.bf16 %v13220_v1  ;;  %v13222_v7 = vunpack.i.h.bf16 %v13220_v1 }
0x1337   : > { %v13313_v5 = vpack.i.bf16 %v10364_v0, %v10361_v54 }
0x1338   : > { %v9394_v22 = vsel %vm1900_vm8, %v17894_v13, %v13221_v3 }
0x133a   : > { %13314 = vrot.lane.b32.xlu1 %v13313_v5, %s14149_s29  ;;  %v9396_v5 = vsel %vm1900_vm8, %v17891_v26, %v13222_v7 }
0x133e   : > { %13324 = vrot.lane.b32.xlu1 %v13323_v4, %s14148_s25 }
0x1341   : > { %v13225_v9 = vpop.permute.xlu1 %13224 }
0x1342   : > { %v13226_v57 = vunpack.i.l.bf16 %v13225_v9  ;;  %v13227_v49 = vunpack.i.h.bf16 %v13225_v9 }
0x1344   : > { %v9398_v18 = vsel %vm4400_vm4, %v9394_v22, %v13226_v57 }
0x134e   : > { %v13230_v14 = vpop.permute.xlu1 %13229 }
0x134f   : > { %v13231_v8 = vunpack.i.l.bf16 %v13230_v14  ;;  %v13232_v28 = vunpack.i.h.bf16 %v13230_v14 }
0x1351   : > { %v9402_v2 = vsel %vm18843_vm2, %v9398_v18, %v13231_v8 }
0x1352   : > { %v13240_v29 = vpop.permute.xlu0 %13239 }
0x1353   : > { %v13242_v10 = vunpack.i.h.bf16 %v13240_v29  ;;  %v13241_v47 = vunpack.i.l.bf16 %v13240_v29  ;;  %v9400_v29 = vsel %vm4400_vm4, %v9396_v5, %v13227_v49 }
0x1355   : > { %v9393_v35 = vsel %vm1900_vm8, %v17889_v39, %v13242_v10  ;;  %v9762_v36 = vsel %vm1900_vm8, %v17899_v60, %v13241_v47 }
0x1357   : > { %v13235_v15 = vpop.permute.xlu1 %13234 }
0x1358   : > { %v13237_v19 = vunpack.i.h.bf16 %v13235_v15  ;;  %v13236_v62 = vunpack.i.l.bf16 %v13235_v15 }
0x1359   : > { %v17946_v46 = vpop.permute.xlu0 %13244 }
0x135a   : > { %v9397_v13 = vsel %vm4400_vm4, %v9393_v35, %v13237_v19  ;;  %v9766_v40 = vsel %vm4400_vm4, %v9762_v36, %v13236_v62  ;;  %v13246_v54 = vunpack.i.l.bf16 %v17946_v46 }
0x135b   : > { %v13255_v51 = vpop.permute.xlu1 %13254 }
0x135c   : > { %v13256_v33 = vunpack.i.l.bf16 %v13255_v51  ;;  %v13257_v47 = vunpack.i.h.bf16 %v13255_v51 }
0x135d   : > { %v13250_v37 = vpop.permute.xlu0 %13249 }
0x135e   : > { %v9764_v20 = vsel %vm1900_vm8, %v17897_v42, %v13256_v33  ;;  %v13252_v42 = vunpack.i.h.bf16 %v13250_v37  ;;  %v13251_v4 = vunpack.i.l.bf16 %v13250_v37  ;;  %v9765_v19 = vsel %vm1900_vm8, %v17901_v58, %v13257_v47 }
0x135f   : > { %v9768_v1 = vsel %vm4400_vm4, %v9764_v20, %v13246_v54 }
0x1361   : > { %v13260_v25 = vpop.permute.xlu0 %13259 }
0x1362   : > { %v12787_v61 = vpop.f32.mrf.mxu1  ;;  %v13262_v24 = vunpack.i.h.bf16 %v13260_v25  ;;  %v13261_v21 = vunpack.i.l.bf16 %v13260_v25  ;;  %v13247_v25 = vunpack.i.h.bf16 %v17946_v46 }
0x1364   : > { %v10441_v48 = vpop.f32.mrf.mxu1  ;;  %v9763_v55 = vsel %vm1900_vm8, %v17904_v31, %v13262_v24  ;;  %v9395_v12 = vsel %vm1900_vm8, %v17887_v23, %v13261_v21  ;;  %v9769_v35 = vsel %vm4400_vm4, %v9765_v19, %v13247_v25 }
0x1365   : > { %v9399_v23 = vsel %vm4400_vm4, %v9395_v12, %v13251_v4 }
0x1366   : > { %v12788_v43 = vpop.f32.mrf.mxu1 }
0x1367   : > { %v13333_v56 = vpack.i.bf16 %v12788_v43, %v12787_v61  ;;  %v9767_v43 = vsel %vm4400_vm4, %v9763_v55, %v13252_v42 }
0x1368   : > { %v10444_v59 = vpop.f32.mrf.mxu1 }
0x1369   : > { %v13318_v16 = vpack.i.bf16 %v10444_v59, %v10441_v48  ;;  %13334 = vrot.lane.b32.xlu1 %v13333_v56, %s14150_s30  ;;  %v9404_v48 = vsel %vm18847_vm15, %v9400_v29, %v13232_v28 }
0x136b   : > { %13319 = vrot.lane.b32.xlu0 %v13318_v16, %s14150_s30 }
0x136f   : > { %13329 = vrot.lane.b32.xlu0 %v13328_v50, %s14149_s29 }
0x1371   : > { %v13265_v45 = vpop.permute.xlu1 %13264 }
0x1372   : > { %v13267_v53 = vunpack.i.h.bf16 %v13265_v45  ;;  %v13266_v17 = vunpack.i.l.bf16 %v13265_v45 }
0x1373   : > { %v13270_v52 = vpop.permute.xlu0 %13269 }
0x1374   : > { %v9401_v39 = vsel %vm18844_vm12, %v9397_v13, %v13267_v53  ;;  %v9770_v60 = vsel %vm18845_vm13, %v9766_v40, %v13266_v17  ;;  %v13271_v27 = vunpack.i.l.bf16 %v13270_v52  ;;  %v13272_v62 = vunpack.i.h.bf16 %v13270_v52  ;;  %vm18851_vm12 = vmmov %vm18843_vm2 }
0x1375   : > { %v10566_v44 = vpack.c.bf16 %v9402_v2, %v9401_v39  ;;  %v10520_v0 = vrot.slane %v9770_v60, 3  ;;  %vm18852_vm13 = vmmov %vm18843_vm2 }
0x1376   : > { %v9772_v61 = vsel %vm18846_vm14, %v9768_v1, %v13271_v27  ;;  %v9773_v45 = vsel %vm18850_vm11, %v9769_v35, %v13272_v62  ;;  %vm18853_vm14 = vmmov %vm18843_vm2  ;;  %vm11467_vm11 = vcmask 260096  }
0x1377   : > { %v13275_v9 = vpop.permute.xlu0 %13274  ;;  %12793 = vmatprep.mubr.msk.bf16.mxu0 %vm630_vm0, %v10566_v44  ;;  %v10563_v15 = vsel %vm1259_vm1, %v9404_v48, %v10520_v0  ;;  %v10523_v59 = vrot.slane %v9772_v61, 3  ;;  %v10525_v52 = vrot.slane %v9773_v45, 3 }
0x1378   : > { %v13277_v14 = vunpack.i.h.bf16 %v13275_v9  ;;  %v13276_v31 = vunpack.i.l.bf16 %v13275_v9 }
0x1379   : > { %v10526_v55 = vsel %vm1259_vm1, %v10523_v59, %v10525_v52 }
0x137a   : > { %v9403_v26 = vsel %vm18848_vm3, %v9399_v23, %v13276_v31  ;;  %v9771_v56 = vsel %vm18849_vm9, %v9767_v43, %v13277_v14  ;;  %vm11470_vm9 = vcmask 261127  }
0x137b   : > { %v10521_v16 = vrot.slane %v9771_v56, 3  ;;  %v10567_v37 = vpack.c.bf16 %v10563_v15, %v9403_v26 }
0x137d   : > { %12794 = vmatmul.mubr.msk.bf16.vlgmr.msra.gmra.mxu0 %vm630_vm0, %v10567_v37  ;;  %v10522_v50 = vsel %vm1259_vm1, %v10520_v0, %v10521_v16  ;;  %v10524_v3 = vsel %vm1259_vm1, %v10521_v16, %v10523_v59  ;;  %vm18854_vm1 = vmmov %vm18843_vm2 }
0x137e   : > { %v10568_v57 = vpack.c.bf16 %v10524_v3, %v10522_v50  ;;  %vm18856_vm15 = vmmov %vm18854_vm1 }
0x137f   : > { %vm18857_vm3 = vmmov %vm18854_vm1 }
0x1380   : > { %12797 = vmatprep.mubr.msk.bf16.mxu0 %vm630_vm0, %v10568_v57 }
0x1386   : > { %v13295_v22 = vpop.permute.xlu0 %13294 }
0x1387   : > { %v13297_v24 = vunpack.i.h.bf16 %v13295_v22  ;;  %v13296_v60 = vunpack.i.l.bf16 %v13295_v22 }
0x1388   : > { %v13280_v10 = vpop.permute.xlu1 %13279 }
0x1389   : > { %v13282_v53 = vunpack.i.h.bf16 %v13280_v10  ;;  %v13281_v17 = vunpack.i.l.bf16 %v13280_v10 }
0x138c   : > { %v13285_v8 = vpop.permute.xlu1 %13284 }
0x138d   : > { %v13287_v33 = vunpack.i.h.bf16 %v13285_v8  ;;  %v13286_v7 = vunpack.i.l.bf16 %v13285_v8 }
0x138f   : > { %v10134_v51 = vsel %vm1900_vm8, %v17927_v38, %v13287_v33  ;;  %v10133_v21 = vsel %vm1900_vm8, %v17922_v63, %v13286_v7 }
0x1390   : > { %v13290_v18 = vpop.permute.xlu1 %13289  ;;  %v10137_v20 = vsel %vm4400_vm4, %v10133_v21, %v13281_v17  ;;  %v10138_v39 = vsel %vm4400_vm4, %v10134_v51, %v13282_v53 }
0x1391   : > { %v13292_v36 = vunpack.i.h.bf16 %v13290_v18  ;;  %v13291_v46 = vunpack.i.l.bf16 %v13290_v18 }
0x1393   : > { %v10136_v58 = vsel %vm1900_vm8, %v17925_v11, %v13292_v36  ;;  %v13300_v49 = vpop.permute.xlu0 %13299  ;;  %v10135_v38 = vsel %vm1900_vm8, %v17918_v34, %v13291_v46 }
0x1394   : > { %v10140_v2 = vsel %vm4400_vm4, %v10136_v58, %v13297_v24  ;;  %v13302_v13 = vunpack.i.h.bf16 %v13300_v49  ;;  %v13301_v40 = vunpack.i.l.bf16 %v13300_v49  ;;  %v10139_v5 = vsel %vm4400_vm4, %v10135_v38, %v13296_v60  ;;  %v18858_v38 = vld [vmem:[#allocation26_spill] sm:$0xff]  ;;  %v18859_v60 = vld [vmem:[#allocation21_spill] sm:$0xff] }
0x1396   : > { %v10142_v63 = vsel %vm18843_vm2, %v10138_v39, %v13302_v13  ;;  %v10141_v11 = vsel %vm18851_vm12, %v10137_v20, %v13301_v40 }
0x1397   : > { %v10536_v27 = vrot.slane %v10141_v11, 6  ;;  %v13305_v28 = vpop.permute.xlu0 %13304  ;;  %v10537_v12 = vrot.slane %v10142_v63, 6  ;;  %v18041_v11 = vld [vmem:[%s18425_s9 + $0x4] sm:$0xf] }
0x1398   : > { %v13307_v54 = vunpack.i.h.bf16 %v13305_v28  ;;  %v13306_v44 = vunpack.i.l.bf16 %v13305_v28  ;;  %v18860_v28 = vld [vmem:[#allocation24_spill] sm:$0xff] }
0x1399   : > { %v10564_v0 = vsel %vm1276_vm10, %v10525_v52, %v10536_v27  ;;  %v10538_v61 = vsel %vm1276_vm10, %v10536_v27, %v10537_v12  ;;  %v18045_v27 = vrot.slane %v18041_v11, %v18859_v60 }
0x139a   : > { %v10143_v42 = vsel %vm18852_vm13, %v10139_v5, %v13306_v44  ;;  %v10144_v34 = vsel %vm18853_vm14, %v10140_v2, %v13307_v54  ;;  %v10569_v4 = vpack.c.bf16 %v10564_v0, %v10526_v55  ;;  %v18861_v5 = vld [vmem:[#allocation29_spill] sm:$0xff] }
0x139b   : > { %v10539_v1 = vrot.slane %v10143_v42, 6  ;;  %v10541_v9 = vrot.slane %v10144_v34, 6  ;;  %v18862_v34 = vld [vmem:[#allocation28_spill] sm:$0xff] }
0x139c   : > { %12798 = vmatmul.mubr.msk.bf16.gmra.mxu0 %vm630_vm0, %v10569_v4 }
0x139d   : > { %v10542_v29 = vsel %vm1276_vm10, %v10539_v1, %v10541_v9  ;;  %v10540_v14 = vsel %vm1276_vm10, %v10537_v12, %v10539_v1  ;;  %vm18855_vm10 = vmmov %vm18854_vm1 }
0x139e   : > { %v10570_v31 = vpack.c.bf16 %v10540_v14, %v10538_v61 }
0x13a0   : > { %12801 = vmatprep.mubr.msk.bf16.mxu0 %vm630_vm0, %v10570_v31 }
0x13a8   : > { %v13310_v48 = vpop.permute.xlu1 %13309 }
0x13a9   : > { %v13312_v43 = vunpack.i.h.bf16 %v13310_v48  ;;  %v13311_v26 = vunpack.i.l.bf16 %v13310_v48 }
0x13ab   : > { %v10505_v16 = vsel %vm1900_vm8, %v17941_v6, %v13312_v43  ;;  %v10504_v37 = vsel %vm1900_vm8, %v17936_v32, %v13311_v26  ;;  %v18863_v43 = vld [vmem:[#allocation32_spill] sm:$0xff] }
0x13ac   : > { %v13315_v23 = vpop.permute.xlu1 %13314 }
0x13ad   : > { %v13317_v56 = vunpack.i.h.bf16 %v13315_v23  ;;  %v13316_v15 = vunpack.i.l.bf16 %v13315_v23 }
0x13af   : > { %v10509_v8 = vsel %vm4400_vm4, %v10505_v16, %v13317_v56  ;;  %v10508_v19 = vsel %vm4400_vm4, %v10504_v37, %v13316_v15  ;;  %v18864_v56 = vld [vmem:[#allocation27_spill] sm:$0xff] }
0x13b0   : > { %v13325_v59 = vpop.permute.xlu1 %13324 }
0x13b1   : > { %v13327_v3 = vunpack.i.h.bf16 %v13325_v59  ;;  %v13326_v57 = vunpack.i.l.bf16 %v13325_v59 }
0x13b3   : > { %v10507_v32 = vsel %vm1900_vm8, %v17939_v30, %v13327_v3  ;;  %v10506_v18 = vsel %vm1900_vm8, %v17933_v41, %v13326_v57  ;;  %v18865_v3 = vld [vmem:[#allocation23_spill] sm:$0xff]  ;;  %vm11455_vm8 = vcmask 261125  }
0x13db   : > { %v13335_v62 = vpop.permute.xlu1 %13334 }
0x13dc   : > { %v13337_v45 = vunpack.i.h.bf16 %v13335_v62  ;;  %v13336_v24 = vunpack.i.l.bf16 %v13335_v62 }
0x13dd   : > { %v13320_v50 = vpop.permute.xlu0 %13319 }
0x13de   : > { %v13322_v10 = vunpack.i.h.bf16 %v13320_v50  ;;  %v13321_v47 = vunpack.i.l.bf16 %v13320_v50 }
0x13e0   : > { %v10513_v25 = vsel %vm18854_vm1, %v10509_v8, %v13322_v10  ;;  %v10512_v22 = vsel %vm18855_vm10, %v10508_v19, %v13321_v47  ;;  %v18866_v10 = vld [vmem:[#allocation30_spill] sm:$0xff] }
0x13e1   : > { %v10552_v33 = vrot.slane %v10513_v25, 1  ;;  %v10551_v7 = vrot.slane %v10512_v22, 1  ;;  %v13330_v6 = vpop.permute.xlu0 %13329 }
0x13e2   : > { %v13332_v35 = vunpack.i.h.bf16 %v13330_v6  ;;  %v13331_v36 = vunpack.i.l.bf16 %v13330_v6  ;;  %v18867_v6 = vld [vmem:[#allocation33_spill] sm:$0xff] }
0x13e3   : > { %v10553_v51 = vsel %vm1292_vm6, %v10551_v7, %v10552_v33  ;;  %v10565_v21 = vsel %vm1292_vm6, %v10542_v29, %v10551_v7 }
0x13e4   : > { %v10511_v58 = vsel %vm4400_vm4, %v10507_v32, %v13332_v35  ;;  %v10510_v46 = vsel %vm4400_vm4, %v10506_v18, %v13331_v36  ;;  %v10571_v53 = vpack.c.bf16 %v10553_v51, %v10565_v21  ;;  %v18868_v35 = vld [vmem:[#allocation31_spill] sm:$0xff]  ;;  %vm11460_vm4 = vcmask 254976  }
0x13e5   : > { %v10515_v17 = vsel %vm18856_vm15, %v10511_v58, %v13337_v45  ;;  %v10514_v30 = vsel %vm18857_vm3, %v10510_v46, %v13336_v24  ;;  %v18869_v58 = vld [vmem:[#allocation35_spill] sm:$0xff] }
0x13e6   : > { %v10556_v49 = vrot.slane %v10515_v17, 1  ;;  %v10554_v2 = vrot.slane %v10514_v30, 1  ;;  %12802 = vmatmul.mubr.msk.bf16.gmra.mxu0 %vm630_vm0, %v10571_v53  ;;  %v18870_v53 = vld [vmem:[#allocation34_spill] sm:$0xff] }
0x13e8   : > { %v10555_v41 = vsel %vm1292_vm6, %v10552_v33, %v10554_v2  ;;  %v10557_v13 = vsel %vm1292_vm6, %v10554_v2, %v10556_v49  ;;  %v10573_v52 = vpack.c.bf16 %v10556_v49, %v10556_v49  ;;  %vm11452_vm6 = vcmask 258048  }
0x13e9   : > { %v10572_v40 = vpack.c.bf16 %v10557_v13, %v10555_v41 }
0x13eb   : > { %12805 = vmatprep.mubr.msk.bf16.mxu0 %vm630_vm0, %v10572_v40 }
0x13ee   : > { %12806 = vmatmul.mubr.msk.bf16.gmra.mxu0 %vm630_vm0, %v10573_v52  ;;  %v18871_v52 = vld [vmem:[#allocation36_spill] sm:$0xff] }
0x143d   : > { %v12795_v20 = vpop.f32.mrf.mxu0 }
0x143e   : > { %v10713_v63 = vadd.f32 %v12795_v20, %v18858_v38 }
0x143f   : > { %v10649_v39 = vpop.f32.mrf.mxu0 }
0x1440   : > { %v10711_v54 = vadd.f32 %v10649_v39, %v18860_v28  ;;  %v18052_v0 = vadd.f32 %v18045_v27, %v10713_v63  ;;  %v18872_v39 = vld [vmem:[#allocation37_spill] sm:$0xff] }
0x1441   : > { %v12796_v44 = vpop.f32.mrf.mxu0 }
0x1442   : > { %v18049_v55 = vadd.f32 %v18045_v27, %v10711_v54  ;;  %v10714_v42 = vadd.f32 %v12796_v44, %v18861_v5  ;;  %v10751_v61 = vsel %vm630_vm0, %v18052_v0, 0.0 }
0x1443   : > { %v10652_v12 = vpop.f32.mrf.mxu0 }
0x1444   : > { %v10712_v4 = vadd.f32 %v10652_v12, %v18862_v34  ;;  %v10745_v1 = vsel %vm630_vm0, %v18049_v55, 0.0  ;;  %v18062_v29 = vadd.f32 %v18045_v27, %v10714_v42  ;;  %v18873_v12 = vld [vmem:[#allocation38_spill] sm:$0xff] }
0x1445   : > { %10746 = vadd.xlane.f32.xlu0 %v10745_v1 }
0x1446   : > { %v18059_v9 = vadd.f32 %v18045_v27, %v10712_v4  ;;  %v10754_v31 = vsel %vm630_vm0, %v18062_v29, 0.0 }
0x1448   : > { %v10748_v14 = vsel %vm630_vm0, %v18059_v9, 0.0 }
0x1449   : > { %10752 = vadd.xlane.f32.xlu0 %v10751_v61  ;;  %10749 = vadd.xlane.f32.xlu1 %v10748_v14 }
0x144d   : > { %10755 = vadd.xlane.f32.xlu0 %v10754_v31 }
0x145c   : > { %v12799_v48 = vpop.f32.mrf.mxu0 }
0x145d   : > { %v10717_v26 = vadd.f32 %v12799_v48, %v18863_v43 }
0x145e   : > { %v10665_v23 = vpop.f32.mrf.mxu0 }
0x145f   : > { %v10715_v15 = vadd.f32 %v10665_v23, %v18864_v56  ;;  %v18076_v50 = vadd.f32 %v18045_v27, %v10717_v26 }
0x1460   : > { %v12800_v59 = vpop.f32.mrf.mxu0 }
0x1461   : > { %v18073_v16 = vadd.f32 %v18045_v27, %v10715_v15  ;;  %v10718_v57 = vadd.f32 %v12800_v59, %v18865_v3  ;;  %v10763_v25 = vsel %vm630_vm0, %v18076_v50, 0.0 }
0x1462   : > { %v10668_v37 = vpop.f32.mrf.mxu0 }
0x1463   : > { %v10716_v47 = vadd.f32 %v10668_v37, %v18866_v10  ;;  %v10757_v8 = vsel %vm630_vm0, %v18073_v16, 0.0  ;;  %v18086_v62 = vadd.f32 %v18045_v27, %v10718_v57 }
0x1464   : > { %10758 = vadd.xlane.f32.xlu1 %v10757_v8 }
0x1465   : > { %v18083_v19 = vadd.f32 %v18045_v27, %v10716_v47  ;;  %v10766_v33 = vsel %vm630_vm0, %v18086_v62, 0.0 }
0x1467   : > { %v10760_v22 = vsel %vm630_vm0, %v18083_v19, 0.0 }
0x1468   : > { %10764 = vadd.xlane.f32.xlu1 %v10763_v25  ;;  %10761 = vadd.xlane.f32.xlu0 %v10760_v22 }
0x146c   : > { %10767 = vadd.xlane.f32.xlu0 %v10766_v33 }
0x14a6   : > { %v12803_v7 = vpop.f32.mrf.mxu0 }
0x14a7   : > { %v10721_v32 = vadd.f32 %v12803_v7, %v18867_v6 }
0x14a8   : > { %v10681_v18 = vpop.f32.mrf.mxu0 }
0x14a9   : > { %v10719_v36 = vadd.f32 %v10681_v18, %v18868_v35  ;;  %v18100_v51 = vadd.f32 %v18045_v27, %v10721_v32 }
0x14aa   : > { %v12804_v45 = vpop.f32.mrf.mxu0 }
0x14ab   : > { %v18097_v24 = vadd.f32 %v18045_v27, %v10719_v36  ;;  %v10722_v46 = vadd.f32 %v12804_v45, %v18869_v58  ;;  %v10775_v13 = vsel %vm630_vm0, %v18100_v51, 0.0 }
0x14ac   : > { %v10684_v21 = vpop.f32.mrf.mxu0 }
0x14ad   : > { %v10720_v17 = vadd.f32 %v10684_v21, %v18870_v53  ;;  %v10769_v30 = vsel %vm630_vm0, %v18097_v24, 0.0  ;;  %v18112_v40 = vadd.f32 %v18045_v27, %v10722_v46 }
0x14ae   : > { %10770 = vadd.xlane.f32.xlu1 %v10769_v30  ;;  %v12807_v49 = vpop.f32.mrf.mxu0 }
0x14af   : > { %v18107_v2 = vadd.f32 %v18045_v27, %v10720_v17  ;;  %v10725_v20 = vadd.f32 %v12807_v49, %v18871_v52  ;;  %v10778_v42 = vsel %vm630_vm0, %v18112_v40, 0.0 }
0x14b0   : > { %v10697_v41 = vpop.f32.mrf.mxu0 }
0x14b1   : > { %v10723_v38 = vadd.f32 %v10697_v41, %v18872_v39  ;;  %v10772_v63 = vsel %vm630_vm0, %v18107_v2, 0.0  ;;  %v18122_v44 = vadd.f32 %v18045_v27, %v10725_v20 }
0x14b2   : > { %10776 = vadd.xlane.f32.xlu1 %v10775_v13  ;;  %10773 = vadd.xlane.f32.xlu0 %v10772_v63  ;;  %v12808_v60 = vpop.f32.mrf.mxu0 }
0x14b3   : > { %v18119_v28 = vadd.f32 %v18045_v27, %v10723_v38  ;;  %v10787_v1 = vsel %vm1501_vm7, %v18122_v44, 0.0  ;;  %v13412_v38 = vld [vmem:[%s18423_s7 + $0x18] sm:$0xff]  }
0x14b4   : > { %v10700_v54 = vpop.f32.mrf.mxu0  ;;  %12809 = vmatprep.subr.bf16.mxu1 %v13412_v38 }
0x14b5   : > { %v10724_v5 = vadd.f32 %v10700_v54, %v18873_v12  ;;  %v10781_v34 = vsel %vm630_vm0, %v18119_v28, 0.0  ;;  %12810 = vmatpush3.bf16.msra.mxu1 %v13412_v38  ;;  %v13413_v54 = vld [vmem:[%s18423_s7 + $0x10] sm:$0xff]  }
0x14b6   : > { %10779 = vadd.xlane.f32.xlu0 %v10778_v42  ;;  %10782 = vadd.xlane.f32.xlu1 %v10781_v34 }
0x14b7   : > { %v18130_v4 = vadd.f32 %v18045_v27, %v10724_v5  ;;  %12811 = vmatprep.subr.bf16.mxu1 %v13413_v54 }
0x14b9   : > { %v10784_v61 = vsel %vm630_vm0, %v18130_v4, 0.0  ;;  %12812 = vmatpush3.bf16.msra.mxu1 %v13413_v54 }
0x14ba   : > { %10788 = vadd.xlane.f32.xlu1 %v10787_v1  ;;  %10785 = vadd.xlane.f32.xlu0 %v10784_v61 }
0x14ce   : > { %v10747_v14 = vpop.xlane.xlu0 %10746 }
0x14cf   : > { %v10790_v31 = vmul.f32 0.03125, %v10747_v14 }
0x14d1   : > { %v18137_v48 = vsub.f32 %v18049_v55, %v10790_v31 }
0x14d2   : > { %v10753_v23 = vpop.xlane.xlu0 %10752  ;;  %v10750_v43 = vpop.xlane.xlu1 %10749 }
0x14d3   : > { %v10792_v26 = vmul.f32 0.03125, %v10753_v23  ;;  %v10791_v56 = vmul.f32 0.03125, %v10750_v43  ;;  %v10820_v27 = vmul.f32 %v18137_v48, %v18137_v48 }
0x14d5   : > { %v18142_v15 = vsub.f32 %v18052_v0, %v10792_v26  ;;  %v18145_v59 = vsub.f32 %v18059_v9, %v10791_v56  ;;  %v10835_v37 = vsel %vm630_vm0, %v10820_v27, 0.0 }
0x14d6   : > { %v10756_v3 = vpop.xlane.xlu0 %10755  ;;  %10836 = vadd.xlane.f32.xlu0 %v10835_v37 }
0x14d7   : > { %v10793_v57 = vmul.f32 0.03125, %v10756_v3  ;;  %v10821_v10 = vmul.f32 %v18145_v59, %v18145_v59  ;;  %v10822_v47 = vmul.f32 %v18142_v15, %v18142_v15 }
0x14d9   : > { %v18153_v8 = vsub.f32 %v18062_v29, %v10793_v57  ;;  %v10838_v25 = vsel %vm630_vm0, %v10821_v10, 0.0  ;;  %v10841_v22 = vsel %vm630_vm0, %v10822_v47, 0.0 }
0x14da   : > { %10839 = vadd.xlane.f32.xlu1 %v10838_v25  ;;  %10842 = vadd.xlane.f32.xlu0 %v10841_v22 }
0x14db   : > { %v10823_v33 = vmul.f32 %v18153_v8, %v18153_v8 }
0x14dd   : > { %v10844_v7 = vsel %vm630_vm0, %v10823_v33, 0.0 }
0x14de   : > { %10845 = vadd.xlane.f32.xlu1 %v10844_v7 }
0x14ed   : > { %v10759_v6 = vpop.xlane.xlu1 %10758 }
0x14ee   : > { %v10794_v32 = vmul.f32 0.03125, %v10759_v6 }
0x14f0   : > { %v18161_v18 = vsub.f32 %v18073_v16, %v10794_v32 }
0x14f1   : > { %v10765_v35 = vpop.xlane.xlu1 %10764  ;;  %v10762_v36 = vpop.xlane.xlu0 %10761 }
0x14f2   : > { %v10796_v45 = vmul.f32 0.03125, %v10765_v35  ;;  %v10795_v21 = vmul.f32 0.03125, %v10762_v36  ;;  %v10824_v58 = vmul.f32 %v18161_v18, %v18161_v18 }
0x14f4   : > { %v18166_v46 = vsub.f32 %v18076_v50, %v10796_v45  ;;  %v18169_v53 = vsub.f32 %v18083_v19, %v10795_v21  ;;  %v10847_v17 = vsel %vm630_vm0, %v10824_v58, 0.0 }
0x14f5   : > { %v10768_v30 = vpop.xlane.xlu0 %10767  ;;  %10848 = vadd.xlane.f32.xlu0 %v10847_v17 }
0x14f6   : > { %v10797_v49 = vmul.f32 0.03125, %v10768_v30  ;;  %v10825_v41 = vmul.f32 %v18169_v53, %v18169_v53  ;;  %v10826_v13 = vmul.f32 %v18166_v46, %v18166_v46 }
0x14f8   : > { %v18177_v52 = vsub.f32 %v18086_v62, %v10797_v49  ;;  %v10850_v20 = vsel %vm630_vm0, %v10825_v41, 0.0  ;;  %v10853_v39 = vsel %vm630_vm0, %v10826_v13, 0.0 }
0x14f9   : > { %10851 = vadd.xlane.f32.xlu1 %v10850_v20  ;;  %10854 = vadd.xlane.f32.xlu0 %v10853_v39 }
0x14fa   : > { %v10827_v63 = vmul.f32 %v18177_v52, %v18177_v52 }
0x14fc   : > { %v10856_v60 = vsel %vm630_vm0, %v10827_v63, 0.0 }
0x14fd   : > { %10857 = vadd.xlane.f32.xlu1 %v10856_v60 }
0x1537   : > { %v10771_v12 = vpop.xlane.xlu1 %10770 }
0x1538   : > { %v10798_v5 = vmul.f32 0.03125, %v10771_v12 }
0x153a   : > { %v18191_v42 = vsub.f32 %v18097_v24, %v10798_v5 }
0x153b   : > { %v10777_v34 = vpop.xlane.xlu1 %10776  ;;  %v10774_v1 = vpop.xlane.xlu0 %10773 }
0x153c   : > { %v10800_v61 = vmul.f32 0.03125, %v10777_v34  ;;  %v10799_v14 = vmul.f32 0.03125, %v10774_v1  ;;  %v10828_v31 = vmul.f32 %v18191_v42, %v18191_v42 }
0x153e   : > { %v18196_v23 = vsub.f32 %v18100_v51, %v10800_v61  ;;  %v18199_v43 = vsub.f32 %v18107_v2, %v10799_v14  ;;  %v10859_v26 = vsel %vm630_vm0, %v10828_v31, 0.0 }
0x153f   : > { %v10780_v56 = vpop.xlane.xlu0 %10779  ;;  %v10783_v27 = vpop.xlane.xlu1 %10782  ;;  %10860 = vadd.xlane.f32.xlu0 %v10859_v26 }
0x1540   : > { %v10801_v37 = vmul.f32 0.03125, %v10780_v56  ;;  %v10802_v3 = vmul.f32 0.03125, %v10783_v27  ;;  %v10829_v57 = vmul.f32 %v18199_v43, %v18199_v43  ;;  %v10830_v10 = vmul.f32 %v18196_v23, %v18196_v23 }
0x1542   : > { %v18207_v47 = vsub.f32 %v18112_v40, %v10801_v37  ;;  %v18210_v25 = vsub.f32 %v18119_v28, %v10802_v3  ;;  %v10862_v22 = vsel %vm630_vm0, %v10829_v57, 0.0  ;;  %v10865_v33 = vsel %vm630_vm0, %v10830_v10, 0.0  ;;  %v18874_v57 = vld [vmem:[#allocation40_spill] sm:$0xff] }
0x1543   : > { %10863 = vadd.xlane.f32.xlu1 %v10862_v22  ;;  %v10789_v7 = vpop.xlane.xlu1 %10788  ;;  %10866 = vadd.xlane.f32.xlu0 %v10865_v33  ;;  %v10786_v6 = vpop.xlane.xlu0 %10785 }
0x1544   : > { %v10804_v32 = vmul.f32 0.03125, %v10789_v7  ;;  %v10803_v35 = vmul.f32 0.03125, %v10786_v6  ;;  %v10831_v36 = vmul.f32 %v18207_v47, %v18207_v47  ;;  %v10832_v45 = vmul.f32 %v18210_v25, %v18210_v25 }
0x1546   : > { %v18219_v21 = vsub.f32 %v18122_v44, %v10804_v32  ;;  %v18222_v58 = vsub.f32 %v18130_v4, %v10803_v35  ;;  %v10868_v17 = vsel %vm630_vm0, %v10831_v36, 0.0  ;;  %v10871_v30 = vsel %vm630_vm0, %v10832_v45, 0.0  ;;  %v18875_v35 = vld [vmem:[#allocation42_spill] sm:$0xff] }
0x1547   : > { %10869 = vadd.xlane.f32.xlu1 %v10868_v17  ;;  %10872 = vadd.xlane.f32.xlu0 %v10871_v30 }
0x1548   : > { %v10834_v49 = vmul.f32 %v18219_v21, %v18219_v21  ;;  %v10833_v41 = vmul.f32 %v18222_v58, %v18222_v58 }
0x154a   : > { %v10877_v13 = vsel %vm1501_vm7, %v10834_v49, 0.0  ;;  %v10874_v20 = vsel %vm630_vm0, %v10833_v41, 0.0 }
0x154b   : > { %10878 = vadd.xlane.f32.xlu0 %v10877_v13  ;;  %10875 = vadd.xlane.f32.xlu1 %v10874_v20 }
0x155f   : > { %v10837_v39 = vpop.xlane.xlu0 %10836 }
0x1560   : > { %v10880_v38 = vmul.f32 0.03125, %v10837_v39 }
0x1562   : > { %v10895_v63 = vadd.f32 1e-05, %v10880_v38 }
0x1563   : > { %v10840_v60 = vpop.xlane.xlu1 %10839  ;;  %v10843_v54 = vpop.xlane.xlu0 %10842 }
0x1564   : > { %14066 = vrsqrt.f32 %v10895_v63  ;;  %v10881_v12 = vmul.f32 0.03125, %v10840_v60  ;;  %v10882_v5 = vmul.f32 0.03125, %v10843_v54 }
0x1566   : > { %v10896_v34 = vadd.f32 1e-05, %v10881_v12  ;;  %v10897_v1 = vadd.f32 1e-05, %v10882_v5 }
0x1567   : > { %v10846_v61 = vpop.xlane.xlu1 %10845 }
0x1568   : > { %14068 = vrsqrt.f32 %v10896_v34  ;;  %v10883_v14 = vmul.f32 0.03125, %v10846_v61 }
0x1569   : > { %14070 = vrsqrt.f32 %v10897_v1 }
0x156a   : > { %v10898_v31 = vadd.f32 1e-05, %v10883_v14 }
0x156c   : > { %14072 = vrsqrt.f32 %v10898_v31 }
0x1571   : > { %v14067_v26 = vpop.eup %14066 }
0x1572   : > { %v10925_v56 = vmul.f32 %v14067_v26, %v18137_v48 }
0x1574   : > { %v10940_v10 = vmul.f32 %v10925_v56, %v18874_v57 }
0x1575   : > { %v14069_v27 = vpop.eup %14068 }
0x1576   : > { %v14071_v37 = vpop.eup %14070  ;;  %v10926_v3 = vmul.f32 %v14069_v27, %v18145_v59  ;;  %v10955_v36 = vadd.f32 %v10940_v10, %v18875_v35 }
0x1577   : > { %v10927_v22 = vmul.f32 %v14071_v37, %v18142_v15 }
0x1578   : > { %v10941_v33 = vmul.f32 %v10926_v3, %v18874_v57 }
0x1579   : > { %v14073_v7 = vpop.eup %14072  ;;  %v10942_v6 = vmul.f32 %v10927_v22, %v18874_v57 }
0x157a   : > { %v10928_v32 = vmul.f32 %v14073_v7, %v18153_v8  ;;  %v10956_v45 = vadd.f32 %v10941_v33, %v18875_v35 }
0x157b   : > { %v10957_v30 = vadd.f32 %v10942_v6, %v18875_v35 }
0x157c   : > { %v10943_v48 = vmul.f32 %v10928_v32, %v18874_v57  ;;  %v10970_v17 = vpack.c.bf16 %v10956_v45, %v10955_v36 }
0x157e   : > { %12813 = vmatprep.mubr.msk.bf16.mxu1 %vm630_vm0, %v10970_v17  ;;  %v10849_v59 = vpop.xlane.xlu0 %10848  ;;  %v10958_v15 = vadd.f32 %v10943_v48, %v18875_v35 }
0x157f   : > { %v10884_v49 = vmul.f32 0.03125, %v10849_v59 }
0x1580   : > { %v10971_v41 = vpack.c.bf16 %v10958_v15, %v10957_v30 }
0x1581   : > { %v10899_v13 = vadd.f32 1e-05, %v10884_v49 }
0x1582   : > { %v10852_v20 = vpop.xlane.xlu1 %10851  ;;  %12814 = vmatmul.mubr.msk.bf16.vlgmr.msra.gmra.mxu1 %vm630_vm0, %v10971_v41  ;;  %v10855_v8 = vpop.xlane.xlu0 %10854 }
0x1583   : > { %14074 = vrsqrt.f32 %v10899_v13  ;;  %v10885_v39 = vmul.f32 0.03125, %v10852_v20  ;;  %v10886_v38 = vmul.f32 0.03125, %v10855_v8 }
0x1585   : > { %v10900_v63 = vadd.f32 1e-05, %v10885_v39  ;;  %v10901_v60 = vadd.f32 1e-05, %v10886_v38 }
0x1586   : > { %v10858_v54 = vpop.xlane.xlu1 %10857 }
0x1587   : > { %14076 = vrsqrt.f32 %v10900_v63  ;;  %v10887_v12 = vmul.f32 0.03125, %v10858_v54 }
0x1588   : > { %14078 = vrsqrt.f32 %v10901_v60 }
0x1589   : > { %v10902_v5 = vadd.f32 1e-05, %v10887_v12 }
0x158b   : > { %14080 = vrsqrt.f32 %v10902_v5 }
0x1590   : > { %v14075_v34 = vpop.eup %14074 }
0x1591   : > { %v10929_v1 = vmul.f32 %v14075_v34, %v18161_v18 }
0x1593   : > { %v10944_v26 = vmul.f32 %v10929_v1, %v18874_v57  ;;  %v13414_v1 = vld [vmem:[%s18424_s8 + $0x38] sm:$0xff]  }
0x1594   : > { %v14077_v61 = vpop.eup %14076  ;;  %12829 = vmatprep.subr.bf16.mxu0 %v13414_v1 }
0x1595   : > { %v14079_v14 = vpop.eup %14078  ;;  %v10930_v31 = vmul.f32 %v14077_v61, %v18169_v53  ;;  %v10959_v10 = vadd.f32 %v10944_v26, %v18875_v35  ;;  %12830 = vmatpush3.bf16.msra.mxu0 %v13414_v1 }
0x1596   : > { %v10931_v56 = vmul.f32 %v14079_v14, %v18166_v46 }
0x1597   : > { %v10945_v27 = vmul.f32 %v10930_v31, %v18874_v57  ;;  %v13415_v31 = vld [vmem:[%s18424_s8 + $0x30] sm:$0xff]  }
0x1598   : > { %v14081_v37 = vpop.eup %14080  ;;  %v10946_v33 = vmul.f32 %v10931_v56, %v18874_v57  ;;  %12831 = vmatprep.subr.bf16.mxu0 %v13415_v31 }
0x1599   : > { %v10932_v3 = vmul.f32 %v14081_v37, %v18177_v52  ;;  %v10960_v22 = vadd.f32 %v10945_v27, %v18875_v35  ;;  %12832 = vmatpush3.bf16.msra.mxu0 %v13415_v31 }
0x159a   : > { %v10961_v53 = vadd.f32 %v10946_v33, %v18875_v35 }
0x159b   : > { %v10972_v18 = vpack.c.bf16 %v10960_v22, %v10959_v10  ;;  %v10947_v7 = vmul.f32 %v10932_v3, %v18874_v57 }
0x159d   : > { %12817 = vmatprep.mubr.msk.bf16.mxu1 %vm630_vm0, %v10972_v18  ;;  %v10962_v46 = vadd.f32 %v10947_v7, %v18875_v35 }
0x159f   : > { %v10973_v6 = vpack.c.bf16 %v10962_v46, %v10961_v53 }
0x15a1   : > { %12818 = vmatmul.mubr.msk.bf16.gmra.mxu1 %vm630_vm0, %v10973_v6 }
0x15c8   : > { %v10861_v32 = vpop.xlane.xlu0 %10860 }
0x15c9   : > { %v10888_v52 = vmul.f32 0.03125, %v10861_v32  ;;  %v13417_v32 = vld [vmem:[%s18424_s8 + $0x20] sm:$0xff]  }
0x15cb   : > { %v10903_v36 = vadd.f32 1e-05, %v10888_v52 }
0x15cc   : > { %v10864_v45 = vpop.xlane.xlu1 %10863  ;;  %v10867_v48 = vpop.xlane.xlu0 %10866 }
0x15cd   : > { %14082 = vrsqrt.f32 %v10903_v36  ;;  %v10889_v17 = vmul.f32 0.03125, %v10864_v45  ;;  %v10890_v59 = vmul.f32 0.03125, %v10867_v48 }
0x15cf   : > { %v10904_v30 = vadd.f32 1e-05, %v10889_v17  ;;  %v10905_v15 = vadd.f32 1e-05, %v10890_v59 }
0x15d0   : > { %v10870_v49 = vpop.xlane.xlu1 %10869  ;;  %v10873_v41 = vpop.xlane.xlu0 %10872 }
0x15d1   : > { %14084 = vrsqrt.f32 %v10904_v30  ;;  %v10891_v13 = vmul.f32 0.03125, %v10870_v49  ;;  %v10892_v20 = vmul.f32 0.03125, %v10873_v41 }
0x15d2   : > { %14086 = vrsqrt.f32 %v10905_v15 }
0x15d3   : > { %v10906_v8 = vadd.f32 1e-05, %v10891_v13  ;;  %v10907_v39 = vadd.f32 1e-05, %v10892_v20 }
0x15d4   : > { %v10876_v38 = vpop.xlane.xlu1 %10875  ;;  %v10879_v63 = vpop.xlane.xlu0 %10878 }
0x15d5   : > { %14088 = vrsqrt.f32 %v10906_v8  ;;  %v10893_v60 = vmul.f32 0.03125, %v10876_v38  ;;  %v10894_v54 = vmul.f32 0.03125, %v10879_v63 }
0x15d6   : > { %14090 = vrsqrt.f32 %v10907_v39 }
0x15d7   : > { %v10908_v12 = vadd.f32 1e-05, %v10893_v60  ;;  %v10909_v5 = vadd.f32 1e-05, %v10894_v54 }
0x15d9   : > { %14092 = vrsqrt.f32 %v10908_v12 }
0x15da   : > { %v14083_v34 = vpop.eup %14082  ;;  %14094 = vrsqrt.f32 %v10909_v5 }
0x15db   : > { %v10933_v61 = vmul.f32 %v14083_v34, %v18191_v42  ;;  %v13416_v42 = vld [vmem:[%s18424_s8 + $0x28] sm:$0xff]  }
0x15dc   : > { %12833 = vmatprep.subr.bf16.mxu0 %v13416_v42 }
0x15dd   : > { %v10948_v27 = vmul.f32 %v10933_v61, %v18874_v57  ;;  %12834 = vmatpush3.bf16.msra.mxu0 %v13416_v42 }
0x15de   : > { %v14085_v14 = vpop.eup %14084  ;;  %12835 = vmatprep.subr.bf16.mxu0 %v13417_v32 }
0x15df   : > { %v14087_v26 = vpop.eup %14086  ;;  %v10934_v56 = vmul.f32 %v14085_v14, %v18199_v43  ;;  %v10963_v18 = vadd.f32 %v10948_v27, %v18875_v35 }
0x15e0   : > { %v10935_v37 = vmul.f32 %v14087_v26, %v18196_v23 }
0x15e1   : > { %v10949_v3 = vmul.f32 %v10934_v56, %v18874_v57  ;;  %12836 = vmatpush3.bf16.msra.mxu0 %v13417_v32 }
0x15e2   : > { %v14089_v10 = vpop.eup %14088  ;;  %v10950_v7 = vmul.f32 %v10935_v37, %v18874_v57 }
0x15e3   : > { %v14091_v22 = vpop.eup %14090  ;;  %v10936_v33 = vmul.f32 %v14089_v10, %v18207_v47  ;;  %v10964_v43 = vadd.f32 %v10949_v3, %v18875_v35 }
0x15e4   : > { %v10937_v23 = vmul.f32 %v14091_v22, %v18210_v25  ;;  %v10965_v47 = vadd.f32 %v10950_v7, %v18875_v35 }
0x15e5   : > { %v10974_v53 = vpack.c.bf16 %v10964_v43, %v10963_v18  ;;  %v10951_v46 = vmul.f32 %v10936_v33, %v18874_v57 }
0x15e6   : > { %v14093_v6 = vpop.eup %14092  ;;  %v10952_v25 = vmul.f32 %v10937_v23, %v18874_v57 }
0x15e7   : > { %v14095_v52 = vpop.eup %14094  ;;  %12821 = vmatprep.mubr.msk.bf16.mxu1 %vm630_vm0, %v10974_v53  ;;  %v10966_v36 = vadd.f32 %v10951_v46, %v18875_v35  ;;  %v10938_v45 = vmul.f32 %v14093_v6, %v18222_v58 }
0x15e8   : > { %v10939_v48 = vmul.f32 %v14095_v52, %v18219_v21  ;;  %v10967_v15 = vadd.f32 %v10952_v25, %v18875_v35  ;;  %v18876_v21 = vld [vmem:[#allocation18_spill] sm:$0xff] }
0x15e9   : > { %v10975_v17 = vpack.c.bf16 %v10966_v36, %v10965_v47  ;;  %v10953_v59 = vmul.f32 %v10938_v45, %v18874_v57  ;;  %v18877_v20 = vsub.s32 2, %v18876_v21 }
0x15ea   : > { %v10954_v30 = vmul.f32 %v10939_v48, %v18874_v57 }
0x15eb   : > { %12822 = vmatmul.mubr.msk.bf16.gmra.mxu1 %vm630_vm0, %v10975_v17  ;;  %v10968_v49 = vadd.f32 %v10953_v59, %v18875_v35  ;;  %v18300_v8 = vrot.slane %v18041_v11, %v18877_v20 }
0x15ec   : > { %v10969_v58 = vadd.f32 %v10954_v30, %v18875_v35 }
0x15ed   : > { %v10976_v41 = vpack.c.bf16 %v10968_v49, %v10967_v15 }
0x15ee   : > { %v10977_v13 = vpack.c.bf16 %v10969_v58, %v10969_v58 }
0x15ef   : > { %12825 = vmatprep.mubr.msk.bf16.mxu1 %vm630_vm0, %v10976_v41 }
0x15f3   : > { %12826 = vmatmul.mubr.msk.bf16.gmra.mxu1 %vm630_vm0, %v10977_v13 }
0x1642   : > { %v12815_v57 = vpop.f32.mrf.mxu1 }
0x1643   : > { %v11066_v39 = vadd.f32 %v12815_v57, %v18300_v8 }
0x1644   : > { %v11057_v38 = vpop.f32.mrf.mxu1 }
0x1645   : > { %v11136_v63 = vmul.f32 0.044715, %v11066_v39  ;;  %v11058_v60 = vadd.f32 %v11057_v38, %v18300_v8  ;;  %v11121_v41 = vmul.f32 0.5, %v11066_v39 }
0x1646   : > { %v12816_v54 = vpop.f32.mrf.mxu1 }
0x1647   : > { %v11151_v12 = vmul.f32 %v11136_v63, %v11066_v39  ;;  %v11134_v35 = vmul.f32 0.044715, %v11058_v60  ;;  %v11069_v5 = vadd.f32 %v12816_v54, %v18300_v8  ;;  %v11119_v20 = vmul.f32 0.5, %v11058_v60 }
0x1648   : > { %v11060_v34 = vpop.f32.mrf.mxu1 }
0x1649   : > { %v11166_v1 = vmul.f32 %v11151_v12, %v11066_v39  ;;  %v11149_v61 = vmul.f32 %v11134_v35, %v11058_v60  ;;  %v11137_v14 = vmul.f32 0.044715, %v11069_v5  ;;  %v11061_v31 = vadd.f32 %v11060_v34, %v18300_v8 }
0x164a   : > { %v11122_v45 = vmul.f32 0.5, %v11069_v5 }
0x164b   : > { %v11164_v11 = vmul.f32 %v11149_v61, %v11058_v60  ;;  %v11152_v26 = vmul.f32 %v11137_v14, %v11069_v5  ;;  %v11181_v56 = vadd.f32 %v11166_v1, %v11066_v39  ;;  %v11135_v27 = vmul.f32 0.044715, %v11061_v31 }
0x164c   : > { %v11120_v48 = vmul.f32 0.5, %v11061_v31 }
0x164d   : > { %v11179_v37 = vadd.f32 %v11164_v11, %v11058_v60  ;;  %v11167_v3 = vmul.f32 %v11152_v26, %v11069_v5  ;;  %v11150_v10 = vmul.f32 %v11135_v27, %v11061_v31  ;;  %v11196_v33 = vmul.f32 0.7978846, %v11181_v56 }
0x164f   : > { %v11194_v42 = vmul.f32 0.7978846, %v11179_v37  ;;  %v11182_v22 = vadd.f32 %v11167_v3, %v11069_v5  ;;  %v11165_v18 = vmul.f32 %v11150_v10, %v11061_v31 }
0x1651   : > { %v11197_v43 = vmul.f32 0.7978846, %v11182_v22  ;;  %14096 = vtanh.f32 %v11194_v42  ;;  %v11180_v7 = vadd.f32 %v11165_v18, %v11061_v31 }
0x1653   : > { %14098 = vtanh.f32 %v11197_v43  ;;  %v11195_v23 = vmul.f32 0.7978846, %v11180_v7 }
0x1654   : > { %14100 = vtanh.f32 %v11196_v33 }
0x1655   : > { %14102 = vtanh.f32 %v11195_v23 }
0x165e   : > { %v14097_v53 = vpop.eup %14096 }
0x165f   : > { %v11224_v17 = vadd.f32 1.0, %v14097_v53 }
0x1660   : > { %v14099_v46 = vpop.eup %14098 }
0x1661   : > { %v14101_v6 = vpop.eup %14100  ;;  %v11227_v32 = vadd.f32 1.0, %v14099_v46  ;;  %v12819_v52 = vpop.f32.mrf.mxu1  ;;  %v11239_v35 = vmul.f32 %v11224_v17, %v11119_v20 }
0x1662   : > { %v11082_v47 = vadd.f32 %v12819_v52, %v18300_v8  ;;  %v14103_v36 = vpop.eup %14102  ;;  %v11226_v59 = vadd.f32 1.0, %v14101_v6 }
0x1663   : > { %v11073_v25 = vpop.f32.mrf.mxu1  ;;  %v11225_v49 = vadd.f32 1.0, %v14103_v36  ;;  %v11242_v58 = vmul.f32 %v11227_v32, %v11122_v45 }
0x1664   : > { %v11140_v30 = vmul.f32 0.044715, %v11082_v47  ;;  %v11074_v15 = vadd.f32 %v11073_v25, %v18300_v8  ;;  %v11241_v5 = vmul.f32 %v11226_v59, %v11121_v41  ;;  %v11125_v59 = vmul.f32 0.5, %v11082_v47 }
0x1665   : > { %v12820_v13 = vpop.f32.mrf.mxu1  ;;  %v11240_v54 = vmul.f32 %v11225_v49, %v11120_v48 }
0x1666   : > { %v11155_v57 = vmul.f32 %v11140_v30, %v11082_v47  ;;  %v11138_v38 = vmul.f32 0.044715, %v11074_v15  ;;  %v11085_v63 = vadd.f32 %v12820_v13, %v18300_v8  ;;  %v11255_v11 = vpack.c.bf16 %v11242_v58, %v11241_v5 }
0x1667   : > { %v11076_v12 = vpop.f32.mrf.mxu1  ;;  %v11254_v31 = vpack.c.bf16 %v11240_v54, %v11239_v35  ;;  %v11123_v25 = vmul.f32 0.5, %v11074_v15 }
0x1668   : > { %v11170_v34 = vmul.f32 %v11155_v57, %v11082_v47  ;;  %v11153_v1 = vmul.f32 %v11138_v38, %v11074_v15  ;;  %v11141_v61 = vmul.f32 0.044715, %v11085_v63  ;;  %v11077_v14 = vadd.f32 %v11076_v12, %v18300_v8 }
0x1669   : > { %12837 = vmatprep.mubr.msk.bf16.mxu0 %vm6309_vm5, %v11254_v31  ;;  %v11126_v36 = vmul.f32 0.5, %v11085_v63 }
0x166a   : > { %v11185_v26 = vadd.f32 %v11170_v34, %v11082_v47  ;;  %v11168_v39 = vmul.f32 %v11153_v1, %v11074_v15  ;;  %v11156_v56 = vmul.f32 %v11141_v61, %v11085_v63  ;;  %v11139_v27 = vmul.f32 0.044715, %v11077_v14  ;;  %12838 = vmatmul.mubr.msk.bf16.vlgmr.msra.gmra.mxu0 %vm6309_vm5, %v11255_v11 }
0x166b   : > { %v11124_v48 = vmul.f32 0.5, %v11077_v14 }
0x166c   : > { %v11200_v60 = vmul.f32 0.7978846, %v11185_v26  ;;  %v11183_v37 = vadd.f32 %v11168_v39, %v11074_v15  ;;  %v11171_v3 = vmul.f32 %v11156_v56, %v11085_v63  ;;  %v11154_v10 = vmul.f32 %v11139_v27, %v11077_v14 }
0x166e   : > { %v11198_v42 = vmul.f32 0.7978846, %v11183_v37  ;;  %v11186_v22 = vadd.f32 %v11171_v3, %v11085_v63  ;;  %v11169_v33 = vmul.f32 %v11154_v10, %v11077_v14  ;;  %14104 = vtanh.f32 %v11200_v60 }
0x1670   : > { %v11201_v18 = vmul.f32 0.7978846, %v11186_v22  ;;  %14106 = vtanh.f32 %v11198_v42  ;;  %v11184_v43 = vadd.f32 %v11169_v33, %v11077_v14 }
0x1672   : > { %14108 = vtanh.f32 %v11201_v18  ;;  %v11199_v7 = vmul.f32 0.7978846, %v11184_v43 }
0x1674   : > { %14110 = vtanh.f32 %v11199_v7 }
0x167b   : > { %v14105_v23 = vpop.eup %14104 }
0x167c   : > { %v11230_v45 = vadd.f32 1.0, %v14105_v23 }
0x167d   : > { %v14107_v53 = vpop.eup %14106 }
0x167e   : > { %v11228_v32 = vadd.f32 1.0, %v14107_v53  ;;  %v11245_v58 = vmul.f32 %v11230_v45, %v11125_v59 }
0x167f   : > { %v14109_v46 = vpop.eup %14108 }
0x1680   : > { %v11231_v6 = vadd.f32 1.0, %v14109_v46  ;;  %v11243_v49 = vmul.f32 %v11228_v32, %v11123_v25 }
0x1681   : > { %v14111_v52 = vpop.eup %14110 }
0x1682   : > { %v11229_v17 = vadd.f32 1.0, %v14111_v52  ;;  %v11246_v30 = vmul.f32 %v11231_v6, %v11126_v36 }
0x1684   : > { %v11244_v41 = vmul.f32 %v11229_v17, %v11124_v48  ;;  %v11257_v20 = vpack.c.bf16 %v11246_v30, %v11245_v58 }
0x1686   : > { %v11256_v13 = vpack.c.bf16 %v11244_v41, %v11243_v49 }
0x1688   : > { %12841 = vmatprep.mubr.msk.bf16.mxu0 %vm6309_vm5, %v11256_v13 }
0x1689   : > { %12842 = vmatmul.mubr.msk.bf16.gmra.mxu0 %vm6309_vm5, %v11257_v20 }
0x16ab   : > { %v12823_v57 = vpop.f32.mrf.mxu1 }
0x16ac   : > { %v18315_v38 = vadd.f32 %v12823_v57, %v18300_v8 }
0x16ad   : > { %v11089_v63 = vpop.f32.mrf.mxu1 }
0x16ae   : > { %v11144_v15 = vmul.f32 0.044715, %v18315_v38  ;;  %v11090_v54 = vadd.f32 %v11089_v63, %v18300_v8 }
0x16af   : > { %v12824_v47 = vpop.f32.mrf.mxu1 }
0x16b0   : > { %v11159_v12 = vmul.f32 %v11144_v15, %v18315_v38  ;;  %v11142_v35 = vmul.f32 0.044715, %v11090_v54  ;;  %v11101_v5 = vadd.f32 %v12824_v47, %v18300_v8 }
0x16b1   : > { %v11092_v34 = vpop.f32.mrf.mxu1 }
0x16b2   : > { %v11174_v1 = vmul.f32 %v11159_v12, %v18315_v38  ;;  %v11157_v61 = vmul.f32 %v11142_v35, %v11090_v54  ;;  %v11145_v14 = vmul.f32 0.044715, %v11101_v5  ;;  %v11093_v31 = vadd.f32 %v11092_v34, %v18300_v8 }
0x16b3   : > { %v12827_v11 = vpop.f32.mrf.mxu1 }
0x16b4   : > { %v11189_v26 = vadd.f32 %v11174_v1, %v18315_v38  ;;  %v11172_v39 = vmul.f32 %v11157_v61, %v11090_v54  ;;  %v11160_v56 = vmul.f32 %v11145_v14, %v11101_v5  ;;  %v18325_v27 = vadd.f32 %v12827_v11, %v18300_v8 }
0x16b5   : > { %v11143_v60 = vmul.f32 0.044715, %v11093_v31  ;;  %v11105_v37 = vpop.f32.mrf.mxu1  ;;  %v11130_v61 = vmul.f32 0.5, %v11101_v5  ;;  %v11127_v11 = vmul.f32 0.5, %v11090_v54 }
0x16b6   : > { %v11204_v3 = vmul.f32 0.7978846, %v11189_v26  ;;  %v11187_v10 = vadd.f32 %v11172_v39, %v11090_v54  ;;  %v11175_v42 = vmul.f32 %v11160_v56, %v11101_v5  ;;  %v11148_v33 = vmul.f32 0.044715, %v18325_v27 }
0x16b7   : > { %v11158_v22 = vmul.f32 %v11143_v60, %v11093_v31  ;;  %v11106_v18 = vadd.f32 %v11105_v37, %v18300_v8  ;;  %v12828_v43 = vpop.f32.mrf.mxu1  ;;  %v11128_v26 = vmul.f32 0.5, %v11093_v31  ;;  %v11129_v56 = vmul.f32 0.5, %v18315_v38 }
0x16b8   : > { %v11202_v7 = vmul.f32 0.7978846, %v11187_v10  ;;  %v11190_v23 = vadd.f32 %v11175_v42, %v11101_v5  ;;  %v11163_v46 = vmul.f32 %v11148_v33, %v18325_v27  ;;  %14112 = vtanh.f32 %v11204_v3 }
0x16b9   : > { %v11173_v53 = vmul.f32 %v11158_v22, %v11093_v31  ;;  %v11146_v6 = vmul.f32 0.044715, %v11106_v18  ;;  %v11108_v32 = vpop.f32.mrf.mxu1  ;;  %v11133_v54 = vmul.f32 0.5, %v18325_v27  ;;  %v11131_v5 = vmul.f32 0.5, %v11106_v18 }
0x16ba   : > { %v11205_v52 = vmul.f32 0.7978846, %v11190_v23  ;;  %v11109_v36 = vadd.f32 %v11108_v32, %v18300_v8  ;;  %14114 = vtanh.f32 %v11202_v7  ;;  %v11178_v25 = vmul.f32 %v11163_v46, %v18325_v27 }
0x16bb   : > { %v11188_v45 = vadd.f32 %v11173_v53, %v11093_v31  ;;  %v11161_v48 = vmul.f32 %v11146_v6, %v11106_v18 }
0x16bc   : > { %14116 = vtanh.f32 %v11205_v52  ;;  %v11147_v17 = vmul.f32 0.044715, %v11109_v36  ;;  %v11193_v30 = vadd.f32 %v11178_v25, %v18325_v27  ;;  %v11132_v38 = vmul.f32 0.5, %v11109_v36  ;;  %v14129_v27 = vld [vmem:[%s18425_s9 + $0x4] sm:$0xf] }
0x16bd   : > { %v11203_v59 = vmul.f32 0.7978846, %v11188_v45  ;;  %v11176_v49 = vmul.f32 %v11161_v48, %v11106_v18 }
0x16be   : > { %v11162_v41 = vmul.f32 %v11147_v17, %v11109_v36  ;;  %v11208_v58 = vmul.f32 0.7978846, %v11193_v30 }
0x16bf   : > { %14118 = vtanh.f32 %v11203_v59  ;;  %v11191_v13 = vadd.f32 %v11176_v49, %v11106_v18  ;;  %v18878_v18 = vsub.s32 3, %v18876_v21 }
0x16c0   : > { %v11177_v20 = vmul.f32 %v11162_v41, %v11109_v36  ;;  %14120 = vtanh.f32 %v11208_v58 }
0x16c1   : > { %v11206_v57 = vmul.f32 0.7978846, %v11191_v13 }
0x16c2   : > { %v11192_v63 = vadd.f32 %v11177_v20, %v11109_v36  ;;  %v18346_v36 = vrot.slane %v14129_v27, %v18878_v18 }
0x16c3   : > { %14122 = vtanh.f32 %v11206_v57 }
0x16c4   : > { %v11207_v8 = vmul.f32 0.7978846, %v11192_v63 }
0x16c5   : > { %v14113_v15 = vpop.eup %14112 }
0x16c6   : > { %14124 = vtanh.f32 %v11207_v8  ;;  %v11234_v14 = vadd.f32 1.0, %v14113_v15 }
0x16c7   : > { %v14115_v47 = vpop.eup %14114 }
0x16c8   : > { %v11232_v34 = vadd.f32 1.0, %v14115_v47  ;;  %v11249_v22 = vmul.f32 %v11234_v14, %v11129_v56 }
0x16c9   : > { %v14117_v12 = vpop.eup %14116 }
0x16ca   : > { %v11235_v35 = vadd.f32 1.0, %v14117_v12  ;;  %v11247_v3 = vmul.f32 %v11232_v34, %v11127_v11 }
0x16cc   : > { %v14119_v1 = vpop.eup %14118  ;;  %v11250_v60 = vmul.f32 %v11235_v35, %v11130_v61 }
0x16cd   : > { %v11233_v39 = vadd.f32 1.0, %v14119_v1  ;;  %v14121_v37 = vpop.eup %14120 }
0x16ce   : > { %v11259_v43 = vpack.c.bf16 %v11250_v60, %v11249_v22  ;;  %v11238_v23 = vadd.f32 1.0, %v14121_v37 }
0x16cf   : > { %v11248_v10 = vmul.f32 %v11233_v39, %v11128_v26 }
0x16d0   : > { %v14123_v42 = vpop.eup %14122  ;;  %v11253_v32 = vmul.f32 %v11238_v23, %v11133_v54 }
0x16d1   : > { %v11258_v33 = vpack.c.bf16 %v11248_v10, %v11247_v3  ;;  %v11236_v7 = vadd.f32 1.0, %v14123_v42 }
0x16d2   : > { %v11261_v45 = vpack.c.bf16 %v11253_v32, %v11253_v32 }
0x16d3   : > { %v14125_v53 = vpop.eup %14124  ;;  %12845 = vmatprep.mubr.msk.bf16.mxu0 %vm6309_vm5, %v11258_v33  ;;  %v11251_v46 = vmul.f32 %v11236_v7, %v11131_v5 }
0x16d4   : > { %12846 = vmatmul.mubr.msk.bf16.gmra.mxu0 %vm6309_vm5, %v11259_v43  ;;  %v11237_v31 = vadd.f32 1.0, %v14125_v53 }
0x16d6   : > { %v11252_v6 = vmul.f32 %v11237_v31, %v11132_v38 }
0x16d8   : > { %v11260_v52 = vpack.c.bf16 %v11252_v6, %v11251_v46 }
0x16da   : > { %12849 = vmatprep.mubr.msk.bf16.mxu0 %vm6309_vm5, %v11260_v52 }
0x16dc   : > { %12850 = vmatmul.mubr.msk.bf16.gmra.mxu0 %vm6309_vm5, %v11261_v45  ;;  %vm11463_vm5 = vcmask 261122  }
0x172a   : > { %v12839_v25 = vpop.f32.mrf.mxu0 }
0x172b   : > { %v11417_v48 = vadd.f32 %v12839_v25, %v18052_v0 }
0x172c   : > { %v11353_v17 = vpop.f32.mrf.mxu0 }
0x172d   : > { %v11436_v59 = vadd.f32 %v18346_v36, %v11417_v48  ;;  %v11415_v21 = vadd.f32 %v11353_v17, %v18049_v55 }
0x172e   : > { %v12840_v30 = vpop.f32.mrf.mxu0 }
0x172f   : > { %11451 = vst.msk [vmem:[%s18352_s27 + $0x10] sm:$0xff] %vm630_vm0, %v11436_v59  ;;  %v11434_v0 = vadd.f32 %v18346_v36, %v11415_v21  ;;  %v11418_v49 = vadd.f32 %v12840_v30, %v18062_v29 }
0x1730   : > { %v11356_v41 = vpop.f32.mrf.mxu0 }
0x1731   : > { %11449 = vst.msk [vmem:[%s18352_s27] sm:$0xff] %vm630_vm0, %v11434_v0  ;;  %v11437_v58 = vadd.f32 %v18346_v36, %v11418_v49  ;;  %v11416_v13 = vadd.f32 %v11356_v41, %v18059_v9 }
0x1733   : > { %11453 = vst.msk [vmem:[%s18352_s27 + $0x18] sm:$0x1f] %vm11452_vm6, %v11437_v58  ;;  %v11435_v55 = vadd.f32 %v18346_v36, %v11416_v13 }
0x1734   : > { %11881 = vst.msk [vmem:[%s18352_s27 + $0x1b] sm:$0xe0] %vm11455_vm8, %v11437_v58 }
0x1735   : > { %11450 = vst.msk [vmem:[%s18352_s27 + $0x8] sm:$0xff] %vm630_vm0, %v11435_v55 }
0x1749   : > { %v12843_v20 = vpop.f32.mrf.mxu0 }
0x174a   : > { %v11421_v29 = vadd.f32 %v12843_v20, %v18076_v50 }
0x174b   : > { %v11369_v57 = vpop.f32.mrf.mxu0 }
0x174c   : > { %v11440_v63 = vadd.f32 %v18346_v36, %v11421_v29  ;;  %v11419_v8 = vadd.f32 %v11369_v57, %v18073_v16 }
0x174d   : > { %v12844_v15 = vpop.f32.mrf.mxu0 }
0x174e   : > { %11884 = vst.msk [vmem:[%s18352_s27 + $0x33] sm:$0xff] %vm630_vm0, %v11440_v63  ;;  %v11438_v9 = vadd.f32 %v18346_v36, %v11419_v8  ;;  %v11422_v47 = vadd.f32 %v12844_v15, %v18086_v62 }
0x174f   : > { %v11372_v12 = vpop.f32.mrf.mxu0 }
0x1750   : > { %11882 = vst.msk [vmem:[%s18352_s27 + $0x23] sm:$0xff] %vm630_vm0, %v11438_v9  ;;  %v11441_v50 = vadd.f32 %v18346_v36, %v11422_v47  ;;  %v11420_v35 = vadd.f32 %v11372_v12, %v18083_v19 }
0x1752   : > { %11885 = vst.msk [vmem:[%s18352_s27 + $0x3b] sm:$0x3] %vm11460_vm4, %v11441_v50  ;;  %v11439_v16 = vadd.f32 %v18346_v36, %v11420_v35 }
0x1753   : > { %11886 = vst.msk [vmem:[%s18352_s27 + $0x3e] sm:$0xfc] %vm11463_vm5, %v11441_v50 }
0x1754   : > { %11883 = vst.msk [vmem:[%s18352_s27 + $0x2b] sm:$0xff] %vm630_vm0, %v11439_v16 }
0x1794   : > { %v12847_v34 = vpop.f32.mrf.mxu0 }
0x1795   : > { %v11425_v62 = vadd.f32 %v12847_v34, %v18100_v51 }
0x1796   : > { %v11385_v1 = vpop.f32.mrf.mxu0 }
0x1797   : > { %v11444_v61 = vadd.f32 %v18346_v36, %v11425_v62  ;;  %v11423_v19 = vadd.f32 %v11385_v1, %v18097_v24 }
0x1798   : > { %v12848_v14 = vpop.f32.mrf.mxu0 }
0x1799   : > { %11890 = vst.msk [vmem:[%s18352_s27 + $0x59] sm:$0x80] %vm11470_vm9, %v11444_v61  ;;  %v11442_v11 = vadd.f32 %v18346_v36, %v11423_v19  ;;  %v11426_v26 = vadd.f32 %v12848_v14, %v18112_v40 }
0x179a   : > { %11889 = vst.msk [vmem:[%s18352_s27 + $0x56] sm:$0x7f] %vm11467_vm11, %v11444_v61  ;;  %v11388_v39 = vpop.f32.mrf.mxu0 }
0x179b   : > { %11887 = vst.msk [vmem:[%s18352_s27 + $0x46] sm:$0xff] %vm630_vm0, %v11442_v11  ;;  %v11445_v51 = vadd.f32 %v18346_v36, %v11426_v26  ;;  %v11424_v56 = vadd.f32 %v11388_v39, %v18107_v2 }
0x179c   : > { %v12851_v60 = vpop.f32.mrf.mxu0 }
0x179d   : > { %11891 = vst.msk [vmem:[%s18352_s27 + $0x61] sm:$0xff] %vm630_vm0, %v11445_v51  ;;  %v11443_v24 = vadd.f32 %v18346_v36, %v11424_v56  ;;  %v11429_v37 = vadd.f32 %v12851_v60, %v18122_v44 }
0x179e   : > { %v11401_v3 = vpop.f32.mrf.mxu0 }
0x179f   : > { %11888 = vst.msk [vmem:[%s18352_s27 + $0x4e] sm:$0xff] %vm630_vm0, %v11443_v24  ;;  %v11448_v40 = vadd.f32 %v18346_v36, %v11429_v37  ;;  %v11427_v10 = vadd.f32 %v11401_v3, %v18119_v28 }
0x17a0   : > { %v12852_v42 = vpop.f32.mrf.mxu0 }
0x17a1   : > { %11894 = vst.msk [vmem:[%s18352_s27 + $0x79] sm:$0xf] %vm1501_vm7, %v11448_v40  ;;  %v11446_v2 = vadd.f32 %v18346_v36, %v11427_v10 }
0x17a2   : > { %v11404_v22 = vpop.f32.mrf.mxu0 }
0x17a3   : > { %11892 = vst.msk [vmem:[%s18352_s27 + $0x69] sm:$0xff] %vm630_vm0, %v11446_v2  ;;  %v11428_v33 = vadd.f32 %v11404_v22, %v18130_v4 }
0x17a5   : > { %v11447_v43 = vadd.f32 %v18346_v36, %v11428_v33 }
0x17a7   : > { %11893 = vst.msk [vmem:[%s18352_s27 + $0x71] sm:$0xff] %vm630_vm0, %v11447_v43 }
0x17a8 PF: > { %s20_s13 = sadd.s32 1, %s14136_s13  }
0x17a9   : > { %p17_p5 = scmp.ge.s32.totalorder %s20_s13, 4  }
0x17ab   :  { %19 = sbr.rel (!%p17_p5) target bundleno = 1 (0x1), region = 162 }

</bundles_post_ra>
